<compile_context>
chip_gen: v7x
topology: tpu7x:2x2x1
jax: 0.10.0
libtpu: 0.0.40
codegen_flags: <defaults>
</compile_context>

<pallas_src>
import functools

import jax
import jax.numpy as jnp
from jax.experimental import pallas as pl
from jax.experimental.pallas import tpu as pltpu


def _round_up(x, m):
    return (x + m - 1) // m * m


def _vmem_limit_bytes(tile_bytes):
    """Scoped-VMEM budget derived from the device, sized from actual tiles."""
    try:
        cap = int(pltpu.get_tpu_info().vmem_capacity_bytes)
    except Exception:  # conservative fallback (v7x per-TC capacity)
        cap = 64 * 2 ** 20
    limit = int(min(0.7 * cap, max(tile_bytes + 8 * 2 ** 20, 16 * 2 ** 20)))
    assert tile_bytes <= limit, ("VMEM tile footprint exceeds budget",
                                 tile_bytes, limit)
    return limit


def _mm_bias_kernel(p_ref, w_ref, b_ref, o_ref, *, do_act, alpha):
    # p_ref: (tm, Kp) bf16 patches (N folded into M)
    # w_ref: (Kp, tco) bf16 weight tile     b_ref: (1, tco) f32 bias tile
    # o_ref: (tm, tco) output tile
    y = jnp.dot(p_ref[...], w_ref[...], preferred_element_type=jnp.float32)
    y = y + b_ref[...]
    if do_act:
        y = jnp.where(y >= 0, y, alpha * y)        # LeakyReLU(0.2)
    o_ref[...] = y.astype(o_ref.dtype)


def _mm_norm_act_kernel(p_ref, w_ref, b_ref, o_ref, *, do_act, eps, alpha):
    # p_ref: (1, P, Kp) bf16 patches of ONE sample (P = Ho*Wo)
    # w_ref: (Kp, tco) bf16 weight tile     b_ref: (1, tco) f32 bias tile
    # o_ref: (1, P, tco) output tile
    y = jnp.dot(p_ref[0], w_ref[...], preferred_element_type=jnp.float32)
    y = y + b_ref[...]
    # InstanceNorm2d(affine=False): per-sample, per-channel, biased variance
    # over the full spatial extent. Single-pass stats (E[y^2]-mean^2), all f32
    # (v5e has no bf16 VPU/EUP). Cout tiling is exact: channels independent.
    mean = jnp.mean(y, axis=0, keepdims=True)
    var = jnp.maximum(jnp.mean(y * y, axis=0, keepdims=True) - mean * mean, 0.0)
    y = (y - mean) * jax.lax.rsqrt(var + eps)
    if do_act:
        y = jnp.where(y >= 0, y, alpha * y)        # LeakyReLU(0.2)
    o_ref[0] = y.astype(o_ref.dtype)


def conv_block(x_nhwc, w, b, *, stride, pad, do_norm, do_act,
               out_dtype=jnp.bfloat16, eps=1e-5, alpha=0.2):
    """One discriminator block.

    x_nhwc: (N, H, W, Cin) f32 or bf16
    w:      (Cout, Cin, kh, kw)   (PyTorch conv weight layout)
    b:      (Cout,)
    pad:    ((top, bottom), (left, right)) zero padding of the input
    """
    N, H, W, Cin = x_nhwc.shape
    Cout, _, kh, kw = w.shape
    (pt, pb), (pleft, pright) = pad

    # bf16 operands for the MXU (no-op when the previous layer stored bf16).
    xp = jnp.pad(x_nhwc.astype(jnp.bfloat16),
                 ((0, 0), (pt, pb), (pleft, pright), (0, 0)))
    Hp, Wp = xp.shape[1], xp.shape[2]
    Ho = (Hp - kh) // stride + 1
    Wo = (Wp - kw) // stride + 1
    P = Ho * Wo
    K = kh * kw * Cin

    # im2col glue (K ordering: kh, kw, cin) -- data rearrangement only.
    # TODO(synk): at large images build patches in-kernel from a (1,Hp,Wp,Cin)
    # block (kh*kw accumulating matmuls) so the patch blob never hits HBM.
    cols = []
    for i in range(kh):
        for j in range(kw):
            cols.append(xp[:, i:i + stride * Ho:stride, j:j + stride * Wo:stride, :])
    patches = jnp.concatenate(cols, axis=-1).reshape(N, P, K)

    # Lane-density padding on K; Cout padded only when >1 (the 1-channel head
    # keeps a (Kp, 1) weight instead of wasting 127/128 MXU columns and DMA).
    Kp = _round_up(K, 128)
    Cp = Cout if Cout == 1 else _round_up(Cout, 128)
    if Kp > K:
        patches = jnp.pad(patches, ((0, 0), (0, 0), (0, Kp - K)))

    # (Cout, Cin, kh, kw) -> (kh, kw, Cin, Cout) -> (K, Cout) to match patches.
    wmat = jnp.transpose(w, (2, 3, 1, 0)).reshape(K, Cout).astype(jnp.bfloat16)
    wmat = jnp.pad(wmat, ((0, Kp - K), (0, Cp - Cout)))
    bmat = jnp.pad(b.astype(jnp.float32).reshape(1, Cout), ((0, 0), (0, Cp - Cout)))

    tco = Cp if Cp < 256 else 256
    n_co = Cp // tco
    out_bytes = jnp.dtype(out_dtype).itemsize

    if do_norm:
        # Per-sample block so the InstanceNorm reduction over P is exact.
        # grid = (n_co, N): the weight block index is constant along the inner
        # N axis, so the (Kp, tco) weight tile stays VMEM-resident across
        # samples instead of being re-DMA'd per sample.
        tile_bytes = (2 * P * Kp * 2              # patch tile (bf16, 2-buffered)
                      + Kp * tco * 2              # resident weight tile (bf16)
                      + 2 * P * tco * out_bytes   # output tile (2-buffered)
                      + 2 * tco * 4)              # bias tile
        kernel = functools.partial(_mm_norm_act_kernel, do_act=do_act,
                                   eps=eps, alpha=alpha)
        out = pl.pallas_call(
            kernel,
            out_shape=jax.ShapeDtypeStruct((N, P, Cp), out_dtype),
            grid_spec=pltpu.PrefetchScalarGridSpec(
                num_scalar_prefetch=0,
                grid=(n_co, N),
                in_specs=[
                    pl.BlockSpec((1, P, Kp), lambda co, n: (n, 0, 0)),
                    pl.BlockSpec((Kp, tco), lambda co, n: (0, co)),
                    pl.BlockSpec((1, tco), lambda co, n: (0, co)),
                ],
                out_specs=pl.BlockSpec((1, P, tco), lambda co, n: (n, 0, co)),
            ),
            compiler_params=pltpu.CompilerParams(
                dimension_semantics=("parallel", "parallel"),
                vmem_limit_bytes=_vmem_limit_bytes(tile_bytes),
                # Let XLA fuse the im2col producer into the patch operand.
                allow_input_fusion=[True, False, False],
            ),
        )(patches, wmat, bmat)
        out = out[:, :, :Cout].reshape(N, P, Cout)
    else:
        # No per-sample statistic: fold N into the matmul M dimension for MXU
        # row occupancy + pipeline depth, then tile M. Weight stays resident
        # across the inner M axis.
        Mtot = N * P
        pm = patches.reshape(Mtot, Kp)
        tm = 256 if Mtot >= 256 else _round_up(Mtot, 8)
        Mp = _round_up(Mtot, tm)
        if Mp > Mtot:
            pm = jnp.pad(pm, ((0, Mp - Mtot), (0, 0)))
        n_m = Mp // tm
        tile_bytes = (2 * tm * Kp * 2
                      + Kp * tco * 2
                      + 2 * tm * tco * out_bytes
                      + 2 * tco * 4)
        kernel = functools.partial(_mm_bias_kernel, do_act=do_act, alpha=alpha)
        out = pl.pallas_call(
            kernel,
            out_shape=jax.ShapeDtypeStruct((Mp, Cp), out_dtype),
            grid_spec=pltpu.PrefetchScalarGridSpec(
                num_scalar_prefetch=0,
                grid=(n_co, n_m),
                in_specs=[
                    pl.BlockSpec((tm, Kp), lambda co, m: (m, 0)),
                    pl.BlockSpec((Kp, tco), lambda co, m: (0, co)),
                    pl.BlockSpec((1, tco), lambda co, m: (0, co)),
                ],
                out_specs=pl.BlockSpec((tm, tco), lambda co, m: (m, co)),
            ),
            compiler_params=pltpu.CompilerParams(
                dimension_semantics=("parallel", "parallel"),
                vmem_limit_bytes=_vmem_limit_bytes(tile_bytes),
                allow_input_fusion=[True, False, False],
            ),
        )(pm, wmat, bmat)
        out = out[:Mtot, :Cout].reshape(N, P, Cout)

    return out.reshape(N, Ho, Wo, Cout)


def init_params(key, channels):
    """Deterministic synthetic parameters (same shapes as the PyTorch module)."""
    specs = [(channels, 64), (64, 128), (128, 256), (256, 512), (512, 1)]
    params = []
    for cin, cout in specs:
        key, k1, k2 = jax.random.split(key, 3)
        w = jax.random.normal(k1, (cout, cin, 4, 4), jnp.float32) * 0.05
        bias = jax.random.normal(k2, (cout,), jnp.float32) * 0.01
        params.append((w, bias))
    return params


def image_discriminator(img_nchw, params):
    """Forward pass. img_nchw: (N, C, H, W) -> (N, 1, H // 16, W // 16)."""
    x = jnp.transpose(img_nchw, (0, 2, 3, 1)).astype(jnp.float32)  # NCHW -> NHWC

    # Block 1: Conv(C->64, k4 s2 p1) + LeakyReLU          (normalize=False)
    x = conv_block(x, *params[0], stride=2, pad=((1, 1), (1, 1)),
                   do_norm=False, do_act=True, out_dtype=jnp.bfloat16)
    # Blocks 2-4: Conv + InstanceNorm + LeakyReLU (bf16 inter-layer storage)
    x = conv_block(x, *params[1], stride=2, pad=((1, 1), (1, 1)),
                   do_norm=True, do_act=True, out_dtype=jnp.bfloat16)
    x = conv_block(x, *params[2], stride=2, pad=((1, 1), (1, 1)),
                   do_norm=True, do_act=True, out_dtype=jnp.bfloat16)
    x = conv_block(x, *params[3], stride=2, pad=((1, 1), (1, 1)),
                   do_norm=True, do_act=True, out_dtype=jnp.bfloat16)
    # ZeroPad2d((1, 0, 1, 0)) then Conv(512->1, k4 s1 p1): folded asymmetric
    # pad (top/left 1+1=2, bottom/right 0+1=1). Final output kept in f32.
    x = conv_block(x, *params[4], stride=1, pad=((2, 1), (2, 1)),
                   do_norm=False, do_act=False, out_dtype=jnp.float32)

    return jnp.transpose(x, (0, 3, 1, 2))  # NHWC -> NCHW


def reference_discriminator(img_nchw, params, eps=1e-5, alpha=0.2):
    """Pure-JAX reference mirroring the kernel's bf16-operand / f32-acc recipe."""
    def block(x, w, b, *, stride, pad, do_norm, do_act):
        y = jax.lax.conv_general_dilated(
            x.astype(jnp.bfloat16),
            jnp.transpose(w, (2, 3, 1, 0)).astype(jnp.bfloat16),   # OIHW -> HWIO
            window_strides=(stride, stride),
            padding=pad,
            dimension_numbers=("NHWC", "HWIO", "NHWC"),
            preferred_element_type=jnp.float32,
        ) + b.astype(jnp.float32)
        if do_norm:
            mean = jnp.mean(y, axis=(1, 2), keepdims=True)
            var = jnp.mean(jnp.square(y - mean), axis=(1, 2), keepdims=True)
            y = (y - mean) * jax.lax.rsqrt(var + eps)
        if do_act:
            y = jnp.where(y >= 0, y, alpha * y)
        return y

    x = jnp.transpose(img_nchw, (0, 2, 3, 1)).astype(jnp.float32)
    x = block(x, *params[0], stride=2, pad=((1, 1), (1, 1)), do_norm=False, do_act=True)
    x = x.astype(jnp.bfloat16).astype(jnp.float32)   # mirror bf16 inter-layer storage
    x = block(x, *params[1], stride=2, pad=((1, 1), (1, 1)), do_norm=True, do_act=True)
    x = x.astype(jnp.bfloat16).astype(jnp.float32)
    x = block(x, *params[2], stride=2, pad=((1, 1), (1, 1)), do_norm=True, do_act=True)
    x = x.astype(jnp.bfloat16).astype(jnp.float32)
    x = block(x, *params[3], stride=2, pad=((1, 1), (1, 1)), do_norm=True, do_act=True)
    x = x.astype(jnp.bfloat16).astype(jnp.float32)
    x = block(x, *params[4], stride=1, pad=((2, 1), (2, 1)), do_norm=False, do_act=False)
    return jnp.transpose(x, (0, 3, 1, 2))


if __name__ == "__main__":
    key = jax.random.PRNGKey(0)
    k_img, k_par = jax.random.split(key)

    N, C, H, W = 2, 4, 32, 32
    img = jax.random.normal(k_img, (N, C, H, W), jnp.float32)
    params = init_params(k_par, C)

    out = jax.jit(image_discriminator)(img, params)
    out = jax.block_until_ready(out)

    assert out.shape == (N, 1, H // 2 ** 4, W // 2 ** 4), out.shape
    assert bool(jnp.all(jnp.isfinite(out)))

    # Tolerance check against an independent pure-JAX conv path (same bf16
    # operand / f32 accumulation recipe, so only accumulation-order differs).
    ref = jax.block_until_ready(jax.jit(reference_discriminator)(img, params))
    assert bool(jnp.allclose(out, ref, rtol=5e-2, atol=5e-2)), \
        float(jnp.max(jnp.abs(out - ref)))

    print("KERNEL_OK")
</pallas_src>

<mosaic_0001>
module attributes {stable_mosaic.version = 11 : i64} {
  func.func @_mm_bias_kernel(%arg0: i32, %arg1: i32, %arg2: memref<256x128xbf16, #tpu.memory_space<vmem>>, %arg3: memref<128x128xbf16, #tpu.memory_space<vmem>>, %arg4: memref<1x128xf32, #tpu.memory_space<vmem>>, %arg5: memref<256x128xbf16, #tpu.memory_space<vmem>>) attributes {dimension_semantics = [#tpu.dimension_semantics<parallel>, #tpu.dimension_semantics<parallel>], iteration_bounds = array<i64: 1, 2>, scalar_prefetch = 0 : i64, scratch_operands = 0 : i64, tpu.core_type = #tpu.core_type<tc>, window_params = [{transform_indices = @transform_0, window_bounds = array<i64: 256, 128>}, {transform_indices = @transform_1, window_bounds = array<i64: 128, 128>}, {transform_indices = @transform_2, window_bounds = array<i64: 1, 128>}, {transform_indices = @transform_3, window_bounds = array<i64: 256, 128>}]} {
    %c0 = arith.constant 0 : index
    %c0_0 = arith.constant 0 : index
    %0 = vector.load %arg2[%c0, %c0_0] : memref<256x128xbf16, #tpu.memory_space<vmem>>, vector<256x128xbf16>
    %c0_1 = arith.constant 0 : index
    %c0_2 = arith.constant 0 : index
    %1 = vector.load %arg3[%c0_1, %c0_2] : memref<128x128xbf16, #tpu.memory_space<vmem>>, vector<128x128xbf16>
    %cst = arith.constant dense<0.000000e+00> : vector<256x128xf32>
    %2 = tpu.matmul %0, %1, %cst {dimension_numbers = #tpu.dot_dimension_numbers<[1], [0], [0], [1], [0, 0, 1, 1], [], []>} : vector<256x128xbf16>, vector<128x128xbf16>, vector<256x128xf32> -> vector<256x128xf32>
    %c0_3 = arith.constant 0 : index
    %c0_4 = arith.constant 0 : index
    %3 = vector.load %arg4[%c0_3, %c0_4] : memref<1x128xf32, #tpu.memory_space<vmem>>, vector<1x128xf32>
    %4 = vector.broadcast %3 : vector<1x128xf32> to vector<256x128xf32>
    %5 = arith.addf %2, %4 : vector<256x128xf32>
    %cst_5 = arith.constant 0.000000e+00 : f32
    %6 = vector.broadcast %cst_5 : f32 to vector<256x128xf32>
    %7 = arith.cmpf oge, %5, %6 : vector<256x128xf32>
    %cst_6 = arith.constant 2.000000e-01 : f32
    %8 = vector.broadcast %cst_6 : f32 to vector<256x128xf32>
    %9 = arith.mulf %8, %5 : vector<256x128xf32>
    %10 = arith.select %7, %5, %9 : vector<256x128xi1>, vector<256x128xf32>
    %11 = arith.truncf %10 : vector<256x128xf32> to vector<256x128xbf16>
    %c0_7 = arith.constant 0 : index
    %c0_8 = arith.constant 0 : index
    %12 = vector.load %arg5[%c0_7, %c0_8] : memref<256x128xbf16, #tpu.memory_space<vmem>>, vector<256x128xbf16>
    tpu.vector_store %arg5[%c0_7, %c0_8], %11 {strides = array<i32>} : memref<256x128xbf16, #tpu.memory_space<vmem>>, vector<256x128xbf16>,
    return
  }
  func.func @transform_0(%arg0: i32, %arg1: i32) -> (i32, i32) {
    %c0_i32 = arith.constant 0 : i32
    %c0_i32_0 = arith.constant 0 : i32
    return %arg1, %c0_i32 : i32, i32
  }
  func.func @transform_1(%arg0: i32, %arg1: i32) -> (i32, i32) {
    %c0_i32 = arith.constant 0 : i32
    %c0_i32_0 = arith.constant 0 : i32
    return %c0_i32, %arg0 : i32, i32
  }
  func.func @transform_2(%arg0: i32, %arg1: i32) -> (i32, i32) {
    %c0_i32 = arith.constant 0 : i32
    %c0_i32_0 = arith.constant 0 : i32
    return %c0_i32, %arg0 : i32, i32
  }
  func.func @transform_3(%arg0: i32, %arg1: i32) -> (i32, i32) {
    %c0_i32 = arith.constant 0 : i32
    return %arg1, %arg0 : i32, i32
  }
}

module attributes {stable_mosaic.version = 11 : i64} {
  func.func @_mm_norm_act_kernel(%arg0: i32, %arg1: i32, %arg2: memref<1x64x1024xbf16, #tpu.memory_space<vmem>>, %arg3: memref<1024x128xbf16, #tpu.memory_space<vmem>>, %arg4: memref<1x128xf32, #tpu.memory_space<vmem>>, %arg5: memref<1x64x128xbf16, #tpu.memory_space<vmem>>) attributes {dimension_semantics = [#tpu.dimension_semantics<parallel>, #tpu.dimension_semantics<parallel>], iteration_bounds = array<i64: 1, 2>, scalar_prefetch = 0 : i64, scratch_operands = 0 : i64, tpu.core_type = #tpu.core_type<tc>, window_params = [{transform_indices = @transform_0, window_bounds = array<i64: 1, 64, 1024>}, {transform_indices = @transform_1, window_bounds = array<i64: 1024, 128>}, {transform_indices = @transform_2, window_bounds = array<i64: 1, 128>}, {transform_indices = @transform_3, window_bounds = array<i64: 1, 64, 128>}]} {
    %c0 = arith.constant 0 : index
    %c0_0 = arith.constant 0 : index
    %c0_1 = arith.constant 0 : index
    %0 = vector.load %arg2[%c0, %c0_0, %c0_1] : memref<1x64x1024xbf16, #tpu.memory_space<vmem>>, vector<1x64x1024xbf16>
    %1 = vector.shape_cast %0 : vector<1x64x1024xbf16> to vector<64x1024xbf16>
    %c0_2 = arith.constant 0 : index
    %c0_3 = arith.constant 0 : index
    %2 = vector.load %arg3[%c0_2, %c0_3] : memref<1024x128xbf16, #tpu.memory_space<vmem>>, vector<1024x128xbf16>
    %cst = arith.constant dense<0.000000e+00> : vector<64x128xf32>
    %3 = tpu.matmul %1, %2, %cst {dimension_numbers = #tpu.dot_dimension_numbers<[1], [0], [0], [1], [0, 0, 1, 1], [], []>} : vector<64x1024xbf16>, vector<1024x128xbf16>, vector<64x128xf32> -> vector<64x128xf32>
    %c0_4 = arith.constant 0 : index
    %c0_5 = arith.constant 0 : index
    %4 = vector.load %arg4[%c0_4, %c0_5] : memref<1x128xf32, #tpu.memory_space<vmem>>, vector<1x128xf32>
    %5 = vector.broadcast %4 : vector<1x128xf32> to vector<64x128xf32>
    %6 = arith.addf %3, %5 : vector<64x128xf32>
    %cst_6 = arith.constant dense<0.000000e+00> : vector<128xf32>
    %7 = vector.multi_reduction <add>, %6, %cst_6 [0] : vector<64x128xf32> to vector<128xf32>
    %8 = vector.shape_cast %7 : vector<128xf32> to vector<1x128xf32>
    %cst_7 = arith.constant 6.400000e+01 : f32
    %9 = vector.broadcast %cst_7 : f32 to vector<1x128xf32>
    %10 = arith.divf %8, %9 : vector<1x128xf32>
    %11 = arith.mulf %6, %6 : vector<64x128xf32>
    %cst_8 = arith.constant dense<0.000000e+00> : vector<128xf32>
    %12 = vector.multi_reduction <add>, %11, %cst_8 [0] : vector<64x128xf32> to vector<128xf32>
    %13 = vector.shape_cast %12 : vector<128xf32> to vector<1x128xf32>
    %cst_9 = arith.constant 6.400000e+01 : f32
    %14 = vector.broadcast %cst_9 : f32 to vector<1x128xf32>
    %15 = arith.divf %13, %14 : vector<1x128xf32>
    %16 = arith.mulf %10, %10 : vector<1x128xf32>
    %17 = arith.subf %15, %16 : vector<1x128xf32>
    %cst_10 = arith.constant 0.000000e+00 : f32
    %18 = vector.broadcast %cst_10 : f32 to vector<1x128xf32>
    %19 = arith.maximumf %17, %18 : vector<1x128xf32>
    %20 = vector.broadcast %10 : vector<1x128xf32> to vector<64x128xf32>
    %21 = arith.subf %6, %20 : vector<64x128xf32>
    %cst_11 = arith.constant 9.99999974E-6 : f32
    %22 = vector.broadcast %cst_11 : f32 to vector<1x128xf32>
    %23 = arith.addf %19, %22 : vector<1x128xf32>
    %24 = math.rsqrt %23 : vector<1x128xf32>
    %25 = vector.broadcast %24 : vector<1x128xf32> to vector<64x128xf32>
    %26 = arith.mulf %21, %25 : vector<64x128xf32>
    %cst_12 = arith.constant 0.000000e+00 : f32
    %27 = vector.broadcast %cst_12 : f32 to vector<64x128xf32>
    %28 = arith.cmpf oge, %26, %27 : vector<64x128xf32>
    %cst_13 = arith.constant 2.000000e-01 : f32
    %29 = vector.broadcast %cst_13 : f32 to vector<64x128xf32>
    %30 = arith.mulf %29, %26 : vector<64x128xf32>
    %31 = arith.select %28, %26, %30 : vector<64x128xi1>, vector<64x128xf32>
    %32 = arith.truncf %31 : vector<64x128xf32> to vector<64x128xbf16>
    %c0_14 = arith.constant 0 : index
    %c0_15 = arith.constant 0 : index
    %c0_16 = arith.constant 0 : index
    %33 = vector.load %arg5[%c0_14, %c0_15, %c0_16] : memref<1x64x128xbf16, #tpu.memory_space<vmem>>, vector<1x64x128xbf16>
    %34 = vector.shape_cast %33 : vector<1x64x128xbf16> to vector<64x128xbf16>
    %35 = vector.shape_cast %32 : vector<64x128xbf16> to vector<1x64x128xbf16>
    tpu.vector_store %arg5[%c0_14, %c0_15, %c0_16], %35 {strides = array<i32>} : memref<1x64x128xbf16, #tpu.memory_space<vmem>>, vector<1x64x128xbf16>,
    return
  }
  func.func @transform_0(%arg0: i32, %arg1: i32) -> (i32, i32, i32) {
    %c0_i32 = arith.constant 0 : i32
    %c0_i32_0 = arith.constant 0 : i32
    %c0_i32_1 = arith.constant 0 : i32
    return %arg1, %c0_i32, %c0_i32_0 : i32, i32, i32
  }
  func.func @transform_1(%arg0: i32, %arg1: i32) -> (i32, i32) {
    %c0_i32 = arith.constant 0 : i32
    %c0_i32_0 = arith.constant 0 : i32
    return %c0_i32, %arg0 : i32, i32
  }
  func.func @transform_2(%arg0: i32, %arg1: i32) -> (i32, i32) {
    %c0_i32 = arith.constant 0 : i32
    %c0_i32_0 = arith.constant 0 : i32
    return %c0_i32, %arg0 : i32, i32
  }
  func.func @transform_3(%arg0: i32, %arg1: i32) -> (i32, i32, i32) {
    %c0_i32 = arith.constant 0 : i32
    %c0_i32_0 = arith.constant 0 : i32
    return %arg1, %c0_i32, %arg0 : i32, i32, i32
  }
}

module attributes {stable_mosaic.version = 11 : i64} {
  func.func @_mm_norm_act_kernel(%arg0: i32, %arg1: i32, %arg2: memref<1x16x2048xbf16, #tpu.memory_space<vmem>>, %arg3: memref<2048x256xbf16, #tpu.memory_space<vmem>>, %arg4: memref<1x256xf32, #tpu.memory_space<vmem>>, %arg5: memref<1x16x256xbf16, #tpu.memory_space<vmem>>) attributes {dimension_semantics = [#tpu.dimension_semantics<parallel>, #tpu.dimension_semantics<parallel>], iteration_bounds = array<i64: 1, 2>, scalar_prefetch = 0 : i64, scratch_operands = 0 : i64, tpu.core_type = #tpu.core_type<tc>, window_params = [{transform_indices = @transform_0, window_bounds = array<i64: 1, 16, 2048>}, {transform_indices = @transform_1, window_bounds = array<i64: 2048, 256>}, {transform_indices = @transform_2, window_bounds = array<i64: 1, 256>}, {transform_indices = @transform_3, window_bounds = array<i64: 1, 16, 256>}]} {
    %c0 = arith.constant 0 : index
    %c0_0 = arith.constant 0 : index
    %c0_1 = arith.constant 0 : index
    %0 = vector.load %arg2[%c0, %c0_0, %c0_1] : memref<1x16x2048xbf16, #tpu.memory_space<vmem>>, vector<1x16x2048xbf16>
    %1 = vector.shape_cast %0 : vector<1x16x2048xbf16> to vector<16x2048xbf16>
    %c0_2 = arith.constant 0 : index
    %c0_3 = arith.constant 0 : index
    %2 = vector.load %arg3[%c0_2, %c0_3] : memref<2048x256xbf16, #tpu.memory_space<vmem>>, vector<2048x256xbf16>
    %cst = arith.constant dense<0.000000e+00> : vector<16x256xf32>
    %3 = tpu.matmul %1, %2, %cst {dimension_numbers = #tpu.dot_dimension_numbers<[1], [0], [0], [1], [0, 0, 1, 1], [], []>} : vector<16x2048xbf16>, vector<2048x256xbf16>, vector<16x256xf32> -> vector<16x256xf32>
    %c0_4 = arith.constant 0 : index
    %c0_5 = arith.constant 0 : index
    %4 = vector.load %arg4[%c0_4, %c0_5] : memref<1x256xf32, #tpu.memory_space<vmem>>, vector<1x256xf32>
    %5 = vector.broadcast %4 : vector<1x256xf32> to vector<16x256xf32>
    %6 = arith.addf %3, %5 : vector<16x256xf32>
    %cst_6 = arith.constant dense<0.000000e+00> : vector<256xf32>
    %7 = vector.multi_reduction <add>, %6, %cst_6 [0] : vector<16x256xf32> to vector<256xf32>
    %8 = vector.shape_cast %7 : vector<256xf32> to vector<1x256xf32>
    %cst_7 = arith.constant 1.600000e+01 : f32
    %9 = vector.broadcast %cst_7 : f32 to vector<1x256xf32>
    %10 = arith.divf %8, %9 : vector<1x256xf32>
    %11 = arith.mulf %6, %6 : vector<16x256xf32>
    %cst_8 = arith.constant dense<0.000000e+00> : vector<256xf32>
    %12 = vector.multi_reduction <add>, %11, %cst_8 [0] : vector<16x256xf32> to vector<256xf32>
    %13 = vector.shape_cast %12 : vector<256xf32> to vector<1x256xf32>
    %cst_9 = arith.constant 1.600000e+01 : f32
    %14 = vector.broadcast %cst_9 : f32 to vector<1x256xf32>
    %15 = arith.divf %13, %14 : vector<1x256xf32>
    %16 = arith.mulf %10, %10 : vector<1x256xf32>
    %17 = arith.subf %15, %16 : vector<1x256xf32>
    %cst_10 = arith.constant 0.000000e+00 : f32
    %18 = vector.broadcast %cst_10 : f32 to vector<1x256xf32>
    %19 = arith.maximumf %17, %18 : vector<1x256xf32>
    %20 = vector.broadcast %10 : vector<1x256xf32> to vector<16x256xf32>
    %21 = arith.subf %6, %20 : vector<16x256xf32>
    %cst_11 = arith.constant 9.99999974E-6 : f32
    %22 = vector.broadcast %cst_11 : f32 to vector<1x256xf32>
    %23 = arith.addf %19, %22 : vector<1x256xf32>
    %24 = math.rsqrt %23 : vector<1x256xf32>
    %25 = vector.broadcast %24 : vector<1x256xf32> to vector<16x256xf32>
    %26 = arith.mulf %21, %25 : vector<16x256xf32>
    %cst_12 = arith.constant 0.000000e+00 : f32
    %27 = vector.broadcast %cst_12 : f32 to vector<16x256xf32>
    %28 = arith.cmpf oge, %26, %27 : vector<16x256xf32>
    %cst_13 = arith.constant 2.000000e-01 : f32
    %29 = vector.broadcast %cst_13 : f32 to vector<16x256xf32>
    %30 = arith.mulf %29, %26 : vector<16x256xf32>
    %31 = arith.select %28, %26, %30 : vector<16x256xi1>, vector<16x256xf32>
    %32 = arith.truncf %31 : vector<16x256xf32> to vector<16x256xbf16>
    %c0_14 = arith.constant 0 : index
    %c0_15 = arith.constant 0 : index
    %c0_16 = arith.constant 0 : index
    %33 = vector.load %arg5[%c0_14, %c0_15, %c0_16] : memref<1x16x256xbf16, #tpu.memory_space<vmem>>, vector<1x16x256xbf16>
    %34 = vector.shape_cast %33 : vector<1x16x256xbf16> to vector<16x256xbf16>
    %35 = vector.shape_cast %32 : vector<16x256xbf16> to vector<1x16x256xbf16>
    tpu.vector_store %arg5[%c0_14, %c0_15, %c0_16], %35 {strides = array<i32>} : memref<1x16x256xbf16, #tpu.memory_space<vmem>>, vector<1x16x256xbf16>,
    return
  }
  func.func @transform_0(%arg0: i32, %arg1: i32) -> (i32, i32, i32) {
    %c0_i32 = arith.constant 0 : i32
    %c0_i32_0 = arith.constant 0 : i32
    %c0_i32_1 = arith.constant 0 : i32
    return %arg1, %c0_i32, %c0_i32_0 : i32, i32, i32
  }
  func.func @transform_1(%arg0: i32, %arg1: i32) -> (i32, i32) {
    %c0_i32 = arith.constant 0 : i32
    %c0_i32_0 = arith.constant 0 : i32
    return %c0_i32, %arg0 : i32, i32
  }
  func.func @transform_2(%arg0: i32, %arg1: i32) -> (i32, i32) {
    %c0_i32 = arith.constant 0 : i32
    %c0_i32_0 = arith.constant 0 : i32
    return %c0_i32, %arg0 : i32, i32
  }
  func.func @transform_3(%arg0: i32, %arg1: i32) -> (i32, i32, i32) {
    %c0_i32 = arith.constant 0 : i32
    %c0_i32_0 = arith.constant 0 : i32
    return %arg1, %c0_i32, %arg0 : i32, i32, i32
  }
}

module attributes {stable_mosaic.version = 11 : i64} {
  func.func @_mm_norm_act_kernel(%arg0: i32, %arg1: i32, %arg2: memref<1x4x4096xbf16, #tpu.memory_space<vmem>>, %arg3: memref<4096x256xbf16, #tpu.memory_space<vmem>>, %arg4: memref<1x256xf32, #tpu.memory_space<vmem>>, %arg5: memref<1x4x256xbf16, #tpu.memory_space<vmem>>) attributes {dimension_semantics = [#tpu.dimension_semantics<parallel>, #tpu.dimension_semantics<parallel>], iteration_bounds = array<i64: 2, 2>, scalar_prefetch = 0 : i64, scratch_operands = 0 : i64, tpu.core_type = #tpu.core_type<tc>, window_params = [{transform_indices = @transform_0, window_bounds = array<i64: 1, 4, 4096>}, {transform_indices = @transform_1, window_bounds = array<i64: 4096, 256>}, {transform_indices = @transform_2, window_bounds = array<i64: 1, 256>}, {transform_indices = @transform_3, window_bounds = array<i64: 1, 4, 256>}]} {
    %c0 = arith.constant 0 : index
    %c0_0 = arith.constant 0 : index
    %c0_1 = arith.constant 0 : index
    %0 = vector.load %arg2[%c0, %c0_0, %c0_1] : memref<1x4x4096xbf16, #tpu.memory_space<vmem>>, vector<1x4x4096xbf16>
    %1 = vector.shape_cast %0 : vector<1x4x4096xbf16> to vector<4x4096xbf16>
    %c0_2 = arith.constant 0 : index
    %c0_3 = arith.constant 0 : index
    %2 = vector.load %arg3[%c0_2, %c0_3] : memref<4096x256xbf16, #tpu.memory_space<vmem>>, vector<4096x256xbf16>
    %cst = arith.constant dense<0.000000e+00> : vector<4x256xf32>
    %3 = tpu.matmul %1, %2, %cst {dimension_numbers = #tpu.dot_dimension_numbers<[1], [0], [0], [1], [0, 0, 1, 1], [], []>} : vector<4x4096xbf16>, vector<4096x256xbf16>, vector<4x256xf32> -> vector<4x256xf32>
    %c0_4 = arith.constant 0 : index
    %c0_5 = arith.constant 0 : index
    %4 = vector.load %arg4[%c0_4, %c0_5] : memref<1x256xf32, #tpu.memory_space<vmem>>, vector<1x256xf32>
    %5 = vector.broadcast %4 : vector<1x256xf32> to vector<4x256xf32>
    %6 = arith.addf %3, %5 : vector<4x256xf32>
    %cst_6 = arith.constant dense<0.000000e+00> : vector<256xf32>
    %7 = vector.multi_reduction <add>, %6, %cst_6 [0] : vector<4x256xf32> to vector<256xf32>
    %8 = vector.shape_cast %7 : vector<256xf32> to vector<1x256xf32>
    %cst_7 = arith.constant 4.000000e+00 : f32
    %9 = vector.broadcast %cst_7 : f32 to vector<1x256xf32>
    %10 = arith.divf %8, %9 : vector<1x256xf32>
    %11 = arith.mulf %6, %6 : vector<4x256xf32>
    %cst_8 = arith.constant dense<0.000000e+00> : vector<256xf32>
    %12 = vector.multi_reduction <add>, %11, %cst_8 [0] : vector<4x256xf32> to vector<256xf32>
    %13 = vector.shape_cast %12 : vector<256xf32> to vector<1x256xf32>
    %cst_9 = arith.constant 4.000000e+00 : f32
    %14 = vector.broadcast %cst_9 : f32 to vector<1x256xf32>
    %15 = arith.divf %13, %14 : vector<1x256xf32>
    %16 = arith.mulf %10, %10 : vector<1x256xf32>
    %17 = arith.subf %15, %16 : vector<1x256xf32>
    %cst_10 = arith.constant 0.000000e+00 : f32
    %18 = vector.broadcast %cst_10 : f32 to vector<1x256xf32>
    %19 = arith.maximumf %17, %18 : vector<1x256xf32>
    %20 = vector.broadcast %10 : vector<1x256xf32> to vector<4x256xf32>
    %21 = arith.subf %6, %20 : vector<4x256xf32>
    %cst_11 = arith.constant 9.99999974E-6 : f32
    %22 = vector.broadcast %cst_11 : f32 to vector<1x256xf32>
    %23 = arith.addf %19, %22 : vector<1x256xf32>
    %24 = math.rsqrt %23 : vector<1x256xf32>
    %25 = vector.broadcast %24 : vector<1x256xf32> to vector<4x256xf32>
    %26 = arith.mulf %21, %25 : vector<4x256xf32>
    %cst_12 = arith.constant 0.000000e+00 : f32
    %27 = vector.broadcast %cst_12 : f32 to vector<4x256xf32>
    %28 = arith.cmpf oge, %26, %27 : vector<4x256xf32>
    %cst_13 = arith.constant 2.000000e-01 : f32
    %29 = vector.broadcast %cst_13 : f32 to vector<4x256xf32>
    %30 = arith.mulf %29, %26 : vector<4x256xf32>
    %31 = arith.select %28, %26, %30 : vector<4x256xi1>, vector<4x256xf32>
    %32 = arith.truncf %31 : vector<4x256xf32> to vector<4x256xbf16>
    %c0_14 = arith.constant 0 : index
    %c0_15 = arith.constant 0 : index
    %c0_16 = arith.constant 0 : index
    %33 = vector.load %arg5[%c0_14, %c0_15, %c0_16] : memref<1x4x256xbf16, #tpu.memory_space<vmem>>, vector<1x4x256xbf16>
    %34 = vector.shape_cast %33 : vector<1x4x256xbf16> to vector<4x256xbf16>
    %35 = vector.shape_cast %32 : vector<4x256xbf16> to vector<1x4x256xbf16>
    tpu.vector_store %arg5[%c0_14, %c0_15, %c0_16], %35 {strides = array<i32>} : memref<1x4x256xbf16, #tpu.memory_space<vmem>>, vector<1x4x256xbf16>,
    return
  }
  func.func @transform_0(%arg0: i32, %arg1: i32) -> (i32, i32, i32) {
    %c0_i32 = arith.constant 0 : i32
    %c0_i32_0 = arith.constant 0 : i32
    %c0_i32_1 = arith.constant 0 : i32
    return %arg1, %c0_i32, %c0_i32_0 : i32, i32, i32
  }
  func.func @transform_1(%arg0: i32, %arg1: i32) -> (i32, i32) {
    %c0_i32 = arith.constant 0 : i32
    %c0_i32_0 = arith.constant 0 : i32
    return %c0_i32, %arg0 : i32, i32
  }
  func.func @transform_2(%arg0: i32, %arg1: i32) -> (i32, i32) {
    %c0_i32 = arith.constant 0 : i32
    %c0_i32_0 = arith.constant 0 : i32
    return %c0_i32, %arg0 : i32, i32
  }
  func.func @transform_3(%arg0: i32, %arg1: i32) -> (i32, i32, i32) {
    %c0_i32 = arith.constant 0 : i32
    %c0_i32_0 = arith.constant 0 : i32
    return %arg1, %c0_i32, %arg0 : i32, i32, i32
  }
}

module attributes {stable_mosaic.version = 11 : i64} {
  func.func @_mm_bias_kernel(%arg0: i32, %arg1: i32, %arg2: memref<8x8192xbf16, #tpu.memory_space<vmem>>, %arg3: memref<8192x1xbf16, #tpu.memory_space<vmem>>, %arg4: memref<1x1xf32, #tpu.memory_space<vmem>>, %arg5: memref<8x1xf32, #tpu.memory_space<vmem>>) attributes {dimension_semantics = [#tpu.dimension_semantics<parallel>, #tpu.dimension_semantics<parallel>], iteration_bounds = array<i64: 1, 1>, scalar_prefetch = 0 : i64, scratch_operands = 0 : i64, tpu.core_type = #tpu.core_type<tc>, window_params = [{transform_indices = @transform_0, window_bounds = array<i64: 8, 8192>}, {transform_indices = @transform_1, window_bounds = array<i64: 8192, 1>}, {transform_indices = @transform_2, window_bounds = array<i64: 1, 1>}, {transform_indices = @transform_3, window_bounds = array<i64: 8, 1>}]} {
    %c0 = arith.constant 0 : index
    %c0_0 = arith.constant 0 : index
    %0 = vector.load %arg2[%c0, %c0_0] : memref<8x8192xbf16, #tpu.memory_space<vmem>>, vector<8x8192xbf16>
    %c0_1 = arith.constant 0 : index
    %c0_2 = arith.constant 0 : index
    %1 = vector.load %arg3[%c0_1, %c0_2] : memref<8192x1xbf16, #tpu.memory_space<vmem>>, vector<8192x1xbf16>
    %cst = arith.constant dense<0.000000e+00> : vector<8x1xf32>
    %2 = tpu.matmul %0, %1, %cst {dimension_numbers = #tpu.dot_dimension_numbers<[1], [0], [0], [1], [0, 0, 1, 1], [], []>} : vector<8x8192xbf16>, vector<8192x1xbf16>, vector<8x1xf32> -> vector<8x1xf32>
    %c0_3 = arith.constant 0 : index
    %c0_4 = arith.constant 0 : index
    %3 = vector.load %arg4[%c0_3, %c0_4] : memref<1x1xf32, #tpu.memory_space<vmem>>, vector<1x1xf32>
    %4 = vector.broadcast %3 : vector<1x1xf32> to vector<8x1xf32>
    %5 = arith.addf %2, %4 : vector<8x1xf32>
    %c0_5 = arith.constant 0 : index
    %c0_6 = arith.constant 0 : index
    %6 = vector.load %arg5[%c0_5, %c0_6] : memref<8x1xf32, #tpu.memory_space<vmem>>, vector<8x1xf32>
    tpu.vector_store %arg5[%c0_5, %c0_6], %5 {strides = array<i32>} : memref<8x1xf32, #tpu.memory_space<vmem>>, vector<8x1xf32>,
    return
  }
  func.func @transform_0(%arg0: i32, %arg1: i32) -> (i32, i32) {
    %c0_i32 = arith.constant 0 : i32
    %c0_i32_0 = arith.constant 0 : i32
    return %arg1, %c0_i32 : i32, i32
  }
  func.func @transform_1(%arg0: i32, %arg1: i32) -> (i32, i32) {
    %c0_i32 = arith.constant 0 : i32
    %c0_i32_0 = arith.constant 0 : i32
    return %c0_i32, %arg0 : i32, i32
  }
  func.func @transform_2(%arg0: i32, %arg1: i32) -> (i32, i32) {
    %c0_i32 = arith.constant 0 : i32
    %c0_i32_0 = arith.constant 0 : i32
    return %c0_i32, %arg0 : i32, i32
  }
  func.func @transform_3(%arg0: i32, %arg1: i32) -> (i32, i32) {
    %c0_i32 = arith.constant 0 : i32
    return %arg1, %arg0 : i32, i32
  }
}

</mosaic_0001>

<bundles_post_ra>
// kernel: image_discriminator.6
= control target key start
LH: loop header
LB: loop body
LE: loop exit
PB: predicated region body
PF: predicated region fallthrough
CT: control target
= control target key end

     0   :  { %s1321_s12 = smov 0   ;;  %s1323_s13 = smov 0   ;;  %s1464_s0 = inlined_call_operand.vmem [shape: bf16[512,128], index: 0, kind: input, shape index: {}]   ;;  %s1465_s1 = inlined_call_operand.vmem [shape: bf16[128,128], index: 1, kind: input, shape index: {}]   ;;  %s1466_s2 = inlined_call_operand.vmem [shape: f32[1,128], index: 2, kind: input, shape index: {}]   ;;  %s1467_s3 = inlined_call_operand.vmem [shape: bf16[512,128], index: 3, kind: output, shape index: {}]  }
   0x1   :  { %s1325_s14 = smov 0  }
   0x2 LB: > { %s22_s15 = sadd.s32 1, %s1295_s13  ;;  %p950_p0 = scmp.ge.s32.totalorder %s1299_s14, 1  ;;  %s1299_s14 = sphi %s1325_s14, %s13_s14   ;;  %s1295_s13 = sphi %s1323_s13, %s1469_s13   ;;  %s1291_s12 = sphi %s1321_s12, %s1468_s12  }
   0x3   : > { %p23_p1 = scmp.ge.s32.totalorder %s22_s15, 2  ;;  %p169_p2 = scmp.lt.s32.totalorder %s1299_s14, 3 }
   0x5   : > { %s1471_s15 = smov (%p23_p1, %s22_s15), 0  ;;  %p170_p3 = pnand %p950_p0, %p169_p2 }
   0x6   : > { %v1253_v0 = vld [vmem:[%s1465_s1] sm:$0xff] (!%p170_p3)   ;;  %s951_s18 = sshll.u32 (!%p170_p3), %s1291_s12, 5  ;;  %v1254_v1 = vld [vmem:[%s1465_s1 + $0x8] sm:$0xff] (!%p170_p3)   ;;  %v1255_v2 = vld [vmem:[%s1465_s1 + $0x10] sm:$0xff] (!%p170_p3)  }
   0x7   : > { %173 = sbr.rel (%p170_p3) target bundleno = 294 (0x126), region = 32  ;;  %p204_p4 = scmp.lt.s32.totalorder (!%p170_p3), %s951_s18, 63  ;;  %1165 = vmatprep.subr.bf16.mxu0 (!%p170_p3), %v1253_v0  ;;  %1213 = vmatprep.subr.bf16.mxu1 (!%p170_p3), %v1253_v0  ;;  %v1256_v3 = vld [vmem:[%s1465_s1 + $0x18] sm:$0xff] (!%p170_p3)   ;;  %v1257_v6 = vld [vmem:[%s1465_s1 + $0x20] sm:$0xff] (!%p170_p3)   ;;  %v1258_v7 = vld [vmem:[%s1465_s1 + $0x28] sm:$0xff] (!%p170_p3)  }
   0x8   : > { %1166 = vmatpush3.bf16.msra.mxu0 (!%p170_p3), %v1253_v0  ;;  %1221 = vmatpush3.bf16.msra.mxu1 (!%p170_p3), %v1253_v0  ;;  %v1259_v8 = vld [vmem:[%s1465_s1 + $0x30] sm:$0xff] (!%p170_p3)   ;;  %v1260_v9 = vld [vmem:[%s1465_s1 + $0x38] sm:$0xff] (!%p170_p3)   ;;  %v1392_v24 = vld [vmem:[%s1466_s2] ss:$0 sm:$0xff] (!%p170_p3) }
   0x9   : > { %1167 = vmatprep.subr.bf16.mxu0 (!%p170_p3), %v1254_v1  ;;  %1214 = vmatprep.subr.bf16.mxu1 (!%p170_p3), %v1254_v1 }
   0xc   : > { %1168 = vmatpush3.bf16.msra.mxu0 (!%p170_p3), %v1254_v1  ;;  %1222 = vmatpush3.bf16.msra.mxu1 (!%p170_p3), %v1254_v1 }
   0xd   : > { %1169 = vmatprep.subr.bf16.mxu0 (!%p170_p3), %v1255_v2  ;;  %1215 = vmatprep.subr.bf16.mxu1 (!%p170_p3), %v1255_v2 }
   0xe   : > { %s1473_s18 = smov (!%p204_p4, %s951_s18), 63 }
   0xf   : > { %s952_s23 = sshll.u32 %s1473_s18, 2 }
  0x10   : > { %s1356_s26 = scalar_lea.vmem %s1464_s0, %s952_s23  ;;  %1170 = vmatpush3.bf16.msra.mxu0 %v1255_v2  ;;  %1223 = vmatpush3.bf16.msra.mxu1 %v1255_v2  ;;  %s1409_s17 = scalar_lea.vmem %s1467_s3, %s952_s23 }
  0x11   : > { %v1261_v4 = vld [vmem:[%s1356_s26] sm:$0xff]   ;;  %1171 = vmatprep.subr.bf16.mxu0 %v1256_v3  ;;  %1216 = vmatprep.subr.bf16.mxu1 %v1256_v3  ;;  %v1263_v10 = vld [vmem:[%s1356_s26 + $0x8] sm:$0xff]   ;;  %v1265_v12 = vld [vmem:[%s1356_s26 + $0x10] sm:$0xff]  }
  0x12   : > { %v1262_v5 = vld [vmem:[%s1356_s26 + $0x40] sm:$0xff]   ;;  %1181 = vmatprep.mubr.bf16.mxu0 %v1261_v4  ;;  %v1264_v11 = vld [vmem:[%s1356_s26 + $0x48] sm:$0xff]   ;;  %v1266_v13 = vld [vmem:[%s1356_s26 + $0x50] sm:$0xff]  }
  0x13   : > { %1197 = vmatprep.mubr.bf16.mxu1 %v1262_v5  ;;  %v1267_v14 = vld [vmem:[%s1356_s26 + $0x18] sm:$0xff]   ;;  %v1269_v16 = vld [vmem:[%s1356_s26 + $0x20] sm:$0xff]   ;;  %v1271_v18 = vld [vmem:[%s1356_s26 + $0x28] sm:$0xff]  }
  0x14   : > { %1172 = vmatpush3.bf16.msra.mxu0 %v1256_v3  ;;  %1224 = vmatpush3.bf16.msra.mxu1 %v1256_v3  ;;  %v1268_v15 = vld [vmem:[%s1356_s26 + $0x58] sm:$0xff]   ;;  %v1270_v17 = vld [vmem:[%s1356_s26 + $0x60] sm:$0xff]   ;;  %v1272_v19 = vld [vmem:[%s1356_s26 + $0x68] sm:$0xff]  }
  0x15   : > { %1173 = vmatprep.subr.bf16.mxu0 %v1257_v6  ;;  %1217 = vmatprep.subr.bf16.mxu1 %v1257_v6  ;;  %v1273_v20 = vld [vmem:[%s1356_s26 + $0x30] sm:$0xff]   ;;  %v1275_v22 = vld [vmem:[%s1356_s26 + $0x38] sm:$0xff]  }
  0x16   : > { %v1274_v21 = vld [vmem:[%s1356_s26 + $0x70] sm:$0xff]   ;;  %v1276_v23 = vld [vmem:[%s1356_s26 + $0x78] sm:$0xff]  }
  0x18   : > { %1174 = vmatpush3.bf16.msra.mxu0 %v1257_v6  ;;  %1225 = vmatpush3.bf16.msra.mxu1 %v1257_v6 }
  0x19   : > { %1175 = vmatprep.subr.bf16.mxu0 %v1258_v7  ;;  %1218 = vmatprep.subr.bf16.mxu1 %v1258_v7 }
  0x1c   : > { %1176 = vmatpush3.bf16.msra.mxu0 %v1258_v7  ;;  %1226 = vmatpush3.bf16.msra.mxu1 %v1258_v7 }
  0x1d   : > { %1177 = vmatprep.subr.bf16.mxu0 %v1259_v8  ;;  %1219 = vmatprep.subr.bf16.mxu1 %v1259_v8 }
  0x20   : > { %1178 = vmatpush3.bf16.msra.mxu0 %v1259_v8  ;;  %1227 = vmatpush3.bf16.msra.mxu1 %v1259_v8 }
  0x21   : > { %1179 = vmatprep.subr.bf16.mxu0 %v1260_v9  ;;  %1220 = vmatprep.subr.bf16.mxu1 %v1260_v9 }
  0x24   : > { %1180 = vmatpush3.bf16.msra.mxu0 %v1260_v9  ;;  %1228 = vmatpush3.bf16.msra.mxu1 %v1260_v9 }
  0x27   : > { %1182 = vmatmul.mubr.bf16.vlgmr.msra.gmra.mrb[0].mxu0 %v1263_v10  ;;  %1198 = vmatmul.mubr.bf16.vlgmr.msra.gmra.mrb[0].mxu1 %v1264_v11 }
  0x28   : > { %1185 = vmatprep.mubr.bf16.mxu0 %v1265_v12  ;;  %1201 = vmatprep.mubr.bf16.mxu1 %v1266_v13 }
  0x2f   : > { %1186 = vmatmul.mubr.bf16.gmra.mrb[4].mxu0 %v1267_v14  ;;  %1202 = vmatmul.mubr.bf16.gmra.mrb[4].mxu1 %v1268_v15 }
  0x30   : > { %1189 = vmatprep.mubr.bf16.mxu0 %v1269_v16  ;;  %1205 = vmatprep.mubr.bf16.mxu1 %v1270_v17 }
  0x37   : > { %1190 = vmatmul.mubr.bf16.gmra.mrb[8].mxu0 %v1271_v18  ;;  %1206 = vmatmul.mubr.bf16.gmra.mrb[8].mxu1 %v1272_v19 }
  0x38   : > { %1193 = vmatprep.mubr.bf16.mxu0 %v1273_v20  ;;  %1209 = vmatprep.mubr.bf16.mxu1 %v1274_v21 }
  0x3f   : > { %1194 = vmatmul.mubr.bf16.gmra.mrb[12].mxu0 %v1275_v22  ;;  %1210 = vmatmul.mubr.bf16.gmra.mrb[12].mxu1 %v1276_v23 }
  0xfa   : > { %v1183_v25 = vpop.f32.mrb[0].mxu0  ;;  %v1199_v26 = vpop.f32.mrb[0].mxu1 }
  0xfb   : > { %v468_v27 = vadd.f32 %v1183_v25, %v1392_v24  ;;  %v532_v28 = vadd.f32 %v1199_v26, %v1392_v24  ;;  %v459_v29 = vpop.f32.mrb[1].mxu0  ;;  %v523_v30 = vpop.f32.mrb[1].mxu1 }
  0xfc   : > { %v460_v31 = vadd.f32 %v1392_v24, %v459_v29  ;;  %v524_v32 = vadd.f32 %v1392_v24, %v523_v30  ;;  %v1184_v33 = vpop.f32.mrb[2].mxu0  ;;  %v1200_v34 = vpop.f32.mrb[2].mxu1 }
  0xfd   : > { %vm588_vm0 = vcmp.ge.f32.partialorder %v468_v27, 0.0  ;;  %v620_v35 = vmul.f32 0.2, %v468_v27  ;;  %vm604_vm1 = vcmp.ge.f32.partialorder %v532_v28, 0.0  ;;  %v636_v36 = vmul.f32 0.2, %v532_v28 }
  0xfe   : > { %vm586_vm2 = vcmp.ge.f32.partialorder %v460_v31, 0.0  ;;  %v618_v37 = vmul.f32 0.2, %v460_v31  ;;  %vm602_vm3 = vcmp.ge.f32.partialorder %v524_v32, 0.0  ;;  %v634_v38 = vmul.f32 0.2, %v524_v32 }
  0xff   : > { %v471_v39 = vadd.f32 %v1184_v33, %v1392_v24  ;;  %v535_v40 = vadd.f32 %v1200_v34, %v1392_v24  ;;  %v462_v41 = vpop.f32.mrb[3].mxu0  ;;  %v526_v42 = vpop.f32.mrb[3].mxu1  ;;  %v652_v43 = vsel %vm588_vm0, %v468_v27, %v620_v35  ;;  %v668_v44 = vsel %vm604_vm1, %v532_v28, %v636_v36 }
 0x100   : > { %v463_v45 = vadd.f32 %v1392_v24, %v462_v41  ;;  %v527_v46 = vadd.f32 %v1392_v24, %v526_v42  ;;  %v650_v51 = vsel %vm586_vm2, %v460_v31, %v618_v37  ;;  %v666_v52 = vsel %vm602_vm3, %v524_v32, %v634_v38 }
 0x101   : > { %vm589_vm4 = vcmp.ge.f32.partialorder %v471_v39, 0.0  ;;  %v621_v47 = vmul.f32 0.2, %v471_v39  ;;  %vm605_vm5 = vcmp.ge.f32.partialorder %v535_v40, 0.0  ;;  %v637_v48 = vmul.f32 0.2, %v535_v40 }
 0x102   : > { %vm587_vm6 = vcmp.ge.f32.partialorder %v463_v45, 0.0  ;;  %v619_v49 = vmul.f32 0.2, %v463_v45  ;;  %vm603_vm7 = vcmp.ge.f32.partialorder %v527_v46, 0.0  ;;  %v635_v50 = vmul.f32 0.2, %v527_v46 }
 0x103   : > { %v653_v53 = vsel %vm589_vm4, %v471_v39, %v621_v47  ;;  %v669_v54 = vsel %vm605_vm5, %v535_v40, %v637_v48  ;;  %v1187_v55 = vpop.f32.mrb[4].mxu0  ;;  %v1203_v56 = vpop.f32.mrb[4].mxu1 }
 0x104   : > { %v1054_v57 = vpack.c.bf16 %v653_v53, %v652_v43  ;;  %v1094_v58 = vpack.c.bf16 %v669_v54, %v668_v44  ;;  %v651_v59 = vsel %vm587_vm6, %v463_v45, %v619_v49  ;;  %v667_v60 = vsel %vm603_vm7, %v527_v46, %v635_v50  ;;  %v475_v61 = vpop.f32.mrb[5].mxu0  ;;  %v539_v62 = vpop.f32.mrb[5].mxu1 }
 0x105   : > { %v1049_v63 = vpack.c.bf16 %v651_v59, %v650_v51  ;;  %v1089_v0 = vpack.c.bf16 %v667_v60, %v666_v52  ;;  %v484_v1 = vadd.f32 %v1187_v55, %v1392_v24  ;;  %v548_v2 = vadd.f32 %v1203_v56, %v1392_v24  ;;  %v1188_v3 = vpop.f32.mrb[6].mxu0  ;;  %v1204_v4 = vpop.f32.mrb[6].mxu1 }
 0x106   : > { %1126 = vst [vmem:[%s1409_s17 + $0x8] sm:$0xff] %v1054_v57   ;;  %1134 = vst [vmem:[%s1409_s17 + $0x48] sm:$0xff] %v1094_v58   ;;  %v476_v5 = vadd.f32 %v1392_v24, %v475_v61  ;;  %v540_v6 = vadd.f32 %v1392_v24, %v539_v62  ;;  %v487_v7 = vadd.f32 %v1188_v3, %v1392_v24  ;;  %v478_v9 = vpop.f32.mrb[7].mxu0  ;;  %v542_v10 = vpop.f32.mrb[7].mxu1 }
 0x107   : > { %v551_v8 = vadd.f32 %v1204_v4, %v1392_v24  ;;  %1050 = vst [vmem:[%s1409_s17] sm:$0xff] %v1049_v63   ;;  %1133 = vst [vmem:[%s1409_s17 + $0x40] sm:$0xff] %v1089_v0   ;;  %vm592_vm8 = vcmp.ge.f32.partialorder %v484_v1, 0.0  ;;  %v624_v11 = vmul.f32 0.2, %v484_v1  ;;  %vm608_vm9 = vcmp.ge.f32.partialorder %v548_v2, 0.0 }
 0x108   : > { %v640_v12 = vmul.f32 0.2, %v548_v2  ;;  %vm590_vm10 = vcmp.ge.f32.partialorder %v476_v5, 0.0  ;;  %v622_v13 = vmul.f32 0.2, %v476_v5  ;;  %vm606_vm11 = vcmp.ge.f32.partialorder %v540_v6, 0.0 }
 0x109   : > { %v656_v14 = vsel %vm592_vm8, %v484_v1, %v624_v11  ;;  %v638_v15 = vmul.f32 0.2, %v540_v6  ;;  %vm593_vm12 = vcmp.ge.f32.partialorder %v487_v7, 0.0  ;;  %v625_v16 = vmul.f32 0.2, %v487_v7 }
 0x10a   : > { %v672_v17 = vsel %vm608_vm9, %v548_v2, %v640_v12  ;;  %v654_v18 = vsel %vm590_vm10, %v476_v5, %v622_v13  ;;  %vm609_vm13 = vcmp.ge.f32.partialorder %v551_v8, 0.0  ;;  %v641_v19 = vmul.f32 0.2, %v551_v8  ;;  %v1191_v20 = vpop.f32.mrb[8].mxu0  ;;  %v1207_v21 = vpop.f32.mrb[8].mxu1 }
 0x10b   : > { %v657_v22 = vsel %vm593_vm12, %v487_v7, %v625_v16  ;;  %v479_v23 = vadd.f32 %v1392_v24, %v478_v9  ;;  %v543_v25 = vadd.f32 %v1392_v24, %v542_v10  ;;  %v500_v26 = vadd.f32 %v1191_v20, %v1392_v24  ;;  %v491_v27 = vpop.f32.mrb[9].mxu0  ;;  %v555_v28 = vpop.f32.mrb[9].mxu1 }
 0x10c   : > { %v1064_v29 = vpack.c.bf16 %v657_v22, %v656_v14  ;;  %v673_v30 = vsel %vm609_vm13, %v551_v8, %v641_v19  ;;  %v564_v31 = vadd.f32 %v1207_v21, %v1392_v24  ;;  %v492_v32 = vadd.f32 %v1392_v24, %v491_v27  ;;  %v1192_v33 = vpop.f32.mrb[10].mxu0  ;;  %v1208_v34 = vpop.f32.mrb[10].mxu1 }
 0x10d   : > { %v1104_v35 = vpack.c.bf16 %v673_v30, %v672_v17  ;;  %vm591_vm14 = vcmp.ge.f32.partialorder %v479_v23, 0.0  ;;  %v623_v36 = vmul.f32 0.2, %v479_v23  ;;  %vm607_vm15 = vcmp.ge.f32.partialorder %v543_v25, 0.0  ;;  %v494_v37 = vpop.f32.mrb[11].mxu0  ;;  %v558_v38 = vpop.f32.mrb[11].mxu1 }
 0x10e   : > { %1128 = vst [vmem:[%s1409_s17 + $0x18] sm:$0xff] %v1064_v29   ;;  %v639_v39 = vmul.f32 0.2, %v543_v25  ;;  %vm596_vm0 = vcmp.ge.f32.partialorder %v500_v26, 0.0  ;;  %v628_v40 = vmul.f32 0.2, %v500_v26  ;;  %v670_v41 = vsel %vm606_vm11, %v540_v6, %v638_v15 }
 0x10f   : > { %vm612_vm1 = vcmp.ge.f32.partialorder %v564_v31, 0.0  ;;  %1136 = vst [vmem:[%s1409_s17 + $0x58] sm:$0xff] %v1104_v35   ;;  %v655_v42 = vsel %vm591_vm14, %v479_v23, %v623_v36  ;;  %v644_v43 = vmul.f32 0.2, %v564_v31  ;;  %vm594_vm2 = vcmp.ge.f32.partialorder %v492_v32, 0.0 }
 0x110   : > { %v1059_v44 = vpack.c.bf16 %v655_v42, %v654_v18  ;;  %v671_v45 = vsel %vm607_vm15, %v543_v25, %v639_v39  ;;  %v626_v46 = vmul.f32 0.2, %v492_v32  ;;  %v556_v47 = vadd.f32 %v1392_v24, %v555_v28 }
 0x111   : > { %v1099_v48 = vpack.c.bf16 %v671_v45, %v670_v41  ;;  %v660_v49 = vsel %vm596_vm0, %v500_v26, %v628_v40  ;;  %v676_v50 = vsel %vm612_vm1, %v564_v31, %v644_v43  ;;  %v503_v51 = vadd.f32 %v1192_v33, %v1392_v24 }
 0x112   : > { %1127 = vst [vmem:[%s1409_s17 + $0x10] sm:$0xff] %v1059_v44   ;;  %vm610_vm3 = vcmp.ge.f32.partialorder %v556_v47, 0.0  ;;  %v642_v52 = vmul.f32 0.2, %v556_v47  ;;  %v567_v53 = vadd.f32 %v1208_v34, %v1392_v24  ;;  %v495_v54 = vadd.f32 %v1392_v24, %v494_v37  ;;  %v1195_v55 = vpop.f32.mrb[12].mxu0  ;;  %v1211_v56 = vpop.f32.mrb[12].mxu1 }
 0x113   : > { %1135 = vst [vmem:[%s1409_s17 + $0x50] sm:$0xff] %v1099_v48   ;;  %vm597_vm4 = vcmp.ge.f32.partialorder %v503_v51, 0.0  ;;  %v629_v57 = vmul.f32 0.2, %v503_v51  ;;  %v559_v58 = vadd.f32 %v1392_v24, %v558_v38  ;;  %v516_v59 = vadd.f32 %v1195_v55, %v1392_v24  ;;  %v507_v60 = vpop.f32.mrb[13].mxu0  ;;  %v571_v61 = vpop.f32.mrb[13].mxu1 }
 0x114   : > { %v658_v62 = vsel %vm594_vm2, %v492_v32, %v626_v46  ;;  %vm613_vm5 = vcmp.ge.f32.partialorder %v567_v53, 0.0  ;;  %v645_v63 = vmul.f32 0.2, %v567_v53  ;;  %vm595_vm6 = vcmp.ge.f32.partialorder %v495_v54, 0.0  ;;  %v1196_v0 = vpop.f32.mrb[14].mxu0  ;;  %v1212_v1 = vpop.f32.mrb[14].mxu1 }
 0x115   : > { %v661_v2 = vsel %vm597_vm4, %v503_v51, %v629_v57  ;;  %v627_v3 = vmul.f32 0.2, %v495_v54  ;;  %vm611_vm7 = vcmp.ge.f32.partialorder %v559_v58, 0.0  ;;  %v643_v4 = vmul.f32 0.2, %v559_v58  ;;  %v510_v5 = vpop.f32.mrb[15].mxu0 }
 0x116   : > { %v674_v6 = vsel %vm610_vm3, %v556_v47, %v642_v52  ;;  %v1074_v7 = vpack.c.bf16 %v661_v2, %v660_v49  ;;  %v677_v8 = vsel %vm613_vm5, %v567_v53, %v645_v63  ;;  %v632_v9 = vmul.f32 0.2, %v516_v59  ;;  %v574_v10 = vpop.f32.mrb[15].mxu1 }
 0x117   : > { %v1114_v11 = vpack.c.bf16 %v677_v8, %v676_v50  ;;  %v659_v12 = vsel %vm595_vm6, %v495_v54, %v627_v3  ;;  %v675_v13 = vsel %vm611_vm7, %v559_v58, %v643_v4  ;;  %v580_v14 = vadd.f32 %v1211_v56, %v1392_v24 }
 0x118   : > { %1130 = vst [vmem:[%s1409_s17 + $0x28] sm:$0xff] %v1074_v7   ;;  %v1069_v15 = vpack.c.bf16 %v659_v12, %v658_v62  ;;  %v1109_v16 = vpack.c.bf16 %v675_v13, %v674_v6  ;;  %vm600_vm8 = vcmp.ge.f32.partialorder %v516_v59, 0.0  ;;  %v508_v17 = vadd.f32 %v1392_v24, %v507_v60 }
 0x119   : > { %1138 = vst [vmem:[%s1409_s17 + $0x68] sm:$0xff] %v1114_v11   ;;  %vm616_vm9 = vcmp.ge.f32.partialorder %v580_v14, 0.0  ;;  %v648_v18 = vmul.f32 0.2, %v580_v14  ;;  %v572_v19 = vadd.f32 %v1392_v24, %v571_v61  ;;  %v519_v20 = vadd.f32 %v1196_v0, %v1392_v24 }
 0x11a   : > { %1129 = vst [vmem:[%s1409_s17 + $0x20] sm:$0xff] %v1069_v15   ;;  %1137 = vst [vmem:[%s1409_s17 + $0x60] sm:$0xff] %v1109_v16   ;;  %v630_v21 = vmul.f32 0.2, %v508_v17  ;;  %v583_v22 = vadd.f32 %v1212_v1, %v1392_v24  ;;  %v511_v23 = vadd.f32 %v1392_v24, %v510_v5  ;;  %v664_v25 = vsel %vm600_vm8, %v516_v59, %v632_v9 }
 0x11b   : > { %vm598_vm10 = vcmp.ge.f32.partialorder %v508_v17, 0.0  ;;  %vm601_vm11 = vcmp.ge.f32.partialorder %v519_v20, 0.0  ;;  %v680_v26 = vsel %vm616_vm9, %v580_v14, %v648_v18  ;;  %v633_v27 = vmul.f32 0.2, %v519_v20 }
 0x11c   : > { %vm617_vm12 = vcmp.ge.f32.partialorder %v583_v22, 0.0  ;;  %v649_v28 = vmul.f32 0.2, %v583_v22  ;;  %vm614_vm13 = vcmp.ge.f32.partialorder %v572_v19, 0.0  ;;  %vm599_vm14 = vcmp.ge.f32.partialorder %v511_v23, 0.0 }
 0x11d   : > { %v631_v29 = vmul.f32 0.2, %v511_v23  ;;  %v575_v30 = vadd.f32 %v1392_v24, %v574_v10  ;;  %v662_v31 = vsel %vm598_vm10, %v508_v17, %v630_v21  ;;  %v646_v32 = vmul.f32 0.2, %v572_v19 }
 0x11e   : > { %v665_v33 = vsel %vm601_vm11, %v519_v20, %v633_v27  ;;  %v681_v34 = vsel %vm617_vm12, %v583_v22, %v649_v28 }
 0x11f   : > { %v1084_v35 = vpack.c.bf16 %v665_v33, %v664_v25  ;;  %v1124_v36 = vpack.c.bf16 %v681_v34, %v680_v26  ;;  %v663_v37 = vsel %vm599_vm14, %v511_v23, %v631_v29  ;;  %vm615_vm15 = vcmp.ge.f32.partialorder %v575_v30, 0.0 }
 0x120   : > { %v1079_v38 = vpack.c.bf16 %v663_v37, %v662_v31  ;;  %v647_v39 = vmul.f32 0.2, %v575_v30  ;;  %v678_v40 = vsel %vm614_vm13, %v572_v19, %v646_v32 }
 0x121   : > { %1132 = vst [vmem:[%s1409_s17 + $0x38] sm:$0xff] %v1084_v35   ;;  %1140 = vst [vmem:[%s1409_s17 + $0x78] sm:$0xff] %v1124_v36  }
 0x122   : > { %1131 = vst [vmem:[%s1409_s17 + $0x30] sm:$0xff] %v1079_v38   ;;  %v679_v41 = vsel %vm615_vm15, %v575_v30, %v647_v39 }
 0x123   : > { %v1119_v42 = vpack.c.bf16 %v679_v41, %v678_v40 }
 0x125   : > { %1139 = vst [vmem:[%s1409_s17 + $0x70] sm:$0xff] %v1119_v42  }
 0x126 PF: > { %s13_s14 = sadd.s32 1, %s1299_s14   ;;  %s1468_s12 = smov %s1295_s13 }
 0x127   : > { %p10_p5 = scmp.ge.s32.totalorder %s13_s14, 4   ;;  %s1469_s13 = smov %s1471_s15 }
 0x129   :  { %12 = sbr.rel (!%p10_p5) target bundleno = 2 (0x2), region = 68 }

// kernel: image_discriminator.10
= control target key start
LH: loop header
LB: loop body
LE: loop exit
PB: predicated region body
PF: predicated region fallthrough
CT: control target
= control target key end

     0   :  { %s2656_s12 = smov 0   ;;  %s2658_s13 = smov 0   ;;  %s2979_s0 = inlined_call_operand.vmem [shape: bf16[1024,128], index: 0, kind: input, shape index: {}]   ;;  %s2980_s1 = inlined_call_operand.vmem [shape: f32[1,128], index: 1, kind: input, shape index: {}]   ;;  %s2981_s2 = inlined_call_operand.vmem [shape: bf16[2,8,8,1024], index: 2, kind: input, shape index: {}]   ;;  %s2982_s3 = inlined_call_operand.vmem [shape: bf16[2,64,128], index: 3, kind: output, shape index: {}]  }
   0x1   :  { %s2660_s14 = smov 0  }
   0x2 LB: > { %s22_s15 = sadd.s32 1, %s2630_s13  ;;  %p1937_p0 = scmp.ge.s32.totalorder %s2634_s14, 1  ;;  %s2634_s14 = sphi %s2660_s14, %s13_s14   ;;  %s2630_s13 = sphi %s2658_s13, %s2984_s13   ;;  %s2626_s12 = sphi %s2656_s12, %s2983_s12  }
   0x3   : > { %p23_p1 = scmp.ge.s32.totalorder %s22_s15, 2  ;;  %p168_p2 = scmp.lt.s32.totalorder %s2634_s14, 3 }
   0x5   : > { %s2986_s15 = smov (%p23_p1, %s22_s15), 0  ;;  %p169_p3 = pnand %p1937_p0, %p168_p2 }
   0x7   : > { %172 = sbr.rel (%p169_p3) target bundleno = 372 (0x174), region = 32 }
   0xe   : > { %v2515_v0 = vld [vmem:[%s2979_s0 + $0x40] sm:$0xff]   ;;  %v2519_v4 = vld [vmem:[%s2979_s0 + $0x48] sm:$0xff]   ;;  %v2523_v8 = vld [vmem:[%s2979_s0 + $0x50] sm:$0xff]   ;;  %p202_p4 = scmp.lt.s32.totalorder %s2626_s12, 1 }
   0xf   : > { %v2516_v1 = vld [vmem:[%s2979_s0 + $0xc0] sm:$0xff]   ;;  %2331 = vmatprep.subr.bf16.mxu0 %v2515_v0  ;;  %v2520_v5 = vld [vmem:[%s2979_s0 + $0xc8] sm:$0xff]   ;;  %v2524_v9 = vld [vmem:[%s2979_s0 + $0xd0] sm:$0xff]  }
  0x10   : > { %v2517_v2 = vld [vmem:[%s2979_s0] sm:$0xff]   ;;  %2371 = vmatprep.subr.bf16.mxu1 %v2516_v1  ;;  %v2521_v6 = vld [vmem:[%s2979_s0 + $0x8] sm:$0xff]   ;;  %v2525_v10 = vld [vmem:[%s2979_s0 + $0x10] sm:$0xff]   ;;  %s2988_s12 = smov (!%p202_p4, %s2626_s12), 1 }
  0x11   : > { %v2518_v3 = vld [vmem:[%s2979_s0 + $0x80] sm:$0xff]   ;;  %2332 = vmatpush3.bf16.msra.mxu0 %v2517_v2  ;;  %v2522_v7 = vld [vmem:[%s2979_s0 + $0x88] sm:$0xff]   ;;  %v2526_v11 = vld [vmem:[%s2979_s0 + $0x90] sm:$0xff]   ;;  %s2112_s24 = sshll.u32 %s2988_s12, 8  ;;  %s2113_s10 = sshll.u32 %s2988_s12, 5 }
  0x12   : > { %2372 = vmatpush3.bf16.msra.mxu1 %v2518_v3  ;;  %2333 = vmatprep.subr.bf16.mxu0 %v2519_v4  ;;  %v2527_v12 = vld [vmem:[%s2979_s0 + $0x58] sm:$0xff]   ;;  %v2531_v16 = vld [vmem:[%s2979_s0 + $0x60] sm:$0xff]   ;;  %v2535_v20 = vld [vmem:[%s2979_s0 + $0x68] sm:$0xff]   ;;  %s2774_s6 = scalar_lea.vmem %s2981_s2, %s2112_s24  ;;  %s221_s12 = scalar_lea.vmem %s2982_s3, %s2113_s10 }
  0x13   : > { %2373 = vmatprep.subr.bf16.mxu1 %v2520_v5  ;;  %v2528_v13 = vld [vmem:[%s2979_s0 + $0xd8] sm:$0xff]   ;;  %v2532_v17 = vld [vmem:[%s2979_s0 + $0xe0] sm:$0xff]   ;;  %v2536_v21 = vld [vmem:[%s2979_s0 + $0xe8] sm:$0xff]  }
  0x14   : > { %v2529_v14 = vld [vmem:[%s2979_s0 + $0x18] sm:$0xff]   ;;  %v2533_v18 = vld [vmem:[%s2979_s0 + $0x20] sm:$0xff]   ;;  %v2537_v22 = vld [vmem:[%s2979_s0 + $0x28] sm:$0xff]  }
  0x15   : > { %2334 = vmatpush3.bf16.msra.mxu0 %v2521_v6  ;;  %v2530_v15 = vld [vmem:[%s2979_s0 + $0x98] sm:$0xff]   ;;  %v2534_v19 = vld [vmem:[%s2979_s0 + $0xa0] sm:$0xff]   ;;  %v2538_v23 = vld [vmem:[%s2979_s0 + $0xa8] sm:$0xff]  }
  0x16   : > { %2374 = vmatpush3.bf16.msra.mxu1 %v2522_v7  ;;  %2335 = vmatprep.subr.bf16.mxu0 %v2523_v8  ;;  %v2539_v24 = vld [vmem:[%s2979_s0 + $0x70] sm:$0xff]   ;;  %v2543_v28 = vld [vmem:[%s2979_s0 + $0x78] sm:$0xff]   ;;  %v222_v32 = vld [vmem:[%s2774_s6] sm:$0xff]  }
  0x17   : > { %2375 = vmatprep.subr.bf16.mxu1 %v2524_v9  ;;  %v2540_v25 = vld [vmem:[%s2979_s0 + $0xf0] sm:$0xff]   ;;  %v2544_v29 = vld [vmem:[%s2979_s0 + $0xf8] sm:$0xff]   ;;  %227 = vst [vmem:[#allocation2] sm:$0xff] %v222_v32   ;;  %v2547_v33 = vld [vmem:[%s2774_s6 + $0x20] sm:$0xff]  }
  0x18   : > { %v2541_v26 = vld [vmem:[%s2979_s0 + $0x30] sm:$0xff]   ;;  %v2545_v30 = vld [vmem:[%s2979_s0 + $0x38] sm:$0xff]   ;;  %v2548_v34 = vld [vmem:[%s2774_s6 + $0x8] sm:$0xff]  }
  0x19   : > { %2336 = vmatpush3.bf16.msra.mxu0 %v2525_v10  ;;  %v2542_v27 = vld [vmem:[%s2979_s0 + $0xb0] sm:$0xff]   ;;  %v2546_v31 = vld [vmem:[%s2979_s0 + $0xb8] sm:$0xff]   ;;  %v2549_v35 = vld [vmem:[%s2774_s6 + $0x28] sm:$0xff]  }
  0x1a   : > { %2376 = vmatpush3.bf16.msra.mxu1 %v2526_v11  ;;  %2337 = vmatprep.subr.bf16.mxu0 %v2527_v12  ;;  %v2550_v36 = vld [vmem:[%s2979_s0 + $0x140] sm:$0xff]   ;;  %v2008_v37 = vcombine.low %v2548_v34, %v2549_v35  ;;  %v2009_v38 = vcombine.high %v2548_v34, %v2549_v35  ;;  %v2555_v45 = vld [vmem:[%s2979_s0 + $0x1c8] sm:$0xff]   ;;  %v2562_v55 = vld [vmem:[%s2979_s0 + $0x150] sm:$0xff]  }
  0x1b   : > { %2377 = vmatprep.subr.bf16.mxu1 %v2528_v13  ;;  %v2551_v39 = vld [vmem:[%s2979_s0 + $0x1c0] sm:$0xff]   ;;  %v2554_v46 = vld [vmem:[%s2979_s0 + $0x148] sm:$0xff]   ;;  %v2563_v58 = vld [vmem:[%s2979_s0 + $0x1d0] sm:$0xff]  }
  0x1c   : > { %1541 = vmatprep.mubr.bf16.mxu1 %v2009_v38  ;;  %v2553_v40 = vld [vmem:[%s2979_s0 + $0x180] sm:$0xff]   ;;  %v2556_v47 = vld [vmem:[%s2979_s0 + $0x108] sm:$0xff]   ;;  %v2564_v59 = vld [vmem:[%s2979_s0 + $0x110] sm:$0xff]  }
  0x1d   : > { %2338 = vmatpush3.bf16.msra.mxu0 %v2529_v14  ;;  %v2552_v42 = vld [vmem:[%s2979_s0 + $0x100] sm:$0xff]   ;;  %v2557_v48 = vld [vmem:[%s2979_s0 + $0x188] sm:$0xff]   ;;  %v2565_v60 = vld [vmem:[%s2979_s0 + $0x190] sm:$0xff]  }
  0x1e   : > { %2378 = vmatpush3.bf16.msra.mxu1 %v2530_v15  ;;  %2339 = vmatprep.subr.bf16.mxu0 %v2531_v16  ;;  %v733_v41 = vld [vmem:[#allocation2] sm:$0xff]  ;;  %v2560_v51 = vld [vmem:[%s2774_s6 + $0x48] sm:$0xff]   ;;  %v2566_v61 = vld [vmem:[%s2979_s0 + $0x158] sm:$0xff]  }
  0x1f   : > { %2379 = vmatprep.subr.bf16.mxu1 %v2532_v17  ;;  %v2006_v43 = vcombine.low %v733_v41, %v2547_v33  ;;  %v2007_v44 = vcombine.high %v733_v41, %v2547_v33  ;;  %v2558_v49 = vld [vmem:[%s2774_s6 + $0x40] sm:$0xff]   ;;  %v2561_v53 = vld [vmem:[%s2774_s6 + $0x68] sm:$0xff]   ;;  %v2567_v62 = vld [vmem:[%s2979_s0 + $0x1d8] sm:$0xff]  }
  0x20   : > { %v2559_v50 = vld [vmem:[%s2774_s6 + $0x60] sm:$0xff]   ;;  %v2017_v56 = vcombine.high %v2560_v51, %v2561_v53  ;;  %v2016_v57 = vcombine.low %v2560_v51, %v2561_v53  ;;  %v2568_v63 = vld [vmem:[%s2979_s0 + $0x118] sm:$0xff]   ;;  %v2572_v3 = vld [vmem:[%s2774_s6 + $0x88] sm:$0xff]  }
  0x21   : > { %2340 = vmatpush3.bf16.msra.mxu0 %v2533_v18  ;;  %1476 = vmatprep.mubr.bf16.mxu0 %v2007_v44  ;;  %v2015_v52 = vcombine.high %v2558_v49, %v2559_v50  ;;  %v2014_v54 = vcombine.low %v2558_v49, %v2559_v50  ;;  %v2569_v0 = vld [vmem:[%s2979_s0 + $0x198] sm:$0xff]   ;;  %v2570_v1 = vld [vmem:[%s2774_s6 + $0x80] sm:$0xff]   ;;  %v2573_v5 = vld [vmem:[%s2774_s6 + $0xa8] sm:$0xff]  }
  0x22   : > { %2380 = vmatpush3.bf16.msra.mxu1 %v2534_v19  ;;  %2341 = vmatprep.subr.bf16.mxu0 %v2535_v20  ;;  %v2571_v2 = vld [vmem:[%s2774_s6 + $0xa0] sm:$0xff]   ;;  %v2025_v8 = vcombine.high %v2572_v3, %v2573_v5  ;;  %v2024_v9 = vcombine.low %v2572_v3, %v2573_v5  ;;  %v2578_v13 = vld [vmem:[%s2979_s0 + $0x168] sm:$0xff]   ;;  %v2593_v32 = vld [vmem:[%s2979_s0 + $0x1b8] sm:$0xff]  }
  0x23   : > { %2381 = vmatprep.subr.bf16.mxu1 %v2536_v21  ;;  %v2023_v4 = vcombine.high %v2570_v1, %v2571_v2  ;;  %v2022_v6 = vcombine.low %v2570_v1, %v2571_v2  ;;  %v2574_v7 = vld [vmem:[%s2979_s0 + $0x160] sm:$0xff]   ;;  %v2579_v14 = vld [vmem:[%s2979_s0 + $0x1e8] sm:$0xff]   ;;  %v2594_v33 = vld [vmem:[%s2774_s6 + $0x10] sm:$0xff]  }
  0x24   : > { %v2575_v10 = vld [vmem:[%s2979_s0 + $0x1e0] sm:$0xff]   ;;  %v2580_v15 = vld [vmem:[%s2979_s0 + $0x128] sm:$0xff]   ;;  %v2595_v34 = vld [vmem:[%s2774_s6 + $0x30] sm:$0xff]  }
  0x25   : > { %2342 = vmatpush3.bf16.msra.mxu0 %v2537_v22  ;;  %v2576_v11 = vld [vmem:[%s2979_s0 + $0x120] sm:$0xff]   ;;  %v2581_v16 = vld [vmem:[%s2979_s0 + $0x1a8] sm:$0xff]   ;;  %v2596_v35 = vld [vmem:[%s2774_s6 + $0x18] sm:$0xff]  }
  0x26   : > { %2382 = vmatpush3.bf16.msra.mxu1 %v2538_v23  ;;  %2343 = vmatprep.subr.bf16.mxu0 %v2539_v24  ;;  %v2577_v12 = vld [vmem:[%s2979_s0 + $0x1a0] sm:$0xff]   ;;  %v2584_v19 = vld [vmem:[%s2774_s6 + $0xc8] sm:$0xff]   ;;  %v2586_v23 = vld [vmem:[%s2979_s0 + $0x170] sm:$0xff]  }
  0x27   : > { %2383 = vmatprep.subr.bf16.mxu1 %v2540_v25  ;;  %v2582_v17 = vld [vmem:[%s2774_s6 + $0xc0] sm:$0xff]   ;;  %v2585_v21 = vld [vmem:[%s2774_s6 + $0xe8] sm:$0xff]   ;;  %v2597_v38 = vld [vmem:[%s2774_s6 + $0x38] sm:$0xff]  }
  0x28   : > { %v2583_v18 = vld [vmem:[%s2774_s6 + $0xe0] sm:$0xff]   ;;  %v2033_v24 = vcombine.high %v2584_v19, %v2585_v21  ;;  %v2032_v25 = vcombine.low %v2584_v19, %v2585_v21  ;;  %v2013_v41 = vcombine.high %v2596_v35, %v2597_v38  ;;  %v2604_v50 = vld [vmem:[%s2774_s6 + $0x98] sm:$0xff]  }
  0x29   : > { %2344 = vmatpush3.bf16.msra.mxu0 %v2541_v26  ;;  %v2031_v20 = vcombine.high %v2582_v17, %v2583_v18  ;;  %v2030_v22 = vcombine.low %v2582_v17, %v2583_v18  ;;  %v2587_v26 = vld [vmem:[%s2979_s0 + $0x1f0] sm:$0xff]  }
  0x2a   : > { %2384 = vmatpush3.bf16.msra.mxu1 %v2542_v27  ;;  %2345 = vmatprep.subr.bf16.mxu0 %v2543_v28  ;;  %v2588_v27 = vld [vmem:[%s2979_s0 + $0x130] sm:$0xff]  }
  0x2b   : > { %2385 = vmatprep.subr.bf16.mxu1 %v2544_v29  ;;  %v2589_v28 = vld [vmem:[%s2979_s0 + $0x1b0] sm:$0xff]   ;;  %v2590_v29 = vld [vmem:[%s2979_s0 + $0x178] sm:$0xff]  }
  0x2d   : > { %2346 = vmatpush3.bf16.msra.mxu0 %v2545_v30  ;;  %v2591_v30 = vld [vmem:[%s2979_s0 + $0x1f8] sm:$0xff]  }
  0x2e   : > { %2386 = vmatpush3.bf16.msra.mxu1 %v2546_v31  ;;  %2411 = vmatprep.subr.bf16.mxu0 %v2550_v36  ;;  %v2592_v31 = vld [vmem:[%s2979_s0 + $0x138] sm:$0xff]   ;;  %v2010_v36 = vcombine.low %v2594_v33, %v2595_v34 }
  0x2f   : > { %2451 = vmatprep.subr.bf16.mxu1 %v2551_v39  ;;  %v2598_v39 = vld [vmem:[%s2774_s6 + $0x50] sm:$0xff]  }
  0x30   : > { %1477 = vmatmul.mubr.bf16.vlgmr.msra.gmra.mrb[0].mxu0 %v2006_v43  ;;  %v2600_v43 = vld [vmem:[%s2774_s6 + $0x58] sm:$0xff]  }
  0x31   : > { %1542 = vmatmul.mubr.bf16.vlgmr.msra.gmra.mrb[0].mxu1 %v2008_v37  ;;  %2412 = vmatpush3.bf16.msra.mxu0 %v2552_v42  ;;  %v2011_v37 = vcombine.high %v2594_v33, %v2595_v34  ;;  %v2599_v42 = vld [vmem:[%s2774_s6 + $0x70] sm:$0xff]  }
  0x32   : > { %2452 = vmatpush3.bf16.msra.mxu1 %v2553_v40  ;;  %2413 = vmatprep.subr.bf16.mxu0 %v2554_v46  ;;  %v2012_v40 = vcombine.low %v2596_v35, %v2597_v38  ;;  %v2019_v44 = vcombine.high %v2598_v39, %v2599_v42  ;;  %v2602_v46 = vld [vmem:[%s2774_s6 + $0x90] sm:$0xff]   ;;  %v2018_v49 = vcombine.low %v2598_v39, %v2599_v42 }
  0x33   : > { %2453 = vmatprep.subr.bf16.mxu1 %v2555_v45  ;;  %1484 = vmatprep.mubr.bf16.mxu0 %v2015_v52  ;;  %v2601_v45 = vld [vmem:[%s2774_s6 + $0x78] sm:$0xff]  }
  0x34   : > { %1549 = vmatprep.mubr.bf16.mxu1 %v2017_v56  ;;  %v2605_v52 = vld [vmem:[%s2774_s6 + $0xb8] sm:$0xff]   ;;  %v2020_v53 = vcombine.low %v2600_v43, %v2601_v45  ;;  %v2607_v56 = vld [vmem:[%s2774_s6 + $0xf0] sm:$0xff]  }
  0x35   : > { %2414 = vmatpush3.bf16.msra.mxu0 %v2556_v47  ;;  %v2021_v47 = vcombine.high %v2600_v43, %v2601_v45 }
  0x36   : > { %2454 = vmatpush3.bf16.msra.mxu1 %v2557_v48  ;;  %2415 = vmatprep.subr.bf16.mxu0 %v2562_v55  ;;  %v2603_v48 = vld [vmem:[%s2774_s6 + $0xb0] sm:$0xff]   ;;  %v2029_v55 = vcombine.high %v2604_v50, %v2605_v52 }
  0x37   : > { %2455 = vmatprep.subr.bf16.mxu1 %v2563_v58  ;;  %v2027_v51 = vcombine.high %v2602_v46, %v2603_v48  ;;  %v2609_v58 = vld [vmem:[%s2774_s6 + $0xf8] sm:$0xff]  }
  0x38   : > { %1485 = vmatmul.mubr.bf16.gmra.mrb[4].mxu0 %v2014_v54  ;;  %v2606_v54 = vld [vmem:[%s2774_s6 + $0xd0] sm:$0xff]  }
  0x39   : > { %1550 = vmatmul.mubr.bf16.gmra.mrb[4].mxu1 %v2016_v57  ;;  %2416 = vmatpush3.bf16.msra.mxu0 %v2564_v59  ;;  %v2608_v57 = vld [vmem:[%s2774_s6 + $0xd8] sm:$0xff]   ;;  %v2026_v59 = vcombine.low %v2602_v46, %v2603_v48 }
  0x3a   : > { %2456 = vmatpush3.bf16.msra.mxu1 %v2565_v60  ;;  %2417 = vmatprep.subr.bf16.mxu0 %v2566_v61  ;;  %v2035_v60 = vcombine.high %v2606_v54, %v2607_v56  ;;  %v2028_v61 = vcombine.low %v2604_v50, %v2605_v52 }
  0x3b   : > { %2457 = vmatprep.subr.bf16.mxu1 %v2567_v62  ;;  %1492 = vmatprep.mubr.bf16.mxu0 %v2023_v4  ;;  %v2037_v62 = vcombine.high %v2608_v57, %v2609_v58 }
  0x3c   : > { %1557 = vmatprep.mubr.bf16.mxu1 %v2025_v8  ;;  %v2005_v8 = vld [vmem:[%s2980_s1] ss:$0 sm:$0xff] }
  0x3d   : > { %2418 = vmatpush3.bf16.msra.mxu0 %v2568_v63  ;;  %v2034_v63 = vcombine.low %v2606_v54, %v2607_v56 }
  0x3e   : > { %2458 = vmatpush3.bf16.msra.mxu1 %v2569_v0  ;;  %2419 = vmatprep.subr.bf16.mxu0 %v2574_v7  ;;  %v2036_v0 = vcombine.low %v2608_v57, %v2609_v58 }
  0x3f   : > { %2459 = vmatprep.subr.bf16.mxu1 %v2575_v10 }
  0x40   : > { %1493 = vmatmul.mubr.bf16.gmra.mrb[8].mxu0 %v2022_v6 }
  0x41   : > { %1558 = vmatmul.mubr.bf16.gmra.mrb[8].mxu1 %v2024_v9  ;;  %2420 = vmatpush3.bf16.msra.mxu0 %v2576_v11 }
  0x42   : > { %2460 = vmatpush3.bf16.msra.mxu1 %v2577_v12  ;;  %2421 = vmatprep.subr.bf16.mxu0 %v2578_v13 }
  0x43   : > { %2461 = vmatprep.subr.bf16.mxu1 %v2579_v14  ;;  %1500 = vmatprep.mubr.bf16.mxu0 %v2031_v20 }
  0x44   : > { %1565 = vmatprep.mubr.bf16.mxu1 %v2033_v24 }
  0x45   : > { %2422 = vmatpush3.bf16.msra.mxu0 %v2580_v15 }
  0x46   : > { %2462 = vmatpush3.bf16.msra.mxu1 %v2581_v16  ;;  %2423 = vmatprep.subr.bf16.mxu0 %v2586_v23 }
  0x47   : > { %2463 = vmatprep.subr.bf16.mxu1 %v2587_v26 }
  0x48   : > { %1501 = vmatmul.mubr.bf16.gmra.mrb[12].mxu0 %v2030_v22 }
  0x49   : > { %1566 = vmatmul.mubr.bf16.gmra.mrb[12].mxu1 %v2032_v25  ;;  %2424 = vmatpush3.bf16.msra.mxu0 %v2588_v27 }
  0x4a   : > { %2464 = vmatpush3.bf16.msra.mxu1 %v2589_v28  ;;  %2425 = vmatprep.subr.bf16.mxu0 %v2590_v29 }
  0x4b   : > { %2465 = vmatprep.subr.bf16.mxu1 %v2591_v30  ;;  %1606 = vmatprep.mubr.bf16.mxu0 %v2011_v37 }
  0x4c   : > { %1671 = vmatprep.mubr.bf16.mxu1 %v2013_v41 }
  0x4d   : > { %2426 = vmatpush3.bf16.msra.mxu0 %v2592_v31 }
  0x4e   : > { %2466 = vmatpush3.bf16.msra.mxu1 %v2593_v32 }
  0x50   : > { %1607 = vmatmul.mubr.bf16.vlgmr.msra.gmra.mrb[16].mxu0 %v2010_v36 }
  0x51   : > { %1672 = vmatmul.mubr.bf16.vlgmr.msra.gmra.mrb[16].mxu1 %v2012_v40  ;;  %1614 = vmatprep.mubr.bf16.mxu0 %v2019_v44 }
  0x52   : > { %1679 = vmatprep.mubr.bf16.mxu1 %v2021_v47 }
  0x58   : > { %1615 = vmatmul.mubr.bf16.gmra.mrb[20].mxu0 %v2018_v49 }
  0x59   : > { %1622 = vmatprep.mubr.bf16.mxu0 %v2027_v51  ;;  %1680 = vmatmul.mubr.bf16.gmra.mrb[20].mxu1 %v2020_v53 }
  0x5a   : > { %1687 = vmatprep.mubr.bf16.mxu1 %v2029_v55 }
  0x60   : > { %1623 = vmatmul.mubr.bf16.gmra.mrb[24].mxu0 %v2026_v59 }
  0x61   : > { %1630 = vmatprep.mubr.bf16.mxu0 %v2035_v60  ;;  %1688 = vmatmul.mubr.bf16.gmra.mrb[24].mxu1 %v2028_v61 }
  0x62   : > { %1695 = vmatprep.mubr.bf16.mxu1 %v2037_v62 }
  0x68   : > { %1631 = vmatmul.mubr.bf16.gmra.mrb[28].mxu0 %v2034_v63 }
  0x69   : > { %1696 = vmatmul.mubr.bf16.gmra.mrb[28].mxu1 %v2036_v0 }
 0x103   : > { %v2347_v6 = vpop.f32.mrb[0].mxu0 }
 0x104   : > { %v2387_v1 = vpop.f32.mrb[0].mxu1  ;;  %v2348_v9 = vpop.f32.mrb[1].mxu0 }
 0x105   : > { %v2388_v2 = vpop.f32.mrb[1].mxu1  ;;  %v2349_v10 = vadd.f32 %v2348_v9, %v2347_v6  ;;  %v2350_v11 = vpop.f32.mrb[2].mxu0 }
 0x106   : > { %v2389_v3 = vadd.f32 %v2388_v2, %v2387_v1  ;;  %v2390_v4 = vpop.f32.mrb[2].mxu1  ;;  %v2351_v12 = vpop.f32.mrb[3].mxu0 }
 0x107   : > { %v2391_v5 = vpop.f32.mrb[3].mxu1  ;;  %v1479_v13 = vadd.f32 %v2349_v10, %v2005_v8  ;;  %v2352_v14 = vadd.f32 %v2351_v12, %v2350_v11 }
 0x108   : > { %v2392_v7 = vadd.f32 %v2391_v5, %v2390_v4 }
 0x109   : > { %v1544_v15 = vadd.f32 %v2389_v3, %v1479_v13  ;;  %v1482_v16 = vadd.f32 %v2352_v14, %v2005_v8 }
 0x10b   : > { %v1547_v17 = vadd.f32 %v2392_v7, %v1482_v16  ;;  %v2353_v18 = vpop.f32.mrb[4].mxu0 }
 0x10c   : > { %v2393_v19 = vpop.f32.mrb[4].mxu1  ;;  %v2354_v20 = vpop.f32.mrb[5].mxu0 }
 0x10d   : > { %v2394_v21 = vpop.f32.mrb[5].mxu1  ;;  %v2355_v22 = vadd.f32 %v2354_v20, %v2353_v18  ;;  %v2356_v24 = vpop.f32.mrb[6].mxu0 }
 0x10e   : > { %v2395_v23 = vadd.f32 %v2394_v21, %v2393_v19  ;;  %v2396_v25 = vpop.f32.mrb[6].mxu1  ;;  %v2357_v26 = vpop.f32.mrb[7].mxu0 }
 0x10f   : > { %v2397_v27 = vpop.f32.mrb[7].mxu1  ;;  %v1487_v28 = vadd.f32 %v2355_v22, %v2005_v8  ;;  %v2358_v29 = vadd.f32 %v2357_v26, %v2356_v24 }
 0x110   : > { %v2398_v30 = vadd.f32 %v2397_v27, %v2396_v25 }
 0x111   : > { %v1552_v31 = vadd.f32 %v2395_v23, %v1487_v28  ;;  %v1490_v32 = vadd.f32 %v2358_v29, %v2005_v8 }
 0x113   : > { %v2913_v33 = vadd.f32 %v2398_v30, %v1490_v32  ;;  %v2359_v34 = vpop.f32.mrb[8].mxu0 }
 0x114   : > { %v2360_v35 = vpop.f32.mrb[9].mxu0  ;;  %v2399_v36 = vpop.f32.mrb[8].mxu1 }
 0x115   : > { %v2361_v37 = vadd.f32 %v2360_v35, %v2359_v34  ;;  %v2362_v38 = vpop.f32.mrb[10].mxu0  ;;  %v2400_v39 = vpop.f32.mrb[9].mxu1 }
 0x116   : > { %v2363_v40 = vpop.f32.mrb[11].mxu0  ;;  %v2401_v42 = vadd.f32 %v2400_v39, %v2399_v36  ;;  %v2402_v43 = vpop.f32.mrb[10].mxu1 }
 0x117   : > { %v1495_v41 = vadd.f32 %v2361_v37, %v2005_v8  ;;  %v2364_v44 = vadd.f32 %v2363_v40, %v2362_v38  ;;  %v2403_v45 = vpop.f32.mrb[11].mxu1 }
 0x118   : > { %v2404_v48 = vadd.f32 %v2403_v45, %v2402_v43 }
 0x119   : > { %v2915_v46 = vadd.f32 %v2401_v42, %v1495_v41  ;;  %v1498_v47 = vadd.f32 %v2364_v44, %v2005_v8 }
 0x11b   : > { %v2917_v49 = vadd.f32 %v2404_v48, %v1498_v47  ;;  %v2365_v50 = vpop.f32.mrb[12].mxu0 }
 0x11c   : > { %v2366_v51 = vpop.f32.mrb[13].mxu0  ;;  %v2405_v52 = vpop.f32.mrb[12].mxu1 }
 0x11d   : > { %v2367_v53 = vadd.f32 %v2366_v51, %v2365_v50  ;;  %v2368_v54 = vpop.f32.mrb[14].mxu0  ;;  %v2406_v55 = vpop.f32.mrb[13].mxu1 }
 0x11e   : > { %v2369_v56 = vpop.f32.mrb[15].mxu0  ;;  %v2407_v58 = vadd.f32 %v2406_v55, %v2405_v52  ;;  %v2408_v59 = vpop.f32.mrb[14].mxu1 }
 0x11f   : > { %v1503_v57 = vadd.f32 %v2367_v53, %v2005_v8  ;;  %v2370_v60 = vadd.f32 %v2369_v56, %v2368_v54  ;;  %v2409_v61 = vpop.f32.mrb[15].mxu1 }
 0x120   : > { %v2410_v0 = vadd.f32 %v2409_v61, %v2408_v59 }
 0x121   : > { %v2919_v62 = vadd.f32 %v2407_v58, %v1503_v57  ;;  %v1506_v63 = vadd.f32 %v2370_v60, %v2005_v8 }
 0x123   : > { %v2921_v1 = vadd.f32 %v2410_v0, %v1506_v63  ;;  %v2427_v2 = vpop.f32.mrb[16].mxu0 }
 0x124   : > { %v2428_v3 = vpop.f32.mrb[17].mxu0  ;;  %v2467_v4 = vpop.f32.mrb[16].mxu1 }
 0x125   : > { %v2429_v5 = vadd.f32 %v2428_v3, %v2427_v2  ;;  %v2430_v6 = vpop.f32.mrb[18].mxu0  ;;  %v2468_v7 = vpop.f32.mrb[17].mxu1 }
 0x126   : > { %v2431_v9 = vpop.f32.mrb[19].mxu0  ;;  %v2469_v11 = vadd.f32 %v2468_v7, %v2467_v4  ;;  %v2470_v12 = vpop.f32.mrb[18].mxu1 }
 0x127   : > { %v1609_v10 = vadd.f32 %v2429_v5, %v1544_v15  ;;  %v2432_v13 = vadd.f32 %v2431_v9, %v2430_v6  ;;  %v2471_v14 = vpop.f32.mrb[19].mxu1 }
 0x128   : > { %v2472_v19 = vadd.f32 %v2471_v14, %v2470_v12 }
 0x129   : > { %v2923_v16 = vadd.f32 %v2469_v11, %v1609_v10  ;;  %v1612_v18 = vadd.f32 %v2432_v13, %v1547_v17 }
 0x12b   : > { %v2925_v8 = vadd.f32 %v2472_v19, %v1612_v18  ;;  %v2433_v20 = vpop.f32.mrb[20].mxu0  ;;  %v1719_v22 = vmul.f32 %v2923_v16, %v2923_v16 }
 0x12c   : > { %v2434_v21 = vpop.f32.mrb[21].mxu0  ;;  %v2473_v24 = vpop.f32.mrb[20].mxu1 }
 0x12d   : > { %v1704_v23 = vadd.f32 %v2925_v8, %v2923_v16  ;;  %v1720_v15 = vmul.f32 %v2925_v8, %v2925_v8  ;;  %v2435_v25 = vadd.f32 %v2434_v21, %v2433_v20  ;;  %v2436_v26 = vpop.f32.mrb[22].mxu0  ;;  %v2474_v27 = vpop.f32.mrb[21].mxu1 }
 0x12e   : > { %v2437_v28 = vpop.f32.mrb[23].mxu0  ;;  %v2475_v30 = vadd.f32 %v2474_v27, %v2473_v24  ;;  %v2476_v32 = vpop.f32.mrb[22].mxu1 }
 0x12f   : > { %v1727_v17 = vadd.f32 %v1720_v15, %v1719_v22  ;;  %v1617_v29 = vadd.f32 %v2435_v25, %v1552_v31  ;;  %v2438_v34 = vadd.f32 %v2437_v28, %v2436_v26  ;;  %v2477_v35 = vpop.f32.mrb[23].mxu1 }
 0x130   : > { %v2478_v38 = vadd.f32 %v2477_v35, %v2476_v32 }
 0x131   : > { %v2933_v36 = vadd.f32 %v2475_v30, %v1617_v29  ;;  %v1620_v37 = vadd.f32 %v2438_v34, %v2913_v33 }
 0x133   : > { %v1705_v39 = vadd.f32 %v1704_v23, %v2933_v36  ;;  %v1721_v40 = vmul.f32 %v2933_v36, %v2933_v36  ;;  %v2939_v41 = vadd.f32 %v2478_v38, %v1620_v37  ;;  %v2439_v42 = vpop.f32.mrb[24].mxu0 }
 0x134   : > { %v2440_v43 = vpop.f32.mrb[25].mxu0  ;;  %v2479_v47 = vpop.f32.mrb[24].mxu1 }
 0x135   : > { %v1728_v44 = vadd.f32 %v1727_v17, %v1721_v40  ;;  %v1706_v31 = vadd.f32 %v1705_v39, %v2939_v41  ;;  %v1722_v45 = vmul.f32 %v2939_v41, %v2939_v41  ;;  %v2441_v48 = vadd.f32 %v2440_v43, %v2439_v42  ;;  %v2442_v50 = vpop.f32.mrb[26].mxu0  ;;  %v2480_v33 = vpop.f32.mrb[25].mxu1 }
 0x136   : > { %v2443_v51 = vpop.f32.mrb[27].mxu0  ;;  %v2481_v54 = vadd.f32 %v2480_v33, %v2479_v47  ;;  %v2482_v55 = vpop.f32.mrb[26].mxu1 }
 0x137   : > { %v1729_v52 = vadd.f32 %v1728_v44, %v1722_v45  ;;  %v1625_v53 = vadd.f32 %v2441_v48, %v2915_v46  ;;  %v2444_v56 = vadd.f32 %v2443_v51, %v2442_v50  ;;  %v2483_v57 = vpop.f32.mrb[27].mxu1 }
 0x138   : > { %v2484_v60 = vadd.f32 %v2483_v57, %v2482_v55 }
 0x139   : > { %v2945_v58 = vadd.f32 %v2481_v54, %v1625_v53  ;;  %v1628_v59 = vadd.f32 %v2444_v56, %v2917_v49 }
 0x13b   : > { %v1707_v61 = vadd.f32 %v1706_v31, %v2945_v58  ;;  %v1723_v63 = vmul.f32 %v2945_v58, %v2945_v58  ;;  %v1693_v0 = vadd.f32 %v2484_v60, %v1628_v59  ;;  %v2445_v2 = vpop.f32.mrb[28].mxu0 }
 0x13c   : > { %v2446_v3 = vpop.f32.mrb[29].mxu0  ;;  %v2485_v6 = vpop.f32.mrb[28].mxu1 }
 0x13d   : > { %v1730_v4 = vadd.f32 %v1729_v52, %v1723_v63  ;;  %v1708_v5 = vadd.f32 %v1707_v61, %v1693_v0  ;;  %v1724_v46 = vmul.f32 %v1693_v0, %v1693_v0  ;;  %v2447_v7 = vadd.f32 %v2446_v3, %v2445_v2  ;;  %v2448_v9 = vpop.f32.mrb[30].mxu0  ;;  %v2486_v10 = vpop.f32.mrb[29].mxu1 }
 0x13e   : > { %v2449_v11 = vpop.f32.mrb[31].mxu0  ;;  %v2487_v13 = vadd.f32 %v2486_v10, %v2485_v6  ;;  %v2488_v14 = vpop.f32.mrb[30].mxu1 }
 0x13f   : > { %v1731_v12 = vadd.f32 %v1730_v4, %v1724_v46  ;;  %v1633_v49 = vadd.f32 %v2447_v7, %v2919_v62  ;;  %v2450_v18 = vadd.f32 %v2449_v11, %v2448_v9  ;;  %v2489_v19 = vpop.f32.mrb[31].mxu1 }
 0x140   : > { %v2490_v22 = vadd.f32 %v2489_v19, %v2488_v14 }
 0x141   : > { %v1698_v20 = vadd.f32 %v2487_v13, %v1633_v49  ;;  %v1636_v21 = vadd.f32 %v2450_v18, %v2921_v1 }
 0x143   : > { %v1709_v23 = vadd.f32 %v1708_v5, %v1698_v20  ;;  %v1725_v15 = vmul.f32 %v1698_v20, %v1698_v20  ;;  %v1701_v24 = vadd.f32 %v2490_v22, %v1636_v21 }
 0x145   : > { %v1732_v25 = vadd.f32 %v1731_v12, %v1725_v15  ;;  %v1710_v26 = vadd.f32 %v1709_v23, %v1701_v24  ;;  %v1726_v27 = vmul.f32 %v1701_v24, %v1701_v24 }
 0x147   : > { %v1711_v28 = vrot.slane %v1710_v26, 4  ;;  %v1733_v17 = vadd.f32 %v1732_v25, %v1726_v27 }
 0x149   : > { %v1712_v29 = vadd.f32 %v1711_v28, %v1710_v26  ;;  %v1734_v30 = vrot.slane %v1733_v17, 4 }
 0x14b   : > { %v1713_v32 = vrot.slane %v1712_v29, 2  ;;  %v1735_v62 = vadd.f32 %v1734_v30, %v1733_v17 }
 0x14d   : > { %v1714_v34 = vadd.f32 %v1713_v32, %v1712_v29  ;;  %v1736_v35 = vrot.slane %v1735_v62, 2 }
 0x14f   : > { %v1715_v37 = vrot.slane %v1714_v34, 1  ;;  %v1737_v38 = vadd.f32 %v1736_v35, %v1735_v62 }
 0x151   : > { %v1716_v39 = vadd.f32 %v1715_v37, %v1714_v34  ;;  %v1738_v40 = vrot.slane %v1737_v38, 1 }
 0x153   : > { %v1718_v1 = vmul.f32 0.015625, %v1716_v39  ;;  %v1739_v42 = vadd.f32 %v1738_v40, %v1737_v38 }
 0x155   : > { %v1740_v43 = vmul.f32 0.015625, %v1739_v42  ;;  %v1741_v44 = vmul.f32 %v1718_v1, %v1718_v1  ;;  %v1744_v31 = vsub.f32 %v2923_v16, %v1718_v1  ;;  %v1745_v45 = vsub.f32 %v2925_v8, %v1718_v1 }
 0x156   : > { %v1746_v47 = vsub.f32 %v2933_v36, %v1718_v1  ;;  %v1747_v48 = vsub.f32 %v2939_v41, %v1718_v1  ;;  %v1748_v50 = vsub.f32 %v2945_v58, %v1718_v1  ;;  %v1749_v33 = vsub.f32 %v1693_v0, %v1718_v1 }
 0x157   : > { %v1742_v51 = vsub.f32 %v1740_v43, %v1741_v44  ;;  %v1750_v52 = vsub.f32 %v1698_v20, %v1718_v1  ;;  %v1751_v53 = vsub.f32 %v1701_v24, %v1718_v1 }
 0x159   : > { %v1743_v54 = vmax.f32 %v1742_v51, 0.0 }
 0x15b   : > { %v1752_v55 = vadd.f32 1e-05, %v1743_v54 }
 0x15d   : > { %2610 = vrsqrt.f32 %v1752_v55 }
 0x167   : > { %v2611_v56 = vpop.eup %2610 }
 0x168   : > { %v1754_v57 = vmul.f32 %v2611_v56, %v1744_v31  ;;  %v1755_v59 = vmul.f32 %v2611_v56, %v1745_v45  ;;  %v1756_v16 = vmul.f32 %v2611_v56, %v1746_v47  ;;  %v1757_v60 = vmul.f32 %v2611_v56, %v1747_v48 }
 0x169   : > { %v1758_v8 = vmul.f32 %v2611_v56, %v1748_v50  ;;  %v1759_v61 = vmul.f32 %v2611_v56, %v1749_v33  ;;  %v1760_v36 = vmul.f32 %v2611_v56, %v1750_v52  ;;  %v1761_v63 = vmul.f32 %v2611_v56, %v1751_v53 }
 0x16a   : > { %vm1762_vm0 = vcmp.ge.f32.partialorder %v1754_v57, 0.0  ;;  %vm1763_vm1 = vcmp.ge.f32.partialorder %v1755_v59, 0.0  ;;  %vm1764_vm2 = vcmp.ge.f32.partialorder %v1756_v16, 0.0  ;;  %vm1765_vm3 = vcmp.ge.f32.partialorder %v1757_v60, 0.0 }
 0x16b   : > { %vm1766_vm4 = vcmp.ge.f32.partialorder %v1758_v8, 0.0  ;;  %vm1767_vm5 = vcmp.ge.f32.partialorder %v1759_v61, 0.0  ;;  %vm1768_vm6 = vcmp.ge.f32.partialorder %v1760_v36, 0.0  ;;  %vm1769_vm7 = vcmp.ge.f32.partialorder %v1761_v63, 0.0 }
 0x16c   : > { %v1770_v41 = vmul.f32 0.2, %v1754_v57  ;;  %v1771_v58 = vmul.f32 0.2, %v1755_v59  ;;  %v1772_v0 = vmul.f32 0.2, %v1756_v16 }
 0x16d   : > { %v1773_v2 = vmul.f32 0.2, %v1757_v60  ;;  %v1774_v3 = vmul.f32 0.2, %v1758_v8  ;;  %v1775_v4 = vmul.f32 0.2, %v1759_v61 }
 0x16e   : > { %v1776_v5 = vmul.f32 0.2, %v1760_v36  ;;  %v1777_v46 = vmul.f32 0.2, %v1761_v63  ;;  %v1778_v6 = vsel %vm1762_vm0, %v1754_v57, %v1770_v41  ;;  %v1779_v7 = vsel %vm1763_vm1, %v1755_v59, %v1771_v58 }
 0x16f   : > { %v1780_v9 = vsel %vm1764_vm2, %v1756_v16, %v1772_v0  ;;  %v1781_v10 = vsel %vm1765_vm3, %v1757_v60, %v1773_v2  ;;  %v1782_v11 = vsel %vm1766_vm4, %v1758_v8, %v1774_v3  ;;  %v1783_v12 = vsel %vm1767_vm5, %v1759_v61, %v1775_v4 }
 0x170   : > { %v1784_v49 = vsel %vm1768_vm6, %v1760_v36, %v1776_v5  ;;  %v1785_v13 = vsel %vm1769_vm7, %v1761_v63, %v1777_v46  ;;  %v2280_v14 = vpack.c.bf16 %v1779_v7, %v1778_v6  ;;  %v2285_v18 = vpack.c.bf16 %v1781_v10, %v1780_v9 }
 0x171   : > { %v2290_v19 = vpack.c.bf16 %v1783_v12, %v1782_v11  ;;  %v2295_v20 = vpack.c.bf16 %v1785_v13, %v1784_v49 }
 0x172   : > { %2281 = vst [vmem:[%s221_s12] sm:$0xff] %v2280_v14   ;;  %2328 = vst [vmem:[%s221_s12 + $0x8] sm:$0xff] %v2285_v18  }
 0x173   : > { %2329 = vst [vmem:[%s221_s12 + $0x10] sm:$0xff] %v2290_v19   ;;  %2330 = vst [vmem:[%s221_s12 + $0x18] sm:$0xff] %v2295_v20  }
 0x174 PF: > { %s13_s14 = sadd.s32 1, %s2634_s14   ;;  %s2983_s12 = smov %s2630_s13 }
 0x175   : > { %p10_p5 = scmp.ge.s32.totalorder %s13_s14, 4   ;;  %s2984_s13 = smov %s2986_s15 }
 0x177   :  { %12 = sbr.rel (!%p10_p5) target bundleno = 2 (0x2), region = 194 }

// kernel: image_discriminator.7
= control target key start
LH: loop header
LB: loop body
LE: loop exit
PB: predicated region body
PF: predicated region fallthrough
CT: control target
= control target key end

     0   :  { %s3191_s12 = smov 0   ;;  %s3193_s13 = smov 0   ;;  %s4069_s0 = inlined_call_operand.vmem [shape: bf16[2,16,2048], index: 0, kind: input, shape index: {}]   ;;  %s4070_s1 = inlined_call_operand.vmem [shape: bf16[2048,256], index: 1, kind: input, shape index: {}]   ;;  %s4071_s2 = inlined_call_operand.vmem [shape: f32[1,256], index: 2, kind: input, shape index: {}]   ;;  %s4072_s3 = inlined_call_operand.vmem [shape: bf16[2,16,256], index: 3, kind: output, shape index: {}]  }
   0x1   :  { %s3195_s14 = smov 0  }
   0x2 LB: > { %s22_s15 = sadd.s32 1, %s3165_s13  ;;  %p2418_p0 = scmp.ge.s32.totalorder %s3169_s14, 1  ;;  %s3169_s14 = sphi %s3195_s14, %s13_s14   ;;  %s3165_s13 = sphi %s3193_s13, %s4074_s13   ;;  %s3161_s12 = sphi %s3191_s12, %s4073_s12  }
   0x3   : > { %p23_p1 = scmp.ge.s32.totalorder %s22_s15, 2  ;;  %p172_p2 = scmp.lt.s32.totalorder %s3169_s14, 3 }
   0x5   : > { %s4076_s15 = smov (%p23_p1, %s22_s15), 0  ;;  %p173_p3 = pnand %p2418_p0, %p172_p2 }
   0x6   : > { %v2759_v0 = vld [vmem:[%s4070_s1 + $0x4] ss:$8 sps:$4 sm:$0xff] (!%p173_p3)   ;;  %v2763_v2 = vld [vmem:[%s4070_s1] ss:$8 sps:$4 sm:$0xff] (!%p173_p3)   ;;  %v2765_v4 = vld [vmem:[%s4070_s1 + $0x14] ss:$8 sps:$4 sm:$0xff] (!%p173_p3)  }
   0x7   : > { %176 = sbr.rel (%p173_p3) target bundleno = 525 (0x20d), region = 32  ;;  %v2761_v1 = vld [vmem:[%s4070_s1 + $0x404] ss:$8 sps:$4 sm:$0xff] (!%p173_p3)   ;;  %1879 = vmatprep.subr.bf16.mxu1 (!%p173_p3), %v2759_v0  ;;  %v2764_v3 = vld [vmem:[%s4070_s1 + $0x400] ss:$8 sps:$4 sm:$0xff] (!%p173_p3)   ;;  %p209_p4 = scmp.lt.s32.totalorder (!%p173_p3), %s3161_s12, 1 }
   0x8   : > { %2051 = vmatprep.subr.bf16.mxu0 (!%p173_p3), %v2761_v1  ;;  %1880 = vmatpush1.bf16.msra.mxu1 (!%p173_p3), %v2763_v2  ;;  %v2767_v5 = vld [vmem:[%s4070_s1 + $0x414] ss:$8 sps:$4 sm:$0xff] (!%p173_p3)   ;;  %v2769_v6 = vld [vmem:[%s4070_s1 + $0x10] ss:$8 sps:$4 sm:$0xff] (!%p173_p3)   ;;  %v2771_v8 = vld [vmem:[%s4070_s1 + $0x24] ss:$8 sps:$4 sm:$0xff] (!%p173_p3)  }
   0x9   : > { %2052 = vmatpush1.bf16.msra.mxu0 (!%p173_p3), %v2764_v3  ;;  %1881 = vmatprep.subr.bf16.mxu1 (!%p173_p3), %v2765_v4  ;;  %v2770_v7 = vld [vmem:[%s4070_s1 + $0x410] ss:$8 sps:$4 sm:$0xff] (!%p173_p3)   ;;  %v2773_v9 = vld [vmem:[%s4070_s1 + $0x424] ss:$8 sps:$4 sm:$0xff] (!%p173_p3)   ;;  %v2775_v10 = vld [vmem:[%s4070_s1 + $0x20] ss:$8 sps:$4 sm:$0xff] (!%p173_p3)  }
   0xa   : > { %2053 = vmatprep.subr.bf16.mxu0 (!%p173_p3), %v2767_v5  ;;  %v2776_v11 = vld [vmem:[%s4070_s1 + $0x420] ss:$8 sps:$4 sm:$0xff] (!%p173_p3)   ;;  %v2777_v12 = vld [vmem:[%s4070_s1 + $0x34] ss:$8 sps:$4 sm:$0xff] (!%p173_p3)   ;;  %v2781_v14 = vld [vmem:[%s4070_s1 + $0x30] ss:$8 sps:$4 sm:$0xff] (!%p173_p3)  }
   0xb   : > { %v2779_v13 = vld [vmem:[%s4070_s1 + $0x434] ss:$8 sps:$4 sm:$0xff] (!%p173_p3)   ;;  %v2782_v15 = vld [vmem:[%s4070_s1 + $0x430] ss:$8 sps:$4 sm:$0xff] (!%p173_p3)   ;;  %v2783_v16 = vld [vmem:[%s4070_s1 + $0x44] ss:$8 sps:$4 sm:$0xff] (!%p173_p3)  }
   0xc   : > { %1882 = vmatpush1.bf16.msra.mxu1 (!%p173_p3), %v2769_v6  ;;  %v2785_v17 = vld [vmem:[%s4070_s1 + $0x444] ss:$8 sps:$4 sm:$0xff] (!%p173_p3)   ;;  %v2787_v18 = vld [vmem:[%s4070_s1 + $0x40] ss:$8 sps:$4 sm:$0xff] (!%p173_p3)   ;;  %v2789_v20 = vld [vmem:[%s4070_s1 + $0x54] ss:$8 sps:$4 sm:$0xff] (!%p173_p3)  }
   0xd   : > { %2054 = vmatpush1.bf16.msra.mxu0 (!%p173_p3), %v2770_v7  ;;  %1883 = vmatprep.subr.bf16.mxu1 (!%p173_p3), %v2771_v8  ;;  %v2788_v19 = vld [vmem:[%s4070_s1 + $0x440] ss:$8 sps:$4 sm:$0xff] (!%p173_p3)   ;;  %v2791_v21 = vld [vmem:[%s4070_s1 + $0x454] ss:$8 sps:$4 sm:$0xff] (!%p173_p3)   ;;  %v2793_v22 = vld [vmem:[%s4070_s1 + $0x50] ss:$8 sps:$4 sm:$0xff] (!%p173_p3)  }
   0xe   : > { %2055 = vmatprep.subr.bf16.mxu0 %v2773_v9  ;;  %v2794_v23 = vld [vmem:[%s4070_s1 + $0x450] ss:$8 sps:$4 sm:$0xff]   ;;  %v2795_v24 = vld [vmem:[%s4070_s1 + $0x64] ss:$8 sps:$4 sm:$0xff]   ;;  %v2799_v26 = vld [vmem:[%s4070_s1 + $0x60] ss:$8 sps:$4 sm:$0xff]  }
   0xf   : > { %v2797_v25 = vld [vmem:[%s4070_s1 + $0x464] ss:$8 sps:$4 sm:$0xff]   ;;  %v2800_v27 = vld [vmem:[%s4070_s1 + $0x460] ss:$8 sps:$4 sm:$0xff]   ;;  %v2801_v28 = vld [vmem:[%s4070_s1 + $0x74] ss:$8 sps:$4 sm:$0xff]  }
  0x10   : > { %1884 = vmatpush1.bf16.msra.mxu1 %v2775_v10  ;;  %v2803_v29 = vld [vmem:[%s4070_s1 + $0x474] ss:$8 sps:$4 sm:$0xff]   ;;  %v2805_v30 = vld [vmem:[%s4070_s1 + $0x70] ss:$8 sps:$4 sm:$0xff]   ;;  %v2807_v32 = vld [vmem:[%s4070_s1 + $0x84] ss:$8 sps:$4 sm:$0xff]  }
  0x11   : > { %2056 = vmatpush1.bf16.msra.mxu0 %v2776_v11  ;;  %1885 = vmatprep.subr.bf16.mxu1 %v2777_v12  ;;  %v2806_v31 = vld [vmem:[%s4070_s1 + $0x470] ss:$8 sps:$4 sm:$0xff]   ;;  %v2809_v33 = vld [vmem:[%s4070_s1 + $0x484] ss:$8 sps:$4 sm:$0xff]   ;;  %v2811_v34 = vld [vmem:[%s4070_s1 + $0x80] ss:$8 sps:$4 sm:$0xff]  }
  0x12   : > { %2057 = vmatprep.subr.bf16.mxu0 %v2779_v13  ;;  %v2812_v35 = vld [vmem:[%s4070_s1 + $0x480] ss:$8 sps:$4 sm:$0xff]   ;;  %v2813_v36 = vld [vmem:[%s4070_s1 + $0x94] ss:$8 sps:$4 sm:$0xff]   ;;  %s4078_s12 = smov (!%p209_p4, %s3161_s12), 1 }
  0x13   : > { %v2815_v37 = vld [vmem:[%s4070_s1 + $0x494] ss:$8 sps:$4 sm:$0xff]   ;;  %v2817_v38 = vld [vmem:[%s4070_s1 + $0x90] ss:$8 sps:$4 sm:$0xff]   ;;  %v2819_v40 = vld [vmem:[%s4070_s1 + $0xa4] ss:$8 sps:$4 sm:$0xff]  }
  0x14   : > { %1886 = vmatpush1.bf16.msra.mxu1 %v2781_v14  ;;  %v2818_v39 = vld [vmem:[%s4070_s1 + $0x490] ss:$8 sps:$4 sm:$0xff]   ;;  %s2699_s29 = sshll.u32 %s4078_s12, 7  ;;  %v2821_v41 = vld [vmem:[%s4070_s1 + $0x4a4] ss:$8 sps:$4 sm:$0xff]   ;;  %s2700_s18 = sshll.u32 %s4078_s12, 4 }
  0x15   : > { %2058 = vmatpush1.bf16.msra.mxu0 %v2782_v15  ;;  %1887 = vmatprep.subr.bf16.mxu1 %v2783_v16  ;;  %v2823_v42 = vld [vmem:[%s4070_s1 + $0xa0] ss:$8 sps:$4 sm:$0xff]   ;;  %s3351_s11 = scalar_lea.vmem %s4069_s0, %s2699_s29  ;;  %v2825_v44 = vld [vmem:[%s4070_s1 + $0xb4] ss:$8 sps:$4 sm:$0xff]   ;;  %v2829_v46 = vld [vmem:[%s4070_s1 + $0xb0] ss:$8 sps:$4 sm:$0xff]   ;;  %s233_s21 = scalar_lea.vmem %s4072_s3, %s2700_s18 }
  0x16   : > { %2059 = vmatprep.subr.bf16.mxu0 %v2785_v17  ;;  %v2824_v43 = vld [vmem:[%s4070_s1 + $0x4a0] ss:$8 sps:$4 sm:$0xff]   ;;  %v2827_v45 = vld [vmem:[%s4070_s1 + $0x4b4] ss:$8 sps:$4 sm:$0xff]   ;;  %v2830_v47 = vld [vmem:[%s4070_s1 + $0x4b0] ss:$8 sps:$4 sm:$0xff]  }
  0x17   : > { %v235_v48 = vld [vmem:[%s3351_s11] sm:$0xff]  ;;  %v2837_v58 = vld [vmem:[%s4070_s1 + $0xd4] ss:$8 sps:$4 sm:$0xff]   ;;  %v2841_v60 = vld [vmem:[%s4070_s1 + $0xd0] ss:$8 sps:$4 sm:$0xff]  }
  0x18   : > { %1888 = vmatpush1.bf16.msra.mxu1 %v2787_v18  ;;  %v243_v49 = vld [vmem:[%s3351_s11 + $0x40] sm:$0xff]  ;;  %v2839_v59 = vld [vmem:[%s4070_s1 + $0x4d4] ss:$8 sps:$4 sm:$0xff]   ;;  %v2842_v61 = vld [vmem:[%s4070_s1 + $0x4d0] ss:$8 sps:$4 sm:$0xff]  }
  0x19   : > { %2060 = vmatpush1.bf16.msra.mxu0 %v2788_v19  ;;  %1889 = vmatprep.subr.bf16.mxu1 %v2789_v20  ;;  %v2831_v50 = vld [vmem:[%s4070_s1 + $0xc4] ss:$8 sps:$4 sm:$0xff]   ;;  %v2424_v52 = vcombine.high %v235_v48, %v243_v49  ;;  %v2835_v56 = vld [vmem:[%s4070_s1 + $0xc0] ss:$8 sps:$4 sm:$0xff]   ;;  %v2849_v2 = vld [vmem:[%s4070_s1 + $0xf4] ss:$8 sps:$4 sm:$0xff]   ;;  %v2423_v8 = vcombine.low %v235_v48, %v243_v49 }
  0x1a   : > { %2061 = vmatprep.subr.bf16.mxu0 %v2791_v21  ;;  %v2833_v51 = vld [vmem:[%s4070_s1 + $0x4c4] ss:$8 sps:$4 sm:$0xff]   ;;  %v2836_v57 = vld [vmem:[%s4070_s1 + $0x4c0] ss:$8 sps:$4 sm:$0xff]   ;;  %v2851_v3 = vld [vmem:[%s4070_s1 + $0x4f4] ss:$8 sps:$4 sm:$0xff]  }
  0x1b   : > { %v239_v53 = vld [vmem:[%s3351_s11 + $0x20] sm:$0xff]  ;;  %1911 = vmatprep.mubr.bf16.mxu1 %v2424_v52  ;;  %v2853_v4 = vld [vmem:[%s4070_s1 + $0xf0] ss:$8 sps:$4 sm:$0xff]   ;;  %v2863_v12 = vld [vmem:[%s4070_s1 + $0x114] ss:$8 sps:$4 sm:$0xff]  }
  0x1c   : > { %1890 = vmatpush1.bf16.msra.mxu1 %v2793_v22  ;;  %v247_v54 = vld [vmem:[%s3351_s11 + $0x60] sm:$0xff]  ;;  %v2854_v5 = vld [vmem:[%s4070_s1 + $0x4f0] ss:$8 sps:$4 sm:$0xff]   ;;  %v2866_v13 = vld [vmem:[%s4070_s1 + $0x514] ss:$8 sps:$4 sm:$0xff]  }
  0x1d   : > { %2062 = vmatpush1.bf16.msra.mxu0 %v2794_v23  ;;  %1891 = vmatprep.subr.bf16.mxu1 %v2795_v24  ;;  %v2432_v55 = vcombine.high %v239_v53, %v247_v54  ;;  %v2843_v62 = vld [vmem:[%s4070_s1 + $0xe4] ss:$8 sps:$4 sm:$0xff]   ;;  %v2847_v0 = vld [vmem:[%s4070_s1 + $0xe0] ss:$8 sps:$4 sm:$0xff]   ;;  %v2431_v10 = vcombine.low %v239_v53, %v247_v54  ;;  %v2861_v14 = vld [vmem:[%s4070_s1 + $0x110] ss:$8 sps:$4 sm:$0xff]  }
  0x1e   : > { %2063 = vmatprep.subr.bf16.mxu0 %v2797_v25  ;;  %v2845_v63 = vld [vmem:[%s4070_s1 + $0x4e4] ss:$8 sps:$4 sm:$0xff]   ;;  %v2848_v1 = vld [vmem:[%s4070_s1 + $0x4e0] ss:$8 sps:$4 sm:$0xff]   ;;  %v2864_v15 = vld [vmem:[%s4070_s1 + $0x510] ss:$8 sps:$4 sm:$0xff]  }
  0x1f   : > { %2083 = vmatprep.mubr.bf16.mxu0 %v2432_v55  ;;  %v2857_v6 = vld [vmem:[%s4070_s1 + $0x104] ss:$8 sps:$4 sm:$0xff]   ;;  %v2855_v9 = vld [vmem:[%s4070_s1 + $0x100] ss:$8 sps:$4 sm:$0xff]   ;;  %v2875_v20 = vld [vmem:[%s4070_s1 + $0x134] ss:$8 sps:$4 sm:$0xff]  }
  0x20   : > { %1892 = vmatpush1.bf16.msra.mxu1 %v2799_v26  ;;  %v2860_v7 = vld [vmem:[%s4070_s1 + $0x504] ss:$8 sps:$4 sm:$0xff]   ;;  %v2858_v11 = vld [vmem:[%s4070_s1 + $0x500] ss:$8 sps:$4 sm:$0xff]   ;;  %v2878_v21 = vld [vmem:[%s4070_s1 + $0x534] ss:$8 sps:$4 sm:$0xff]  }
  0x21   : > { %2064 = vmatpush1.bf16.msra.mxu0 %v2800_v27  ;;  %1893 = vmatprep.subr.bf16.mxu1 %v2801_v28  ;;  %v2869_v16 = vld [vmem:[%s4070_s1 + $0x124] ss:$8 sps:$4 sm:$0xff]   ;;  %v2867_v18 = vld [vmem:[%s4070_s1 + $0x120] ss:$8 sps:$4 sm:$0xff]   ;;  %v2873_v22 = vld [vmem:[%s4070_s1 + $0x130] ss:$8 sps:$4 sm:$0xff]  }
  0x22   : > { %2065 = vmatprep.subr.bf16.mxu0 %v2803_v29  ;;  %v2872_v17 = vld [vmem:[%s4070_s1 + $0x524] ss:$8 sps:$4 sm:$0xff]   ;;  %v2870_v19 = vld [vmem:[%s4070_s1 + $0x520] ss:$8 sps:$4 sm:$0xff]   ;;  %v2876_v23 = vld [vmem:[%s4070_s1 + $0x530] ss:$8 sps:$4 sm:$0xff]  }
  0x23   : > { %v2881_v24 = vld [vmem:[%s4070_s1 + $0x144] ss:$8 sps:$4 sm:$0xff]   ;;  %v2879_v26 = vld [vmem:[%s4070_s1 + $0x140] ss:$8 sps:$4 sm:$0xff]   ;;  %v2887_v28 = vld [vmem:[%s4070_s1 + $0x154] ss:$8 sps:$4 sm:$0xff]  }
  0x24   : > { %1894 = vmatpush1.bf16.msra.mxu1 %v2805_v30  ;;  %v2884_v25 = vld [vmem:[%s4070_s1 + $0x544] ss:$8 sps:$4 sm:$0xff]   ;;  %v2882_v27 = vld [vmem:[%s4070_s1 + $0x540] ss:$8 sps:$4 sm:$0xff]   ;;  %v2890_v29 = vld [vmem:[%s4070_s1 + $0x554] ss:$8 sps:$4 sm:$0xff]  }
  0x25   : > { %2066 = vmatpush1.bf16.msra.mxu0 %v2806_v31  ;;  %1895 = vmatprep.subr.bf16.mxu1 %v2807_v32  ;;  %v2885_v30 = vld [vmem:[%s4070_s1 + $0x150] ss:$8 sps:$4 sm:$0xff]   ;;  %v2893_v32 = vld [vmem:[%s4070_s1 + $0x164] ss:$8 sps:$4 sm:$0xff]   ;;  %v2903_v48 = vld [vmem:[%s4070_s1 + $0x180] ss:$8 sps:$4 sm:$0xff]  }
  0x26   : > { %2067 = vmatprep.subr.bf16.mxu0 %v2809_v33  ;;  %v2888_v31 = vld [vmem:[%s4070_s1 + $0x550] ss:$8 sps:$4 sm:$0xff]   ;;  %v2896_v33 = vld [vmem:[%s4070_s1 + $0x564] ss:$8 sps:$4 sm:$0xff]   ;;  %v2906_v49 = vld [vmem:[%s4070_s1 + $0x580] ss:$8 sps:$4 sm:$0xff]  }
  0x27   : > { %v2909_v52 = vld [vmem:[%s4070_s1 + $0x190] ss:$8 sps:$4 sm:$0xff]   ;;  %v2917_v54 = vld [vmem:[%s4070_s1 + $0x1a4] ss:$8 sps:$4 sm:$0xff]  }
  0x28   : > { %1896 = vmatpush1.bf16.msra.mxu1 %v2811_v34  ;;  %v2891_v34 = vld [vmem:[%s4070_s1 + $0x160] ss:$8 sps:$4 sm:$0xff]   ;;  %v2912_v53 = vld [vmem:[%s4070_s1 + $0x590] ss:$8 sps:$4 sm:$0xff]   ;;  %v2920_v55 = vld [vmem:[%s4070_s1 + $0x5a4] ss:$8 sps:$4 sm:$0xff]  }
  0x29   : > { %2068 = vmatpush1.bf16.msra.mxu0 %v2812_v35  ;;  %1897 = vmatprep.subr.bf16.mxu1 %v2813_v36  ;;  %v2894_v35 = vld [vmem:[%s4070_s1 + $0x560] ss:$8 sps:$4 sm:$0xff]  }
  0x2a   : > { %2069 = vmatprep.subr.bf16.mxu0 %v2815_v37  ;;  %v3502_v36 = vld [vmem:[%s3351_s11 + $0x8] sm:$0xff] }
  0x2b   : > { %v3505_v37 = vld [vmem:[%s3351_s11 + $0x48] sm:$0xff] }
  0x2c   : > { %1898 = vmatpush1.bf16.msra.mxu1 %v2817_v38  ;;  %v2899_v38 = vld [vmem:[%s4070_s1 + $0x174] ss:$8 sps:$4 sm:$0xff]  }
  0x2d   : > { %2070 = vmatpush1.bf16.msra.mxu0 %v2818_v39  ;;  %1899 = vmatprep.subr.bf16.mxu1 %v2819_v40  ;;  %v2902_v39 = vld [vmem:[%s4070_s1 + $0x574] ss:$8 sps:$4 sm:$0xff]   ;;  %v2426_v40 = vcombine.high %v3502_v36, %v3505_v37 }
  0x2e   : > { %2071 = vmatprep.subr.bf16.mxu0 %v2821_v41  ;;  %v3516_v41 = vld [vmem:[%s3351_s11 + $0x28] sm:$0xff] }
  0x30   : > { %1900 = vmatpush1.bf16.msra.mxu1 %v2823_v42  ;;  %v3519_v42 = vld [vmem:[%s3351_s11 + $0x68] sm:$0xff] }
  0x31   : > { %2072 = vmatpush1.bf16.msra.mxu0 %v2824_v43  ;;  %1901 = vmatprep.subr.bf16.mxu1 %v2825_v44  ;;  %v2434_v43 = vcombine.high %v3516_v41, %v3519_v42  ;;  %v2897_v44 = vld [vmem:[%s4070_s1 + $0x170] ss:$8 sps:$4 sm:$0xff]  }
  0x32   : > { %2073 = vmatprep.subr.bf16.mxu0 %v2827_v45  ;;  %v2900_v45 = vld [vmem:[%s4070_s1 + $0x570] ss:$8 sps:$4 sm:$0xff]  }
  0x34   : > { %1902 = vmatpush1.bf16.msra.mxu1 %v2829_v46  ;;  %v2905_v46 = vld [vmem:[%s4070_s1 + $0x184] ss:$8 sps:$4 sm:$0xff]  }
  0x35   : > { %2074 = vmatpush1.bf16.msra.mxu0 %v2830_v47  ;;  %1903 = vmatprep.subr.bf16.mxu1 %v2831_v50  ;;  %v2908_v47 = vld [vmem:[%s4070_s1 + $0x584] ss:$8 sps:$4 sm:$0xff]   ;;  %v2911_v50 = vld [vmem:[%s4070_s1 + $0x194] ss:$8 sps:$4 sm:$0xff]  }
  0x36   : > { %2075 = vmatprep.subr.bf16.mxu0 %v2833_v51  ;;  %v2914_v51 = vld [vmem:[%s4070_s1 + $0x594] ss:$8 sps:$4 sm:$0xff]  }
  0x38   : > { %1904 = vmatpush1.bf16.msra.mxu1 %v2835_v56  ;;  %v2915_v56 = vld [vmem:[%s4070_s1 + $0x1a0] ss:$8 sps:$4 sm:$0xff]  }
  0x39   : > { %2076 = vmatpush1.bf16.msra.mxu0 %v2836_v57  ;;  %1905 = vmatprep.subr.bf16.mxu1 %v2837_v58  ;;  %v2918_v57 = vld [vmem:[%s4070_s1 + $0x5a0] ss:$8 sps:$4 sm:$0xff]   ;;  %v2923_v58 = vld [vmem:[%s4070_s1 + $0x1b4] ss:$8 sps:$4 sm:$0xff]  }
  0x3a   : > { %2077 = vmatprep.subr.bf16.mxu0 %v2839_v59  ;;  %v2926_v59 = vld [vmem:[%s4070_s1 + $0x5b4] ss:$8 sps:$4 sm:$0xff]  }
  0x3c   : > { %1906 = vmatpush1.bf16.msra.mxu1 %v2841_v60  ;;  %v2921_v60 = vld [vmem:[%s4070_s1 + $0x1b0] ss:$8 sps:$4 sm:$0xff]  }
  0x3d   : > { %2078 = vmatpush1.bf16.msra.mxu0 %v2842_v61  ;;  %1907 = vmatprep.subr.bf16.mxu1 %v2843_v62  ;;  %v2924_v61 = vld [vmem:[%s4070_s1 + $0x5b0] ss:$8 sps:$4 sm:$0xff]   ;;  %v2929_v62 = vld [vmem:[%s4070_s1 + $0x1c4] ss:$8 sps:$4 sm:$0xff]  }
  0x3e   : > { %2079 = vmatprep.subr.bf16.mxu0 %v2845_v63  ;;  %v2932_v63 = vld [vmem:[%s4070_s1 + $0x5c4] ss:$8 sps:$4 sm:$0xff]  }
  0x40   : > { %1908 = vmatpush1.bf16.msra.mxu1 %v2847_v0  ;;  %v2927_v0 = vld [vmem:[%s4070_s1 + $0x1c0] ss:$8 sps:$4 sm:$0xff]  }
  0x41   : > { %2080 = vmatpush1.bf16.msra.mxu0 %v2848_v1  ;;  %1909 = vmatprep.subr.bf16.mxu1 %v2849_v2  ;;  %v2930_v1 = vld [vmem:[%s4070_s1 + $0x5c0] ss:$8 sps:$4 sm:$0xff]   ;;  %v2935_v2 = vld [vmem:[%s4070_s1 + $0x1d4] ss:$8 sps:$4 sm:$0xff]  }
  0x42   : > { %2081 = vmatprep.subr.bf16.mxu0 %v2851_v3  ;;  %v2938_v3 = vld [vmem:[%s4070_s1 + $0x5d4] ss:$8 sps:$4 sm:$0xff]  }
  0x44   : > { %1910 = vmatpush1.bf16.msra.mxu1 %v2853_v4  ;;  %v2933_v4 = vld [vmem:[%s4070_s1 + $0x1d0] ss:$8 sps:$4 sm:$0xff]  }
  0x45   : > { %2082 = vmatpush1.bf16.msra.mxu0 %v2854_v5  ;;  %1922 = vmatprep.subr.bf16.mxu1 %v2857_v6  ;;  %v2936_v5 = vld [vmem:[%s4070_s1 + $0x5d0] ss:$8 sps:$4 sm:$0xff]   ;;  %v2941_v6 = vld [vmem:[%s4070_s1 + $0x1e4] ss:$8 sps:$4 sm:$0xff]  }
  0x46   : > { %2094 = vmatprep.subr.bf16.mxu0 %v2860_v7  ;;  %v2944_v7 = vld [vmem:[%s4070_s1 + $0x5e4] ss:$8 sps:$4 sm:$0xff]  }
  0x47   : > { %1912 = vmatmul.mubr.bf16.vlgmr.msra.gmra.mrb[0].mxu1 %v2423_v8  ;;  %v2939_v8 = vld [vmem:[%s4070_s1 + $0x1e0] ss:$8 sps:$4 sm:$0xff]  }
  0x48   : > { %2084 = vmatmul.mubr.bf16.vlgmr.msra.gmra.mrb[0].mxu0 %v2431_v10  ;;  %1923 = vmatpush1.bf16.msra.mxu1 %v2855_v9  ;;  %v2942_v9 = vld [vmem:[%s4070_s1 + $0x5e0] ss:$8 sps:$4 sm:$0xff]   ;;  %v2947_v10 = vld [vmem:[%s4070_s1 + $0x1f4] ss:$8 sps:$4 sm:$0xff]  }
  0x49   : > { %2095 = vmatpush1.bf16.msra.mxu0 %v2858_v11  ;;  %1924 = vmatprep.subr.bf16.mxu1 %v2863_v12  ;;  %v2950_v11 = vld [vmem:[%s4070_s1 + $0x5f4] ss:$8 sps:$4 sm:$0xff]   ;;  %v2945_v12 = vld [vmem:[%s4070_s1 + $0x1f0] ss:$8 sps:$4 sm:$0xff]  }
  0x4a   : > { %2096 = vmatprep.subr.bf16.mxu0 %v2866_v13  ;;  %1954 = vmatprep.mubr.bf16.mxu1 %v2426_v40  ;;  %v2948_v13 = vld [vmem:[%s4070_s1 + $0x5f0] ss:$8 sps:$4 sm:$0xff]   ;;  %v2975_v40 = vld [vmem:[%s4070_s1 + $0x240] ss:$8 sps:$4 sm:$0xff]  }
  0x4b   : > { %2126 = vmatprep.mubr.bf16.mxu0 %v2434_v43  ;;  %v2986_v43 = vld [vmem:[%s4070_s1 + $0x654] ss:$8 sps:$4 sm:$0xff]  }
  0x4c   : > { %1925 = vmatpush1.bf16.msra.mxu1 %v2861_v14  ;;  %v2953_v14 = vld [vmem:[%s4070_s1 + $0x204] ss:$8 sps:$4 sm:$0xff]  }
  0x4d   : > { %2097 = vmatpush1.bf16.msra.mxu0 %v2864_v15  ;;  %1926 = vmatprep.subr.bf16.mxu1 %v2869_v16  ;;  %v2956_v15 = vld [vmem:[%s4070_s1 + $0x604] ss:$8 sps:$4 sm:$0xff]   ;;  %v2425_v16 = vcombine.low %v3502_v36, %v3505_v37  ;;  %v2969_v36 = vld [vmem:[%s4070_s1 + $0x230] ss:$8 sps:$4 sm:$0xff]  }
  0x4e   : > { %2098 = vmatprep.subr.bf16.mxu0 %v2872_v17  ;;  %v2951_v17 = vld [vmem:[%s4070_s1 + $0x200] ss:$8 sps:$4 sm:$0xff]   ;;  %v2972_v37 = vld [vmem:[%s4070_s1 + $0x630] ss:$8 sps:$4 sm:$0xff]  }
  0x50   : > { %1927 = vmatpush1.bf16.msra.mxu1 %v2867_v18  ;;  %v2433_v18 = vcombine.low %v3516_v41, %v3519_v42  ;;  %v2978_v41 = vld [vmem:[%s4070_s1 + $0x640] ss:$8 sps:$4 sm:$0xff]   ;;  %v2983_v42 = vld [vmem:[%s4070_s1 + $0x254] ss:$8 sps:$4 sm:$0xff]  }
  0x51   : > { %2099 = vmatpush1.bf16.msra.mxu0 %v2870_v19  ;;  %1928 = vmatprep.subr.bf16.mxu1 %v2875_v20  ;;  %v2954_v19 = vld [vmem:[%s4070_s1 + $0x600] ss:$8 sps:$4 sm:$0xff]   ;;  %v2959_v20 = vld [vmem:[%s4070_s1 + $0x214] ss:$8 sps:$4 sm:$0xff]  }
  0x52   : > { %2100 = vmatprep.subr.bf16.mxu0 %v2878_v21  ;;  %v2962_v21 = vld [vmem:[%s4070_s1 + $0x614] ss:$8 sps:$4 sm:$0xff]  }
  0x54   : > { %1929 = vmatpush1.bf16.msra.mxu1 %v2873_v22  ;;  %v2957_v22 = vld [vmem:[%s4070_s1 + $0x210] ss:$8 sps:$4 sm:$0xff]  }
  0x55   : > { %2101 = vmatpush1.bf16.msra.mxu0 %v2876_v23  ;;  %1930 = vmatprep.subr.bf16.mxu1 %v2881_v24  ;;  %v2960_v23 = vld [vmem:[%s4070_s1 + $0x610] ss:$8 sps:$4 sm:$0xff]  }
  0x56   : > { %2102 = vmatprep.subr.bf16.mxu0 %v2884_v25  ;;  %v3654_v24 = vld [vmem:[%s3351_s11 + $0x10] sm:$0xff] }
  0x57   : > { %v3657_v25 = vld [vmem:[%s3351_s11 + $0x50] sm:$0xff] }
  0x58   : > { %1931 = vmatpush1.bf16.msra.mxu1 %v2879_v26  ;;  %v2965_v26 = vld [vmem:[%s4070_s1 + $0x224] ss:$8 sps:$4 sm:$0xff]  }
  0x59   : > { %2103 = vmatpush1.bf16.msra.mxu0 %v2882_v27  ;;  %1932 = vmatprep.subr.bf16.mxu1 %v2887_v28  ;;  %v2968_v27 = vld [vmem:[%s4070_s1 + $0x624] ss:$8 sps:$4 sm:$0xff]   ;;  %v2428_v28 = vcombine.high %v3654_v24, %v3657_v25 }
  0x5a   : > { %2104 = vmatprep.subr.bf16.mxu0 %v2890_v29  ;;  %v3668_v29 = vld [vmem:[%s3351_s11 + $0x30] sm:$0xff] }
  0x5c   : > { %1933 = vmatpush1.bf16.msra.mxu1 %v2885_v30  ;;  %v3671_v30 = vld [vmem:[%s3351_s11 + $0x70] sm:$0xff] }
  0x5d   : > { %2105 = vmatpush1.bf16.msra.mxu0 %v2888_v31  ;;  %1934 = vmatprep.subr.bf16.mxu1 %v2893_v32  ;;  %v2436_v31 = vcombine.high %v3668_v29, %v3671_v30  ;;  %v2963_v32 = vld [vmem:[%s4070_s1 + $0x220] ss:$8 sps:$4 sm:$0xff]  }
  0x5e   : > { %2106 = vmatprep.subr.bf16.mxu0 %v2896_v33  ;;  %v2966_v33 = vld [vmem:[%s4070_s1 + $0x620] ss:$8 sps:$4 sm:$0xff]  }
  0x60   : > { %1935 = vmatpush1.bf16.msra.mxu1 %v2891_v34  ;;  %v2971_v34 = vld [vmem:[%s4070_s1 + $0x234] ss:$8 sps:$4 sm:$0xff]  }
  0x61   : > { %2107 = vmatpush1.bf16.msra.mxu0 %v2894_v35  ;;  %1936 = vmatprep.subr.bf16.mxu1 %v2899_v38  ;;  %v2974_v35 = vld [vmem:[%s4070_s1 + $0x634] ss:$8 sps:$4 sm:$0xff]   ;;  %v2977_v38 = vld [vmem:[%s4070_s1 + $0x244] ss:$8 sps:$4 sm:$0xff]  }
  0x62   : > { %2108 = vmatprep.subr.bf16.mxu0 %v2902_v39  ;;  %v2980_v39 = vld [vmem:[%s4070_s1 + $0x644] ss:$8 sps:$4 sm:$0xff]  }
  0x64   : > { %1937 = vmatpush1.bf16.msra.mxu1 %v2897_v44  ;;  %v2981_v44 = vld [vmem:[%s4070_s1 + $0x250] ss:$8 sps:$4 sm:$0xff]  }
  0x65   : > { %2109 = vmatpush1.bf16.msra.mxu0 %v2900_v45  ;;  %1938 = vmatprep.subr.bf16.mxu1 %v2905_v46  ;;  %v2984_v45 = vld [vmem:[%s4070_s1 + $0x650] ss:$8 sps:$4 sm:$0xff]   ;;  %v2989_v46 = vld [vmem:[%s4070_s1 + $0x264] ss:$8 sps:$4 sm:$0xff]  }
  0x66   : > { %2110 = vmatprep.subr.bf16.mxu0 %v2908_v47  ;;  %v2992_v47 = vld [vmem:[%s4070_s1 + $0x664] ss:$8 sps:$4 sm:$0xff]  }
  0x68   : > { %1939 = vmatpush1.bf16.msra.mxu1 %v2903_v48  ;;  %v2987_v48 = vld [vmem:[%s4070_s1 + $0x260] ss:$8 sps:$4 sm:$0xff]  }
  0x69   : > { %2111 = vmatpush1.bf16.msra.mxu0 %v2906_v49  ;;  %1940 = vmatprep.subr.bf16.mxu1 %v2911_v50  ;;  %v2990_v49 = vld [vmem:[%s4070_s1 + $0x660] ss:$8 sps:$4 sm:$0xff]   ;;  %v2995_v50 = vld [vmem:[%s4070_s1 + $0x274] ss:$8 sps:$4 sm:$0xff]  }
  0x6a   : > { %2112 = vmatprep.subr.bf16.mxu0 %v2914_v51  ;;  %v2998_v51 = vld [vmem:[%s4070_s1 + $0x674] ss:$8 sps:$4 sm:$0xff]  }
  0x6c   : > { %1941 = vmatpush1.bf16.msra.mxu1 %v2909_v52  ;;  %v2993_v52 = vld [vmem:[%s4070_s1 + $0x270] ss:$8 sps:$4 sm:$0xff]  }
  0x6d   : > { %2113 = vmatpush1.bf16.msra.mxu0 %v2912_v53  ;;  %1942 = vmatprep.subr.bf16.mxu1 %v2917_v54  ;;  %v2996_v53 = vld [vmem:[%s4070_s1 + $0x670] ss:$8 sps:$4 sm:$0xff]   ;;  %v3001_v54 = vld [vmem:[%s4070_s1 + $0x284] ss:$8 sps:$4 sm:$0xff]  }
  0x6e   : > { %2114 = vmatprep.subr.bf16.mxu0 %v2920_v55  ;;  %v3004_v55 = vld [vmem:[%s4070_s1 + $0x684] ss:$8 sps:$4 sm:$0xff]  }
  0x70   : > { %1943 = vmatpush1.bf16.msra.mxu1 %v2915_v56  ;;  %v2999_v56 = vld [vmem:[%s4070_s1 + $0x280] ss:$8 sps:$4 sm:$0xff]  }
  0x71   : > { %2115 = vmatpush1.bf16.msra.mxu0 %v2918_v57  ;;  %1944 = vmatprep.subr.bf16.mxu1 %v2923_v58  ;;  %v3002_v57 = vld [vmem:[%s4070_s1 + $0x680] ss:$8 sps:$4 sm:$0xff]   ;;  %v3007_v58 = vld [vmem:[%s4070_s1 + $0x294] ss:$8 sps:$4 sm:$0xff]  }
  0x72   : > { %2116 = vmatprep.subr.bf16.mxu0 %v2926_v59  ;;  %v3010_v59 = vld [vmem:[%s4070_s1 + $0x694] ss:$8 sps:$4 sm:$0xff]  }
  0x74   : > { %1945 = vmatpush1.bf16.msra.mxu1 %v2921_v60  ;;  %v3005_v60 = vld [vmem:[%s4070_s1 + $0x290] ss:$8 sps:$4 sm:$0xff]  }
  0x75   : > { %2117 = vmatpush1.bf16.msra.mxu0 %v2924_v61  ;;  %1946 = vmatprep.subr.bf16.mxu1 %v2929_v62  ;;  %v3008_v61 = vld [vmem:[%s4070_s1 + $0x690] ss:$8 sps:$4 sm:$0xff]   ;;  %v3013_v62 = vld [vmem:[%s4070_s1 + $0x2a4] ss:$8 sps:$4 sm:$0xff]  }
  0x76   : > { %2118 = vmatprep.subr.bf16.mxu0 %v2932_v63  ;;  %v3016_v63 = vld [vmem:[%s4070_s1 + $0x6a4] ss:$8 sps:$4 sm:$0xff]  }
  0x78   : > { %1947 = vmatpush1.bf16.msra.mxu1 %v2927_v0  ;;  %v3011_v0 = vld [vmem:[%s4070_s1 + $0x2a0] ss:$8 sps:$4 sm:$0xff]  }
  0x79   : > { %2119 = vmatpush1.bf16.msra.mxu0 %v2930_v1  ;;  %1948 = vmatprep.subr.bf16.mxu1 %v2935_v2  ;;  %v3014_v1 = vld [vmem:[%s4070_s1 + $0x6a0] ss:$8 sps:$4 sm:$0xff]   ;;  %v3019_v2 = vld [vmem:[%s4070_s1 + $0x2b4] ss:$8 sps:$4 sm:$0xff]  }
  0x7a   : > { %2120 = vmatprep.subr.bf16.mxu0 %v2938_v3  ;;  %v3022_v3 = vld [vmem:[%s4070_s1 + $0x6b4] ss:$8 sps:$4 sm:$0xff]  }
  0x7c   : > { %1949 = vmatpush1.bf16.msra.mxu1 %v2933_v4  ;;  %v3017_v4 = vld [vmem:[%s4070_s1 + $0x2b0] ss:$8 sps:$4 sm:$0xff]  }
  0x7d   : > { %2121 = vmatpush1.bf16.msra.mxu0 %v2936_v5  ;;  %1950 = vmatprep.subr.bf16.mxu1 %v2941_v6  ;;  %v3020_v5 = vld [vmem:[%s4070_s1 + $0x6b0] ss:$8 sps:$4 sm:$0xff]   ;;  %v3025_v6 = vld [vmem:[%s4070_s1 + $0x2c4] ss:$8 sps:$4 sm:$0xff]  }
  0x7e   : > { %2122 = vmatprep.subr.bf16.mxu0 %v2944_v7  ;;  %v3028_v7 = vld [vmem:[%s4070_s1 + $0x6c4] ss:$8 sps:$4 sm:$0xff]  }
  0x80   : > { %1951 = vmatpush1.bf16.msra.mxu1 %v2939_v8  ;;  %v3023_v8 = vld [vmem:[%s4070_s1 + $0x2c0] ss:$8 sps:$4 sm:$0xff]  }
  0x81   : > { %2123 = vmatpush1.bf16.msra.mxu0 %v2942_v9  ;;  %1952 = vmatprep.subr.bf16.mxu1 %v2947_v10  ;;  %v3026_v9 = vld [vmem:[%s4070_s1 + $0x6c0] ss:$8 sps:$4 sm:$0xff]   ;;  %v3031_v10 = vld [vmem:[%s4070_s1 + $0x2d4] ss:$8 sps:$4 sm:$0xff]  }
  0x82   : > { %2124 = vmatprep.subr.bf16.mxu0 %v2950_v11  ;;  %v3034_v11 = vld [vmem:[%s4070_s1 + $0x6d4] ss:$8 sps:$4 sm:$0xff]  }
  0x84   : > { %1953 = vmatpush1.bf16.msra.mxu1 %v2945_v12  ;;  %v3029_v12 = vld [vmem:[%s4070_s1 + $0x2d0] ss:$8 sps:$4 sm:$0xff]  }
  0x85   : > { %2125 = vmatpush1.bf16.msra.mxu0 %v2948_v13  ;;  %1965 = vmatprep.subr.bf16.mxu1 %v2953_v14  ;;  %v3032_v13 = vld [vmem:[%s4070_s1 + $0x6d0] ss:$8 sps:$4 sm:$0xff]   ;;  %v3037_v14 = vld [vmem:[%s4070_s1 + $0x2e4] ss:$8 sps:$4 sm:$0xff]  }
  0x86   : > { %2137 = vmatprep.subr.bf16.mxu0 %v2956_v15  ;;  %v3040_v15 = vld [vmem:[%s4070_s1 + $0x6e4] ss:$8 sps:$4 sm:$0xff]  }
  0x87   : > { %1955 = vmatmul.mubr.bf16.vlgmr.msra.gmra.mrb[0].mxu1 %v2425_v16  ;;  %v3035_v16 = vld [vmem:[%s4070_s1 + $0x2e0] ss:$8 sps:$4 sm:$0xff]  }
  0x88   : > { %2127 = vmatmul.mubr.bf16.vlgmr.msra.gmra.mrb[0].mxu0 %v2433_v18  ;;  %1966 = vmatpush1.bf16.msra.mxu1 %v2951_v17  ;;  %v3038_v17 = vld [vmem:[%s4070_s1 + $0x6e0] ss:$8 sps:$4 sm:$0xff]   ;;  %v3043_v18 = vld [vmem:[%s4070_s1 + $0x2f4] ss:$8 sps:$4 sm:$0xff]  }
  0x89   : > { %2138 = vmatpush1.bf16.msra.mxu0 %v2954_v19  ;;  %1967 = vmatprep.subr.bf16.mxu1 %v2959_v20  ;;  %v3046_v19 = vld [vmem:[%s4070_s1 + $0x6f4] ss:$8 sps:$4 sm:$0xff]   ;;  %v3041_v20 = vld [vmem:[%s4070_s1 + $0x2f0] ss:$8 sps:$4 sm:$0xff]  }
  0x8a   : > { %2139 = vmatprep.subr.bf16.mxu0 %v2962_v21  ;;  %1997 = vmatprep.mubr.bf16.mxu1 %v2428_v28  ;;  %v3044_v21 = vld [vmem:[%s4070_s1 + $0x6f0] ss:$8 sps:$4 sm:$0xff]   ;;  %v2435_v28 = vcombine.low %v3668_v29, %v3671_v30 }
  0x8b   : > { %2169 = vmatprep.mubr.bf16.mxu0 %v2436_v31  ;;  %v3851_v31 = vld [vmem:[%s3351_s11 + $0x58] sm:$0xff] }
  0x8c   : > { %1968 = vmatpush1.bf16.msra.mxu1 %v2957_v22  ;;  %v3049_v22 = vld [vmem:[%s4070_s1 + $0x304] ss:$8 sps:$4 sm:$0xff]  }
  0x8d   : > { %2140 = vmatpush1.bf16.msra.mxu0 %v2960_v23  ;;  %1969 = vmatprep.subr.bf16.mxu1 %v2965_v26  ;;  %v3052_v23 = vld [vmem:[%s4070_s1 + $0x704] ss:$8 sps:$4 sm:$0xff]   ;;  %v3844_v26 = vld [vmem:[%s3351_s11 + $0x18] sm:$0xff] }
  0x8e   : > { %2141 = vmatprep.subr.bf16.mxu0 %v2968_v27  ;;  %v2427_v27 = vcombine.low %v3654_v24, %v3657_v25  ;;  %v3055_v24 = vld [vmem:[%s4070_s1 + $0x314] ss:$8 sps:$4 sm:$0xff]   ;;  %v2430_v29 = vcombine.high %v3844_v26, %v3851_v31 }
  0x8f   : > { %v3058_v25 = vld [vmem:[%s4070_s1 + $0x714] ss:$8 sps:$4 sm:$0xff]  }
  0x90   : > { %1970 = vmatpush1.bf16.msra.mxu1 %v2963_v32  ;;  %v3854_v32 = vld [vmem:[%s3351_s11 + $0x38] sm:$0xff] }
  0x91   : > { %2142 = vmatpush1.bf16.msra.mxu0 %v2966_v33  ;;  %1971 = vmatprep.subr.bf16.mxu1 %v2971_v34  ;;  %v3857_v33 = vld [vmem:[%s3351_s11 + $0x78] sm:$0xff]  ;;  %v3047_v34 = vld [vmem:[%s4070_s1 + $0x300] ss:$8 sps:$4 sm:$0xff]  }
  0x92   : > { %2143 = vmatprep.subr.bf16.mxu0 %v2974_v35  ;;  %v3050_v35 = vld [vmem:[%s4070_s1 + $0x700] ss:$8 sps:$4 sm:$0xff]   ;;  %v2438_v30 = vcombine.high %v3854_v32, %v3857_v33 }
  0x94   : > { %1972 = vmatpush1.bf16.msra.mxu1 %v2969_v36  ;;  %v3053_v36 = vld [vmem:[%s4070_s1 + $0x310] ss:$8 sps:$4 sm:$0xff]  }
  0x95   : > { %2144 = vmatpush1.bf16.msra.mxu0 %v2972_v37  ;;  %1973 = vmatprep.subr.bf16.mxu1 %v2977_v38  ;;  %v3056_v37 = vld [vmem:[%s4070_s1 + $0x710] ss:$8 sps:$4 sm:$0xff]   ;;  %v3061_v38 = vld [vmem:[%s4070_s1 + $0x324] ss:$8 sps:$4 sm:$0xff]  }
  0x96   : > { %2145 = vmatprep.subr.bf16.mxu0 %v2980_v39  ;;  %v3064_v39 = vld [vmem:[%s4070_s1 + $0x724] ss:$8 sps:$4 sm:$0xff]  }
  0x98   : > { %1974 = vmatpush1.bf16.msra.mxu1 %v2975_v40  ;;  %v3059_v40 = vld [vmem:[%s4070_s1 + $0x320] ss:$8 sps:$4 sm:$0xff]  }
  0x99   : > { %2146 = vmatpush1.bf16.msra.mxu0 %v2978_v41  ;;  %1975 = vmatprep.subr.bf16.mxu1 %v2983_v42  ;;  %v3062_v41 = vld [vmem:[%s4070_s1 + $0x720] ss:$8 sps:$4 sm:$0xff]   ;;  %v3067_v42 = vld [vmem:[%s4070_s1 + $0x334] ss:$8 sps:$4 sm:$0xff]  }
  0x9a   : > { %2147 = vmatprep.subr.bf16.mxu0 %v2986_v43  ;;  %v3070_v43 = vld [vmem:[%s4070_s1 + $0x734] ss:$8 sps:$4 sm:$0xff]  }
  0x9c   : > { %1976 = vmatpush1.bf16.msra.mxu1 %v2981_v44  ;;  %v3065_v44 = vld [vmem:[%s4070_s1 + $0x330] ss:$8 sps:$4 sm:$0xff]  }
  0x9d   : > { %2148 = vmatpush1.bf16.msra.mxu0 %v2984_v45  ;;  %1977 = vmatprep.subr.bf16.mxu1 %v2989_v46  ;;  %v3068_v45 = vld [vmem:[%s4070_s1 + $0x730] ss:$8 sps:$4 sm:$0xff]   ;;  %v3073_v46 = vld [vmem:[%s4070_s1 + $0x344] ss:$8 sps:$4 sm:$0xff]  }
  0x9e   : > { %2149 = vmatprep.subr.bf16.mxu0 %v2992_v47  ;;  %v3076_v47 = vld [vmem:[%s4070_s1 + $0x744] ss:$8 sps:$4 sm:$0xff]  }
  0xa0   : > { %1978 = vmatpush1.bf16.msra.mxu1 %v2987_v48  ;;  %v3071_v48 = vld [vmem:[%s4070_s1 + $0x340] ss:$8 sps:$4 sm:$0xff]  }
  0xa1   : > { %2150 = vmatpush1.bf16.msra.mxu0 %v2990_v49  ;;  %1979 = vmatprep.subr.bf16.mxu1 %v2995_v50  ;;  %v3074_v49 = vld [vmem:[%s4070_s1 + $0x740] ss:$8 sps:$4 sm:$0xff]   ;;  %v3079_v50 = vld [vmem:[%s4070_s1 + $0x354] ss:$8 sps:$4 sm:$0xff]  }
  0xa2   : > { %2151 = vmatprep.subr.bf16.mxu0 %v2998_v51  ;;  %v3082_v51 = vld [vmem:[%s4070_s1 + $0x754] ss:$8 sps:$4 sm:$0xff]  }
  0xa4   : > { %1980 = vmatpush1.bf16.msra.mxu1 %v2993_v52  ;;  %v3077_v52 = vld [vmem:[%s4070_s1 + $0x350] ss:$8 sps:$4 sm:$0xff]  }
  0xa5   : > { %2152 = vmatpush1.bf16.msra.mxu0 %v2996_v53  ;;  %1981 = vmatprep.subr.bf16.mxu1 %v3001_v54  ;;  %v3080_v53 = vld [vmem:[%s4070_s1 + $0x750] ss:$8 sps:$4 sm:$0xff]   ;;  %v3085_v54 = vld [vmem:[%s4070_s1 + $0x364] ss:$8 sps:$4 sm:$0xff]  }
  0xa6   : > { %2153 = vmatprep.subr.bf16.mxu0 %v3004_v55  ;;  %v3088_v55 = vld [vmem:[%s4070_s1 + $0x764] ss:$8 sps:$4 sm:$0xff]  }
  0xa8   : > { %1982 = vmatpush1.bf16.msra.mxu1 %v2999_v56  ;;  %v3083_v56 = vld [vmem:[%s4070_s1 + $0x360] ss:$8 sps:$4 sm:$0xff]  }
  0xa9   : > { %2154 = vmatpush1.bf16.msra.mxu0 %v3002_v57  ;;  %1983 = vmatprep.subr.bf16.mxu1 %v3007_v58  ;;  %v3086_v57 = vld [vmem:[%s4070_s1 + $0x760] ss:$8 sps:$4 sm:$0xff]   ;;  %v3091_v58 = vld [vmem:[%s4070_s1 + $0x374] ss:$8 sps:$4 sm:$0xff]  }
  0xaa   : > { %2155 = vmatprep.subr.bf16.mxu0 %v3010_v59  ;;  %v3094_v59 = vld [vmem:[%s4070_s1 + $0x774] ss:$8 sps:$4 sm:$0xff]  }
  0xac   : > { %1984 = vmatpush1.bf16.msra.mxu1 %v3005_v60  ;;  %v3089_v60 = vld [vmem:[%s4070_s1 + $0x370] ss:$8 sps:$4 sm:$0xff]  }
  0xad   : > { %2156 = vmatpush1.bf16.msra.mxu0 %v3008_v61  ;;  %1985 = vmatprep.subr.bf16.mxu1 %v3013_v62  ;;  %v3092_v61 = vld [vmem:[%s4070_s1 + $0x770] ss:$8 sps:$4 sm:$0xff]   ;;  %v3097_v62 = vld [vmem:[%s4070_s1 + $0x384] ss:$8 sps:$4 sm:$0xff]  }
  0xae   : > { %2157 = vmatprep.subr.bf16.mxu0 %v3016_v63  ;;  %v3100_v63 = vld [vmem:[%s4070_s1 + $0x784] ss:$8 sps:$4 sm:$0xff]  }
  0xb0   : > { %1986 = vmatpush1.bf16.msra.mxu1 %v3011_v0  ;;  %v3095_v0 = vld [vmem:[%s4070_s1 + $0x380] ss:$8 sps:$4 sm:$0xff]  }
  0xb1   : > { %2158 = vmatpush1.bf16.msra.mxu0 %v3014_v1  ;;  %1987 = vmatprep.subr.bf16.mxu1 %v3019_v2  ;;  %v3098_v1 = vld [vmem:[%s4070_s1 + $0x780] ss:$8 sps:$4 sm:$0xff]   ;;  %v3103_v2 = vld [vmem:[%s4070_s1 + $0x394] ss:$8 sps:$4 sm:$0xff]  }
  0xb2   : > { %2159 = vmatprep.subr.bf16.mxu0 %v3022_v3  ;;  %v3106_v3 = vld [vmem:[%s4070_s1 + $0x794] ss:$8 sps:$4 sm:$0xff]  }
  0xb4   : > { %1988 = vmatpush1.bf16.msra.mxu1 %v3017_v4  ;;  %v3101_v4 = vld [vmem:[%s4070_s1 + $0x390] ss:$8 sps:$4 sm:$0xff]  }
  0xb5   : > { %2160 = vmatpush1.bf16.msra.mxu0 %v3020_v5  ;;  %1989 = vmatprep.subr.bf16.mxu1 %v3025_v6  ;;  %v3104_v5 = vld [vmem:[%s4070_s1 + $0x790] ss:$8 sps:$4 sm:$0xff]   ;;  %v3109_v6 = vld [vmem:[%s4070_s1 + $0x3a4] ss:$8 sps:$4 sm:$0xff]  }
  0xb6   : > { %2161 = vmatprep.subr.bf16.mxu0 %v3028_v7  ;;  %v3112_v7 = vld [vmem:[%s4070_s1 + $0x7a4] ss:$8 sps:$4 sm:$0xff]  }
  0xb8   : > { %1990 = vmatpush1.bf16.msra.mxu1 %v3023_v8  ;;  %v3107_v8 = vld [vmem:[%s4070_s1 + $0x3a0] ss:$8 sps:$4 sm:$0xff]  }
  0xb9   : > { %2162 = vmatpush1.bf16.msra.mxu0 %v3026_v9  ;;  %1991 = vmatprep.subr.bf16.mxu1 %v3031_v10  ;;  %v3110_v9 = vld [vmem:[%s4070_s1 + $0x7a0] ss:$8 sps:$4 sm:$0xff]   ;;  %v3115_v10 = vld [vmem:[%s4070_s1 + $0x3b4] ss:$8 sps:$4 sm:$0xff]  }
  0xba   : > { %2163 = vmatprep.subr.bf16.mxu0 %v3034_v11  ;;  %v3118_v11 = vld [vmem:[%s4070_s1 + $0x7b4] ss:$8 sps:$4 sm:$0xff]  }
  0xbc   : > { %1992 = vmatpush1.bf16.msra.mxu1 %v3029_v12  ;;  %v3113_v12 = vld [vmem:[%s4070_s1 + $0x3b0] ss:$8 sps:$4 sm:$0xff]  }
  0xbd   : > { %2164 = vmatpush1.bf16.msra.mxu0 %v3032_v13  ;;  %1993 = vmatprep.subr.bf16.mxu1 %v3037_v14  ;;  %v3116_v13 = vld [vmem:[%s4070_s1 + $0x7b0] ss:$8 sps:$4 sm:$0xff]   ;;  %v3121_v14 = vld [vmem:[%s4070_s1 + $0x3c4] ss:$8 sps:$4 sm:$0xff]  }
  0xbe   : > { %2165 = vmatprep.subr.bf16.mxu0 %v3040_v15  ;;  %v3124_v15 = vld [vmem:[%s4070_s1 + $0x7c4] ss:$8 sps:$4 sm:$0xff]  }
  0xc0   : > { %1994 = vmatpush1.bf16.msra.mxu1 %v3035_v16  ;;  %v3119_v16 = vld [vmem:[%s4070_s1 + $0x3c0] ss:$8 sps:$4 sm:$0xff]  }
  0xc1   : > { %2166 = vmatpush1.bf16.msra.mxu0 %v3038_v17  ;;  %1995 = vmatprep.subr.bf16.mxu1 %v3043_v18  ;;  %v3122_v17 = vld [vmem:[%s4070_s1 + $0x7c0] ss:$8 sps:$4 sm:$0xff]   ;;  %v3127_v18 = vld [vmem:[%s4070_s1 + $0x3d4] ss:$8 sps:$4 sm:$0xff]  }
  0xc2   : > { %2167 = vmatprep.subr.bf16.mxu0 %v3046_v19  ;;  %v3130_v19 = vld [vmem:[%s4070_s1 + $0x7d4] ss:$8 sps:$4 sm:$0xff]  }
  0xc4   : > { %1996 = vmatpush1.bf16.msra.mxu1 %v3041_v20  ;;  %v3125_v20 = vld [vmem:[%s4070_s1 + $0x3d0] ss:$8 sps:$4 sm:$0xff]  }
  0xc5   : > { %2168 = vmatpush1.bf16.msra.mxu0 %v3044_v21  ;;  %2008 = vmatprep.subr.bf16.mxu1 %v3049_v22  ;;  %v3128_v21 = vld [vmem:[%s4070_s1 + $0x7d0] ss:$8 sps:$4 sm:$0xff]   ;;  %v3133_v22 = vld [vmem:[%s4070_s1 + $0x3e4] ss:$8 sps:$4 sm:$0xff]  }
  0xc6   : > { %2180 = vmatprep.subr.bf16.mxu0 %v3052_v23  ;;  %v3136_v23 = vld [vmem:[%s4070_s1 + $0x7e4] ss:$8 sps:$4 sm:$0xff]  }
  0xc7   : > { %1998 = vmatmul.mubr.bf16.vlgmr.msra.gmra.mrb[0].mxu1 %v2427_v27  ;;  %v3131_v27 = vld [vmem:[%s4070_s1 + $0x3e0] ss:$8 sps:$4 sm:$0xff]  }
  0xc8   : > { %2170 = vmatmul.mubr.bf16.vlgmr.msra.gmra.mrb[0].mxu0 %v2435_v28  ;;  %2009 = vmatpush1.bf16.msra.mxu1 %v3047_v34  ;;  %v3134_v28 = vld [vmem:[%s4070_s1 + $0x7e0] ss:$8 sps:$4 sm:$0xff]   ;;  %v3139_v34 = vld [vmem:[%s4070_s1 + $0x3f4] ss:$8 sps:$4 sm:$0xff]  }
  0xc9   : > { %2181 = vmatpush1.bf16.msra.mxu0 %v3050_v35  ;;  %2010 = vmatprep.subr.bf16.mxu1 %v3055_v24  ;;  %v3142_v35 = vld [vmem:[%s4070_s1 + $0x7f4] ss:$8 sps:$4 sm:$0xff]   ;;  %v3137_v24 = vld [vmem:[%s4070_s1 + $0x3f0] ss:$8 sps:$4 sm:$0xff]  }
  0xca   : > { %2182 = vmatprep.subr.bf16.mxu0 %v3058_v25  ;;  %2040 = vmatprep.mubr.bf16.mxu1 %v2430_v29  ;;  %v3140_v25 = vld [vmem:[%s4070_s1 + $0x7f0] ss:$8 sps:$4 sm:$0xff]   ;;  %v2429_v29 = vcombine.low %v3844_v26, %v3851_v31 }
  0xcb   : > { %2212 = vmatprep.mubr.bf16.mxu0 %v2438_v30  ;;  %v2437_v30 = vcombine.low %v3854_v32, %v3857_v33 }
  0xcc   : > { %2011 = vmatpush1.bf16.msra.mxu1 %v3053_v36  ;;  %v509_v36 = vlaneseq }
  0xcd   : > { %2183 = vmatpush1.bf16.msra.mxu0 %v3056_v37  ;;  %2012 = vmatprep.subr.bf16.mxu1 %v3061_v38 }
  0xce   : > { %2184 = vmatprep.subr.bf16.mxu0 %v3064_v39  ;;  %v510_v37 = vshrl.u32 %v509_v36, 7  ;;  %v507_v39 = vld [vmem:[%s4071_s2] sm:$0x3] }
  0xd0   : > { %2013 = vmatpush1.bf16.msra.mxu1 %v3059_v40  ;;  %v511_v38 = vsub.s32 0, %v510_v37  ;;  %v515_v40 = vsub.s32 1, %v510_v37 }
  0xd1   : > { %2185 = vmatpush1.bf16.msra.mxu0 %v3062_v41  ;;  %2014 = vmatprep.subr.bf16.mxu1 %v3067_v42 }
  0xd2   : > { %2186 = vmatprep.subr.bf16.mxu0 %v3070_v43  ;;  %v512_v41 = vrot.slane %v507_v39, %v511_v38  ;;  %v516_v42 = vrot.slane %v507_v39, %v515_v40 }
  0xd4   : > { %2015 = vmatpush1.bf16.msra.mxu1 %v3065_v44 }
  0xd5   : > { %2187 = vmatpush1.bf16.msra.mxu0 %v3068_v45  ;;  %2016 = vmatprep.subr.bf16.mxu1 %v3073_v46 }
  0xd6   : > { %2188 = vmatprep.subr.bf16.mxu0 %v3076_v47 }
  0xd8   : > { %2017 = vmatpush1.bf16.msra.mxu1 %v3071_v48 }
  0xd9   : > { %2189 = vmatpush1.bf16.msra.mxu0 %v3074_v49  ;;  %2018 = vmatprep.subr.bf16.mxu1 %v3079_v50 }
  0xda   : > { %2190 = vmatprep.subr.bf16.mxu0 %v3082_v51 }
  0xdc   : > { %2019 = vmatpush1.bf16.msra.mxu1 %v3077_v52 }
  0xdd   : > { %2191 = vmatpush1.bf16.msra.mxu0 %v3080_v53  ;;  %2020 = vmatprep.subr.bf16.mxu1 %v3085_v54 }
  0xde   : > { %2192 = vmatprep.subr.bf16.mxu0 %v3088_v55 }
  0xe0   : > { %2021 = vmatpush1.bf16.msra.mxu1 %v3083_v56 }
  0xe1   : > { %2193 = vmatpush1.bf16.msra.mxu0 %v3086_v57  ;;  %2022 = vmatprep.subr.bf16.mxu1 %v3091_v58 }
  0xe2   : > { %2194 = vmatprep.subr.bf16.mxu0 %v3094_v59 }
  0xe4   : > { %2023 = vmatpush1.bf16.msra.mxu1 %v3089_v60 }
  0xe5   : > { %2195 = vmatpush1.bf16.msra.mxu0 %v3092_v61  ;;  %2024 = vmatprep.subr.bf16.mxu1 %v3097_v62 }
  0xe6   : > { %2196 = vmatprep.subr.bf16.mxu0 %v3100_v63 }
  0xe8   : > { %2025 = vmatpush1.bf16.msra.mxu1 %v3095_v0 }
  0xe9   : > { %2197 = vmatpush1.bf16.msra.mxu0 %v3098_v1  ;;  %2026 = vmatprep.subr.bf16.mxu1 %v3103_v2 }
  0xea   : > { %2198 = vmatprep.subr.bf16.mxu0 %v3106_v3 }
  0xec   : > { %2027 = vmatpush1.bf16.msra.mxu1 %v3101_v4 }
  0xed   : > { %2199 = vmatpush1.bf16.msra.mxu0 %v3104_v5  ;;  %2028 = vmatprep.subr.bf16.mxu1 %v3109_v6 }
  0xee   : > { %2200 = vmatprep.subr.bf16.mxu0 %v3112_v7 }
  0xf0   : > { %2029 = vmatpush1.bf16.msra.mxu1 %v3107_v8 }
  0xf1   : > { %2201 = vmatpush1.bf16.msra.mxu0 %v3110_v9  ;;  %2030 = vmatprep.subr.bf16.mxu1 %v3115_v10 }
  0xf2   : > { %2202 = vmatprep.subr.bf16.mxu0 %v3118_v11 }
  0xf4   : > { %2031 = vmatpush1.bf16.msra.mxu1 %v3113_v12 }
  0xf5   : > { %2203 = vmatpush1.bf16.msra.mxu0 %v3116_v13  ;;  %2032 = vmatprep.subr.bf16.mxu1 %v3121_v14 }
  0xf6   : > { %2204 = vmatprep.subr.bf16.mxu0 %v3124_v15 }
  0xf8   : > { %2033 = vmatpush1.bf16.msra.mxu1 %v3119_v16 }
  0xf9   : > { %2205 = vmatpush1.bf16.msra.mxu0 %v3122_v17  ;;  %2034 = vmatprep.subr.bf16.mxu1 %v3127_v18 }
  0xfa   : > { %2206 = vmatprep.subr.bf16.mxu0 %v3130_v19 }
  0xfc   : > { %2035 = vmatpush1.bf16.msra.mxu1 %v3125_v20 }
  0xfd   : > { %2207 = vmatpush1.bf16.msra.mxu0 %v3128_v21  ;;  %2036 = vmatprep.subr.bf16.mxu1 %v3133_v22 }
  0xfe   : > { %2208 = vmatprep.subr.bf16.mxu0 %v3136_v23 }
 0x100   : > { %2037 = vmatpush1.bf16.msra.mxu1 %v3131_v27 }
 0x101   : > { %2209 = vmatpush1.bf16.msra.mxu0 %v3134_v28  ;;  %2038 = vmatprep.subr.bf16.mxu1 %v3139_v34 }
 0x102   : > { %2210 = vmatprep.subr.bf16.mxu0 %v3142_v35 }
 0x104   : > { %2039 = vmatpush1.bf16.msra.mxu1 %v3137_v24 }
 0x105   : > { %2211 = vmatpush1.bf16.msra.mxu0 %v3140_v25 }
 0x107   : > { %2041 = vmatmul.mubr.bf16.vlgmr.msra.gmra.mrb[0].mxu1 %v2429_v29 }
 0x108   : > { %2213 = vmatmul.mubr.bf16.vlgmr.msra.gmra.mrb[0].mxu0 %v2437_v30 }
 0x1da   : > { %v2042_v43 = vpop.f32.mrb[0].mxu1 }
 0x1db   : > { %v2214_v44 = vpop.f32.mrb[0].mxu0  ;;  %v2703_v26 = vadd.f32 %v2042_v43, %v512_v41  ;;  %v2044_v31 = vpop.f32.mrb[1].mxu1 }
 0x1dc   : > { %v2216_v45 = vpop.f32.mrb[1].mxu0  ;;  %v2705_v32 = vadd.f32 %v2044_v31, %v516_v42  ;;  %v2046_v33 = vpop.f32.mrb[2].mxu1 }
 0x1dd   : > { %v2218_v46 = vpop.f32.mrb[2].mxu0  ;;  %v2704_v47 = vadd.f32 %v2703_v26, %v2214_v44  ;;  %v2707_v48 = vadd.f32 %v2046_v33, %v512_v41  ;;  %v2048_v49 = vpop.f32.mrb[3].mxu1 }
 0x1de   : > { %v2220_v50 = vpop.f32.mrb[3].mxu0  ;;  %v2706_v51 = vadd.f32 %v2705_v32, %v2216_v45  ;;  %v2709_v52 = vadd.f32 %v2048_v49, %v516_v42 }
 0x1df   : > { %v2708_v53 = vadd.f32 %v2707_v48, %v2218_v46  ;;  %v2240_v55 = vmul.f32 %v2704_v47, %v2704_v47 }
 0x1e0   : > { %v2710_v54 = vadd.f32 %v2709_v52, %v2220_v50  ;;  %v2241_v58 = vmul.f32 %v2706_v51, %v2706_v51 }
 0x1e1   : > { %v2223_v56 = vadd.f32 %v2708_v53, %v2704_v47  ;;  %v2242_v57 = vmul.f32 %v2708_v53, %v2708_v53 }
 0x1e2   : > { %v2230_v59 = vadd.f32 %v2710_v54, %v2706_v51  ;;  %v2243_v60 = vmul.f32 %v2710_v54, %v2710_v54 }
 0x1e3   : > { %v2224_v61 = vrot.slane %v2223_v56, 4  ;;  %v2244_v62 = vadd.f32 %v2242_v57, %v2240_v55 }
 0x1e4   : > { %v2231_v63 = vrot.slane %v2230_v59, 4  ;;  %v2251_v0 = vadd.f32 %v2243_v60, %v2241_v58 }
 0x1e5   : > { %v2225_v1 = vadd.f32 %v2224_v61, %v2223_v56  ;;  %v2245_v2 = vrot.slane %v2244_v62, 4 }
 0x1e6   : > { %v2232_v3 = vadd.f32 %v2231_v63, %v2230_v59  ;;  %v2252_v4 = vrot.slane %v2251_v0, 4 }
 0x1e7   : > { %v2226_v5 = vrot.slane %v2225_v1, 2  ;;  %v2246_v6 = vadd.f32 %v2245_v2, %v2244_v62 }
 0x1e8   : > { %v2233_v7 = vrot.slane %v2232_v3, 2  ;;  %v2253_v8 = vadd.f32 %v2252_v4, %v2251_v0 }
 0x1e9   : > { %v2227_v9 = vadd.f32 %v2226_v5, %v2225_v1  ;;  %v2247_v10 = vrot.slane %v2246_v6, 2 }
 0x1ea   : > { %v2234_v11 = vadd.f32 %v2233_v7, %v2232_v3  ;;  %v2254_v12 = vrot.slane %v2253_v8, 2 }
 0x1eb   : > { %v2228_v13 = vrot.slane %v2227_v9, 1  ;;  %v2248_v14 = vadd.f32 %v2247_v10, %v2246_v6 }
 0x1ec   : > { %v2235_v15 = vrot.slane %v2234_v11, 1  ;;  %v2255_v16 = vadd.f32 %v2254_v12, %v2253_v8 }
 0x1ed   : > { %v2229_v17 = vadd.f32 %v2228_v13, %v2227_v9  ;;  %v2249_v18 = vrot.slane %v2248_v14, 1 }
 0x1ee   : > { %v2236_v19 = vadd.f32 %v2235_v15, %v2234_v11  ;;  %v2256_v20 = vrot.slane %v2255_v16, 1 }
 0x1ef   : > { %v2238_v21 = vmul.f32 0.0625, %v2229_v17  ;;  %v2250_v22 = vadd.f32 %v2249_v18, %v2248_v14 }
 0x1f0   : > { %v2239_v23 = vmul.f32 0.0625, %v2236_v19  ;;  %v2257_v27 = vadd.f32 %v2256_v20, %v2255_v16 }
 0x1f1   : > { %v2258_v28 = vmul.f32 0.0625, %v2250_v22  ;;  %v2260_v34 = vmul.f32 %v2238_v21, %v2238_v21  ;;  %v2266_v35 = vsub.f32 %v2704_v47, %v2238_v21  ;;  %v2268_v24 = vsub.f32 %v2708_v53, %v2238_v21 }
 0x1f2   : > { %v2259_v25 = vmul.f32 0.0625, %v2257_v27  ;;  %v2261_v29 = vmul.f32 %v2239_v23, %v2239_v23  ;;  %v2267_v30 = vsub.f32 %v2706_v51, %v2239_v23  ;;  %v2269_v36 = vsub.f32 %v2710_v54, %v2239_v23 }
 0x1f3   : > { %v2262_v37 = vsub.f32 %v2258_v28, %v2260_v34 }
 0x1f4   : > { %v2263_v38 = vsub.f32 %v2259_v25, %v2261_v29 }
 0x1f5   : > { %v2264_v39 = vmax.f32 %v2262_v37, 0.0 }
 0x1f6   : > { %v2265_v40 = vmax.f32 %v2263_v38, 0.0 }
 0x1f7   : > { %v2270_v41 = vadd.f32 1e-05, %v2264_v39 }
 0x1f8   : > { %v2271_v42 = vadd.f32 1e-05, %v2265_v40 }
 0x1f9   : > { %3143 = vrsqrt.f32 %v2270_v41 }
 0x1fa   : > { %3145 = vrsqrt.f32 %v2271_v42 }
 0x203   : > { %v3144_v43 = vpop.eup %3143 }
 0x204   : > { %v3146_v44 = vpop.eup %3145  ;;  %v2274_v26 = vmul.f32 %v3144_v43, %v2266_v35  ;;  %v2276_v31 = vmul.f32 %v3144_v43, %v2268_v24 }
 0x205   : > { %v2275_v45 = vmul.f32 %v3146_v44, %v2267_v30  ;;  %v2277_v32 = vmul.f32 %v3146_v44, %v2269_v36 }
 0x206   : > { %vm2278_vm0 = vcmp.ge.f32.partialorder %v2274_v26, 0.0  ;;  %vm2280_vm1 = vcmp.ge.f32.partialorder %v2276_v31, 0.0  ;;  %v2282_v33 = vmul.f32 0.2, %v2274_v26  ;;  %v2284_v46 = vmul.f32 0.2, %v2276_v31 }
 0x207   : > { %vm2279_vm2 = vcmp.ge.f32.partialorder %v2275_v45, 0.0  ;;  %vm2281_vm3 = vcmp.ge.f32.partialorder %v2277_v32, 0.0  ;;  %v2283_v47 = vmul.f32 0.2, %v2275_v45  ;;  %v2285_v48 = vmul.f32 0.2, %v2277_v32 }
 0x208   : > { %v2288_v49 = vsel %vm2280_vm1, %v2276_v31, %v2284_v46  ;;  %v2286_v50 = vsel %vm2278_vm0, %v2274_v26, %v2282_v33 }
 0x209   : > { %v2287_v51 = vsel %vm2279_vm2, %v2275_v45, %v2283_v47  ;;  %v2289_v52 = vsel %vm2281_vm3, %v2277_v32, %v2285_v48 }
 0x20a   : > { %v2701_v53 = vpack.c.bf16 %v2287_v51, %v2286_v50  ;;  %v2702_v54 = vpack.c.bf16 %v2289_v52, %v2288_v49 }
 0x20c   : > { %2302 = vst [vmem:[%s233_s21] sm:$0xff] %v2701_v53  ;;  %2303 = vst [vmem:[%s233_s21 + $0x8] sm:$0xff] %v2702_v54 }
 0x20d PF: > { %s13_s14 = sadd.s32 1, %s3169_s14   ;;  %s4073_s12 = smov %s3165_s13 }
 0x20e   : > { %p10_p5 = scmp.ge.s32.totalorder %s13_s14, 4   ;;  %s4074_s13 = smov %s4076_s15 }
 0x210   :  { %12 = sbr.rel (!%p10_p5) target bundleno = 2 (0x2), region = 68 }

// kernel: image_discriminator.8
= control target key start
LH: loop header
LB: loop body
LE: loop exit
PB: predicated region body
PF: predicated region fallthrough
CT: control target
= control target key end

     0   :  { %s10021_s12 = smov 0   ;;  %s10023_s13 = smov 0   ;;  %s11801_s0 = inlined_call_operand.vmem [shape: bf16[2,4,4096], index: 0, kind: input, shape index: {}]   ;;  %s11802_s1 = inlined_call_operand.vmem [shape: bf16[4096,512], index: 1, kind: input, shape index: {}]   ;;  %s11803_s2 = inlined_call_operand.vmem [shape: f32[1,512], index: 2, kind: input, shape index: {}]   ;;  %s11804_s3 = inlined_call_operand.vmem [shape: bf16[2,4,512], index: 3, kind: output, shape index: {}]  }
   0x1   :  { %s10025_s14 = smov 0   ;;  %s10027_s15 = smov 0  }
   0x2   :  { %s10029_s16 = smov 0   ;;  %s10031_s17 = smov 0  }
   0x3   :  { %s10033_s18 = smov 0  }
   0x4 LB: > { %s22_s19 = sadd.s32 1, %s9990_s16  ;;  %s25_s20 = sadd.s32 1, %s9994_s17  ;;  %s9998_s18 = sphi %s10033_s18, %s13_s18   ;;  %s9994_s17 = sphi %s10031_s17, %s11810_s17   ;;  %s9990_s16 = sphi %s10029_s16, %s11809_s16   ;;  %s9986_s15 = sphi %s10027_s15, %s11808_s15   ;;  %s9982_s14 = sphi %s10025_s14, %s11807_s14   ;;  %s9978_s13 = sphi %s10023_s13, %s11806_s13   ;;  %s9974_s12 = sphi %s10021_s12, %s11805_s12  }
   0x5   : > { %p23_p0 = scmp.ge.s32.totalorder %s22_s19, 2  ;;  %p65_p1 = scmp.ne.s32.totalorder %s9978_s13, %s9974_s12 }
   0x6   : > { %p66_p2 = scmp.eq.s32.totalorder %s9998_s18, 0  ;;  %s58_s22 = sadd.s32 1, %s9978_s13 }
   0x7   : > { %s11812_s19 = smov (%p23_p0, %s22_s19), 0  ;;  %s11814_s20 = smov (!%p23_p0, %s25_s20), %s9994_s17 }
   0x8   : > { %p67_p3 = por %p66_p2, %p65_p1  ;;  %p27_p4 = scmp.ge.s32.totalorder %s11814_s20, 2 }
   0x9   : > { %p8517_p6 = scmp.ge.s32.totalorder %s9998_s18, 4 }
   0xa   : > { %s11816_s20 = smov (%p27_p4, %s11814_s20), 0 }
   0xb   : > { %s55_s21 = ssub.s32 %s9994_s17, %s11816_s20  ;;  %145 = sbr.rel (%p8517_p6) target bundleno = 278 (0x116), region = 16 }
   0xc   : > { %p56_p5 = scmp.eq.s32.totalorder %s55_s21, 0 }
   0xe   : > { %s10070_s23 = scalar_select %p56_p5, %s9978_s13, %s58_s22  }
  0x12   : > { %156 = sbr.rel (!%p67_p3) target bundleno = 278 (0x116), region = 24  ;;  %s158_s24 = sand.u32 (%p67_p3), 1, %s9978_s13  }
  0x13   : > { %s9045_s25 = sshll.u32 (%p67_p3), %s9994_s17, 3  ;;  %s8518_s26 = sshll.u32 (%p67_p3), %s158_s24, 12 }
  0x14   : > { %s10078_s29 = scalar_lea.vmem (%p67_p3), %s11802_s1, %s9045_s25  ;;  %s10083_s30 = scalar_lea.vmem (%p67_p3), [#allocation2], %s8518_s26 }
  0x15   : > { %v1216_v0 = vld [vmem:[%s10078_s29] sm:$0xff] (%p67_p3)  ;;  %v1218_v1 = vld [vmem:[%s10078_s29 + $0x10] sm:$0xff] (%p67_p3) }
  0x16   : > { %v1220_v2 = vld [vmem:[%s10078_s29 + $0x20] sm:$0xff] (%p67_p3)  ;;  %1217 = vst [vmem:[%s10083_s30] sm:$0xff] (%p67_p3), %v1216_v0  ;;  %1219 = vst [vmem:[%s10083_s30 + $0x8] sm:$0xff] (%p67_p3), %v1218_v1  ;;  %v1222_v3 = vld [vmem:[%s10078_s29 + $0x30] sm:$0xff] (%p67_p3) }
  0x17   : > { %1221 = vst [vmem:[%s10083_s30 + $0x10] sm:$0xff] (%p67_p3), %v1220_v2  ;;  %v1224_v4 = vld [vmem:[%s10078_s29 + $0x40] sm:$0xff] (%p67_p3)  ;;  %v1226_v5 = vld [vmem:[%s10078_s29 + $0x50] sm:$0xff] (%p67_p3)  ;;  %1223 = vst [vmem:[%s10083_s30 + $0x18] sm:$0xff] (%p67_p3), %v1222_v3 }
  0x18   : > { %1225 = vst [vmem:[%s10083_s30 + $0x20] sm:$0xff] (%p67_p3), %v1224_v4  ;;  %1227 = vst [vmem:[%s10083_s30 + $0x28] sm:$0xff] (%p67_p3), %v1226_v5  ;;  %v1228_v6 = vld [vmem:[%s10078_s29 + $0x60] sm:$0xff] (%p67_p3)  ;;  %v1230_v7 = vld [vmem:[%s10078_s29 + $0x70] sm:$0xff] (%p67_p3) }
  0x19   : > { %v1232_v8 = vld [vmem:[%s10078_s29 + $0x80] sm:$0xff]  ;;  %1229 = vst [vmem:[%s10083_s30 + $0x30] sm:$0xff] %v1228_v6  ;;  %1231 = vst [vmem:[%s10083_s30 + $0x38] sm:$0xff] %v1230_v7  ;;  %v1234_v9 = vld [vmem:[%s10078_s29 + $0x90] sm:$0xff] }
  0x1a   : > { %1233 = vst [vmem:[%s10083_s30 + $0x40] sm:$0xff] %v1232_v8  ;;  %v1236_v10 = vld [vmem:[%s10078_s29 + $0xa0] sm:$0xff]  ;;  %v1238_v11 = vld [vmem:[%s10078_s29 + $0xb0] sm:$0xff]  ;;  %1235 = vst [vmem:[%s10083_s30 + $0x48] sm:$0xff] %v1234_v9 }
  0x1b   : > { %1237 = vst [vmem:[%s10083_s30 + $0x50] sm:$0xff] %v1236_v10  ;;  %1239 = vst [vmem:[%s10083_s30 + $0x58] sm:$0xff] %v1238_v11  ;;  %v1240_v12 = vld [vmem:[%s10078_s29 + $0xc0] sm:$0xff]  ;;  %v1242_v13 = vld [vmem:[%s10078_s29 + $0xd0] sm:$0xff] }
  0x1c   : > { %v1244_v14 = vld [vmem:[%s10078_s29 + $0xe0] sm:$0xff]  ;;  %1241 = vst [vmem:[%s10083_s30 + $0x60] sm:$0xff] %v1240_v12  ;;  %1243 = vst [vmem:[%s10083_s30 + $0x68] sm:$0xff] %v1242_v13  ;;  %v1246_v15 = vld [vmem:[%s10078_s29 + $0xf0] sm:$0xff] }
  0x1d   : > { %1245 = vst [vmem:[%s10083_s30 + $0x70] sm:$0xff] %v1244_v14  ;;  %v1248_v16 = vld [vmem:[%s10078_s29 + $0x100] sm:$0xff]  ;;  %v1250_v17 = vld [vmem:[%s10078_s29 + $0x110] sm:$0xff]  ;;  %1247 = vst [vmem:[%s10083_s30 + $0x78] sm:$0xff] %v1246_v15 }
  0x1e   : > { %1249 = vst [vmem:[%s10083_s30 + $0x80] sm:$0xff] %v1248_v16  ;;  %1251 = vst [vmem:[%s10083_s30 + $0x88] sm:$0xff] %v1250_v17  ;;  %v1252_v18 = vld [vmem:[%s10078_s29 + $0x120] sm:$0xff]  ;;  %v1254_v19 = vld [vmem:[%s10078_s29 + $0x130] sm:$0xff] }
  0x1f   : > { %v1256_v20 = vld [vmem:[%s10078_s29 + $0x140] sm:$0xff]  ;;  %1253 = vst [vmem:[%s10083_s30 + $0x90] sm:$0xff] %v1252_v18  ;;  %1255 = vst [vmem:[%s10083_s30 + $0x98] sm:$0xff] %v1254_v19  ;;  %v1258_v21 = vld [vmem:[%s10078_s29 + $0x150] sm:$0xff] }
  0x20   : > { %1257 = vst [vmem:[%s10083_s30 + $0xa0] sm:$0xff] %v1256_v20  ;;  %v1260_v22 = vld [vmem:[%s10078_s29 + $0x160] sm:$0xff]  ;;  %v1262_v23 = vld [vmem:[%s10078_s29 + $0x170] sm:$0xff]  ;;  %1259 = vst [vmem:[%s10083_s30 + $0xa8] sm:$0xff] %v1258_v21 }
  0x21   : > { %1261 = vst [vmem:[%s10083_s30 + $0xb0] sm:$0xff] %v1260_v22  ;;  %1263 = vst [vmem:[%s10083_s30 + $0xb8] sm:$0xff] %v1262_v23  ;;  %v1264_v24 = vld [vmem:[%s10078_s29 + $0x180] sm:$0xff]  ;;  %v1266_v25 = vld [vmem:[%s10078_s29 + $0x190] sm:$0xff] }
  0x22   : > { %v1268_v26 = vld [vmem:[%s10078_s29 + $0x1a0] sm:$0xff]  ;;  %1265 = vst [vmem:[%s10083_s30 + $0xc0] sm:$0xff] %v1264_v24  ;;  %1267 = vst [vmem:[%s10083_s30 + $0xc8] sm:$0xff] %v1266_v25  ;;  %v1270_v27 = vld [vmem:[%s10078_s29 + $0x1b0] sm:$0xff] }
  0x23   : > { %1269 = vst [vmem:[%s10083_s30 + $0xd0] sm:$0xff] %v1268_v26  ;;  %v1272_v28 = vld [vmem:[%s10078_s29 + $0x1c0] sm:$0xff]  ;;  %v1274_v29 = vld [vmem:[%s10078_s29 + $0x1d0] sm:$0xff]  ;;  %1271 = vst [vmem:[%s10083_s30 + $0xd8] sm:$0xff] %v1270_v27 }
  0x24   : > { %1273 = vst [vmem:[%s10083_s30 + $0xe0] sm:$0xff] %v1272_v28  ;;  %1275 = vst [vmem:[%s10083_s30 + $0xe8] sm:$0xff] %v1274_v29  ;;  %v1276_v30 = vld [vmem:[%s10078_s29 + $0x1e0] sm:$0xff]  ;;  %v1278_v31 = vld [vmem:[%s10078_s29 + $0x1f0] sm:$0xff] }
  0x25   : > { %v1280_v32 = vld [vmem:[%s10078_s29 + $0x200] sm:$0xff]  ;;  %1277 = vst [vmem:[%s10083_s30 + $0xf0] sm:$0xff] %v1276_v30  ;;  %1279 = vst [vmem:[%s10083_s30 + $0xf8] sm:$0xff] %v1278_v31  ;;  %v1282_v33 = vld [vmem:[%s10078_s29 + $0x210] sm:$0xff] }
  0x26   : > { %1281 = vst [vmem:[%s10083_s30 + $0x100] sm:$0xff] %v1280_v32  ;;  %v1284_v34 = vld [vmem:[%s10078_s29 + $0x220] sm:$0xff]  ;;  %v1286_v35 = vld [vmem:[%s10078_s29 + $0x230] sm:$0xff]  ;;  %1283 = vst [vmem:[%s10083_s30 + $0x108] sm:$0xff] %v1282_v33 }
  0x27   : > { %1285 = vst [vmem:[%s10083_s30 + $0x110] sm:$0xff] %v1284_v34  ;;  %1287 = vst [vmem:[%s10083_s30 + $0x118] sm:$0xff] %v1286_v35  ;;  %v1288_v36 = vld [vmem:[%s10078_s29 + $0x240] sm:$0xff]  ;;  %v1290_v37 = vld [vmem:[%s10078_s29 + $0x250] sm:$0xff] }
  0x28   : > { %v1292_v38 = vld [vmem:[%s10078_s29 + $0x260] sm:$0xff]  ;;  %1289 = vst [vmem:[%s10083_s30 + $0x120] sm:$0xff] %v1288_v36  ;;  %1291 = vst [vmem:[%s10083_s30 + $0x128] sm:$0xff] %v1290_v37  ;;  %v1294_v39 = vld [vmem:[%s10078_s29 + $0x270] sm:$0xff] }
  0x29   : > { %1293 = vst [vmem:[%s10083_s30 + $0x130] sm:$0xff] %v1292_v38  ;;  %v1296_v40 = vld [vmem:[%s10078_s29 + $0x280] sm:$0xff]  ;;  %v1298_v41 = vld [vmem:[%s10078_s29 + $0x290] sm:$0xff]  ;;  %1295 = vst [vmem:[%s10083_s30 + $0x138] sm:$0xff] %v1294_v39 }
  0x2a   : > { %1297 = vst [vmem:[%s10083_s30 + $0x140] sm:$0xff] %v1296_v40  ;;  %1299 = vst [vmem:[%s10083_s30 + $0x148] sm:$0xff] %v1298_v41  ;;  %v1300_v42 = vld [vmem:[%s10078_s29 + $0x2a0] sm:$0xff]  ;;  %v1302_v43 = vld [vmem:[%s10078_s29 + $0x2b0] sm:$0xff] }
  0x2b   : > { %v1304_v44 = vld [vmem:[%s10078_s29 + $0x2c0] sm:$0xff]  ;;  %1301 = vst [vmem:[%s10083_s30 + $0x150] sm:$0xff] %v1300_v42  ;;  %1303 = vst [vmem:[%s10083_s30 + $0x158] sm:$0xff] %v1302_v43  ;;  %v1306_v45 = vld [vmem:[%s10078_s29 + $0x2d0] sm:$0xff] }
  0x2c   : > { %1305 = vst [vmem:[%s10083_s30 + $0x160] sm:$0xff] %v1304_v44  ;;  %v1308_v46 = vld [vmem:[%s10078_s29 + $0x2e0] sm:$0xff]  ;;  %v1310_v47 = vld [vmem:[%s10078_s29 + $0x2f0] sm:$0xff]  ;;  %1307 = vst [vmem:[%s10083_s30 + $0x168] sm:$0xff] %v1306_v45 }
  0x2d   : > { %1309 = vst [vmem:[%s10083_s30 + $0x170] sm:$0xff] %v1308_v46  ;;  %1311 = vst [vmem:[%s10083_s30 + $0x178] sm:$0xff] %v1310_v47  ;;  %v1312_v48 = vld [vmem:[%s10078_s29 + $0x300] sm:$0xff]  ;;  %v1314_v49 = vld [vmem:[%s10078_s29 + $0x310] sm:$0xff] }
  0x2e   : > { %v1316_v50 = vld [vmem:[%s10078_s29 + $0x320] sm:$0xff]  ;;  %1313 = vst [vmem:[%s10083_s30 + $0x180] sm:$0xff] %v1312_v48  ;;  %1315 = vst [vmem:[%s10083_s30 + $0x188] sm:$0xff] %v1314_v49  ;;  %v1318_v51 = vld [vmem:[%s10078_s29 + $0x330] sm:$0xff] }
  0x2f   : > { %1317 = vst [vmem:[%s10083_s30 + $0x190] sm:$0xff] %v1316_v50  ;;  %v1320_v52 = vld [vmem:[%s10078_s29 + $0x340] sm:$0xff]  ;;  %v1322_v53 = vld [vmem:[%s10078_s29 + $0x350] sm:$0xff]  ;;  %1319 = vst [vmem:[%s10083_s30 + $0x198] sm:$0xff] %v1318_v51 }
  0x30   : > { %1321 = vst [vmem:[%s10083_s30 + $0x1a0] sm:$0xff] %v1320_v52  ;;  %1323 = vst [vmem:[%s10083_s30 + $0x1a8] sm:$0xff] %v1322_v53  ;;  %v1324_v54 = vld [vmem:[%s10078_s29 + $0x360] sm:$0xff]  ;;  %v1326_v55 = vld [vmem:[%s10078_s29 + $0x370] sm:$0xff] }
  0x31   : > { %v1328_v56 = vld [vmem:[%s10078_s29 + $0x380] sm:$0xff]  ;;  %1325 = vst [vmem:[%s10083_s30 + $0x1b0] sm:$0xff] %v1324_v54  ;;  %1327 = vst [vmem:[%s10083_s30 + $0x1b8] sm:$0xff] %v1326_v55  ;;  %v1330_v57 = vld [vmem:[%s10078_s29 + $0x390] sm:$0xff] }
  0x32   : > { %1329 = vst [vmem:[%s10083_s30 + $0x1c0] sm:$0xff] %v1328_v56  ;;  %v1332_v58 = vld [vmem:[%s10078_s29 + $0x3a0] sm:$0xff]  ;;  %v1334_v59 = vld [vmem:[%s10078_s29 + $0x3b0] sm:$0xff]  ;;  %1331 = vst [vmem:[%s10083_s30 + $0x1c8] sm:$0xff] %v1330_v57 }
  0x33   : > { %1333 = vst [vmem:[%s10083_s30 + $0x1d0] sm:$0xff] %v1332_v58  ;;  %1335 = vst [vmem:[%s10083_s30 + $0x1d8] sm:$0xff] %v1334_v59  ;;  %v1336_v60 = vld [vmem:[%s10078_s29 + $0x3c0] sm:$0xff]  ;;  %v1338_v61 = vld [vmem:[%s10078_s29 + $0x3d0] sm:$0xff] }
  0x34   : > { %v1340_v62 = vld [vmem:[%s10078_s29 + $0x3e0] sm:$0xff]  ;;  %1337 = vst [vmem:[%s10083_s30 + $0x1e0] sm:$0xff] %v1336_v60  ;;  %1339 = vst [vmem:[%s10083_s30 + $0x1e8] sm:$0xff] %v1338_v61  ;;  %v1342_v63 = vld [vmem:[%s10078_s29 + $0x3f0] sm:$0xff] }
  0x35   : > { %1341 = vst [vmem:[%s10083_s30 + $0x1f0] sm:$0xff] %v1340_v62  ;;  %v1344_v0 = vld [vmem:[%s10078_s29 + $0x400] sm:$0xff]  ;;  %v1346_v1 = vld [vmem:[%s10078_s29 + $0x410] sm:$0xff]  ;;  %1343 = vst [vmem:[%s10083_s30 + $0x1f8] sm:$0xff] %v1342_v63 }
  0x36   : > { %1345 = vst [vmem:[%s10083_s30 + $0x200] sm:$0xff] %v1344_v0  ;;  %1347 = vst [vmem:[%s10083_s30 + $0x208] sm:$0xff] %v1346_v1  ;;  %v1348_v2 = vld [vmem:[%s10078_s29 + $0x420] sm:$0xff]  ;;  %v1350_v3 = vld [vmem:[%s10078_s29 + $0x430] sm:$0xff] }
  0x37   : > { %v1352_v4 = vld [vmem:[%s10078_s29 + $0x440] sm:$0xff]  ;;  %1349 = vst [vmem:[%s10083_s30 + $0x210] sm:$0xff] %v1348_v2  ;;  %1351 = vst [vmem:[%s10083_s30 + $0x218] sm:$0xff] %v1350_v3  ;;  %v1354_v5 = vld [vmem:[%s10078_s29 + $0x450] sm:$0xff] }
  0x38   : > { %1353 = vst [vmem:[%s10083_s30 + $0x220] sm:$0xff] %v1352_v4  ;;  %v1356_v6 = vld [vmem:[%s10078_s29 + $0x460] sm:$0xff]  ;;  %v1358_v7 = vld [vmem:[%s10078_s29 + $0x470] sm:$0xff]  ;;  %1355 = vst [vmem:[%s10083_s30 + $0x228] sm:$0xff] %v1354_v5 }
  0x39   : > { %1357 = vst [vmem:[%s10083_s30 + $0x230] sm:$0xff] %v1356_v6  ;;  %1359 = vst [vmem:[%s10083_s30 + $0x238] sm:$0xff] %v1358_v7  ;;  %v1360_v8 = vld [vmem:[%s10078_s29 + $0x480] sm:$0xff]  ;;  %v1362_v9 = vld [vmem:[%s10078_s29 + $0x490] sm:$0xff] }
  0x3a   : > { %v1364_v10 = vld [vmem:[%s10078_s29 + $0x4a0] sm:$0xff]  ;;  %1361 = vst [vmem:[%s10083_s30 + $0x240] sm:$0xff] %v1360_v8  ;;  %1363 = vst [vmem:[%s10083_s30 + $0x248] sm:$0xff] %v1362_v9  ;;  %v1366_v11 = vld [vmem:[%s10078_s29 + $0x4b0] sm:$0xff] }
  0x3b   : > { %1365 = vst [vmem:[%s10083_s30 + $0x250] sm:$0xff] %v1364_v10  ;;  %v1368_v12 = vld [vmem:[%s10078_s29 + $0x4c0] sm:$0xff]  ;;  %v1370_v13 = vld [vmem:[%s10078_s29 + $0x4d0] sm:$0xff]  ;;  %1367 = vst [vmem:[%s10083_s30 + $0x258] sm:$0xff] %v1366_v11 }
  0x3c   : > { %1369 = vst [vmem:[%s10083_s30 + $0x260] sm:$0xff] %v1368_v12  ;;  %1371 = vst [vmem:[%s10083_s30 + $0x268] sm:$0xff] %v1370_v13  ;;  %v1372_v14 = vld [vmem:[%s10078_s29 + $0x4e0] sm:$0xff]  ;;  %v1374_v15 = vld [vmem:[%s10078_s29 + $0x4f0] sm:$0xff] }
  0x3d   : > { %v1376_v16 = vld [vmem:[%s10078_s29 + $0x500] sm:$0xff]  ;;  %1373 = vst [vmem:[%s10083_s30 + $0x270] sm:$0xff] %v1372_v14  ;;  %1375 = vst [vmem:[%s10083_s30 + $0x278] sm:$0xff] %v1374_v15  ;;  %v1378_v17 = vld [vmem:[%s10078_s29 + $0x510] sm:$0xff] }
  0x3e   : > { %1377 = vst [vmem:[%s10083_s30 + $0x280] sm:$0xff] %v1376_v16  ;;  %v1380_v18 = vld [vmem:[%s10078_s29 + $0x520] sm:$0xff]  ;;  %v1382_v19 = vld [vmem:[%s10078_s29 + $0x530] sm:$0xff]  ;;  %1379 = vst [vmem:[%s10083_s30 + $0x288] sm:$0xff] %v1378_v17 }
  0x3f   : > { %1381 = vst [vmem:[%s10083_s30 + $0x290] sm:$0xff] %v1380_v18  ;;  %1383 = vst [vmem:[%s10083_s30 + $0x298] sm:$0xff] %v1382_v19  ;;  %v1384_v20 = vld [vmem:[%s10078_s29 + $0x540] sm:$0xff]  ;;  %v1386_v21 = vld [vmem:[%s10078_s29 + $0x550] sm:$0xff] }
  0x40   : > { %v1388_v22 = vld [vmem:[%s10078_s29 + $0x560] sm:$0xff]  ;;  %1385 = vst [vmem:[%s10083_s30 + $0x2a0] sm:$0xff] %v1384_v20  ;;  %1387 = vst [vmem:[%s10083_s30 + $0x2a8] sm:$0xff] %v1386_v21  ;;  %v1390_v23 = vld [vmem:[%s10078_s29 + $0x570] sm:$0xff] }
  0x41   : > { %1389 = vst [vmem:[%s10083_s30 + $0x2b0] sm:$0xff] %v1388_v22  ;;  %v1392_v24 = vld [vmem:[%s10078_s29 + $0x580] sm:$0xff]  ;;  %v1394_v25 = vld [vmem:[%s10078_s29 + $0x590] sm:$0xff]  ;;  %1391 = vst [vmem:[%s10083_s30 + $0x2b8] sm:$0xff] %v1390_v23 }
  0x42   : > { %1393 = vst [vmem:[%s10083_s30 + $0x2c0] sm:$0xff] %v1392_v24  ;;  %1395 = vst [vmem:[%s10083_s30 + $0x2c8] sm:$0xff] %v1394_v25  ;;  %v1396_v26 = vld [vmem:[%s10078_s29 + $0x5a0] sm:$0xff]  ;;  %v1398_v27 = vld [vmem:[%s10078_s29 + $0x5b0] sm:$0xff] }
  0x43   : > { %v1400_v28 = vld [vmem:[%s10078_s29 + $0x5c0] sm:$0xff]  ;;  %1397 = vst [vmem:[%s10083_s30 + $0x2d0] sm:$0xff] %v1396_v26  ;;  %1399 = vst [vmem:[%s10083_s30 + $0x2d8] sm:$0xff] %v1398_v27  ;;  %v1402_v29 = vld [vmem:[%s10078_s29 + $0x5d0] sm:$0xff] }
  0x44   : > { %1401 = vst [vmem:[%s10083_s30 + $0x2e0] sm:$0xff] %v1400_v28  ;;  %v1404_v30 = vld [vmem:[%s10078_s29 + $0x5e0] sm:$0xff]  ;;  %v1406_v31 = vld [vmem:[%s10078_s29 + $0x5f0] sm:$0xff]  ;;  %1403 = vst [vmem:[%s10083_s30 + $0x2e8] sm:$0xff] %v1402_v29 }
  0x45   : > { %1405 = vst [vmem:[%s10083_s30 + $0x2f0] sm:$0xff] %v1404_v30  ;;  %1407 = vst [vmem:[%s10083_s30 + $0x2f8] sm:$0xff] %v1406_v31  ;;  %v1408_v32 = vld [vmem:[%s10078_s29 + $0x600] sm:$0xff]  ;;  %v1410_v33 = vld [vmem:[%s10078_s29 + $0x610] sm:$0xff] }
  0x46   : > { %v1412_v34 = vld [vmem:[%s10078_s29 + $0x620] sm:$0xff]  ;;  %1409 = vst [vmem:[%s10083_s30 + $0x300] sm:$0xff] %v1408_v32  ;;  %1411 = vst [vmem:[%s10083_s30 + $0x308] sm:$0xff] %v1410_v33  ;;  %v1414_v35 = vld [vmem:[%s10078_s29 + $0x630] sm:$0xff] }
  0x47   : > { %1413 = vst [vmem:[%s10083_s30 + $0x310] sm:$0xff] %v1412_v34  ;;  %v1416_v36 = vld [vmem:[%s10078_s29 + $0x640] sm:$0xff]  ;;  %v1418_v37 = vld [vmem:[%s10078_s29 + $0x650] sm:$0xff]  ;;  %1415 = vst [vmem:[%s10083_s30 + $0x318] sm:$0xff] %v1414_v35 }
  0x48   : > { %1417 = vst [vmem:[%s10083_s30 + $0x320] sm:$0xff] %v1416_v36  ;;  %1419 = vst [vmem:[%s10083_s30 + $0x328] sm:$0xff] %v1418_v37  ;;  %v1420_v38 = vld [vmem:[%s10078_s29 + $0x660] sm:$0xff]  ;;  %v1422_v39 = vld [vmem:[%s10078_s29 + $0x670] sm:$0xff] }
  0x49   : > { %v1424_v40 = vld [vmem:[%s10078_s29 + $0x680] sm:$0xff]  ;;  %1421 = vst [vmem:[%s10083_s30 + $0x330] sm:$0xff] %v1420_v38  ;;  %1423 = vst [vmem:[%s10083_s30 + $0x338] sm:$0xff] %v1422_v39  ;;  %v1426_v41 = vld [vmem:[%s10078_s29 + $0x690] sm:$0xff] }
  0x4a   : > { %1425 = vst [vmem:[%s10083_s30 + $0x340] sm:$0xff] %v1424_v40  ;;  %v1428_v42 = vld [vmem:[%s10078_s29 + $0x6a0] sm:$0xff]  ;;  %v1430_v43 = vld [vmem:[%s10078_s29 + $0x6b0] sm:$0xff]  ;;  %1427 = vst [vmem:[%s10083_s30 + $0x348] sm:$0xff] %v1426_v41 }
  0x4b   : > { %1429 = vst [vmem:[%s10083_s30 + $0x350] sm:$0xff] %v1428_v42  ;;  %1431 = vst [vmem:[%s10083_s30 + $0x358] sm:$0xff] %v1430_v43  ;;  %v1432_v44 = vld [vmem:[%s10078_s29 + $0x6c0] sm:$0xff]  ;;  %v1434_v45 = vld [vmem:[%s10078_s29 + $0x6d0] sm:$0xff] }
  0x4c   : > { %v1436_v46 = vld [vmem:[%s10078_s29 + $0x6e0] sm:$0xff]  ;;  %1433 = vst [vmem:[%s10083_s30 + $0x360] sm:$0xff] %v1432_v44  ;;  %1435 = vst [vmem:[%s10083_s30 + $0x368] sm:$0xff] %v1434_v45  ;;  %v1438_v47 = vld [vmem:[%s10078_s29 + $0x6f0] sm:$0xff] }
  0x4d   : > { %1437 = vst [vmem:[%s10083_s30 + $0x370] sm:$0xff] %v1436_v46  ;;  %v1440_v48 = vld [vmem:[%s10078_s29 + $0x700] sm:$0xff]  ;;  %v1442_v49 = vld [vmem:[%s10078_s29 + $0x710] sm:$0xff]  ;;  %1439 = vst [vmem:[%s10083_s30 + $0x378] sm:$0xff] %v1438_v47 }
  0x4e   : > { %1441 = vst [vmem:[%s10083_s30 + $0x380] sm:$0xff] %v1440_v48  ;;  %1443 = vst [vmem:[%s10083_s30 + $0x388] sm:$0xff] %v1442_v49  ;;  %v1444_v50 = vld [vmem:[%s10078_s29 + $0x720] sm:$0xff]  ;;  %v1446_v51 = vld [vmem:[%s10078_s29 + $0x730] sm:$0xff] }
  0x4f   : > { %v1448_v52 = vld [vmem:[%s10078_s29 + $0x740] sm:$0xff]  ;;  %1445 = vst [vmem:[%s10083_s30 + $0x390] sm:$0xff] %v1444_v50  ;;  %1447 = vst [vmem:[%s10083_s30 + $0x398] sm:$0xff] %v1446_v51  ;;  %v1450_v53 = vld [vmem:[%s10078_s29 + $0x750] sm:$0xff] }
  0x50   : > { %1449 = vst [vmem:[%s10083_s30 + $0x3a0] sm:$0xff] %v1448_v52  ;;  %v1452_v54 = vld [vmem:[%s10078_s29 + $0x760] sm:$0xff]  ;;  %v1454_v55 = vld [vmem:[%s10078_s29 + $0x770] sm:$0xff]  ;;  %1451 = vst [vmem:[%s10083_s30 + $0x3a8] sm:$0xff] %v1450_v53 }
  0x51   : > { %1453 = vst [vmem:[%s10083_s30 + $0x3b0] sm:$0xff] %v1452_v54  ;;  %1455 = vst [vmem:[%s10083_s30 + $0x3b8] sm:$0xff] %v1454_v55  ;;  %v1456_v56 = vld [vmem:[%s10078_s29 + $0x780] sm:$0xff]  ;;  %v1458_v57 = vld [vmem:[%s10078_s29 + $0x790] sm:$0xff] }
  0x52   : > { %v1460_v58 = vld [vmem:[%s10078_s29 + $0x7a0] sm:$0xff]  ;;  %1457 = vst [vmem:[%s10083_s30 + $0x3c0] sm:$0xff] %v1456_v56  ;;  %1459 = vst [vmem:[%s10083_s30 + $0x3c8] sm:$0xff] %v1458_v57  ;;  %v1462_v59 = vld [vmem:[%s10078_s29 + $0x7b0] sm:$0xff] }
  0x53   : > { %1461 = vst [vmem:[%s10083_s30 + $0x3d0] sm:$0xff] %v1460_v58  ;;  %v1464_v60 = vld [vmem:[%s10078_s29 + $0x7c0] sm:$0xff]  ;;  %v1466_v61 = vld [vmem:[%s10078_s29 + $0x7d0] sm:$0xff]  ;;  %1463 = vst [vmem:[%s10083_s30 + $0x3d8] sm:$0xff] %v1462_v59 }
  0x54   : > { %1465 = vst [vmem:[%s10083_s30 + $0x3e0] sm:$0xff] %v1464_v60  ;;  %1467 = vst [vmem:[%s10083_s30 + $0x3e8] sm:$0xff] %v1466_v61  ;;  %v1468_v62 = vld [vmem:[%s10078_s29 + $0x7e0] sm:$0xff]  ;;  %v1470_v63 = vld [vmem:[%s10078_s29 + $0x7f0] sm:$0xff] }
  0x55   : > { %v1472_v0 = vld [vmem:[%s10078_s29 + $0x800] sm:$0xff]  ;;  %1469 = vst [vmem:[%s10083_s30 + $0x3f0] sm:$0xff] %v1468_v62  ;;  %1471 = vst [vmem:[%s10083_s30 + $0x3f8] sm:$0xff] %v1470_v63  ;;  %v1474_v1 = vld [vmem:[%s10078_s29 + $0x810] sm:$0xff] }
  0x56   : > { %1473 = vst [vmem:[%s10083_s30 + $0x400] sm:$0xff] %v1472_v0  ;;  %v1476_v2 = vld [vmem:[%s10078_s29 + $0x820] sm:$0xff]  ;;  %v1478_v3 = vld [vmem:[%s10078_s29 + $0x830] sm:$0xff]  ;;  %1475 = vst [vmem:[%s10083_s30 + $0x408] sm:$0xff] %v1474_v1 }
  0x57   : > { %1477 = vst [vmem:[%s10083_s30 + $0x410] sm:$0xff] %v1476_v2  ;;  %1479 = vst [vmem:[%s10083_s30 + $0x418] sm:$0xff] %v1478_v3  ;;  %v1480_v4 = vld [vmem:[%s10078_s29 + $0x840] sm:$0xff]  ;;  %v1482_v5 = vld [vmem:[%s10078_s29 + $0x850] sm:$0xff] }
  0x58   : > { %v1484_v6 = vld [vmem:[%s10078_s29 + $0x860] sm:$0xff]  ;;  %1481 = vst [vmem:[%s10083_s30 + $0x420] sm:$0xff] %v1480_v4  ;;  %1483 = vst [vmem:[%s10083_s30 + $0x428] sm:$0xff] %v1482_v5  ;;  %v1486_v7 = vld [vmem:[%s10078_s29 + $0x870] sm:$0xff] }
  0x59   : > { %1485 = vst [vmem:[%s10083_s30 + $0x430] sm:$0xff] %v1484_v6  ;;  %v1488_v8 = vld [vmem:[%s10078_s29 + $0x880] sm:$0xff]  ;;  %v1490_v9 = vld [vmem:[%s10078_s29 + $0x890] sm:$0xff]  ;;  %1487 = vst [vmem:[%s10083_s30 + $0x438] sm:$0xff] %v1486_v7 }
  0x5a   : > { %1489 = vst [vmem:[%s10083_s30 + $0x440] sm:$0xff] %v1488_v8  ;;  %1491 = vst [vmem:[%s10083_s30 + $0x448] sm:$0xff] %v1490_v9  ;;  %v1492_v10 = vld [vmem:[%s10078_s29 + $0x8a0] sm:$0xff]  ;;  %v1494_v11 = vld [vmem:[%s10078_s29 + $0x8b0] sm:$0xff] }
  0x5b   : > { %v1496_v12 = vld [vmem:[%s10078_s29 + $0x8c0] sm:$0xff]  ;;  %1493 = vst [vmem:[%s10083_s30 + $0x450] sm:$0xff] %v1492_v10  ;;  %1495 = vst [vmem:[%s10083_s30 + $0x458] sm:$0xff] %v1494_v11  ;;  %v1498_v13 = vld [vmem:[%s10078_s29 + $0x8d0] sm:$0xff] }
  0x5c   : > { %1497 = vst [vmem:[%s10083_s30 + $0x460] sm:$0xff] %v1496_v12  ;;  %v1500_v14 = vld [vmem:[%s10078_s29 + $0x8e0] sm:$0xff]  ;;  %v1502_v15 = vld [vmem:[%s10078_s29 + $0x8f0] sm:$0xff]  ;;  %1499 = vst [vmem:[%s10083_s30 + $0x468] sm:$0xff] %v1498_v13 }
  0x5d   : > { %1501 = vst [vmem:[%s10083_s30 + $0x470] sm:$0xff] %v1500_v14  ;;  %1503 = vst [vmem:[%s10083_s30 + $0x478] sm:$0xff] %v1502_v15  ;;  %v1504_v16 = vld [vmem:[%s10078_s29 + $0x900] sm:$0xff]  ;;  %v1506_v17 = vld [vmem:[%s10078_s29 + $0x910] sm:$0xff] }
  0x5e   : > { %v1508_v18 = vld [vmem:[%s10078_s29 + $0x920] sm:$0xff]  ;;  %1505 = vst [vmem:[%s10083_s30 + $0x480] sm:$0xff] %v1504_v16  ;;  %1507 = vst [vmem:[%s10083_s30 + $0x488] sm:$0xff] %v1506_v17  ;;  %v1510_v19 = vld [vmem:[%s10078_s29 + $0x930] sm:$0xff] }
  0x5f   : > { %1509 = vst [vmem:[%s10083_s30 + $0x490] sm:$0xff] %v1508_v18  ;;  %v1512_v20 = vld [vmem:[%s10078_s29 + $0x940] sm:$0xff]  ;;  %v1514_v21 = vld [vmem:[%s10078_s29 + $0x950] sm:$0xff]  ;;  %1511 = vst [vmem:[%s10083_s30 + $0x498] sm:$0xff] %v1510_v19 }
  0x60   : > { %1513 = vst [vmem:[%s10083_s30 + $0x4a0] sm:$0xff] %v1512_v20  ;;  %1515 = vst [vmem:[%s10083_s30 + $0x4a8] sm:$0xff] %v1514_v21  ;;  %v1516_v22 = vld [vmem:[%s10078_s29 + $0x960] sm:$0xff]  ;;  %v1518_v23 = vld [vmem:[%s10078_s29 + $0x970] sm:$0xff] }
  0x61   : > { %v1520_v24 = vld [vmem:[%s10078_s29 + $0x980] sm:$0xff]  ;;  %1517 = vst [vmem:[%s10083_s30 + $0x4b0] sm:$0xff] %v1516_v22  ;;  %1519 = vst [vmem:[%s10083_s30 + $0x4b8] sm:$0xff] %v1518_v23  ;;  %v1522_v25 = vld [vmem:[%s10078_s29 + $0x990] sm:$0xff] }
  0x62   : > { %1521 = vst [vmem:[%s10083_s30 + $0x4c0] sm:$0xff] %v1520_v24  ;;  %v1524_v26 = vld [vmem:[%s10078_s29 + $0x9a0] sm:$0xff]  ;;  %v1526_v27 = vld [vmem:[%s10078_s29 + $0x9b0] sm:$0xff]  ;;  %1523 = vst [vmem:[%s10083_s30 + $0x4c8] sm:$0xff] %v1522_v25 }
  0x63   : > { %1525 = vst [vmem:[%s10083_s30 + $0x4d0] sm:$0xff] %v1524_v26  ;;  %1527 = vst [vmem:[%s10083_s30 + $0x4d8] sm:$0xff] %v1526_v27  ;;  %v1528_v28 = vld [vmem:[%s10078_s29 + $0x9c0] sm:$0xff]  ;;  %v1530_v29 = vld [vmem:[%s10078_s29 + $0x9d0] sm:$0xff] }
  0x64   : > { %v1532_v30 = vld [vmem:[%s10078_s29 + $0x9e0] sm:$0xff]  ;;  %1529 = vst [vmem:[%s10083_s30 + $0x4e0] sm:$0xff] %v1528_v28  ;;  %1531 = vst [vmem:[%s10083_s30 + $0x4e8] sm:$0xff] %v1530_v29  ;;  %v1534_v31 = vld [vmem:[%s10078_s29 + $0x9f0] sm:$0xff] }
  0x65   : > { %1533 = vst [vmem:[%s10083_s30 + $0x4f0] sm:$0xff] %v1532_v30  ;;  %v1536_v32 = vld [vmem:[%s10078_s29 + $0xa00] sm:$0xff]  ;;  %v1538_v33 = vld [vmem:[%s10078_s29 + $0xa10] sm:$0xff]  ;;  %1535 = vst [vmem:[%s10083_s30 + $0x4f8] sm:$0xff] %v1534_v31 }
  0x66   : > { %1537 = vst [vmem:[%s10083_s30 + $0x500] sm:$0xff] %v1536_v32  ;;  %1539 = vst [vmem:[%s10083_s30 + $0x508] sm:$0xff] %v1538_v33  ;;  %v1540_v34 = vld [vmem:[%s10078_s29 + $0xa20] sm:$0xff]  ;;  %v1542_v35 = vld [vmem:[%s10078_s29 + $0xa30] sm:$0xff] }
  0x67   : > { %v1544_v36 = vld [vmem:[%s10078_s29 + $0xa40] sm:$0xff]  ;;  %1541 = vst [vmem:[%s10083_s30 + $0x510] sm:$0xff] %v1540_v34  ;;  %1543 = vst [vmem:[%s10083_s30 + $0x518] sm:$0xff] %v1542_v35  ;;  %v1546_v37 = vld [vmem:[%s10078_s29 + $0xa50] sm:$0xff] }
  0x68   : > { %1545 = vst [vmem:[%s10083_s30 + $0x520] sm:$0xff] %v1544_v36  ;;  %v1548_v38 = vld [vmem:[%s10078_s29 + $0xa60] sm:$0xff]  ;;  %v1550_v39 = vld [vmem:[%s10078_s29 + $0xa70] sm:$0xff]  ;;  %1547 = vst [vmem:[%s10083_s30 + $0x528] sm:$0xff] %v1546_v37 }
  0x69   : > { %1549 = vst [vmem:[%s10083_s30 + $0x530] sm:$0xff] %v1548_v38  ;;  %1551 = vst [vmem:[%s10083_s30 + $0x538] sm:$0xff] %v1550_v39  ;;  %v1552_v40 = vld [vmem:[%s10078_s29 + $0xa80] sm:$0xff]  ;;  %v1554_v41 = vld [vmem:[%s10078_s29 + $0xa90] sm:$0xff] }
  0x6a   : > { %v1556_v42 = vld [vmem:[%s10078_s29 + $0xaa0] sm:$0xff]  ;;  %1553 = vst [vmem:[%s10083_s30 + $0x540] sm:$0xff] %v1552_v40  ;;  %1555 = vst [vmem:[%s10083_s30 + $0x548] sm:$0xff] %v1554_v41  ;;  %v1558_v43 = vld [vmem:[%s10078_s29 + $0xab0] sm:$0xff] }
  0x6b   : > { %1557 = vst [vmem:[%s10083_s30 + $0x550] sm:$0xff] %v1556_v42  ;;  %v1560_v44 = vld [vmem:[%s10078_s29 + $0xac0] sm:$0xff]  ;;  %v1562_v45 = vld [vmem:[%s10078_s29 + $0xad0] sm:$0xff]  ;;  %1559 = vst [vmem:[%s10083_s30 + $0x558] sm:$0xff] %v1558_v43 }
  0x6c   : > { %1561 = vst [vmem:[%s10083_s30 + $0x560] sm:$0xff] %v1560_v44  ;;  %1563 = vst [vmem:[%s10083_s30 + $0x568] sm:$0xff] %v1562_v45  ;;  %v1564_v46 = vld [vmem:[%s10078_s29 + $0xae0] sm:$0xff]  ;;  %v1566_v47 = vld [vmem:[%s10078_s29 + $0xaf0] sm:$0xff] }
  0x6d   : > { %v1568_v48 = vld [vmem:[%s10078_s29 + $0xb00] sm:$0xff]  ;;  %1565 = vst [vmem:[%s10083_s30 + $0x570] sm:$0xff] %v1564_v46  ;;  %1567 = vst [vmem:[%s10083_s30 + $0x578] sm:$0xff] %v1566_v47  ;;  %v1570_v49 = vld [vmem:[%s10078_s29 + $0xb10] sm:$0xff] }
  0x6e   : > { %1569 = vst [vmem:[%s10083_s30 + $0x580] sm:$0xff] %v1568_v48  ;;  %v1572_v50 = vld [vmem:[%s10078_s29 + $0xb20] sm:$0xff]  ;;  %v1574_v51 = vld [vmem:[%s10078_s29 + $0xb30] sm:$0xff]  ;;  %1571 = vst [vmem:[%s10083_s30 + $0x588] sm:$0xff] %v1570_v49 }
  0x6f   : > { %1573 = vst [vmem:[%s10083_s30 + $0x590] sm:$0xff] %v1572_v50  ;;  %1575 = vst [vmem:[%s10083_s30 + $0x598] sm:$0xff] %v1574_v51  ;;  %v1576_v52 = vld [vmem:[%s10078_s29 + $0xb40] sm:$0xff]  ;;  %v1578_v53 = vld [vmem:[%s10078_s29 + $0xb50] sm:$0xff] }
  0x70   : > { %v1580_v54 = vld [vmem:[%s10078_s29 + $0xb60] sm:$0xff]  ;;  %1577 = vst [vmem:[%s10083_s30 + $0x5a0] sm:$0xff] %v1576_v52  ;;  %1579 = vst [vmem:[%s10083_s30 + $0x5a8] sm:$0xff] %v1578_v53  ;;  %v1582_v55 = vld [vmem:[%s10078_s29 + $0xb70] sm:$0xff] }
  0x71   : > { %1581 = vst [vmem:[%s10083_s30 + $0x5b0] sm:$0xff] %v1580_v54  ;;  %v1584_v56 = vld [vmem:[%s10078_s29 + $0xb80] sm:$0xff]  ;;  %v1586_v57 = vld [vmem:[%s10078_s29 + $0xb90] sm:$0xff]  ;;  %1583 = vst [vmem:[%s10083_s30 + $0x5b8] sm:$0xff] %v1582_v55 }
  0x72   : > { %1585 = vst [vmem:[%s10083_s30 + $0x5c0] sm:$0xff] %v1584_v56  ;;  %1587 = vst [vmem:[%s10083_s30 + $0x5c8] sm:$0xff] %v1586_v57  ;;  %v1588_v58 = vld [vmem:[%s10078_s29 + $0xba0] sm:$0xff]  ;;  %v1590_v59 = vld [vmem:[%s10078_s29 + $0xbb0] sm:$0xff] }
  0x73   : > { %v1592_v60 = vld [vmem:[%s10078_s29 + $0xbc0] sm:$0xff]  ;;  %1589 = vst [vmem:[%s10083_s30 + $0x5d0] sm:$0xff] %v1588_v58  ;;  %1591 = vst [vmem:[%s10083_s30 + $0x5d8] sm:$0xff] %v1590_v59  ;;  %v1594_v61 = vld [vmem:[%s10078_s29 + $0xbd0] sm:$0xff] }
  0x74   : > { %1593 = vst [vmem:[%s10083_s30 + $0x5e0] sm:$0xff] %v1592_v60  ;;  %v1596_v62 = vld [vmem:[%s10078_s29 + $0xbe0] sm:$0xff]  ;;  %v1598_v63 = vld [vmem:[%s10078_s29 + $0xbf0] sm:$0xff]  ;;  %1595 = vst [vmem:[%s10083_s30 + $0x5e8] sm:$0xff] %v1594_v61 }
  0x75   : > { %1597 = vst [vmem:[%s10083_s30 + $0x5f0] sm:$0xff] %v1596_v62  ;;  %1599 = vst [vmem:[%s10083_s30 + $0x5f8] sm:$0xff] %v1598_v63  ;;  %v1600_v0 = vld [vmem:[%s10078_s29 + $0xc00] sm:$0xff]  ;;  %v1602_v1 = vld [vmem:[%s10078_s29 + $0xc10] sm:$0xff] }
  0x76   : > { %v1604_v2 = vld [vmem:[%s10078_s29 + $0xc20] sm:$0xff]  ;;  %1601 = vst [vmem:[%s10083_s30 + $0x600] sm:$0xff] %v1600_v0  ;;  %1603 = vst [vmem:[%s10083_s30 + $0x608] sm:$0xff] %v1602_v1  ;;  %v1606_v3 = vld [vmem:[%s10078_s29 + $0xc30] sm:$0xff] }
  0x77   : > { %1605 = vst [vmem:[%s10083_s30 + $0x610] sm:$0xff] %v1604_v2  ;;  %v1608_v4 = vld [vmem:[%s10078_s29 + $0xc40] sm:$0xff]  ;;  %v1610_v5 = vld [vmem:[%s10078_s29 + $0xc50] sm:$0xff]  ;;  %1607 = vst [vmem:[%s10083_s30 + $0x618] sm:$0xff] %v1606_v3 }
  0x78   : > { %1609 = vst [vmem:[%s10083_s30 + $0x620] sm:$0xff] %v1608_v4  ;;  %1611 = vst [vmem:[%s10083_s30 + $0x628] sm:$0xff] %v1610_v5  ;;  %v1612_v6 = vld [vmem:[%s10078_s29 + $0xc60] sm:$0xff]  ;;  %v1614_v7 = vld [vmem:[%s10078_s29 + $0xc70] sm:$0xff] }
  0x79   : > { %v1616_v8 = vld [vmem:[%s10078_s29 + $0xc80] sm:$0xff]  ;;  %1613 = vst [vmem:[%s10083_s30 + $0x630] sm:$0xff] %v1612_v6  ;;  %1615 = vst [vmem:[%s10083_s30 + $0x638] sm:$0xff] %v1614_v7  ;;  %v1618_v9 = vld [vmem:[%s10078_s29 + $0xc90] sm:$0xff] }
  0x7a   : > { %1617 = vst [vmem:[%s10083_s30 + $0x640] sm:$0xff] %v1616_v8  ;;  %v1620_v10 = vld [vmem:[%s10078_s29 + $0xca0] sm:$0xff]  ;;  %v1622_v11 = vld [vmem:[%s10078_s29 + $0xcb0] sm:$0xff]  ;;  %1619 = vst [vmem:[%s10083_s30 + $0x648] sm:$0xff] %v1618_v9 }
  0x7b   : > { %1621 = vst [vmem:[%s10083_s30 + $0x650] sm:$0xff] %v1620_v10  ;;  %1623 = vst [vmem:[%s10083_s30 + $0x658] sm:$0xff] %v1622_v11  ;;  %v1624_v12 = vld [vmem:[%s10078_s29 + $0xcc0] sm:$0xff]  ;;  %v1626_v13 = vld [vmem:[%s10078_s29 + $0xcd0] sm:$0xff] }
  0x7c   : > { %v1628_v14 = vld [vmem:[%s10078_s29 + $0xce0] sm:$0xff]  ;;  %1625 = vst [vmem:[%s10083_s30 + $0x660] sm:$0xff] %v1624_v12  ;;  %1627 = vst [vmem:[%s10083_s30 + $0x668] sm:$0xff] %v1626_v13  ;;  %v1630_v15 = vld [vmem:[%s10078_s29 + $0xcf0] sm:$0xff] }
  0x7d   : > { %1629 = vst [vmem:[%s10083_s30 + $0x670] sm:$0xff] %v1628_v14  ;;  %v1632_v16 = vld [vmem:[%s10078_s29 + $0xd00] sm:$0xff]  ;;  %v1634_v17 = vld [vmem:[%s10078_s29 + $0xd10] sm:$0xff]  ;;  %1631 = vst [vmem:[%s10083_s30 + $0x678] sm:$0xff] %v1630_v15 }
  0x7e   : > { %1633 = vst [vmem:[%s10083_s30 + $0x680] sm:$0xff] %v1632_v16  ;;  %1635 = vst [vmem:[%s10083_s30 + $0x688] sm:$0xff] %v1634_v17  ;;  %v1636_v18 = vld [vmem:[%s10078_s29 + $0xd20] sm:$0xff]  ;;  %v1638_v19 = vld [vmem:[%s10078_s29 + $0xd30] sm:$0xff] }
  0x7f   : > { %v1640_v20 = vld [vmem:[%s10078_s29 + $0xd40] sm:$0xff]  ;;  %1637 = vst [vmem:[%s10083_s30 + $0x690] sm:$0xff] %v1636_v18  ;;  %1639 = vst [vmem:[%s10083_s30 + $0x698] sm:$0xff] %v1638_v19  ;;  %v1642_v21 = vld [vmem:[%s10078_s29 + $0xd50] sm:$0xff] }
  0x80   : > { %1641 = vst [vmem:[%s10083_s30 + $0x6a0] sm:$0xff] %v1640_v20  ;;  %v1644_v22 = vld [vmem:[%s10078_s29 + $0xd60] sm:$0xff]  ;;  %v1646_v23 = vld [vmem:[%s10078_s29 + $0xd70] sm:$0xff]  ;;  %1643 = vst [vmem:[%s10083_s30 + $0x6a8] sm:$0xff] %v1642_v21 }
  0x81   : > { %1645 = vst [vmem:[%s10083_s30 + $0x6b0] sm:$0xff] %v1644_v22  ;;  %1647 = vst [vmem:[%s10083_s30 + $0x6b8] sm:$0xff] %v1646_v23  ;;  %v1648_v24 = vld [vmem:[%s10078_s29 + $0xd80] sm:$0xff]  ;;  %v1650_v25 = vld [vmem:[%s10078_s29 + $0xd90] sm:$0xff] }
  0x82   : > { %v1652_v26 = vld [vmem:[%s10078_s29 + $0xda0] sm:$0xff]  ;;  %1649 = vst [vmem:[%s10083_s30 + $0x6c0] sm:$0xff] %v1648_v24  ;;  %1651 = vst [vmem:[%s10083_s30 + $0x6c8] sm:$0xff] %v1650_v25  ;;  %v1654_v27 = vld [vmem:[%s10078_s29 + $0xdb0] sm:$0xff] }
  0x83   : > { %1653 = vst [vmem:[%s10083_s30 + $0x6d0] sm:$0xff] %v1652_v26  ;;  %v1656_v28 = vld [vmem:[%s10078_s29 + $0xdc0] sm:$0xff]  ;;  %v1658_v29 = vld [vmem:[%s10078_s29 + $0xdd0] sm:$0xff]  ;;  %1655 = vst [vmem:[%s10083_s30 + $0x6d8] sm:$0xff] %v1654_v27 }
  0x84   : > { %1657 = vst [vmem:[%s10083_s30 + $0x6e0] sm:$0xff] %v1656_v28  ;;  %1659 = vst [vmem:[%s10083_s30 + $0x6e8] sm:$0xff] %v1658_v29  ;;  %v1660_v30 = vld [vmem:[%s10078_s29 + $0xde0] sm:$0xff]  ;;  %v1662_v31 = vld [vmem:[%s10078_s29 + $0xdf0] sm:$0xff] }
  0x85   : > { %v1664_v32 = vld [vmem:[%s10078_s29 + $0xe00] sm:$0xff]  ;;  %1661 = vst [vmem:[%s10083_s30 + $0x6f0] sm:$0xff] %v1660_v30  ;;  %1663 = vst [vmem:[%s10083_s30 + $0x6f8] sm:$0xff] %v1662_v31  ;;  %v1666_v33 = vld [vmem:[%s10078_s29 + $0xe10] sm:$0xff] }
  0x86   : > { %1665 = vst [vmem:[%s10083_s30 + $0x700] sm:$0xff] %v1664_v32  ;;  %v1668_v34 = vld [vmem:[%s10078_s29 + $0xe20] sm:$0xff]  ;;  %v1670_v35 = vld [vmem:[%s10078_s29 + $0xe30] sm:$0xff]  ;;  %1667 = vst [vmem:[%s10083_s30 + $0x708] sm:$0xff] %v1666_v33 }
  0x87   : > { %1669 = vst [vmem:[%s10083_s30 + $0x710] sm:$0xff] %v1668_v34  ;;  %1671 = vst [vmem:[%s10083_s30 + $0x718] sm:$0xff] %v1670_v35  ;;  %v1672_v36 = vld [vmem:[%s10078_s29 + $0xe40] sm:$0xff]  ;;  %v1674_v37 = vld [vmem:[%s10078_s29 + $0xe50] sm:$0xff] }
  0x88   : > { %v1676_v38 = vld [vmem:[%s10078_s29 + $0xe60] sm:$0xff]  ;;  %1673 = vst [vmem:[%s10083_s30 + $0x720] sm:$0xff] %v1672_v36  ;;  %1675 = vst [vmem:[%s10083_s30 + $0x728] sm:$0xff] %v1674_v37  ;;  %v1678_v39 = vld [vmem:[%s10078_s29 + $0xe70] sm:$0xff] }
  0x89   : > { %1677 = vst [vmem:[%s10083_s30 + $0x730] sm:$0xff] %v1676_v38  ;;  %v1680_v40 = vld [vmem:[%s10078_s29 + $0xe80] sm:$0xff]  ;;  %v1682_v41 = vld [vmem:[%s10078_s29 + $0xe90] sm:$0xff]  ;;  %1679 = vst [vmem:[%s10083_s30 + $0x738] sm:$0xff] %v1678_v39 }
  0x8a   : > { %1681 = vst [vmem:[%s10083_s30 + $0x740] sm:$0xff] %v1680_v40  ;;  %1683 = vst [vmem:[%s10083_s30 + $0x748] sm:$0xff] %v1682_v41  ;;  %v1684_v42 = vld [vmem:[%s10078_s29 + $0xea0] sm:$0xff]  ;;  %v1686_v43 = vld [vmem:[%s10078_s29 + $0xeb0] sm:$0xff] }
  0x8b   : > { %v1688_v44 = vld [vmem:[%s10078_s29 + $0xec0] sm:$0xff]  ;;  %1685 = vst [vmem:[%s10083_s30 + $0x750] sm:$0xff] %v1684_v42  ;;  %1687 = vst [vmem:[%s10083_s30 + $0x758] sm:$0xff] %v1686_v43  ;;  %v1690_v45 = vld [vmem:[%s10078_s29 + $0xed0] sm:$0xff] }
  0x8c   : > { %1689 = vst [vmem:[%s10083_s30 + $0x760] sm:$0xff] %v1688_v44  ;;  %v1692_v46 = vld [vmem:[%s10078_s29 + $0xee0] sm:$0xff]  ;;  %v1694_v47 = vld [vmem:[%s10078_s29 + $0xef0] sm:$0xff]  ;;  %1691 = vst [vmem:[%s10083_s30 + $0x768] sm:$0xff] %v1690_v45 }
  0x8d   : > { %1693 = vst [vmem:[%s10083_s30 + $0x770] sm:$0xff] %v1692_v46  ;;  %1695 = vst [vmem:[%s10083_s30 + $0x778] sm:$0xff] %v1694_v47  ;;  %v1696_v48 = vld [vmem:[%s10078_s29 + $0xf00] sm:$0xff]  ;;  %v1698_v49 = vld [vmem:[%s10078_s29 + $0xf10] sm:$0xff] }
  0x8e   : > { %v1700_v50 = vld [vmem:[%s10078_s29 + $0xf20] sm:$0xff]  ;;  %1697 = vst [vmem:[%s10083_s30 + $0x780] sm:$0xff] %v1696_v48  ;;  %1699 = vst [vmem:[%s10083_s30 + $0x788] sm:$0xff] %v1698_v49  ;;  %v1702_v51 = vld [vmem:[%s10078_s29 + $0xf30] sm:$0xff] }
  0x8f   : > { %1701 = vst [vmem:[%s10083_s30 + $0x790] sm:$0xff] %v1700_v50  ;;  %v1704_v52 = vld [vmem:[%s10078_s29 + $0xf40] sm:$0xff]  ;;  %v1706_v53 = vld [vmem:[%s10078_s29 + $0xf50] sm:$0xff]  ;;  %1703 = vst [vmem:[%s10083_s30 + $0x798] sm:$0xff] %v1702_v51 }
  0x90   : > { %1705 = vst [vmem:[%s10083_s30 + $0x7a0] sm:$0xff] %v1704_v52  ;;  %1707 = vst [vmem:[%s10083_s30 + $0x7a8] sm:$0xff] %v1706_v53  ;;  %v1708_v54 = vld [vmem:[%s10078_s29 + $0xf60] sm:$0xff]  ;;  %v1710_v55 = vld [vmem:[%s10078_s29 + $0xf70] sm:$0xff] }
  0x91   : > { %v1712_v56 = vld [vmem:[%s10078_s29 + $0xf80] sm:$0xff]  ;;  %1709 = vst [vmem:[%s10083_s30 + $0x7b0] sm:$0xff] %v1708_v54  ;;  %1711 = vst [vmem:[%s10083_s30 + $0x7b8] sm:$0xff] %v1710_v55  ;;  %v1714_v57 = vld [vmem:[%s10078_s29 + $0xf90] sm:$0xff] }
  0x92   : > { %1713 = vst [vmem:[%s10083_s30 + $0x7c0] sm:$0xff] %v1712_v56  ;;  %v1716_v58 = vld [vmem:[%s10078_s29 + $0xfa0] sm:$0xff]  ;;  %v1718_v59 = vld [vmem:[%s10078_s29 + $0xfb0] sm:$0xff]  ;;  %1715 = vst [vmem:[%s10083_s30 + $0x7c8] sm:$0xff] %v1714_v57 }
  0x93   : > { %1717 = vst [vmem:[%s10083_s30 + $0x7d0] sm:$0xff] %v1716_v58  ;;  %1719 = vst [vmem:[%s10083_s30 + $0x7d8] sm:$0xff] %v1718_v59  ;;  %v1720_v60 = vld [vmem:[%s10078_s29 + $0xfc0] sm:$0xff]  ;;  %v1722_v61 = vld [vmem:[%s10078_s29 + $0xfd0] sm:$0xff] }
  0x94   : > { %v1724_v62 = vld [vmem:[%s10078_s29 + $0xfe0] sm:$0xff]  ;;  %1721 = vst [vmem:[%s10083_s30 + $0x7e0] sm:$0xff] %v1720_v60  ;;  %1723 = vst [vmem:[%s10083_s30 + $0x7e8] sm:$0xff] %v1722_v61  ;;  %v1726_v63 = vld [vmem:[%s10078_s29 + $0xff0] sm:$0xff] }
  0x95   : > { %1725 = vst [vmem:[%s10083_s30 + $0x7f0] sm:$0xff] %v1724_v62  ;;  %v1728_v0 = vld [vmem:[%s10078_s29 + $0x1000] sm:$0xff]  ;;  %v1730_v1 = vld [vmem:[%s10078_s29 + $0x1010] sm:$0xff]  ;;  %1727 = vst [vmem:[%s10083_s30 + $0x7f8] sm:$0xff] %v1726_v63 }
  0x96   : > { %1729 = vst [vmem:[%s10083_s30 + $0x800] sm:$0xff] %v1728_v0  ;;  %1731 = vst [vmem:[%s10083_s30 + $0x808] sm:$0xff] %v1730_v1  ;;  %v1732_v2 = vld [vmem:[%s10078_s29 + $0x1020] sm:$0xff]  ;;  %v1734_v3 = vld [vmem:[%s10078_s29 + $0x1030] sm:$0xff] }
  0x97   : > { %v1736_v4 = vld [vmem:[%s10078_s29 + $0x1040] sm:$0xff]  ;;  %1733 = vst [vmem:[%s10083_s30 + $0x810] sm:$0xff] %v1732_v2  ;;  %1735 = vst [vmem:[%s10083_s30 + $0x818] sm:$0xff] %v1734_v3  ;;  %v1738_v5 = vld [vmem:[%s10078_s29 + $0x1050] sm:$0xff] }
  0x98   : > { %1737 = vst [vmem:[%s10083_s30 + $0x820] sm:$0xff] %v1736_v4  ;;  %v1740_v6 = vld [vmem:[%s10078_s29 + $0x1060] sm:$0xff]  ;;  %v1742_v7 = vld [vmem:[%s10078_s29 + $0x1070] sm:$0xff]  ;;  %1739 = vst [vmem:[%s10083_s30 + $0x828] sm:$0xff] %v1738_v5 }
  0x99   : > { %1741 = vst [vmem:[%s10083_s30 + $0x830] sm:$0xff] %v1740_v6  ;;  %1743 = vst [vmem:[%s10083_s30 + $0x838] sm:$0xff] %v1742_v7  ;;  %v1744_v8 = vld [vmem:[%s10078_s29 + $0x1080] sm:$0xff]  ;;  %v1746_v9 = vld [vmem:[%s10078_s29 + $0x1090] sm:$0xff] }
  0x9a   : > { %v1748_v10 = vld [vmem:[%s10078_s29 + $0x10a0] sm:$0xff]  ;;  %1745 = vst [vmem:[%s10083_s30 + $0x840] sm:$0xff] %v1744_v8  ;;  %1747 = vst [vmem:[%s10083_s30 + $0x848] sm:$0xff] %v1746_v9  ;;  %v1750_v11 = vld [vmem:[%s10078_s29 + $0x10b0] sm:$0xff] }
  0x9b   : > { %1749 = vst [vmem:[%s10083_s30 + $0x850] sm:$0xff] %v1748_v10  ;;  %v1752_v12 = vld [vmem:[%s10078_s29 + $0x10c0] sm:$0xff]  ;;  %v1754_v13 = vld [vmem:[%s10078_s29 + $0x10d0] sm:$0xff]  ;;  %1751 = vst [vmem:[%s10083_s30 + $0x858] sm:$0xff] %v1750_v11 }
  0x9c   : > { %1753 = vst [vmem:[%s10083_s30 + $0x860] sm:$0xff] %v1752_v12  ;;  %1755 = vst [vmem:[%s10083_s30 + $0x868] sm:$0xff] %v1754_v13  ;;  %v1756_v14 = vld [vmem:[%s10078_s29 + $0x10e0] sm:$0xff]  ;;  %v1758_v15 = vld [vmem:[%s10078_s29 + $0x10f0] sm:$0xff] }
  0x9d   : > { %v1760_v16 = vld [vmem:[%s10078_s29 + $0x1100] sm:$0xff]  ;;  %1757 = vst [vmem:[%s10083_s30 + $0x870] sm:$0xff] %v1756_v14  ;;  %1759 = vst [vmem:[%s10083_s30 + $0x878] sm:$0xff] %v1758_v15  ;;  %v1762_v17 = vld [vmem:[%s10078_s29 + $0x1110] sm:$0xff] }
  0x9e   : > { %1761 = vst [vmem:[%s10083_s30 + $0x880] sm:$0xff] %v1760_v16  ;;  %v1764_v18 = vld [vmem:[%s10078_s29 + $0x1120] sm:$0xff]  ;;  %v1766_v19 = vld [vmem:[%s10078_s29 + $0x1130] sm:$0xff]  ;;  %1763 = vst [vmem:[%s10083_s30 + $0x888] sm:$0xff] %v1762_v17 }
  0x9f   : > { %1765 = vst [vmem:[%s10083_s30 + $0x890] sm:$0xff] %v1764_v18  ;;  %1767 = vst [vmem:[%s10083_s30 + $0x898] sm:$0xff] %v1766_v19  ;;  %v1768_v20 = vld [vmem:[%s10078_s29 + $0x1140] sm:$0xff]  ;;  %v1770_v21 = vld [vmem:[%s10078_s29 + $0x1150] sm:$0xff] }
  0xa0   : > { %v1772_v22 = vld [vmem:[%s10078_s29 + $0x1160] sm:$0xff]  ;;  %1769 = vst [vmem:[%s10083_s30 + $0x8a0] sm:$0xff] %v1768_v20  ;;  %1771 = vst [vmem:[%s10083_s30 + $0x8a8] sm:$0xff] %v1770_v21  ;;  %v1774_v23 = vld [vmem:[%s10078_s29 + $0x1170] sm:$0xff] }
  0xa1   : > { %1773 = vst [vmem:[%s10083_s30 + $0x8b0] sm:$0xff] %v1772_v22  ;;  %v1776_v24 = vld [vmem:[%s10078_s29 + $0x1180] sm:$0xff]  ;;  %v1778_v25 = vld [vmem:[%s10078_s29 + $0x1190] sm:$0xff]  ;;  %1775 = vst [vmem:[%s10083_s30 + $0x8b8] sm:$0xff] %v1774_v23 }
  0xa2   : > { %1777 = vst [vmem:[%s10083_s30 + $0x8c0] sm:$0xff] %v1776_v24  ;;  %1779 = vst [vmem:[%s10083_s30 + $0x8c8] sm:$0xff] %v1778_v25  ;;  %v1780_v26 = vld [vmem:[%s10078_s29 + $0x11a0] sm:$0xff]  ;;  %v1782_v27 = vld [vmem:[%s10078_s29 + $0x11b0] sm:$0xff] }
  0xa3   : > { %v1784_v28 = vld [vmem:[%s10078_s29 + $0x11c0] sm:$0xff]  ;;  %1781 = vst [vmem:[%s10083_s30 + $0x8d0] sm:$0xff] %v1780_v26  ;;  %1783 = vst [vmem:[%s10083_s30 + $0x8d8] sm:$0xff] %v1782_v27  ;;  %v1786_v29 = vld [vmem:[%s10078_s29 + $0x11d0] sm:$0xff] }
  0xa4   : > { %1785 = vst [vmem:[%s10083_s30 + $0x8e0] sm:$0xff] %v1784_v28  ;;  %v1788_v30 = vld [vmem:[%s10078_s29 + $0x11e0] sm:$0xff]  ;;  %v1790_v31 = vld [vmem:[%s10078_s29 + $0x11f0] sm:$0xff]  ;;  %1787 = vst [vmem:[%s10083_s30 + $0x8e8] sm:$0xff] %v1786_v29 }
  0xa5   : > { %1789 = vst [vmem:[%s10083_s30 + $0x8f0] sm:$0xff] %v1788_v30  ;;  %1791 = vst [vmem:[%s10083_s30 + $0x8f8] sm:$0xff] %v1790_v31  ;;  %v1792_v32 = vld [vmem:[%s10078_s29 + $0x1200] sm:$0xff]  ;;  %v1794_v33 = vld [vmem:[%s10078_s29 + $0x1210] sm:$0xff] }
  0xa6   : > { %v1796_v34 = vld [vmem:[%s10078_s29 + $0x1220] sm:$0xff]  ;;  %1793 = vst [vmem:[%s10083_s30 + $0x900] sm:$0xff] %v1792_v32  ;;  %1795 = vst [vmem:[%s10083_s30 + $0x908] sm:$0xff] %v1794_v33  ;;  %v1798_v35 = vld [vmem:[%s10078_s29 + $0x1230] sm:$0xff] }
  0xa7   : > { %1797 = vst [vmem:[%s10083_s30 + $0x910] sm:$0xff] %v1796_v34  ;;  %v1800_v36 = vld [vmem:[%s10078_s29 + $0x1240] sm:$0xff]  ;;  %v1802_v37 = vld [vmem:[%s10078_s29 + $0x1250] sm:$0xff]  ;;  %1799 = vst [vmem:[%s10083_s30 + $0x918] sm:$0xff] %v1798_v35 }
  0xa8   : > { %1801 = vst [vmem:[%s10083_s30 + $0x920] sm:$0xff] %v1800_v36  ;;  %1803 = vst [vmem:[%s10083_s30 + $0x928] sm:$0xff] %v1802_v37  ;;  %v1804_v38 = vld [vmem:[%s10078_s29 + $0x1260] sm:$0xff]  ;;  %v1806_v39 = vld [vmem:[%s10078_s29 + $0x1270] sm:$0xff] }
  0xa9   : > { %v1808_v40 = vld [vmem:[%s10078_s29 + $0x1280] sm:$0xff]  ;;  %1805 = vst [vmem:[%s10083_s30 + $0x930] sm:$0xff] %v1804_v38  ;;  %1807 = vst [vmem:[%s10083_s30 + $0x938] sm:$0xff] %v1806_v39  ;;  %v1810_v41 = vld [vmem:[%s10078_s29 + $0x1290] sm:$0xff] }
  0xaa   : > { %1809 = vst [vmem:[%s10083_s30 + $0x940] sm:$0xff] %v1808_v40  ;;  %v1812_v42 = vld [vmem:[%s10078_s29 + $0x12a0] sm:$0xff]  ;;  %v1814_v43 = vld [vmem:[%s10078_s29 + $0x12b0] sm:$0xff]  ;;  %1811 = vst [vmem:[%s10083_s30 + $0x948] sm:$0xff] %v1810_v41 }
  0xab   : > { %1813 = vst [vmem:[%s10083_s30 + $0x950] sm:$0xff] %v1812_v42  ;;  %1815 = vst [vmem:[%s10083_s30 + $0x958] sm:$0xff] %v1814_v43  ;;  %v1816_v44 = vld [vmem:[%s10078_s29 + $0x12c0] sm:$0xff]  ;;  %v1818_v45 = vld [vmem:[%s10078_s29 + $0x12d0] sm:$0xff] }
  0xac   : > { %v1820_v46 = vld [vmem:[%s10078_s29 + $0x12e0] sm:$0xff]  ;;  %1817 = vst [vmem:[%s10083_s30 + $0x960] sm:$0xff] %v1816_v44  ;;  %1819 = vst [vmem:[%s10083_s30 + $0x968] sm:$0xff] %v1818_v45  ;;  %v1822_v47 = vld [vmem:[%s10078_s29 + $0x12f0] sm:$0xff] }
  0xad   : > { %1821 = vst [vmem:[%s10083_s30 + $0x970] sm:$0xff] %v1820_v46  ;;  %v1824_v48 = vld [vmem:[%s10078_s29 + $0x1300] sm:$0xff]  ;;  %v1826_v49 = vld [vmem:[%s10078_s29 + $0x1310] sm:$0xff]  ;;  %1823 = vst [vmem:[%s10083_s30 + $0x978] sm:$0xff] %v1822_v47 }
  0xae   : > { %1825 = vst [vmem:[%s10083_s30 + $0x980] sm:$0xff] %v1824_v48  ;;  %1827 = vst [vmem:[%s10083_s30 + $0x988] sm:$0xff] %v1826_v49  ;;  %v1828_v50 = vld [vmem:[%s10078_s29 + $0x1320] sm:$0xff]  ;;  %v1830_v51 = vld [vmem:[%s10078_s29 + $0x1330] sm:$0xff] }
  0xaf   : > { %v1832_v52 = vld [vmem:[%s10078_s29 + $0x1340] sm:$0xff]  ;;  %1829 = vst [vmem:[%s10083_s30 + $0x990] sm:$0xff] %v1828_v50  ;;  %1831 = vst [vmem:[%s10083_s30 + $0x998] sm:$0xff] %v1830_v51  ;;  %v1834_v53 = vld [vmem:[%s10078_s29 + $0x1350] sm:$0xff] }
  0xb0   : > { %1833 = vst [vmem:[%s10083_s30 + $0x9a0] sm:$0xff] %v1832_v52  ;;  %v1836_v54 = vld [vmem:[%s10078_s29 + $0x1360] sm:$0xff]  ;;  %v1838_v55 = vld [vmem:[%s10078_s29 + $0x1370] sm:$0xff]  ;;  %1835 = vst [vmem:[%s10083_s30 + $0x9a8] sm:$0xff] %v1834_v53 }
  0xb1   : > { %1837 = vst [vmem:[%s10083_s30 + $0x9b0] sm:$0xff] %v1836_v54  ;;  %1839 = vst [vmem:[%s10083_s30 + $0x9b8] sm:$0xff] %v1838_v55  ;;  %v1840_v56 = vld [vmem:[%s10078_s29 + $0x1380] sm:$0xff]  ;;  %v1842_v57 = vld [vmem:[%s10078_s29 + $0x1390] sm:$0xff] }
  0xb2   : > { %v1844_v58 = vld [vmem:[%s10078_s29 + $0x13a0] sm:$0xff]  ;;  %1841 = vst [vmem:[%s10083_s30 + $0x9c0] sm:$0xff] %v1840_v56  ;;  %1843 = vst [vmem:[%s10083_s30 + $0x9c8] sm:$0xff] %v1842_v57  ;;  %v1846_v59 = vld [vmem:[%s10078_s29 + $0x13b0] sm:$0xff] }
  0xb3   : > { %1845 = vst [vmem:[%s10083_s30 + $0x9d0] sm:$0xff] %v1844_v58  ;;  %v1848_v60 = vld [vmem:[%s10078_s29 + $0x13c0] sm:$0xff]  ;;  %v1850_v61 = vld [vmem:[%s10078_s29 + $0x13d0] sm:$0xff]  ;;  %1847 = vst [vmem:[%s10083_s30 + $0x9d8] sm:$0xff] %v1846_v59 }
  0xb4   : > { %1849 = vst [vmem:[%s10083_s30 + $0x9e0] sm:$0xff] %v1848_v60  ;;  %1851 = vst [vmem:[%s10083_s30 + $0x9e8] sm:$0xff] %v1850_v61  ;;  %v1852_v62 = vld [vmem:[%s10078_s29 + $0x13e0] sm:$0xff]  ;;  %v1854_v63 = vld [vmem:[%s10078_s29 + $0x13f0] sm:$0xff] }
  0xb5   : > { %v1856_v0 = vld [vmem:[%s10078_s29 + $0x1400] sm:$0xff]  ;;  %1853 = vst [vmem:[%s10083_s30 + $0x9f0] sm:$0xff] %v1852_v62  ;;  %1855 = vst [vmem:[%s10083_s30 + $0x9f8] sm:$0xff] %v1854_v63  ;;  %v1858_v1 = vld [vmem:[%s10078_s29 + $0x1410] sm:$0xff] }
  0xb6   : > { %1857 = vst [vmem:[%s10083_s30 + $0xa00] sm:$0xff] %v1856_v0  ;;  %v1860_v2 = vld [vmem:[%s10078_s29 + $0x1420] sm:$0xff]  ;;  %v1862_v3 = vld [vmem:[%s10078_s29 + $0x1430] sm:$0xff]  ;;  %1859 = vst [vmem:[%s10083_s30 + $0xa08] sm:$0xff] %v1858_v1 }
  0xb7   : > { %1861 = vst [vmem:[%s10083_s30 + $0xa10] sm:$0xff] %v1860_v2  ;;  %1863 = vst [vmem:[%s10083_s30 + $0xa18] sm:$0xff] %v1862_v3  ;;  %v1864_v4 = vld [vmem:[%s10078_s29 + $0x1440] sm:$0xff]  ;;  %v1866_v5 = vld [vmem:[%s10078_s29 + $0x1450] sm:$0xff] }
  0xb8   : > { %v1868_v6 = vld [vmem:[%s10078_s29 + $0x1460] sm:$0xff]  ;;  %1865 = vst [vmem:[%s10083_s30 + $0xa20] sm:$0xff] %v1864_v4  ;;  %1867 = vst [vmem:[%s10083_s30 + $0xa28] sm:$0xff] %v1866_v5  ;;  %v1870_v7 = vld [vmem:[%s10078_s29 + $0x1470] sm:$0xff] }
  0xb9   : > { %1869 = vst [vmem:[%s10083_s30 + $0xa30] sm:$0xff] %v1868_v6  ;;  %v1872_v8 = vld [vmem:[%s10078_s29 + $0x1480] sm:$0xff]  ;;  %v1874_v9 = vld [vmem:[%s10078_s29 + $0x1490] sm:$0xff]  ;;  %1871 = vst [vmem:[%s10083_s30 + $0xa38] sm:$0xff] %v1870_v7 }
  0xba   : > { %1873 = vst [vmem:[%s10083_s30 + $0xa40] sm:$0xff] %v1872_v8  ;;  %1875 = vst [vmem:[%s10083_s30 + $0xa48] sm:$0xff] %v1874_v9  ;;  %v1876_v10 = vld [vmem:[%s10078_s29 + $0x14a0] sm:$0xff]  ;;  %v1878_v11 = vld [vmem:[%s10078_s29 + $0x14b0] sm:$0xff] }
  0xbb   : > { %v1880_v12 = vld [vmem:[%s10078_s29 + $0x14c0] sm:$0xff]  ;;  %1877 = vst [vmem:[%s10083_s30 + $0xa50] sm:$0xff] %v1876_v10  ;;  %1879 = vst [vmem:[%s10083_s30 + $0xa58] sm:$0xff] %v1878_v11  ;;  %v1882_v13 = vld [vmem:[%s10078_s29 + $0x14d0] sm:$0xff] }
  0xbc   : > { %1881 = vst [vmem:[%s10083_s30 + $0xa60] sm:$0xff] %v1880_v12  ;;  %v1884_v14 = vld [vmem:[%s10078_s29 + $0x14e0] sm:$0xff]  ;;  %v1886_v15 = vld [vmem:[%s10078_s29 + $0x14f0] sm:$0xff]  ;;  %1883 = vst [vmem:[%s10083_s30 + $0xa68] sm:$0xff] %v1882_v13 }
  0xbd   : > { %1885 = vst [vmem:[%s10083_s30 + $0xa70] sm:$0xff] %v1884_v14  ;;  %1887 = vst [vmem:[%s10083_s30 + $0xa78] sm:$0xff] %v1886_v15  ;;  %v1888_v16 = vld [vmem:[%s10078_s29 + $0x1500] sm:$0xff]  ;;  %v1890_v17 = vld [vmem:[%s10078_s29 + $0x1510] sm:$0xff] }
  0xbe   : > { %v1892_v18 = vld [vmem:[%s10078_s29 + $0x1520] sm:$0xff]  ;;  %1889 = vst [vmem:[%s10083_s30 + $0xa80] sm:$0xff] %v1888_v16  ;;  %1891 = vst [vmem:[%s10083_s30 + $0xa88] sm:$0xff] %v1890_v17  ;;  %v1894_v19 = vld [vmem:[%s10078_s29 + $0x1530] sm:$0xff] }
  0xbf   : > { %1893 = vst [vmem:[%s10083_s30 + $0xa90] sm:$0xff] %v1892_v18  ;;  %v1896_v20 = vld [vmem:[%s10078_s29 + $0x1540] sm:$0xff]  ;;  %v1898_v21 = vld [vmem:[%s10078_s29 + $0x1550] sm:$0xff]  ;;  %1895 = vst [vmem:[%s10083_s30 + $0xa98] sm:$0xff] %v1894_v19 }
  0xc0   : > { %1897 = vst [vmem:[%s10083_s30 + $0xaa0] sm:$0xff] %v1896_v20  ;;  %1899 = vst [vmem:[%s10083_s30 + $0xaa8] sm:$0xff] %v1898_v21  ;;  %v1900_v22 = vld [vmem:[%s10078_s29 + $0x1560] sm:$0xff]  ;;  %v1902_v23 = vld [vmem:[%s10078_s29 + $0x1570] sm:$0xff] }
  0xc1   : > { %v1904_v24 = vld [vmem:[%s10078_s29 + $0x1580] sm:$0xff]  ;;  %1901 = vst [vmem:[%s10083_s30 + $0xab0] sm:$0xff] %v1900_v22  ;;  %1903 = vst [vmem:[%s10083_s30 + $0xab8] sm:$0xff] %v1902_v23  ;;  %v1906_v25 = vld [vmem:[%s10078_s29 + $0x1590] sm:$0xff] }
  0xc2   : > { %1905 = vst [vmem:[%s10083_s30 + $0xac0] sm:$0xff] %v1904_v24  ;;  %v1908_v26 = vld [vmem:[%s10078_s29 + $0x15a0] sm:$0xff]  ;;  %v1910_v27 = vld [vmem:[%s10078_s29 + $0x15b0] sm:$0xff]  ;;  %1907 = vst [vmem:[%s10083_s30 + $0xac8] sm:$0xff] %v1906_v25 }
  0xc3   : > { %1909 = vst [vmem:[%s10083_s30 + $0xad0] sm:$0xff] %v1908_v26  ;;  %1911 = vst [vmem:[%s10083_s30 + $0xad8] sm:$0xff] %v1910_v27  ;;  %v1912_v28 = vld [vmem:[%s10078_s29 + $0x15c0] sm:$0xff]  ;;  %v1914_v29 = vld [vmem:[%s10078_s29 + $0x15d0] sm:$0xff] }
  0xc4   : > { %v1916_v30 = vld [vmem:[%s10078_s29 + $0x15e0] sm:$0xff]  ;;  %1913 = vst [vmem:[%s10083_s30 + $0xae0] sm:$0xff] %v1912_v28  ;;  %1915 = vst [vmem:[%s10083_s30 + $0xae8] sm:$0xff] %v1914_v29  ;;  %v1918_v31 = vld [vmem:[%s10078_s29 + $0x15f0] sm:$0xff] }
  0xc5   : > { %1917 = vst [vmem:[%s10083_s30 + $0xaf0] sm:$0xff] %v1916_v30  ;;  %v1920_v32 = vld [vmem:[%s10078_s29 + $0x1600] sm:$0xff]  ;;  %v1922_v33 = vld [vmem:[%s10078_s29 + $0x1610] sm:$0xff]  ;;  %1919 = vst [vmem:[%s10083_s30 + $0xaf8] sm:$0xff] %v1918_v31 }
  0xc6   : > { %1921 = vst [vmem:[%s10083_s30 + $0xb00] sm:$0xff] %v1920_v32  ;;  %1923 = vst [vmem:[%s10083_s30 + $0xb08] sm:$0xff] %v1922_v33  ;;  %v1924_v34 = vld [vmem:[%s10078_s29 + $0x1620] sm:$0xff]  ;;  %v1926_v35 = vld [vmem:[%s10078_s29 + $0x1630] sm:$0xff] }
  0xc7   : > { %v1928_v36 = vld [vmem:[%s10078_s29 + $0x1640] sm:$0xff]  ;;  %1925 = vst [vmem:[%s10083_s30 + $0xb10] sm:$0xff] %v1924_v34  ;;  %1927 = vst [vmem:[%s10083_s30 + $0xb18] sm:$0xff] %v1926_v35  ;;  %v1930_v37 = vld [vmem:[%s10078_s29 + $0x1650] sm:$0xff] }
  0xc8   : > { %1929 = vst [vmem:[%s10083_s30 + $0xb20] sm:$0xff] %v1928_v36  ;;  %v1932_v38 = vld [vmem:[%s10078_s29 + $0x1660] sm:$0xff]  ;;  %v1934_v39 = vld [vmem:[%s10078_s29 + $0x1670] sm:$0xff]  ;;  %1931 = vst [vmem:[%s10083_s30 + $0xb28] sm:$0xff] %v1930_v37 }
  0xc9   : > { %1933 = vst [vmem:[%s10083_s30 + $0xb30] sm:$0xff] %v1932_v38  ;;  %1935 = vst [vmem:[%s10083_s30 + $0xb38] sm:$0xff] %v1934_v39  ;;  %v1936_v40 = vld [vmem:[%s10078_s29 + $0x1680] sm:$0xff]  ;;  %v1938_v41 = vld [vmem:[%s10078_s29 + $0x1690] sm:$0xff] }
  0xca   : > { %v1940_v42 = vld [vmem:[%s10078_s29 + $0x16a0] sm:$0xff]  ;;  %1937 = vst [vmem:[%s10083_s30 + $0xb40] sm:$0xff] %v1936_v40  ;;  %1939 = vst [vmem:[%s10083_s30 + $0xb48] sm:$0xff] %v1938_v41  ;;  %v1942_v43 = vld [vmem:[%s10078_s29 + $0x16b0] sm:$0xff] }
  0xcb   : > { %1941 = vst [vmem:[%s10083_s30 + $0xb50] sm:$0xff] %v1940_v42  ;;  %v1944_v44 = vld [vmem:[%s10078_s29 + $0x16c0] sm:$0xff]  ;;  %v1946_v45 = vld [vmem:[%s10078_s29 + $0x16d0] sm:$0xff]  ;;  %1943 = vst [vmem:[%s10083_s30 + $0xb58] sm:$0xff] %v1942_v43 }
  0xcc   : > { %1945 = vst [vmem:[%s10083_s30 + $0xb60] sm:$0xff] %v1944_v44  ;;  %1947 = vst [vmem:[%s10083_s30 + $0xb68] sm:$0xff] %v1946_v45  ;;  %v1948_v46 = vld [vmem:[%s10078_s29 + $0x16e0] sm:$0xff]  ;;  %v1950_v47 = vld [vmem:[%s10078_s29 + $0x16f0] sm:$0xff] }
  0xcd   : > { %v1952_v48 = vld [vmem:[%s10078_s29 + $0x1700] sm:$0xff]  ;;  %1949 = vst [vmem:[%s10083_s30 + $0xb70] sm:$0xff] %v1948_v46  ;;  %1951 = vst [vmem:[%s10083_s30 + $0xb78] sm:$0xff] %v1950_v47  ;;  %v1954_v49 = vld [vmem:[%s10078_s29 + $0x1710] sm:$0xff] }
  0xce   : > { %1953 = vst [vmem:[%s10083_s30 + $0xb80] sm:$0xff] %v1952_v48  ;;  %v1956_v50 = vld [vmem:[%s10078_s29 + $0x1720] sm:$0xff]  ;;  %v1958_v51 = vld [vmem:[%s10078_s29 + $0x1730] sm:$0xff]  ;;  %1955 = vst [vmem:[%s10083_s30 + $0xb88] sm:$0xff] %v1954_v49 }
  0xcf   : > { %1957 = vst [vmem:[%s10083_s30 + $0xb90] sm:$0xff] %v1956_v50  ;;  %1959 = vst [vmem:[%s10083_s30 + $0xb98] sm:$0xff] %v1958_v51  ;;  %v1960_v52 = vld [vmem:[%s10078_s29 + $0x1740] sm:$0xff]  ;;  %v1962_v53 = vld [vmem:[%s10078_s29 + $0x1750] sm:$0xff] }
  0xd0   : > { %v1964_v54 = vld [vmem:[%s10078_s29 + $0x1760] sm:$0xff]  ;;  %1961 = vst [vmem:[%s10083_s30 + $0xba0] sm:$0xff] %v1960_v52  ;;  %1963 = vst [vmem:[%s10083_s30 + $0xba8] sm:$0xff] %v1962_v53  ;;  %v1966_v55 = vld [vmem:[%s10078_s29 + $0x1770] sm:$0xff] }
  0xd1   : > { %1965 = vst [vmem:[%s10083_s30 + $0xbb0] sm:$0xff] %v1964_v54  ;;  %v1968_v56 = vld [vmem:[%s10078_s29 + $0x1780] sm:$0xff]  ;;  %v1970_v57 = vld [vmem:[%s10078_s29 + $0x1790] sm:$0xff]  ;;  %1967 = vst [vmem:[%s10083_s30 + $0xbb8] sm:$0xff] %v1966_v55 }
  0xd2   : > { %1969 = vst [vmem:[%s10083_s30 + $0xbc0] sm:$0xff] %v1968_v56  ;;  %1971 = vst [vmem:[%s10083_s30 + $0xbc8] sm:$0xff] %v1970_v57  ;;  %v1972_v58 = vld [vmem:[%s10078_s29 + $0x17a0] sm:$0xff]  ;;  %v1974_v59 = vld [vmem:[%s10078_s29 + $0x17b0] sm:$0xff] }
  0xd3   : > { %v1976_v60 = vld [vmem:[%s10078_s29 + $0x17c0] sm:$0xff]  ;;  %1973 = vst [vmem:[%s10083_s30 + $0xbd0] sm:$0xff] %v1972_v58  ;;  %1975 = vst [vmem:[%s10083_s30 + $0xbd8] sm:$0xff] %v1974_v59  ;;  %v1978_v61 = vld [vmem:[%s10078_s29 + $0x17d0] sm:$0xff] }
  0xd4   : > { %1977 = vst [vmem:[%s10083_s30 + $0xbe0] sm:$0xff] %v1976_v60  ;;  %v1980_v62 = vld [vmem:[%s10078_s29 + $0x17e0] sm:$0xff]  ;;  %v1982_v63 = vld [vmem:[%s10078_s29 + $0x17f0] sm:$0xff]  ;;  %1979 = vst [vmem:[%s10083_s30 + $0xbe8] sm:$0xff] %v1978_v61 }
  0xd5   : > { %1981 = vst [vmem:[%s10083_s30 + $0xbf0] sm:$0xff] %v1980_v62  ;;  %1983 = vst [vmem:[%s10083_s30 + $0xbf8] sm:$0xff] %v1982_v63  ;;  %v1984_v0 = vld [vmem:[%s10078_s29 + $0x1800] sm:$0xff]  ;;  %v1986_v1 = vld [vmem:[%s10078_s29 + $0x1810] sm:$0xff] }
  0xd6   : > { %v1988_v2 = vld [vmem:[%s10078_s29 + $0x1820] sm:$0xff]  ;;  %1985 = vst [vmem:[%s10083_s30 + $0xc00] sm:$0xff] %v1984_v0  ;;  %1987 = vst [vmem:[%s10083_s30 + $0xc08] sm:$0xff] %v1986_v1  ;;  %v1990_v3 = vld [vmem:[%s10078_s29 + $0x1830] sm:$0xff] }
  0xd7   : > { %1989 = vst [vmem:[%s10083_s30 + $0xc10] sm:$0xff] %v1988_v2  ;;  %v1992_v4 = vld [vmem:[%s10078_s29 + $0x1840] sm:$0xff]  ;;  %v1994_v5 = vld [vmem:[%s10078_s29 + $0x1850] sm:$0xff]  ;;  %1991 = vst [vmem:[%s10083_s30 + $0xc18] sm:$0xff] %v1990_v3 }
  0xd8   : > { %1993 = vst [vmem:[%s10083_s30 + $0xc20] sm:$0xff] %v1992_v4  ;;  %1995 = vst [vmem:[%s10083_s30 + $0xc28] sm:$0xff] %v1994_v5  ;;  %v1996_v6 = vld [vmem:[%s10078_s29 + $0x1860] sm:$0xff]  ;;  %v1998_v7 = vld [vmem:[%s10078_s29 + $0x1870] sm:$0xff] }
  0xd9   : > { %v2000_v8 = vld [vmem:[%s10078_s29 + $0x1880] sm:$0xff]  ;;  %1997 = vst [vmem:[%s10083_s30 + $0xc30] sm:$0xff] %v1996_v6  ;;  %1999 = vst [vmem:[%s10083_s30 + $0xc38] sm:$0xff] %v1998_v7  ;;  %v2002_v9 = vld [vmem:[%s10078_s29 + $0x1890] sm:$0xff] }
  0xda   : > { %2001 = vst [vmem:[%s10083_s30 + $0xc40] sm:$0xff] %v2000_v8  ;;  %v2004_v10 = vld [vmem:[%s10078_s29 + $0x18a0] sm:$0xff]  ;;  %v2006_v11 = vld [vmem:[%s10078_s29 + $0x18b0] sm:$0xff]  ;;  %2003 = vst [vmem:[%s10083_s30 + $0xc48] sm:$0xff] %v2002_v9 }
  0xdb   : > { %2005 = vst [vmem:[%s10083_s30 + $0xc50] sm:$0xff] %v2004_v10  ;;  %2007 = vst [vmem:[%s10083_s30 + $0xc58] sm:$0xff] %v2006_v11  ;;  %v2008_v12 = vld [vmem:[%s10078_s29 + $0x18c0] sm:$0xff]  ;;  %v2010_v13 = vld [vmem:[%s10078_s29 + $0x18d0] sm:$0xff] }
  0xdc   : > { %v2012_v14 = vld [vmem:[%s10078_s29 + $0x18e0] sm:$0xff]  ;;  %2009 = vst [vmem:[%s10083_s30 + $0xc60] sm:$0xff] %v2008_v12  ;;  %2011 = vst [vmem:[%s10083_s30 + $0xc68] sm:$0xff] %v2010_v13  ;;  %v2014_v15 = vld [vmem:[%s10078_s29 + $0x18f0] sm:$0xff] }
  0xdd   : > { %2013 = vst [vmem:[%s10083_s30 + $0xc70] sm:$0xff] %v2012_v14  ;;  %v2016_v16 = vld [vmem:[%s10078_s29 + $0x1900] sm:$0xff]  ;;  %v2018_v17 = vld [vmem:[%s10078_s29 + $0x1910] sm:$0xff]  ;;  %2015 = vst [vmem:[%s10083_s30 + $0xc78] sm:$0xff] %v2014_v15 }
  0xde   : > { %2017 = vst [vmem:[%s10083_s30 + $0xc80] sm:$0xff] %v2016_v16  ;;  %2019 = vst [vmem:[%s10083_s30 + $0xc88] sm:$0xff] %v2018_v17  ;;  %v2020_v18 = vld [vmem:[%s10078_s29 + $0x1920] sm:$0xff]  ;;  %v2022_v19 = vld [vmem:[%s10078_s29 + $0x1930] sm:$0xff] }
  0xdf   : > { %v2024_v20 = vld [vmem:[%s10078_s29 + $0x1940] sm:$0xff]  ;;  %2021 = vst [vmem:[%s10083_s30 + $0xc90] sm:$0xff] %v2020_v18  ;;  %2023 = vst [vmem:[%s10083_s30 + $0xc98] sm:$0xff] %v2022_v19  ;;  %v2026_v21 = vld [vmem:[%s10078_s29 + $0x1950] sm:$0xff] }
  0xe0   : > { %2025 = vst [vmem:[%s10083_s30 + $0xca0] sm:$0xff] %v2024_v20  ;;  %v2028_v22 = vld [vmem:[%s10078_s29 + $0x1960] sm:$0xff]  ;;  %v2030_v23 = vld [vmem:[%s10078_s29 + $0x1970] sm:$0xff]  ;;  %2027 = vst [vmem:[%s10083_s30 + $0xca8] sm:$0xff] %v2026_v21 }
  0xe1   : > { %2029 = vst [vmem:[%s10083_s30 + $0xcb0] sm:$0xff] %v2028_v22  ;;  %2031 = vst [vmem:[%s10083_s30 + $0xcb8] sm:$0xff] %v2030_v23  ;;  %v2032_v24 = vld [vmem:[%s10078_s29 + $0x1980] sm:$0xff]  ;;  %v2034_v25 = vld [vmem:[%s10078_s29 + $0x1990] sm:$0xff] }
  0xe2   : > { %v2036_v26 = vld [vmem:[%s10078_s29 + $0x19a0] sm:$0xff]  ;;  %2033 = vst [vmem:[%s10083_s30 + $0xcc0] sm:$0xff] %v2032_v24  ;;  %2035 = vst [vmem:[%s10083_s30 + $0xcc8] sm:$0xff] %v2034_v25  ;;  %v2038_v27 = vld [vmem:[%s10078_s29 + $0x19b0] sm:$0xff] }
  0xe3   : > { %2037 = vst [vmem:[%s10083_s30 + $0xcd0] sm:$0xff] %v2036_v26  ;;  %v2040_v28 = vld [vmem:[%s10078_s29 + $0x19c0] sm:$0xff]  ;;  %v2042_v29 = vld [vmem:[%s10078_s29 + $0x19d0] sm:$0xff]  ;;  %2039 = vst [vmem:[%s10083_s30 + $0xcd8] sm:$0xff] %v2038_v27 }
  0xe4   : > { %2041 = vst [vmem:[%s10083_s30 + $0xce0] sm:$0xff] %v2040_v28  ;;  %2043 = vst [vmem:[%s10083_s30 + $0xce8] sm:$0xff] %v2042_v29  ;;  %v2044_v30 = vld [vmem:[%s10078_s29 + $0x19e0] sm:$0xff]  ;;  %v2046_v31 = vld [vmem:[%s10078_s29 + $0x19f0] sm:$0xff] }
  0xe5   : > { %v2048_v32 = vld [vmem:[%s10078_s29 + $0x1a00] sm:$0xff]  ;;  %2045 = vst [vmem:[%s10083_s30 + $0xcf0] sm:$0xff] %v2044_v30  ;;  %2047 = vst [vmem:[%s10083_s30 + $0xcf8] sm:$0xff] %v2046_v31  ;;  %v2050_v33 = vld [vmem:[%s10078_s29 + $0x1a10] sm:$0xff] }
  0xe6   : > { %2049 = vst [vmem:[%s10083_s30 + $0xd00] sm:$0xff] %v2048_v32  ;;  %v2052_v34 = vld [vmem:[%s10078_s29 + $0x1a20] sm:$0xff]  ;;  %v2054_v35 = vld [vmem:[%s10078_s29 + $0x1a30] sm:$0xff]  ;;  %2051 = vst [vmem:[%s10083_s30 + $0xd08] sm:$0xff] %v2050_v33 }
  0xe7   : > { %2053 = vst [vmem:[%s10083_s30 + $0xd10] sm:$0xff] %v2052_v34  ;;  %2055 = vst [vmem:[%s10083_s30 + $0xd18] sm:$0xff] %v2054_v35  ;;  %v2056_v36 = vld [vmem:[%s10078_s29 + $0x1a40] sm:$0xff]  ;;  %v2058_v37 = vld [vmem:[%s10078_s29 + $0x1a50] sm:$0xff] }
  0xe8   : > { %v2060_v38 = vld [vmem:[%s10078_s29 + $0x1a60] sm:$0xff]  ;;  %2057 = vst [vmem:[%s10083_s30 + $0xd20] sm:$0xff] %v2056_v36  ;;  %2059 = vst [vmem:[%s10083_s30 + $0xd28] sm:$0xff] %v2058_v37  ;;  %v2062_v39 = vld [vmem:[%s10078_s29 + $0x1a70] sm:$0xff] }
  0xe9   : > { %2061 = vst [vmem:[%s10083_s30 + $0xd30] sm:$0xff] %v2060_v38  ;;  %v2064_v40 = vld [vmem:[%s10078_s29 + $0x1a80] sm:$0xff]  ;;  %v2066_v41 = vld [vmem:[%s10078_s29 + $0x1a90] sm:$0xff]  ;;  %2063 = vst [vmem:[%s10083_s30 + $0xd38] sm:$0xff] %v2062_v39 }
  0xea   : > { %2065 = vst [vmem:[%s10083_s30 + $0xd40] sm:$0xff] %v2064_v40  ;;  %2067 = vst [vmem:[%s10083_s30 + $0xd48] sm:$0xff] %v2066_v41  ;;  %v2068_v42 = vld [vmem:[%s10078_s29 + $0x1aa0] sm:$0xff]  ;;  %v2070_v43 = vld [vmem:[%s10078_s29 + $0x1ab0] sm:$0xff] }
  0xeb   : > { %v2072_v44 = vld [vmem:[%s10078_s29 + $0x1ac0] sm:$0xff]  ;;  %2069 = vst [vmem:[%s10083_s30 + $0xd50] sm:$0xff] %v2068_v42  ;;  %2071 = vst [vmem:[%s10083_s30 + $0xd58] sm:$0xff] %v2070_v43  ;;  %v2074_v45 = vld [vmem:[%s10078_s29 + $0x1ad0] sm:$0xff] }
  0xec   : > { %2073 = vst [vmem:[%s10083_s30 + $0xd60] sm:$0xff] %v2072_v44  ;;  %v2076_v46 = vld [vmem:[%s10078_s29 + $0x1ae0] sm:$0xff]  ;;  %v2078_v47 = vld [vmem:[%s10078_s29 + $0x1af0] sm:$0xff]  ;;  %2075 = vst [vmem:[%s10083_s30 + $0xd68] sm:$0xff] %v2074_v45 }
  0xed   : > { %2077 = vst [vmem:[%s10083_s30 + $0xd70] sm:$0xff] %v2076_v46  ;;  %2079 = vst [vmem:[%s10083_s30 + $0xd78] sm:$0xff] %v2078_v47  ;;  %v2080_v48 = vld [vmem:[%s10078_s29 + $0x1b00] sm:$0xff]  ;;  %v2082_v49 = vld [vmem:[%s10078_s29 + $0x1b10] sm:$0xff] }
  0xee   : > { %v2084_v50 = vld [vmem:[%s10078_s29 + $0x1b20] sm:$0xff]  ;;  %2081 = vst [vmem:[%s10083_s30 + $0xd80] sm:$0xff] %v2080_v48  ;;  %2083 = vst [vmem:[%s10083_s30 + $0xd88] sm:$0xff] %v2082_v49  ;;  %v2086_v51 = vld [vmem:[%s10078_s29 + $0x1b30] sm:$0xff] }
  0xef   : > { %2085 = vst [vmem:[%s10083_s30 + $0xd90] sm:$0xff] %v2084_v50  ;;  %v2088_v52 = vld [vmem:[%s10078_s29 + $0x1b40] sm:$0xff]  ;;  %v2090_v53 = vld [vmem:[%s10078_s29 + $0x1b50] sm:$0xff]  ;;  %2087 = vst [vmem:[%s10083_s30 + $0xd98] sm:$0xff] %v2086_v51 }
  0xf0   : > { %2089 = vst [vmem:[%s10083_s30 + $0xda0] sm:$0xff] %v2088_v52  ;;  %2091 = vst [vmem:[%s10083_s30 + $0xda8] sm:$0xff] %v2090_v53  ;;  %v2092_v54 = vld [vmem:[%s10078_s29 + $0x1b60] sm:$0xff]  ;;  %v2094_v55 = vld [vmem:[%s10078_s29 + $0x1b70] sm:$0xff] }
  0xf1   : > { %v2096_v56 = vld [vmem:[%s10078_s29 + $0x1b80] sm:$0xff]  ;;  %2093 = vst [vmem:[%s10083_s30 + $0xdb0] sm:$0xff] %v2092_v54  ;;  %2095 = vst [vmem:[%s10083_s30 + $0xdb8] sm:$0xff] %v2094_v55  ;;  %v2098_v57 = vld [vmem:[%s10078_s29 + $0x1b90] sm:$0xff] }
  0xf2   : > { %2097 = vst [vmem:[%s10083_s30 + $0xdc0] sm:$0xff] %v2096_v56  ;;  %v2100_v58 = vld [vmem:[%s10078_s29 + $0x1ba0] sm:$0xff]  ;;  %v2102_v59 = vld [vmem:[%s10078_s29 + $0x1bb0] sm:$0xff]  ;;  %2099 = vst [vmem:[%s10083_s30 + $0xdc8] sm:$0xff] %v2098_v57 }
  0xf3   : > { %2101 = vst [vmem:[%s10083_s30 + $0xdd0] sm:$0xff] %v2100_v58  ;;  %2103 = vst [vmem:[%s10083_s30 + $0xdd8] sm:$0xff] %v2102_v59  ;;  %v2104_v60 = vld [vmem:[%s10078_s29 + $0x1bc0] sm:$0xff]  ;;  %v2106_v61 = vld [vmem:[%s10078_s29 + $0x1bd0] sm:$0xff] }
  0xf4   : > { %v2108_v62 = vld [vmem:[%s10078_s29 + $0x1be0] sm:$0xff]  ;;  %2105 = vst [vmem:[%s10083_s30 + $0xde0] sm:$0xff] %v2104_v60  ;;  %2107 = vst [vmem:[%s10083_s30 + $0xde8] sm:$0xff] %v2106_v61  ;;  %v2110_v63 = vld [vmem:[%s10078_s29 + $0x1bf0] sm:$0xff] }
  0xf5   : > { %2109 = vst [vmem:[%s10083_s30 + $0xdf0] sm:$0xff] %v2108_v62  ;;  %v2112_v0 = vld [vmem:[%s10078_s29 + $0x1c00] sm:$0xff]  ;;  %v2114_v1 = vld [vmem:[%s10078_s29 + $0x1c10] sm:$0xff]  ;;  %2111 = vst [vmem:[%s10083_s30 + $0xdf8] sm:$0xff] %v2110_v63 }
  0xf6   : > { %2113 = vst [vmem:[%s10083_s30 + $0xe00] sm:$0xff] %v2112_v0  ;;  %2115 = vst [vmem:[%s10083_s30 + $0xe08] sm:$0xff] %v2114_v1  ;;  %v2116_v2 = vld [vmem:[%s10078_s29 + $0x1c20] sm:$0xff]  ;;  %v2118_v3 = vld [vmem:[%s10078_s29 + $0x1c30] sm:$0xff] }
  0xf7   : > { %v2120_v4 = vld [vmem:[%s10078_s29 + $0x1c40] sm:$0xff]  ;;  %2117 = vst [vmem:[%s10083_s30 + $0xe10] sm:$0xff] %v2116_v2  ;;  %2119 = vst [vmem:[%s10083_s30 + $0xe18] sm:$0xff] %v2118_v3  ;;  %v2122_v5 = vld [vmem:[%s10078_s29 + $0x1c50] sm:$0xff] }
  0xf8   : > { %2121 = vst [vmem:[%s10083_s30 + $0xe20] sm:$0xff] %v2120_v4  ;;  %v2124_v6 = vld [vmem:[%s10078_s29 + $0x1c60] sm:$0xff]  ;;  %v2126_v7 = vld [vmem:[%s10078_s29 + $0x1c70] sm:$0xff]  ;;  %2123 = vst [vmem:[%s10083_s30 + $0xe28] sm:$0xff] %v2122_v5 }
  0xf9   : > { %2125 = vst [vmem:[%s10083_s30 + $0xe30] sm:$0xff] %v2124_v6  ;;  %2127 = vst [vmem:[%s10083_s30 + $0xe38] sm:$0xff] %v2126_v7  ;;  %v2128_v8 = vld [vmem:[%s10078_s29 + $0x1c80] sm:$0xff]  ;;  %v2130_v9 = vld [vmem:[%s10078_s29 + $0x1c90] sm:$0xff] }
  0xfa   : > { %v2132_v10 = vld [vmem:[%s10078_s29 + $0x1ca0] sm:$0xff]  ;;  %2129 = vst [vmem:[%s10083_s30 + $0xe40] sm:$0xff] %v2128_v8  ;;  %2131 = vst [vmem:[%s10083_s30 + $0xe48] sm:$0xff] %v2130_v9  ;;  %v2134_v11 = vld [vmem:[%s10078_s29 + $0x1cb0] sm:$0xff] }
  0xfb   : > { %2133 = vst [vmem:[%s10083_s30 + $0xe50] sm:$0xff] %v2132_v10  ;;  %v2136_v12 = vld [vmem:[%s10078_s29 + $0x1cc0] sm:$0xff]  ;;  %v2138_v13 = vld [vmem:[%s10078_s29 + $0x1cd0] sm:$0xff]  ;;  %2135 = vst [vmem:[%s10083_s30 + $0xe58] sm:$0xff] %v2134_v11 }
  0xfc   : > { %2137 = vst [vmem:[%s10083_s30 + $0xe60] sm:$0xff] %v2136_v12  ;;  %2139 = vst [vmem:[%s10083_s30 + $0xe68] sm:$0xff] %v2138_v13  ;;  %v2140_v14 = vld [vmem:[%s10078_s29 + $0x1ce0] sm:$0xff]  ;;  %v2142_v15 = vld [vmem:[%s10078_s29 + $0x1cf0] sm:$0xff] }
  0xfd   : > { %v2144_v16 = vld [vmem:[%s10078_s29 + $0x1d00] sm:$0xff]  ;;  %2141 = vst [vmem:[%s10083_s30 + $0xe70] sm:$0xff] %v2140_v14  ;;  %2143 = vst [vmem:[%s10083_s30 + $0xe78] sm:$0xff] %v2142_v15  ;;  %v2146_v17 = vld [vmem:[%s10078_s29 + $0x1d10] sm:$0xff] }
  0xfe   : > { %2145 = vst [vmem:[%s10083_s30 + $0xe80] sm:$0xff] %v2144_v16  ;;  %v2148_v18 = vld [vmem:[%s10078_s29 + $0x1d20] sm:$0xff]  ;;  %v2150_v19 = vld [vmem:[%s10078_s29 + $0x1d30] sm:$0xff]  ;;  %2147 = vst [vmem:[%s10083_s30 + $0xe88] sm:$0xff] %v2146_v17 }
  0xff   : > { %2149 = vst [vmem:[%s10083_s30 + $0xe90] sm:$0xff] %v2148_v18  ;;  %2151 = vst [vmem:[%s10083_s30 + $0xe98] sm:$0xff] %v2150_v19  ;;  %v2152_v20 = vld [vmem:[%s10078_s29 + $0x1d40] sm:$0xff]  ;;  %v2154_v21 = vld [vmem:[%s10078_s29 + $0x1d50] sm:$0xff] }
 0x100   : > { %v2156_v22 = vld [vmem:[%s10078_s29 + $0x1d60] sm:$0xff]  ;;  %2153 = vst [vmem:[%s10083_s30 + $0xea0] sm:$0xff] %v2152_v20  ;;  %2155 = vst [vmem:[%s10083_s30 + $0xea8] sm:$0xff] %v2154_v21  ;;  %v2158_v23 = vld [vmem:[%s10078_s29 + $0x1d70] sm:$0xff] }
 0x101   : > { %2157 = vst [vmem:[%s10083_s30 + $0xeb0] sm:$0xff] %v2156_v22  ;;  %v2160_v24 = vld [vmem:[%s10078_s29 + $0x1d80] sm:$0xff]  ;;  %v2162_v25 = vld [vmem:[%s10078_s29 + $0x1d90] sm:$0xff]  ;;  %2159 = vst [vmem:[%s10083_s30 + $0xeb8] sm:$0xff] %v2158_v23 }
 0x102   : > { %2161 = vst [vmem:[%s10083_s30 + $0xec0] sm:$0xff] %v2160_v24  ;;  %2163 = vst [vmem:[%s10083_s30 + $0xec8] sm:$0xff] %v2162_v25  ;;  %v2164_v26 = vld [vmem:[%s10078_s29 + $0x1da0] sm:$0xff]  ;;  %v2166_v27 = vld [vmem:[%s10078_s29 + $0x1db0] sm:$0xff] }
 0x103   : > { %v2168_v28 = vld [vmem:[%s10078_s29 + $0x1dc0] sm:$0xff]  ;;  %2165 = vst [vmem:[%s10083_s30 + $0xed0] sm:$0xff] %v2164_v26  ;;  %2167 = vst [vmem:[%s10083_s30 + $0xed8] sm:$0xff] %v2166_v27  ;;  %v2170_v29 = vld [vmem:[%s10078_s29 + $0x1dd0] sm:$0xff] }
 0x104   : > { %2169 = vst [vmem:[%s10083_s30 + $0xee0] sm:$0xff] %v2168_v28  ;;  %v2172_v30 = vld [vmem:[%s10078_s29 + $0x1de0] sm:$0xff]  ;;  %v2174_v31 = vld [vmem:[%s10078_s29 + $0x1df0] sm:$0xff]  ;;  %2171 = vst [vmem:[%s10083_s30 + $0xee8] sm:$0xff] %v2170_v29 }
 0x105   : > { %2173 = vst [vmem:[%s10083_s30 + $0xef0] sm:$0xff] %v2172_v30  ;;  %2175 = vst [vmem:[%s10083_s30 + $0xef8] sm:$0xff] %v2174_v31  ;;  %v2176_v32 = vld [vmem:[%s10078_s29 + $0x1e00] sm:$0xff]  ;;  %v2178_v33 = vld [vmem:[%s10078_s29 + $0x1e10] sm:$0xff] }
 0x106   : > { %v2180_v34 = vld [vmem:[%s10078_s29 + $0x1e20] sm:$0xff]  ;;  %2177 = vst [vmem:[%s10083_s30 + $0xf00] sm:$0xff] %v2176_v32  ;;  %2179 = vst [vmem:[%s10083_s30 + $0xf08] sm:$0xff] %v2178_v33  ;;  %v2182_v35 = vld [vmem:[%s10078_s29 + $0x1e30] sm:$0xff] }
 0x107   : > { %2181 = vst [vmem:[%s10083_s30 + $0xf10] sm:$0xff] %v2180_v34  ;;  %v2184_v36 = vld [vmem:[%s10078_s29 + $0x1e40] sm:$0xff]  ;;  %v2186_v37 = vld [vmem:[%s10078_s29 + $0x1e50] sm:$0xff]  ;;  %2183 = vst [vmem:[%s10083_s30 + $0xf18] sm:$0xff] %v2182_v35 }
 0x108   : > { %2185 = vst [vmem:[%s10083_s30 + $0xf20] sm:$0xff] %v2184_v36  ;;  %2187 = vst [vmem:[%s10083_s30 + $0xf28] sm:$0xff] %v2186_v37  ;;  %v2188_v38 = vld [vmem:[%s10078_s29 + $0x1e60] sm:$0xff]  ;;  %v2190_v39 = vld [vmem:[%s10078_s29 + $0x1e70] sm:$0xff] }
 0x109   : > { %v2192_v40 = vld [vmem:[%s10078_s29 + $0x1e80] sm:$0xff]  ;;  %2189 = vst [vmem:[%s10083_s30 + $0xf30] sm:$0xff] %v2188_v38  ;;  %2191 = vst [vmem:[%s10083_s30 + $0xf38] sm:$0xff] %v2190_v39  ;;  %v2194_v41 = vld [vmem:[%s10078_s29 + $0x1e90] sm:$0xff] }
 0x10a   : > { %2193 = vst [vmem:[%s10083_s30 + $0xf40] sm:$0xff] %v2192_v40  ;;  %v2196_v42 = vld [vmem:[%s10078_s29 + $0x1ea0] sm:$0xff]  ;;  %v2198_v43 = vld [vmem:[%s10078_s29 + $0x1eb0] sm:$0xff]  ;;  %2195 = vst [vmem:[%s10083_s30 + $0xf48] sm:$0xff] %v2194_v41 }
 0x10b   : > { %2197 = vst [vmem:[%s10083_s30 + $0xf50] sm:$0xff] %v2196_v42  ;;  %2199 = vst [vmem:[%s10083_s30 + $0xf58] sm:$0xff] %v2198_v43  ;;  %v2200_v44 = vld [vmem:[%s10078_s29 + $0x1ec0] sm:$0xff]  ;;  %v2202_v45 = vld [vmem:[%s10078_s29 + $0x1ed0] sm:$0xff] }
 0x10c   : > { %v2204_v46 = vld [vmem:[%s10078_s29 + $0x1ee0] sm:$0xff]  ;;  %2201 = vst [vmem:[%s10083_s30 + $0xf60] sm:$0xff] %v2200_v44  ;;  %2203 = vst [vmem:[%s10083_s30 + $0xf68] sm:$0xff] %v2202_v45  ;;  %v2206_v47 = vld [vmem:[%s10078_s29 + $0x1ef0] sm:$0xff] }
 0x10d   : > { %2205 = vst [vmem:[%s10083_s30 + $0xf70] sm:$0xff] %v2204_v46  ;;  %v2208_v48 = vld [vmem:[%s10078_s29 + $0x1f00] sm:$0xff]  ;;  %v2210_v49 = vld [vmem:[%s10078_s29 + $0x1f10] sm:$0xff]  ;;  %2207 = vst [vmem:[%s10083_s30 + $0xf78] sm:$0xff] %v2206_v47 }
 0x10e   : > { %2209 = vst [vmem:[%s10083_s30 + $0xf80] sm:$0xff] %v2208_v48  ;;  %2211 = vst [vmem:[%s10083_s30 + $0xf88] sm:$0xff] %v2210_v49  ;;  %v2212_v50 = vld [vmem:[%s10078_s29 + $0x1f20] sm:$0xff]  ;;  %v2214_v51 = vld [vmem:[%s10078_s29 + $0x1f30] sm:$0xff] }
 0x10f   : > { %v2216_v52 = vld [vmem:[%s10078_s29 + $0x1f40] sm:$0xff]  ;;  %2213 = vst [vmem:[%s10083_s30 + $0xf90] sm:$0xff] %v2212_v50  ;;  %2215 = vst [vmem:[%s10083_s30 + $0xf98] sm:$0xff] %v2214_v51  ;;  %v2218_v53 = vld [vmem:[%s10078_s29 + $0x1f50] sm:$0xff] }
 0x110   : > { %2217 = vst [vmem:[%s10083_s30 + $0xfa0] sm:$0xff] %v2216_v52  ;;  %v2220_v54 = vld [vmem:[%s10078_s29 + $0x1f60] sm:$0xff]  ;;  %v2222_v55 = vld [vmem:[%s10078_s29 + $0x1f70] sm:$0xff]  ;;  %2219 = vst [vmem:[%s10083_s30 + $0xfa8] sm:$0xff] %v2218_v53 }
 0x111   : > { %2221 = vst [vmem:[%s10083_s30 + $0xfb0] sm:$0xff] %v2220_v54  ;;  %2223 = vst [vmem:[%s10083_s30 + $0xfb8] sm:$0xff] %v2222_v55  ;;  %v2224_v56 = vld [vmem:[%s10078_s29 + $0x1f80] sm:$0xff]  ;;  %v2226_v57 = vld [vmem:[%s10078_s29 + $0x1f90] sm:$0xff] }
 0x112   : > { %v2228_v58 = vld [vmem:[%s10078_s29 + $0x1fa0] sm:$0xff]  ;;  %2225 = vst [vmem:[%s10083_s30 + $0xfc0] sm:$0xff] %v2224_v56  ;;  %2227 = vst [vmem:[%s10083_s30 + $0xfc8] sm:$0xff] %v2226_v57  ;;  %v2230_v59 = vld [vmem:[%s10078_s29 + $0x1fb0] sm:$0xff] }
 0x113   : > { %2229 = vst [vmem:[%s10083_s30 + $0xfd0] sm:$0xff] %v2228_v58  ;;  %v2232_v60 = vld [vmem:[%s10078_s29 + $0x1fc0] sm:$0xff]  ;;  %v2234_v61 = vld [vmem:[%s10078_s29 + $0x1fd0] sm:$0xff]  ;;  %2231 = vst [vmem:[%s10083_s30 + $0xfd8] sm:$0xff] %v2230_v59 }
 0x114   : > { %2233 = vst [vmem:[%s10083_s30 + $0xfe0] sm:$0xff] %v2232_v60  ;;  %2235 = vst [vmem:[%s10083_s30 + $0xfe8] sm:$0xff] %v2234_v61  ;;  %v2236_v62 = vld [vmem:[%s10078_s29 + $0x1fe0] sm:$0xff]  ;;  %v2238_v63 = vld [vmem:[%s10078_s29 + $0x1ff0] sm:$0xff] }
 0x115   : > { %2237 = vst [vmem:[%s10083_s30 + $0xff0] sm:$0xff] %v2236_v62  ;;  %2239 = vst [vmem:[%s10083_s30 + $0xff8] sm:$0xff] %v2238_v63 }
 0x116 PF: > { %p8521_p7 = scmp.ge.s32.totalorder %s9998_s18, 1  ;;  %p4336_p8 = scmp.lt.s32.totalorder %s9998_s18, 5 }
 0x118   : > { %p4337_p9 = pnand %p8521_p7, %p4336_p8 }
 0x119   : > { %s4343_s4 = sand.u32 (!%p4337_p9), 1, %s9974_s12   ;;  %p4379_p10 = scmp.lt.s32.totalorder (!%p4337_p9), %s9982_s14, 1  ;;  %v4922_v36 = vlaneseq (!%p4337_p9)  ;;  %v10000_v37 = vmov (!%p4337_p9), 1983009808   ;;  %vm8324_vm0 = vcmask (!%p4337_p9), 1043456  }
 0x11a   : > { %4340 = sbr.rel (%p4337_p9) target bundleno = 1056 (0x420), region = 80  ;;  %s8522_s5 = sshll.u32 (!%p4337_p9), %s4343_s4, 12  ;;  %v4942_v38 = vunpack.c.l.s4 (!%p4337_p9), %v10000_v37 }
 0x11b   : > { %s11109_s6 = scalar_lea.vmem (!%p4337_p9), [#allocation2], %s8522_s5  ;;  %v11154_v42 = vshrl.u32 (!%p4337_p9), %v4922_v36, 7  ;;  %s8525_s11 = sshll.u32 (!%p4337_p9), %s9986_s15, 1 }
 0x11c   : > { %v9164_v0 = vld [vmem:[%s11109_s6 + $0x4] ss:$8 sps:$4 sm:$0xff] (!%p4337_p9)   ;;  %v9168_v2 = vld [vmem:[%s11109_s6] ss:$8 sps:$4 sm:$0xff] (!%p4337_p9)   ;;  %v9170_v4 = vld [vmem:[%s11109_s6 + $0x14] ss:$8 sps:$4 sm:$0xff] (!%p4337_p9)   ;;  %v4943_v43 = vunpack.c.0.s8 (!%p4337_p9), %v4942_v38 }
 0x11d   : > { %v9166_v1 = vld [vmem:[%s11109_s6 + $0x804] ss:$8 sps:$4 sm:$0xff] (!%p4337_p9)   ;;  %7668 = vmatprep.subr.bf16.mxu1 (!%p4337_p9), %v9164_v0  ;;  %v9169_v3 = vld [vmem:[%s11109_s6 + $0x800] ss:$8 sps:$4 sm:$0xff] (!%p4337_p9)   ;;  %v9172_v5 = vld [vmem:[%s11109_s6 + $0x814] ss:$8 sps:$4 sm:$0xff] (!%p4337_p9)  }
 0x11e   : > { %7996 = vmatprep.subr.bf16.mxu0 (!%p4337_p9), %v9166_v1  ;;  %7669 = vmatpush1.bf16.msra.mxu1 (!%p4337_p9), %v9168_v2  ;;  %v9174_v6 = vld [vmem:[%s11109_s6 + $0x10] ss:$8 sps:$4 sm:$0xff] (!%p4337_p9)   ;;  %v9176_v8 = vld [vmem:[%s11109_s6 + $0x24] ss:$8 sps:$4 sm:$0xff] (!%p4337_p9)   ;;  %v9180_v10 = vld [vmem:[%s11109_s6 + $0x20] ss:$8 sps:$4 sm:$0xff] (!%p4337_p9)   ;;  %v11168_v49 = vsub.s32 (!%p4337_p9), %v4943_v43, %v11154_v42 }
 0x11f   : > { %7997 = vmatpush1.bf16.msra.mxu0 (!%p4337_p9), %v9169_v3  ;;  %7670 = vmatprep.subr.bf16.mxu1 (!%p4337_p9), %v9170_v4  ;;  %v9175_v7 = vld [vmem:[%s11109_s6 + $0x810] ss:$8 sps:$4 sm:$0xff] (!%p4337_p9)   ;;  %v9178_v9 = vld [vmem:[%s11109_s6 + $0x824] ss:$8 sps:$4 sm:$0xff] (!%p4337_p9)   ;;  %v9181_v11 = vld [vmem:[%s11109_s6 + $0x820] ss:$8 sps:$4 sm:$0xff] (!%p4337_p9)  }
 0x120   : > { %7998 = vmatprep.subr.bf16.mxu0 (!%p4337_p9), %v9172_v5  ;;  %v9182_v12 = vld [vmem:[%s11109_s6 + $0x34] ss:$8 sps:$4 sm:$0xff] (!%p4337_p9)   ;;  %v9186_v14 = vld [vmem:[%s11109_s6 + $0x30] ss:$8 sps:$4 sm:$0xff] (!%p4337_p9)   ;;  %v9188_v16 = vld [vmem:[%s11109_s6 + $0x44] ss:$8 sps:$4 sm:$0xff] (!%p4337_p9)  }
 0x121   : > { %v9184_v13 = vld [vmem:[%s11109_s6 + $0x834] ss:$8 sps:$4 sm:$0xff]   ;;  %v9187_v15 = vld [vmem:[%s11109_s6 + $0x830] ss:$8 sps:$4 sm:$0xff]   ;;  %v9190_v17 = vld [vmem:[%s11109_s6 + $0x844] ss:$8 sps:$4 sm:$0xff]  }
 0x122   : > { %7671 = vmatpush1.bf16.msra.mxu1 %v9174_v6  ;;  %v9192_v18 = vld [vmem:[%s11109_s6 + $0x40] ss:$8 sps:$4 sm:$0xff]   ;;  %v9194_v20 = vld [vmem:[%s11109_s6 + $0x54] ss:$8 sps:$4 sm:$0xff]   ;;  %v9198_v22 = vld [vmem:[%s11109_s6 + $0x50] ss:$8 sps:$4 sm:$0xff]  }
 0x123   : > { %7999 = vmatpush1.bf16.msra.mxu0 %v9175_v7  ;;  %7672 = vmatprep.subr.bf16.mxu1 %v9176_v8  ;;  %v9193_v19 = vld [vmem:[%s11109_s6 + $0x840] ss:$8 sps:$4 sm:$0xff]   ;;  %v9196_v21 = vld [vmem:[%s11109_s6 + $0x854] ss:$8 sps:$4 sm:$0xff]   ;;  %v9199_v23 = vld [vmem:[%s11109_s6 + $0x850] ss:$8 sps:$4 sm:$0xff]  }
 0x124   : > { %8000 = vmatprep.subr.bf16.mxu0 %v9178_v9  ;;  %v9200_v24 = vld [vmem:[%s11109_s6 + $0x64] ss:$8 sps:$4 sm:$0xff]   ;;  %v9204_v26 = vld [vmem:[%s11109_s6 + $0x60] ss:$8 sps:$4 sm:$0xff]   ;;  %v9206_v28 = vld [vmem:[%s11109_s6 + $0x74] ss:$8 sps:$4 sm:$0xff]  }
 0x125   : > { %v9202_v25 = vld [vmem:[%s11109_s6 + $0x864] ss:$8 sps:$4 sm:$0xff]   ;;  %v9205_v27 = vld [vmem:[%s11109_s6 + $0x860] ss:$8 sps:$4 sm:$0xff]   ;;  %v9208_v29 = vld [vmem:[%s11109_s6 + $0x874] ss:$8 sps:$4 sm:$0xff]  }
 0x126   : > { %7673 = vmatpush1.bf16.msra.mxu1 %v9180_v10  ;;  %v9210_v30 = vld [vmem:[%s11109_s6 + $0x70] ss:$8 sps:$4 sm:$0xff]   ;;  %v9212_v32 = vld [vmem:[%s11109_s6 + $0x84] ss:$8 sps:$4 sm:$0xff]   ;;  %v9216_v34 = vld [vmem:[%s11109_s6 + $0x80] ss:$8 sps:$4 sm:$0xff]  }
 0x127   : > { %8001 = vmatpush1.bf16.msra.mxu0 %v9181_v11  ;;  %7674 = vmatprep.subr.bf16.mxu1 %v9182_v12  ;;  %v9211_v31 = vld [vmem:[%s11109_s6 + $0x870] ss:$8 sps:$4 sm:$0xff]   ;;  %v9214_v33 = vld [vmem:[%s11109_s6 + $0x884] ss:$8 sps:$4 sm:$0xff]   ;;  %v9217_v35 = vld [vmem:[%s11109_s6 + $0x880] ss:$8 sps:$4 sm:$0xff]  }
 0x128   : > { %8002 = vmatprep.subr.bf16.mxu0 %v9184_v13  ;;  %v9218_v39 = vld [vmem:[%s11109_s6 + $0x94] ss:$8 sps:$4 sm:$0xff]   ;;  %s11818_s14 = smov (!%p4379_p10, %s9982_s14), 1  ;;  %v9222_v41 = vld [vmem:[%s11109_s6 + $0x90] ss:$8 sps:$4 sm:$0xff]   ;;  %p4386_p11 = scmp.lt.s32.totalorder %s8525_s11, 3 }
 0x129   : > { %v9220_v40 = vld [vmem:[%s11109_s6 + $0x894] ss:$8 sps:$4 sm:$0xff]   ;;  %v9223_v44 = vld [vmem:[%s11109_s6 + $0x890] ss:$8 sps:$4 sm:$0xff]   ;;  %v9224_v45 = vld [vmem:[%s11109_s6 + $0xa4] ss:$8 sps:$4 sm:$0xff]  }
 0x12a   : > { %7675 = vmatpush1.bf16.msra.mxu1 %v9186_v14  ;;  %s9046_s7 = sshll.u32 %s11818_s14, 6  ;;  %v9226_v46 = vld [vmem:[%s11109_s6 + $0x8a4] ss:$8 sps:$4 sm:$0xff]   ;;  %v9228_v47 = vld [vmem:[%s11109_s6 + $0xa0] ss:$8 sps:$4 sm:$0xff]   ;;  %s11820_s11 = smov (!%p4386_p11, %s8525_s11), 3 }
 0x12b   : > { %8003 = vmatpush1.bf16.msra.mxu0 %v9187_v15  ;;  %7676 = vmatprep.subr.bf16.mxu1 %v9188_v16  ;;  %v9229_v48 = vld [vmem:[%s11109_s6 + $0x8a0] ss:$8 sps:$4 sm:$0xff]   ;;  %s11165_s10 = scalar_lea.vmem %s11801_s0, %s9046_s7  ;;  %v9230_v50 = vld [vmem:[%s11109_s6 + $0xb4] ss:$8 sps:$4 sm:$0xff]   ;;  %v9234_v53 = vld [vmem:[%s11109_s6 + $0xb0] ss:$8 sps:$4 sm:$0xff]   ;;  %s4388_s22 = scalar_lea.vmem %s11803_s2, %s11820_s11 }
 0x12c   : > { %8004 = vmatprep.subr.bf16.mxu0 %v9190_v17  ;;  %v9232_v51 = vld [vmem:[%s11109_s6 + $0x8b4] ss:$8 sps:$4 sm:$0xff]   ;;  %v4400_v52 = vld [vmem:[%s11165_s10] sm:$0xff]  ;;  %v9235_v55 = vld [vmem:[%s11109_s6 + $0x8b0] ss:$8 sps:$4 sm:$0xff]   ;;  %s8527_s15 = sshll.u32 %s11818_s14, 2 }
 0x12d   : > { %v4947_v54 = vrot.slane %v4400_v52, %v11168_v49  ;;  %v4404_v56 = vld [vmem:[%s11165_s10 + $0x20] sm:$0xff]  ;;  %v9242_v0 = vld [vmem:[%s11109_s6 + $0xd4] ss:$8 sps:$4 sm:$0xff]   ;;  %v9246_v2 = vld [vmem:[%s11109_s6 + $0xd0] ss:$8 sps:$4 sm:$0xff]   ;;  %v4940_v10 = vcombine.high %v4400_v52, %v4400_v52  ;;  %s4396_s24 = sadd.s32 %s8527_s15, %s11820_s11 }
 0x12e   : > { %7677 = vmatpush1.bf16.msra.mxu1 %v9192_v18  ;;  %v9236_v57 = vld [vmem:[%s11109_s6 + $0xc4] ss:$8 sps:$4 sm:$0xff]   ;;  %v5015_v60 = vrot.slane %v4404_v56, %v11168_v49  ;;  %v9240_v62 = vld [vmem:[%s11109_s6 + $0xc0] ss:$8 sps:$4 sm:$0xff]   ;;  %v9244_v1 = vld [vmem:[%s11109_s6 + $0x8d4] ss:$8 sps:$4 sm:$0xff]   ;;  %v5008_v11 = vcombine.high %v4404_v56, %v4404_v56 }
 0x12f   : > { %8005 = vmatpush1.bf16.msra.mxu0 %v9193_v19  ;;  %7678 = vmatprep.subr.bf16.mxu1 %v9194_v20  ;;  %v9238_v58 = vld [vmem:[%s11109_s6 + $0x8c4] ss:$8 sps:$4 sm:$0xff]   ;;  %v4955_v59 = vcombine.high %v4947_v54, %v4947_v54  ;;  %v9241_v63 = vld [vmem:[%s11109_s6 + $0x8c0] ss:$8 sps:$4 sm:$0xff]   ;;  %v9247_v3 = vld [vmem:[%s11109_s6 + $0x8d0] ss:$8 sps:$4 sm:$0xff]   ;;  %v11197_v16 = vrot.slane %v4940_v10, %v11168_v49 }
 0x130   : > { %8006 = vmatprep.subr.bf16.mxu0 %v9196_v21  ;;  %v5023_v61 = vcombine.high %v5015_v60, %v5015_v60  ;;  %v9248_v4 = vld [vmem:[%s11109_s6 + $0xe4] ss:$8 sps:$4 sm:$0xff]   ;;  %v9252_v6 = vld [vmem:[%s11109_s6 + $0xe0] ss:$8 sps:$4 sm:$0xff]   ;;  %v9254_v8 = vld [vmem:[%s11109_s6 + $0xf4] ss:$8 sps:$4 sm:$0xff]   ;;  %v11200_v17 = vrot.slane %v5008_v11, %v11168_v49 }
 0x131   : > { %7700 = vmatprep.mubr.bf16.mxu1 %v4955_v59  ;;  %v9250_v5 = vld [vmem:[%s11109_s6 + $0x8e4] ss:$8 sps:$4 sm:$0xff]   ;;  %v9253_v7 = vld [vmem:[%s11109_s6 + $0x8e0] ss:$8 sps:$4 sm:$0xff]   ;;  %v9256_v9 = vld [vmem:[%s11109_s6 + $0x8f4] ss:$8 sps:$4 sm:$0xff]  }
 0x132   : > { %7679 = vmatpush1.bf16.msra.mxu1 %v9198_v22  ;;  %8028 = vmatprep.mubr.bf16.mxu0 %v5023_v61  ;;  %v9258_v12 = vld [vmem:[%s11109_s6 + $0xf0] ss:$8 sps:$4 sm:$0xff]   ;;  %v9263_v14 = vld [vmem:[%s11109_s6 + $0x104] ss:$8 sps:$4 sm:$0xff]   ;;  %v9261_v18 = vld [vmem:[%s11109_s6 + $0x100] ss:$8 sps:$4 sm:$0xff]   ;;  %v4956_v22 = vcombine.high %v11197_v16, %v11197_v16 }
 0x133   : > { %8007 = vmatpush1.bf16.msra.mxu0 %v9199_v23  ;;  %7680 = vmatprep.subr.bf16.mxu1 %v9200_v24  ;;  %v9259_v13 = vld [vmem:[%s11109_s6 + $0x8f0] ss:$8 sps:$4 sm:$0xff]   ;;  %v9267_v15 = vld [vmem:[%s11109_s6 + $0x904] ss:$8 sps:$4 sm:$0xff]   ;;  %v9265_v19 = vld [vmem:[%s11109_s6 + $0x900] ss:$8 sps:$4 sm:$0xff]   ;;  %v5024_v23 = vcombine.high %v11200_v17, %v11200_v17 }
 0x134   : > { %8008 = vmatprep.subr.bf16.mxu0 %v9202_v25  ;;  %v9270_v20 = vld [vmem:[%s11109_s6 + $0x114] ss:$8 sps:$4 sm:$0xff]   ;;  %v9268_v24 = vld [vmem:[%s11109_s6 + $0x110] ss:$8 sps:$4 sm:$0xff]   ;;  %v9286_v36 = vld [vmem:[%s11109_s6 + $0x140] ss:$8 sps:$4 sm:$0xff]  }
 0x135   : > { %v9273_v21 = vld [vmem:[%s11109_s6 + $0x914] ss:$8 sps:$4 sm:$0xff]   ;;  %v9271_v25 = vld [vmem:[%s11109_s6 + $0x910] ss:$8 sps:$4 sm:$0xff]   ;;  %v9289_v37 = vld [vmem:[%s11109_s6 + $0x940] ss:$8 sps:$4 sm:$0xff]  }
 0x136   : > { %7681 = vmatpush1.bf16.msra.mxu1 %v9204_v26  ;;  %v9276_v26 = vld [vmem:[%s11109_s6 + $0x124] ss:$8 sps:$4 sm:$0xff]   ;;  %v9294_v38 = vld [vmem:[%s11109_s6 + $0x154] ss:$8 sps:$4 sm:$0xff]   ;;  %v9319_v59 = vld [vmem:[%s11109_s6 + $0x990] ss:$8 sps:$4 sm:$0xff]  }
 0x137   : > { %8009 = vmatpush1.bf16.msra.mxu0 %v9205_v27  ;;  %7682 = vmatprep.subr.bf16.mxu1 %v9206_v28  ;;  %v9279_v27 = vld [vmem:[%s11109_s6 + $0x924] ss:$8 sps:$4 sm:$0xff]   ;;  %v9274_v28 = vld [vmem:[%s11109_s6 + $0x120] ss:$8 sps:$4 sm:$0xff]   ;;  %v9318_v56 = vld [vmem:[%s11109_s6 + $0x194] ss:$8 sps:$4 sm:$0xff]  }
 0x138   : > { %8010 = vmatprep.subr.bf16.mxu0 %v9208_v29  ;;  %v9277_v29 = vld [vmem:[%s11109_s6 + $0x920] ss:$8 sps:$4 sm:$0xff]   ;;  %v9300_v43 = vld [vmem:[%s11109_s6 + $0x164] ss:$8 sps:$4 sm:$0xff]   ;;  %v9340_v10 = vld [vmem:[%s11109_s6 + $0x1d0] ss:$8 sps:$4 sm:$0xff]  }
 0x139   : > { %v9312_v52 = vld [vmem:[%s11109_s6 + $0x184] ss:$8 sps:$4 sm:$0xff]   ;;  %v9343_v11 = vld [vmem:[%s11109_s6 + $0x9d0] ss:$8 sps:$4 sm:$0xff]   ;;  %s8528_s25 = sshll.u32 %s4396_s24, 1 }
 0x13a   : > { %7683 = vmatpush1.bf16.msra.mxu1 %v9210_v30  ;;  %v9282_v30 = vld [vmem:[%s11109_s6 + $0x134] ss:$8 sps:$4 sm:$0xff]   ;;  %v9327_v61 = vld [vmem:[%s11109_s6 + $0x9a4] ss:$8 sps:$4 sm:$0xff]   ;;  %s4398_s28 = scalar_lea.vmem %s11804_s3, %s8528_s25 }
 0x13b   : > { %8011 = vmatpush1.bf16.msra.mxu0 %v9211_v31  ;;  %7684 = vmatprep.subr.bf16.mxu1 %v9212_v32  ;;  %v9285_v31 = vld [vmem:[%s11109_s6 + $0x934] ss:$8 sps:$4 sm:$0xff]   ;;  %v9280_v32 = vld [vmem:[%s11109_s6 + $0x130] ss:$8 sps:$4 sm:$0xff]  }
 0x13c   : > { %8012 = vmatprep.subr.bf16.mxu0 %v9214_v33  ;;  %v9283_v33 = vld [vmem:[%s11109_s6 + $0x930] ss:$8 sps:$4 sm:$0xff]  }
 0x13e   : > { %7685 = vmatpush1.bf16.msra.mxu1 %v9216_v34  ;;  %v9288_v34 = vld [vmem:[%s11109_s6 + $0x144] ss:$8 sps:$4 sm:$0xff]  }
 0x13f   : > { %8013 = vmatpush1.bf16.msra.mxu0 %v9217_v35  ;;  %7686 = vmatprep.subr.bf16.mxu1 %v9218_v39  ;;  %v9291_v35 = vld [vmem:[%s11109_s6 + $0x944] ss:$8 sps:$4 sm:$0xff]   ;;  %v9297_v39 = vld [vmem:[%s11109_s6 + $0x954] ss:$8 sps:$4 sm:$0xff]  }
 0x140   : > { %8014 = vmatprep.subr.bf16.mxu0 %v9220_v40  ;;  %v9292_v40 = vld [vmem:[%s11109_s6 + $0x150] ss:$8 sps:$4 sm:$0xff]  }
 0x142   : > { %7687 = vmatpush1.bf16.msra.mxu1 %v9222_v41  ;;  %v9295_v41 = vld [vmem:[%s11109_s6 + $0x950] ss:$8 sps:$4 sm:$0xff]  }
 0x143   : > { %8015 = vmatpush1.bf16.msra.mxu0 %v9223_v44  ;;  %7688 = vmatprep.subr.bf16.mxu1 %v9224_v45  ;;  %v9303_v44 = vld [vmem:[%s11109_s6 + $0x964] ss:$8 sps:$4 sm:$0xff]   ;;  %v9298_v45 = vld [vmem:[%s11109_s6 + $0x160] ss:$8 sps:$4 sm:$0xff]  }
 0x144   : > { %8016 = vmatprep.subr.bf16.mxu0 %v9226_v46  ;;  %v9301_v46 = vld [vmem:[%s11109_s6 + $0x960] ss:$8 sps:$4 sm:$0xff]  }
 0x146   : > { %7689 = vmatpush1.bf16.msra.mxu1 %v9228_v47  ;;  %v9306_v47 = vld [vmem:[%s11109_s6 + $0x174] ss:$8 sps:$4 sm:$0xff]  }
 0x147   : > { %8017 = vmatpush1.bf16.msra.mxu0 %v9229_v48  ;;  %7690 = vmatprep.subr.bf16.mxu1 %v9230_v50  ;;  %v9309_v48 = vld [vmem:[%s11109_s6 + $0x974] ss:$8 sps:$4 sm:$0xff]   ;;  %v9304_v50 = vld [vmem:[%s11109_s6 + $0x170] ss:$8 sps:$4 sm:$0xff]  }
 0x148   : > { %8018 = vmatprep.subr.bf16.mxu0 %v9232_v51  ;;  %v9307_v51 = vld [vmem:[%s11109_s6 + $0x970] ss:$8 sps:$4 sm:$0xff]  }
 0x14a   : > { %7691 = vmatpush1.bf16.msra.mxu1 %v9234_v53  ;;  %v9315_v53 = vld [vmem:[%s11109_s6 + $0x984] ss:$8 sps:$4 sm:$0xff]  }
 0x14b   : > { %8019 = vmatpush1.bf16.msra.mxu0 %v9235_v55  ;;  %7692 = vmatprep.subr.bf16.mxu1 %v9236_v57  ;;  %v9313_v55 = vld [vmem:[%s11109_s6 + $0x980] ss:$8 sps:$4 sm:$0xff]   ;;  %v9321_v57 = vld [vmem:[%s11109_s6 + $0x994] ss:$8 sps:$4 sm:$0xff]  }
 0x14c   : > { %8020 = vmatprep.subr.bf16.mxu0 %v9238_v58  ;;  %v9316_v58 = vld [vmem:[%s11109_s6 + $0x190] ss:$8 sps:$4 sm:$0xff]  }
 0x14e   : > { %7693 = vmatpush1.bf16.msra.mxu1 %v9240_v62  ;;  %v9322_v62 = vld [vmem:[%s11109_s6 + $0x1a0] ss:$8 sps:$4 sm:$0xff]  }
 0x14f   : > { %8021 = vmatpush1.bf16.msra.mxu0 %v9241_v63  ;;  %7694 = vmatprep.subr.bf16.mxu1 %v9242_v0  ;;  %v9325_v63 = vld [vmem:[%s11109_s6 + $0x9a0] ss:$8 sps:$4 sm:$0xff]   ;;  %v9330_v0 = vld [vmem:[%s11109_s6 + $0x1b4] ss:$8 sps:$4 sm:$0xff]  }
 0x150   : > { %8022 = vmatprep.subr.bf16.mxu0 %v9244_v1  ;;  %v9333_v1 = vld [vmem:[%s11109_s6 + $0x9b4] ss:$8 sps:$4 sm:$0xff]  }
 0x152   : > { %7695 = vmatpush1.bf16.msra.mxu1 %v9246_v2  ;;  %v9328_v2 = vld [vmem:[%s11109_s6 + $0x1b0] ss:$8 sps:$4 sm:$0xff]  }
 0x153   : > { %8023 = vmatpush1.bf16.msra.mxu0 %v9247_v3  ;;  %7696 = vmatprep.subr.bf16.mxu1 %v9248_v4  ;;  %v9331_v3 = vld [vmem:[%s11109_s6 + $0x9b0] ss:$8 sps:$4 sm:$0xff]   ;;  %v9336_v4 = vld [vmem:[%s11109_s6 + $0x1c4] ss:$8 sps:$4 sm:$0xff]  }
 0x154   : > { %8024 = vmatprep.subr.bf16.mxu0 %v9250_v5  ;;  %v9339_v5 = vld [vmem:[%s11109_s6 + $0x9c4] ss:$8 sps:$4 sm:$0xff]  }
 0x156   : > { %7697 = vmatpush1.bf16.msra.mxu1 %v9252_v6  ;;  %v9334_v6 = vld [vmem:[%s11109_s6 + $0x1c0] ss:$8 sps:$4 sm:$0xff]  }
 0x157   : > { %8025 = vmatpush1.bf16.msra.mxu0 %v9253_v7  ;;  %7698 = vmatprep.subr.bf16.mxu1 %v9254_v8  ;;  %v9337_v7 = vld [vmem:[%s11109_s6 + $0x9c0] ss:$8 sps:$4 sm:$0xff]   ;;  %v9342_v8 = vld [vmem:[%s11109_s6 + $0x1d4] ss:$8 sps:$4 sm:$0xff]  }
 0x158   : > { %8026 = vmatprep.subr.bf16.mxu0 %v9256_v9  ;;  %v9345_v9 = vld [vmem:[%s11109_s6 + $0x9d4] ss:$8 sps:$4 sm:$0xff]  }
 0x15a   : > { %7699 = vmatpush1.bf16.msra.mxu1 %v9258_v12  ;;  %v9348_v12 = vld [vmem:[%s11109_s6 + $0x1e4] ss:$8 sps:$4 sm:$0xff]  }
 0x15b   : > { %8027 = vmatpush1.bf16.msra.mxu0 %v9259_v13  ;;  %7709 = vmatprep.subr.bf16.mxu1 %v9263_v14  ;;  %v9351_v13 = vld [vmem:[%s11109_s6 + $0x9e4] ss:$8 sps:$4 sm:$0xff]   ;;  %v9346_v14 = vld [vmem:[%s11109_s6 + $0x1e0] ss:$8 sps:$4 sm:$0xff]  }
 0x15c   : > { %8037 = vmatprep.subr.bf16.mxu0 %v9267_v15  ;;  %v9349_v15 = vld [vmem:[%s11109_s6 + $0x9e0] ss:$8 sps:$4 sm:$0xff]  }
 0x15d   : > { %7701 = vmatmul.mubr.bf16.vlgmr.msra.gmra.mrb[0].mxu1 %v4947_v54  ;;  %v9310_v54 = vld [vmem:[%s11109_s6 + $0x180] ss:$8 sps:$4 sm:$0xff]  }
 0x15e   : > { %8029 = vmatmul.mubr.bf16.vlgmr.msra.gmra.mrb[0].mxu0 %v5015_v60  ;;  %7710 = vmatpush1.bf16.msra.mxu1 %v9261_v18  ;;  %v9324_v60 = vld [vmem:[%s11109_s6 + $0x1a4] ss:$8 sps:$4 sm:$0xff]   ;;  %v9354_v18 = vld [vmem:[%s11109_s6 + $0x1f4] ss:$8 sps:$4 sm:$0xff]  }
 0x15f   : > { %8038 = vmatpush1.bf16.msra.mxu0 %v9265_v19  ;;  %7711 = vmatprep.subr.bf16.mxu1 %v9270_v20  ;;  %v9357_v19 = vld [vmem:[%s11109_s6 + $0x9f4] ss:$8 sps:$4 sm:$0xff]   ;;  %v9352_v20 = vld [vmem:[%s11109_s6 + $0x1f0] ss:$8 sps:$4 sm:$0xff]  }
 0x160   : > { %8039 = vmatprep.subr.bf16.mxu0 %v9273_v21  ;;  %7741 = vmatprep.mubr.bf16.mxu1 %v4956_v22  ;;  %v9355_v21 = vld [vmem:[%s11109_s6 + $0x9f0] ss:$8 sps:$4 sm:$0xff]   ;;  %v9360_v22 = vld [vmem:[%s11109_s6 + $0x204] ss:$8 sps:$4 sm:$0xff]  }
 0x161   : > { %8069 = vmatprep.mubr.bf16.mxu0 %v5024_v23  ;;  %v9363_v23 = vld [vmem:[%s11109_s6 + $0xa04] ss:$8 sps:$4 sm:$0xff]  }
 0x162   : > { %7712 = vmatpush1.bf16.msra.mxu1 %v9268_v24  ;;  %v9358_v24 = vld [vmem:[%s11109_s6 + $0x200] ss:$8 sps:$4 sm:$0xff]  }
 0x163   : > { %8040 = vmatpush1.bf16.msra.mxu0 %v9271_v25  ;;  %7713 = vmatprep.subr.bf16.mxu1 %v9276_v26  ;;  %v9361_v25 = vld [vmem:[%s11109_s6 + $0xa00] ss:$8 sps:$4 sm:$0xff]   ;;  %v9366_v26 = vld [vmem:[%s11109_s6 + $0x214] ss:$8 sps:$4 sm:$0xff]  }
 0x164   : > { %8041 = vmatprep.subr.bf16.mxu0 %v9279_v27  ;;  %v11274_v27 = vld [vmem:[%s11165_s10 + $0x8] sm:$0xff] }
 0x166   : > { %7714 = vmatpush1.bf16.msra.mxu1 %v9274_v28  ;;  %v9369_v28 = vld [vmem:[%s11109_s6 + $0xa14] ss:$8 sps:$4 sm:$0xff]  }
 0x167   : > { %8042 = vmatpush1.bf16.msra.mxu0 %v9277_v29  ;;  %7715 = vmatprep.subr.bf16.mxu1 %v9282_v30  ;;  %v11279_v29 = vrot.slane %v11274_v27, %v11168_v49  ;;  %v11282_v30 = vld [vmem:[%s11165_s10 + $0x28] sm:$0xff] }
 0x168   : > { %8043 = vmatprep.subr.bf16.mxu0 %v9285_v31  ;;  %v9364_v31 = vld [vmem:[%s11109_s6 + $0x210] ss:$8 sps:$4 sm:$0xff]  }
 0x16a   : > { %7716 = vmatpush1.bf16.msra.mxu1 %v9280_v32  ;;  %v9367_v32 = vld [vmem:[%s11109_s6 + $0xa10] ss:$8 sps:$4 sm:$0xff]  }
 0x16b   : > { %8044 = vmatpush1.bf16.msra.mxu0 %v9283_v33  ;;  %7717 = vmatprep.subr.bf16.mxu1 %v9288_v34  ;;  %v4972_v33 = vcombine.high %v11279_v29, %v11279_v29  ;;  %v11292_v34 = vrot.slane %v11282_v30, %v11168_v49 }
 0x16c   : > { %8045 = vmatprep.subr.bf16.mxu0 %v9291_v35  ;;  %v9372_v35 = vld [vmem:[%s11109_s6 + $0x224] ss:$8 sps:$4 sm:$0xff]  }
 0x16e   : > { %7718 = vmatpush1.bf16.msra.mxu1 %v9286_v36  ;;  %v9370_v36 = vld [vmem:[%s11109_s6 + $0x220] ss:$8 sps:$4 sm:$0xff]  }
 0x16f   : > { %8046 = vmatpush1.bf16.msra.mxu0 %v9289_v37  ;;  %7719 = vmatprep.subr.bf16.mxu1 %v9294_v38  ;;  %v9373_v37 = vld [vmem:[%s11109_s6 + $0xa20] ss:$8 sps:$4 sm:$0xff]   ;;  %v9378_v38 = vld [vmem:[%s11109_s6 + $0x234] ss:$8 sps:$4 sm:$0xff]  }
 0x170   : > { %8047 = vmatprep.subr.bf16.mxu0 %v9297_v39  ;;  %v9381_v39 = vld [vmem:[%s11109_s6 + $0xa34] ss:$8 sps:$4 sm:$0xff]  }
 0x172   : > { %7720 = vmatpush1.bf16.msra.mxu1 %v9292_v40  ;;  %v9376_v40 = vld [vmem:[%s11109_s6 + $0x230] ss:$8 sps:$4 sm:$0xff]  }
 0x173   : > { %8048 = vmatpush1.bf16.msra.mxu0 %v9295_v41  ;;  %7721 = vmatprep.subr.bf16.mxu1 %v9300_v43  ;;  %v9379_v41 = vld [vmem:[%s11109_s6 + $0xa30] ss:$8 sps:$4 sm:$0xff]   ;;  %v9384_v43 = vld [vmem:[%s11109_s6 + $0x244] ss:$8 sps:$4 sm:$0xff]  }
 0x174   : > { %8049 = vmatprep.subr.bf16.mxu0 %v9303_v44  ;;  %v9387_v44 = vld [vmem:[%s11109_s6 + $0xa44] ss:$8 sps:$4 sm:$0xff]  }
 0x176   : > { %7722 = vmatpush1.bf16.msra.mxu1 %v9298_v45  ;;  %v9382_v45 = vld [vmem:[%s11109_s6 + $0x240] ss:$8 sps:$4 sm:$0xff]  }
 0x177   : > { %8050 = vmatpush1.bf16.msra.mxu0 %v9301_v46  ;;  %7723 = vmatprep.subr.bf16.mxu1 %v9306_v47  ;;  %v9385_v46 = vld [vmem:[%s11109_s6 + $0xa40] ss:$8 sps:$4 sm:$0xff]   ;;  %v9390_v47 = vld [vmem:[%s11109_s6 + $0x254] ss:$8 sps:$4 sm:$0xff]  }
 0x178   : > { %8051 = vmatprep.subr.bf16.mxu0 %v9309_v48  ;;  %v9393_v48 = vld [vmem:[%s11109_s6 + $0xa54] ss:$8 sps:$4 sm:$0xff]  }
 0x17a   : > { %7724 = vmatpush1.bf16.msra.mxu1 %v9304_v50  ;;  %v9388_v50 = vld [vmem:[%s11109_s6 + $0x250] ss:$8 sps:$4 sm:$0xff]  }
 0x17b   : > { %8052 = vmatpush1.bf16.msra.mxu0 %v9307_v51  ;;  %7725 = vmatprep.subr.bf16.mxu1 %v9312_v52  ;;  %v9391_v51 = vld [vmem:[%s11109_s6 + $0xa50] ss:$8 sps:$4 sm:$0xff]   ;;  %v9396_v52 = vld [vmem:[%s11109_s6 + $0x264] ss:$8 sps:$4 sm:$0xff]  }
 0x17c   : > { %8053 = vmatprep.subr.bf16.mxu0 %v9315_v53  ;;  %v9399_v53 = vld [vmem:[%s11109_s6 + $0xa64] ss:$8 sps:$4 sm:$0xff]  }
 0x17e   : > { %7726 = vmatpush1.bf16.msra.mxu1 %v9310_v54  ;;  %v9394_v54 = vld [vmem:[%s11109_s6 + $0x260] ss:$8 sps:$4 sm:$0xff]  }
 0x17f   : > { %8054 = vmatpush1.bf16.msra.mxu0 %v9313_v55  ;;  %7727 = vmatprep.subr.bf16.mxu1 %v9318_v56  ;;  %v9397_v55 = vld [vmem:[%s11109_s6 + $0xa60] ss:$8 sps:$4 sm:$0xff]   ;;  %v9402_v56 = vld [vmem:[%s11109_s6 + $0x274] ss:$8 sps:$4 sm:$0xff]  }
 0x180   : > { %8055 = vmatprep.subr.bf16.mxu0 %v9321_v57  ;;  %v9405_v57 = vld [vmem:[%s11109_s6 + $0xa74] ss:$8 sps:$4 sm:$0xff]  }
 0x182   : > { %7728 = vmatpush1.bf16.msra.mxu1 %v9316_v58  ;;  %v9400_v58 = vld [vmem:[%s11109_s6 + $0x270] ss:$8 sps:$4 sm:$0xff]  }
 0x183   : > { %8056 = vmatpush1.bf16.msra.mxu0 %v9319_v59  ;;  %7729 = vmatprep.subr.bf16.mxu1 %v9324_v60  ;;  %v9403_v59 = vld [vmem:[%s11109_s6 + $0xa70] ss:$8 sps:$4 sm:$0xff]   ;;  %v9408_v60 = vld [vmem:[%s11109_s6 + $0x284] ss:$8 sps:$4 sm:$0xff]  }
 0x184   : > { %8057 = vmatprep.subr.bf16.mxu0 %v9327_v61  ;;  %v9411_v61 = vld [vmem:[%s11109_s6 + $0xa84] ss:$8 sps:$4 sm:$0xff]  }
 0x186   : > { %7730 = vmatpush1.bf16.msra.mxu1 %v9322_v62  ;;  %v9406_v62 = vld [vmem:[%s11109_s6 + $0x280] ss:$8 sps:$4 sm:$0xff]  }
 0x187   : > { %8058 = vmatpush1.bf16.msra.mxu0 %v9325_v63  ;;  %7731 = vmatprep.subr.bf16.mxu1 %v9330_v0  ;;  %v9409_v63 = vld [vmem:[%s11109_s6 + $0xa80] ss:$8 sps:$4 sm:$0xff]   ;;  %v9414_v0 = vld [vmem:[%s11109_s6 + $0x294] ss:$8 sps:$4 sm:$0xff]  }
 0x188   : > { %8059 = vmatprep.subr.bf16.mxu0 %v9333_v1  ;;  %v9417_v1 = vld [vmem:[%s11109_s6 + $0xa94] ss:$8 sps:$4 sm:$0xff]  }
 0x18a   : > { %7732 = vmatpush1.bf16.msra.mxu1 %v9328_v2  ;;  %v9412_v2 = vld [vmem:[%s11109_s6 + $0x290] ss:$8 sps:$4 sm:$0xff]  }
 0x18b   : > { %8060 = vmatpush1.bf16.msra.mxu0 %v9331_v3  ;;  %7733 = vmatprep.subr.bf16.mxu1 %v9336_v4  ;;  %v9415_v3 = vld [vmem:[%s11109_s6 + $0xa90] ss:$8 sps:$4 sm:$0xff]   ;;  %v9420_v4 = vld [vmem:[%s11109_s6 + $0x2a4] ss:$8 sps:$4 sm:$0xff]  }
 0x18c   : > { %8061 = vmatprep.subr.bf16.mxu0 %v9339_v5  ;;  %v9423_v5 = vld [vmem:[%s11109_s6 + $0xaa4] ss:$8 sps:$4 sm:$0xff]  }
 0x18e   : > { %7734 = vmatpush1.bf16.msra.mxu1 %v9334_v6  ;;  %v9418_v6 = vld [vmem:[%s11109_s6 + $0x2a0] ss:$8 sps:$4 sm:$0xff]  }
 0x18f   : > { %8062 = vmatpush1.bf16.msra.mxu0 %v9337_v7  ;;  %7735 = vmatprep.subr.bf16.mxu1 %v9342_v8  ;;  %v9421_v7 = vld [vmem:[%s11109_s6 + $0xaa0] ss:$8 sps:$4 sm:$0xff]   ;;  %v9426_v8 = vld [vmem:[%s11109_s6 + $0x2b4] ss:$8 sps:$4 sm:$0xff]  }
 0x190   : > { %8063 = vmatprep.subr.bf16.mxu0 %v9345_v9  ;;  %v9429_v9 = vld [vmem:[%s11109_s6 + $0xab4] ss:$8 sps:$4 sm:$0xff]  }
 0x192   : > { %7736 = vmatpush1.bf16.msra.mxu1 %v9340_v10  ;;  %v9424_v10 = vld [vmem:[%s11109_s6 + $0x2b0] ss:$8 sps:$4 sm:$0xff]  }
 0x193   : > { %8064 = vmatpush1.bf16.msra.mxu0 %v9343_v11  ;;  %7737 = vmatprep.subr.bf16.mxu1 %v9348_v12  ;;  %v9427_v11 = vld [vmem:[%s11109_s6 + $0xab0] ss:$8 sps:$4 sm:$0xff]   ;;  %v9432_v12 = vld [vmem:[%s11109_s6 + $0x2c4] ss:$8 sps:$4 sm:$0xff]  }
 0x194   : > { %8065 = vmatprep.subr.bf16.mxu0 %v9351_v13  ;;  %v9435_v13 = vld [vmem:[%s11109_s6 + $0xac4] ss:$8 sps:$4 sm:$0xff]  }
 0x196   : > { %7738 = vmatpush1.bf16.msra.mxu1 %v9346_v14  ;;  %v9430_v14 = vld [vmem:[%s11109_s6 + $0x2c0] ss:$8 sps:$4 sm:$0xff]  }
 0x197   : > { %8066 = vmatpush1.bf16.msra.mxu0 %v9349_v15  ;;  %7739 = vmatprep.subr.bf16.mxu1 %v9354_v18  ;;  %v9433_v15 = vld [vmem:[%s11109_s6 + $0xac0] ss:$8 sps:$4 sm:$0xff]   ;;  %v9438_v18 = vld [vmem:[%s11109_s6 + $0x2d4] ss:$8 sps:$4 sm:$0xff]  }
 0x198   : > { %8067 = vmatprep.subr.bf16.mxu0 %v9357_v19  ;;  %v9441_v19 = vld [vmem:[%s11109_s6 + $0xad4] ss:$8 sps:$4 sm:$0xff]  }
 0x19a   : > { %7740 = vmatpush1.bf16.msra.mxu1 %v9352_v20  ;;  %v9436_v20 = vld [vmem:[%s11109_s6 + $0x2d0] ss:$8 sps:$4 sm:$0xff]  }
 0x19b   : > { %8068 = vmatpush1.bf16.msra.mxu0 %v9355_v21  ;;  %7750 = vmatprep.subr.bf16.mxu1 %v9360_v22  ;;  %v9439_v21 = vld [vmem:[%s11109_s6 + $0xad0] ss:$8 sps:$4 sm:$0xff]   ;;  %v9444_v22 = vld [vmem:[%s11109_s6 + $0x2e4] ss:$8 sps:$4 sm:$0xff]  }
 0x19c   : > { %8078 = vmatprep.subr.bf16.mxu0 %v9363_v23  ;;  %v9447_v23 = vld [vmem:[%s11109_s6 + $0xae4] ss:$8 sps:$4 sm:$0xff]  }
 0x19d   : > { %7742 = vmatmul.mubr.bf16.vlgmr.msra.gmra.mrb[0].mxu1 %v11197_v16  ;;  %v9375_v16 = vld [vmem:[%s11109_s6 + $0xa24] ss:$8 sps:$4 sm:$0xff]  }
 0x19e   : > { %8070 = vmatmul.mubr.bf16.vlgmr.msra.gmra.mrb[0].mxu0 %v11200_v17  ;;  %7751 = vmatpush1.bf16.msra.mxu1 %v9358_v24  ;;  %v5040_v17 = vcombine.high %v11292_v34, %v11292_v34  ;;  %v9442_v24 = vld [vmem:[%s11109_s6 + $0x2e0] ss:$8 sps:$4 sm:$0xff]  }
 0x19f   : > { %8079 = vmatpush1.bf16.msra.mxu0 %v9361_v25  ;;  %7752 = vmatprep.subr.bf16.mxu1 %v9366_v26  ;;  %v9445_v25 = vld [vmem:[%s11109_s6 + $0xae0] ss:$8 sps:$4 sm:$0xff]   ;;  %v9450_v26 = vld [vmem:[%s11109_s6 + $0x2f4] ss:$8 sps:$4 sm:$0xff]  }
 0x1a0   : > { %8080 = vmatprep.subr.bf16.mxu0 %v9369_v28  ;;  %7782 = vmatprep.mubr.bf16.mxu1 %v4972_v33  ;;  %v9453_v28 = vld [vmem:[%s11109_s6 + $0xaf4] ss:$8 sps:$4 sm:$0xff]   ;;  %v9448_v33 = vld [vmem:[%s11109_s6 + $0x2f0] ss:$8 sps:$4 sm:$0xff]  }
 0x1a1   : > { %8110 = vmatprep.mubr.bf16.mxu0 %v5040_v17  ;;  %v9459_v17 = vld [vmem:[%s11109_s6 + $0xb04] ss:$8 sps:$4 sm:$0xff]  }
 0x1a2   : > { %7753 = vmatpush1.bf16.msra.mxu1 %v9364_v31  ;;  %v4957_v31 = vcombine.high %v11274_v27, %v11274_v27 }
 0x1a3   : > { %8081 = vmatpush1.bf16.msra.mxu0 %v9367_v32  ;;  %7754 = vmatprep.subr.bf16.mxu1 %v9372_v35  ;;  %v5025_v32 = vcombine.high %v11282_v30, %v11282_v30  ;;  %v9451_v35 = vld [vmem:[%s11109_s6 + $0xaf0] ss:$8 sps:$4 sm:$0xff]   ;;  %v9457_v30 = vld [vmem:[%s11109_s6 + $0xb00] ss:$8 sps:$4 sm:$0xff]  }
 0x1a4   : > { %8082 = vmatprep.subr.bf16.mxu0 %v9375_v16  ;;  %v9456_v16 = vld [vmem:[%s11109_s6 + $0x304] ss:$8 sps:$4 sm:$0xff]  }
 0x1a5   : > { %v11362_v27 = vrot.slane %v5025_v32, %v11168_v49  ;;  %v9535_v32 = vld [vmem:[%s11109_s6 + $0xbd0] ss:$8 sps:$4 sm:$0xff]  }
 0x1a6   : > { %7755 = vmatpush1.bf16.msra.mxu1 %v9370_v36  ;;  %v11359_v36 = vrot.slane %v4957_v31, %v11168_v49  ;;  %v9532_v31 = vld [vmem:[%s11109_s6 + $0x3d0] ss:$8 sps:$4 sm:$0xff]  }
 0x1a7   : > { %8083 = vmatpush1.bf16.msra.mxu0 %v9373_v37  ;;  %7756 = vmatprep.subr.bf16.mxu1 %v9378_v38  ;;  %v9454_v37 = vld [vmem:[%s11109_s6 + $0x300] ss:$8 sps:$4 sm:$0xff]   ;;  %v9462_v38 = vld [vmem:[%s11109_s6 + $0x314] ss:$8 sps:$4 sm:$0xff]  }
 0x1a8   : > { %8084 = vmatprep.subr.bf16.mxu0 %v9381_v39  ;;  %v9465_v39 = vld [vmem:[%s11109_s6 + $0xb14] ss:$8 sps:$4 sm:$0xff]  }
 0x1aa   : > { %7757 = vmatpush1.bf16.msra.mxu1 %v9376_v40  ;;  %v4973_v40 = vcombine.high %v11359_v36, %v11359_v36 }
 0x1ab   : > { %8085 = vmatpush1.bf16.msra.mxu0 %v9379_v41  ;;  %7758 = vmatprep.subr.bf16.mxu1 %v9384_v43  ;;  %v5041_v41 = vcombine.high %v11362_v27, %v11362_v27  ;;  %v9460_v43 = vld [vmem:[%s11109_s6 + $0x310] ss:$8 sps:$4 sm:$0xff]  }
 0x1ac   : > { %8086 = vmatprep.subr.bf16.mxu0 %v9387_v44  ;;  %v9463_v44 = vld [vmem:[%s11109_s6 + $0xb10] ss:$8 sps:$4 sm:$0xff]  }
 0x1ae   : > { %7759 = vmatpush1.bf16.msra.mxu1 %v9382_v45  ;;  %v9468_v45 = vld [vmem:[%s11109_s6 + $0x324] ss:$8 sps:$4 sm:$0xff]  }
 0x1af   : > { %8087 = vmatpush1.bf16.msra.mxu0 %v9385_v46  ;;  %7760 = vmatprep.subr.bf16.mxu1 %v9390_v47  ;;  %v9471_v46 = vld [vmem:[%s11109_s6 + $0xb24] ss:$8 sps:$4 sm:$0xff]   ;;  %v9466_v47 = vld [vmem:[%s11109_s6 + $0x320] ss:$8 sps:$4 sm:$0xff]  }
 0x1b0   : > { %8088 = vmatprep.subr.bf16.mxu0 %v9393_v48  ;;  %v9477_v48 = vld [vmem:[%s11109_s6 + $0xb34] ss:$8 sps:$4 sm:$0xff]  }
 0x1b2   : > { %7761 = vmatpush1.bf16.msra.mxu1 %v9388_v50  ;;  %v9472_v50 = vld [vmem:[%s11109_s6 + $0x330] ss:$8 sps:$4 sm:$0xff]  }
 0x1b3   : > { %8089 = vmatpush1.bf16.msra.mxu0 %v9391_v51  ;;  %7762 = vmatprep.subr.bf16.mxu1 %v9396_v52  ;;  %v9475_v51 = vld [vmem:[%s11109_s6 + $0xb30] ss:$8 sps:$4 sm:$0xff]   ;;  %v9480_v52 = vld [vmem:[%s11109_s6 + $0x344] ss:$8 sps:$4 sm:$0xff]  }
 0x1b4   : > { %8090 = vmatprep.subr.bf16.mxu0 %v9399_v53  ;;  %v9483_v53 = vld [vmem:[%s11109_s6 + $0xb44] ss:$8 sps:$4 sm:$0xff]  }
 0x1b6   : > { %7763 = vmatpush1.bf16.msra.mxu1 %v9394_v54  ;;  %v9478_v54 = vld [vmem:[%s11109_s6 + $0x340] ss:$8 sps:$4 sm:$0xff]  }
 0x1b7   : > { %8091 = vmatpush1.bf16.msra.mxu0 %v9397_v55  ;;  %7764 = vmatprep.subr.bf16.mxu1 %v9402_v56  ;;  %v9481_v55 = vld [vmem:[%s11109_s6 + $0xb40] ss:$8 sps:$4 sm:$0xff]   ;;  %v9486_v56 = vld [vmem:[%s11109_s6 + $0x354] ss:$8 sps:$4 sm:$0xff]  }
 0x1b8   : > { %8092 = vmatprep.subr.bf16.mxu0 %v9405_v57  ;;  %v9489_v57 = vld [vmem:[%s11109_s6 + $0xb54] ss:$8 sps:$4 sm:$0xff]  }
 0x1ba   : > { %7765 = vmatpush1.bf16.msra.mxu1 %v9400_v58  ;;  %v9484_v58 = vld [vmem:[%s11109_s6 + $0x350] ss:$8 sps:$4 sm:$0xff]  }
 0x1bb   : > { %8093 = vmatpush1.bf16.msra.mxu0 %v9403_v59  ;;  %7766 = vmatprep.subr.bf16.mxu1 %v9408_v60  ;;  %v9487_v59 = vld [vmem:[%s11109_s6 + $0xb50] ss:$8 sps:$4 sm:$0xff]   ;;  %v9492_v60 = vld [vmem:[%s11109_s6 + $0x364] ss:$8 sps:$4 sm:$0xff]  }
 0x1bc   : > { %8094 = vmatprep.subr.bf16.mxu0 %v9411_v61  ;;  %v9495_v61 = vld [vmem:[%s11109_s6 + $0xb64] ss:$8 sps:$4 sm:$0xff]  }
 0x1be   : > { %7767 = vmatpush1.bf16.msra.mxu1 %v9406_v62  ;;  %v9490_v62 = vld [vmem:[%s11109_s6 + $0x360] ss:$8 sps:$4 sm:$0xff]  }
 0x1bf   : > { %8095 = vmatpush1.bf16.msra.mxu0 %v9409_v63  ;;  %7768 = vmatprep.subr.bf16.mxu1 %v9414_v0  ;;  %v9493_v63 = vld [vmem:[%s11109_s6 + $0xb60] ss:$8 sps:$4 sm:$0xff]   ;;  %v9498_v0 = vld [vmem:[%s11109_s6 + $0x374] ss:$8 sps:$4 sm:$0xff]  }
 0x1c0   : > { %8096 = vmatprep.subr.bf16.mxu0 %v9417_v1  ;;  %v9501_v1 = vld [vmem:[%s11109_s6 + $0xb74] ss:$8 sps:$4 sm:$0xff]  }
 0x1c2   : > { %7769 = vmatpush1.bf16.msra.mxu1 %v9412_v2  ;;  %v9496_v2 = vld [vmem:[%s11109_s6 + $0x370] ss:$8 sps:$4 sm:$0xff]  }
 0x1c3   : > { %8097 = vmatpush1.bf16.msra.mxu0 %v9415_v3  ;;  %7770 = vmatprep.subr.bf16.mxu1 %v9420_v4  ;;  %v9499_v3 = vld [vmem:[%s11109_s6 + $0xb70] ss:$8 sps:$4 sm:$0xff]   ;;  %v9504_v4 = vld [vmem:[%s11109_s6 + $0x384] ss:$8 sps:$4 sm:$0xff]  }
 0x1c4   : > { %8098 = vmatprep.subr.bf16.mxu0 %v9423_v5  ;;  %v9507_v5 = vld [vmem:[%s11109_s6 + $0xb84] ss:$8 sps:$4 sm:$0xff]  }
 0x1c6   : > { %7771 = vmatpush1.bf16.msra.mxu1 %v9418_v6  ;;  %v9502_v6 = vld [vmem:[%s11109_s6 + $0x380] ss:$8 sps:$4 sm:$0xff]  }
 0x1c7   : > { %8099 = vmatpush1.bf16.msra.mxu0 %v9421_v7  ;;  %7772 = vmatprep.subr.bf16.mxu1 %v9426_v8  ;;  %v9505_v7 = vld [vmem:[%s11109_s6 + $0xb80] ss:$8 sps:$4 sm:$0xff]   ;;  %v9510_v8 = vld [vmem:[%s11109_s6 + $0x394] ss:$8 sps:$4 sm:$0xff]  }
 0x1c8   : > { %8100 = vmatprep.subr.bf16.mxu0 %v9429_v9  ;;  %v9513_v9 = vld [vmem:[%s11109_s6 + $0xb94] ss:$8 sps:$4 sm:$0xff]  }
 0x1ca   : > { %7773 = vmatpush1.bf16.msra.mxu1 %v9424_v10  ;;  %v9508_v10 = vld [vmem:[%s11109_s6 + $0x390] ss:$8 sps:$4 sm:$0xff]  }
 0x1cb   : > { %8101 = vmatpush1.bf16.msra.mxu0 %v9427_v11  ;;  %7774 = vmatprep.subr.bf16.mxu1 %v9432_v12  ;;  %v9511_v11 = vld [vmem:[%s11109_s6 + $0xb90] ss:$8 sps:$4 sm:$0xff]   ;;  %v9516_v12 = vld [vmem:[%s11109_s6 + $0x3a4] ss:$8 sps:$4 sm:$0xff]  }
 0x1cc   : > { %8102 = vmatprep.subr.bf16.mxu0 %v9435_v13  ;;  %v9519_v13 = vld [vmem:[%s11109_s6 + $0xba4] ss:$8 sps:$4 sm:$0xff]  }
 0x1ce   : > { %7775 = vmatpush1.bf16.msra.mxu1 %v9430_v14  ;;  %v9514_v14 = vld [vmem:[%s11109_s6 + $0x3a0] ss:$8 sps:$4 sm:$0xff]  }
 0x1cf   : > { %8103 = vmatpush1.bf16.msra.mxu0 %v9433_v15  ;;  %7776 = vmatprep.subr.bf16.mxu1 %v9438_v18  ;;  %v9517_v15 = vld [vmem:[%s11109_s6 + $0xba0] ss:$8 sps:$4 sm:$0xff]   ;;  %v9522_v18 = vld [vmem:[%s11109_s6 + $0x3b4] ss:$8 sps:$4 sm:$0xff]  }
 0x1d0   : > { %8104 = vmatprep.subr.bf16.mxu0 %v9441_v19  ;;  %v9525_v19 = vld [vmem:[%s11109_s6 + $0xbb4] ss:$8 sps:$4 sm:$0xff]  }
 0x1d2   : > { %7777 = vmatpush1.bf16.msra.mxu1 %v9436_v20  ;;  %v9520_v20 = vld [vmem:[%s11109_s6 + $0x3b0] ss:$8 sps:$4 sm:$0xff]  }
 0x1d3   : > { %8105 = vmatpush1.bf16.msra.mxu0 %v9439_v21  ;;  %7778 = vmatprep.subr.bf16.mxu1 %v9444_v22  ;;  %v9523_v21 = vld [vmem:[%s11109_s6 + $0xbb0] ss:$8 sps:$4 sm:$0xff]   ;;  %v9528_v22 = vld [vmem:[%s11109_s6 + $0x3c4] ss:$8 sps:$4 sm:$0xff]  }
 0x1d4   : > { %8106 = vmatprep.subr.bf16.mxu0 %v9447_v23  ;;  %v9531_v23 = vld [vmem:[%s11109_s6 + $0xbc4] ss:$8 sps:$4 sm:$0xff]  }
 0x1d6   : > { %7779 = vmatpush1.bf16.msra.mxu1 %v9442_v24  ;;  %v9526_v24 = vld [vmem:[%s11109_s6 + $0x3c0] ss:$8 sps:$4 sm:$0xff]  }
 0x1d7   : > { %8107 = vmatpush1.bf16.msra.mxu0 %v9445_v25  ;;  %7780 = vmatprep.subr.bf16.mxu1 %v9450_v26  ;;  %v9529_v25 = vld [vmem:[%s11109_s6 + $0xbc0] ss:$8 sps:$4 sm:$0xff]   ;;  %v9534_v26 = vld [vmem:[%s11109_s6 + $0x3d4] ss:$8 sps:$4 sm:$0xff]  }
 0x1d8   : > { %8108 = vmatprep.subr.bf16.mxu0 %v9453_v28  ;;  %v9537_v28 = vld [vmem:[%s11109_s6 + $0xbd4] ss:$8 sps:$4 sm:$0xff]  }
 0x1da   : > { %7781 = vmatpush1.bf16.msra.mxu1 %v9448_v33  ;;  %v9540_v33 = vld [vmem:[%s11109_s6 + $0x3e4] ss:$8 sps:$4 sm:$0xff]  }
 0x1db   : > { %8109 = vmatpush1.bf16.msra.mxu0 %v9451_v35  ;;  %7791 = vmatprep.subr.bf16.mxu1 %v9456_v16  ;;  %v9543_v35 = vld [vmem:[%s11109_s6 + $0xbe4] ss:$8 sps:$4 sm:$0xff]   ;;  %v9538_v16 = vld [vmem:[%s11109_s6 + $0x3e0] ss:$8 sps:$4 sm:$0xff]  }
 0x1dc   : > { %8119 = vmatprep.subr.bf16.mxu0 %v9459_v17  ;;  %v9541_v17 = vld [vmem:[%s11109_s6 + $0xbe0] ss:$8 sps:$4 sm:$0xff]  }
 0x1dd   : > { %7783 = vmatmul.mubr.bf16.vlgmr.msra.gmra.mrb[0].mxu1 %v11279_v29  ;;  %v9469_v29 = vld [vmem:[%s11109_s6 + $0xb20] ss:$8 sps:$4 sm:$0xff]  }
 0x1de   : > { %8111 = vmatmul.mubr.bf16.vlgmr.msra.gmra.mrb[0].mxu0 %v11292_v34  ;;  %7792 = vmatpush1.bf16.msra.mxu1 %v9454_v37  ;;  %v9474_v34 = vld [vmem:[%s11109_s6 + $0x334] ss:$8 sps:$4 sm:$0xff]  }
 0x1df   : > { %8120 = vmatpush1.bf16.msra.mxu0 %v9457_v30  ;;  %7793 = vmatprep.subr.bf16.mxu1 %v9462_v38  ;;  %v9546_v37 = vld [vmem:[%s11109_s6 + $0x3f4] ss:$8 sps:$4 sm:$0xff]  }
 0x1e0   : > { %8121 = vmatprep.subr.bf16.mxu0 %v9465_v39  ;;  %7823 = vmatprep.mubr.bf16.mxu1 %v4973_v40  ;;  %v9549_v30 = vld [vmem:[%s11109_s6 + $0xbf4] ss:$8 sps:$4 sm:$0xff]   ;;  %v9544_v40 = vld [vmem:[%s11109_s6 + $0x3f0] ss:$8 sps:$4 sm:$0xff]  }
 0x1e1   : > { %8151 = vmatprep.mubr.bf16.mxu0 %v5041_v41  ;;  %v11431_v38 = vld [vmem:[%s11165_s10 + $0x10] sm:$0xff] }
 0x1e2   : > { %7794 = vmatpush1.bf16.msra.mxu1 %v9460_v43  ;;  %v11434_v39 = vld [vmem:[%s11165_s10 + $0x30] sm:$0xff]  ;;  %v9553_v43 = vld [vmem:[%s11109_s6 + $0x404] ss:$8 sps:$4 sm:$0xff]  }
 0x1e3   : > { %8122 = vmatpush1.bf16.msra.mxu0 %v9463_v44  ;;  %7795 = vmatprep.subr.bf16.mxu1 %v9468_v45  ;;  %v9547_v41 = vld [vmem:[%s11109_s6 + $0xbf0] ss:$8 sps:$4 sm:$0xff]   ;;  %v9557_v44 = vld [vmem:[%s11109_s6 + $0xc04] ss:$8 sps:$4 sm:$0xff]   ;;  %v11442_v45 = vrot.slane %v11431_v38, %v11168_v49 }
 0x1e4   : > { %8123 = vmatprep.subr.bf16.mxu0 %v9471_v46  ;;  %v11446_v46 = vrot.slane %v11434_v39, %v11168_v49 }
 0x1e6   : > { %7796 = vmatpush1.bf16.msra.mxu1 %v9466_v47  ;;  %v9551_v47 = vld [vmem:[%s11109_s6 + $0x400] ss:$8 sps:$4 sm:$0xff]  }
 0x1e7   : > { %8124 = vmatpush1.bf16.msra.mxu0 %v9469_v29  ;;  %7797 = vmatprep.subr.bf16.mxu1 %v9474_v34  ;;  %v9555_v29 = vld [vmem:[%s11109_s6 + $0xc00] ss:$8 sps:$4 sm:$0xff]   ;;  %v9560_v34 = vld [vmem:[%s11109_s6 + $0x414] ss:$8 sps:$4 sm:$0xff]  }
 0x1e8   : > { %8125 = vmatprep.subr.bf16.mxu0 %v9477_v48  ;;  %v9563_v48 = vld [vmem:[%s11109_s6 + $0xc14] ss:$8 sps:$4 sm:$0xff]  }
 0x1ea   : > { %7798 = vmatpush1.bf16.msra.mxu1 %v9472_v50  ;;  %v4989_v50 = vcombine.high %v11442_v45, %v11442_v45 }
 0x1eb   : > { %8126 = vmatpush1.bf16.msra.mxu0 %v9475_v51  ;;  %7799 = vmatprep.subr.bf16.mxu1 %v9480_v52  ;;  %v5057_v51 = vcombine.high %v11446_v46, %v11446_v46  ;;  %v9558_v52 = vld [vmem:[%s11109_s6 + $0x410] ss:$8 sps:$4 sm:$0xff]  }
 0x1ec   : > { %8127 = vmatprep.subr.bf16.mxu0 %v9483_v53  ;;  %v9561_v53 = vld [vmem:[%s11109_s6 + $0xc10] ss:$8 sps:$4 sm:$0xff]  }
 0x1ee   : > { %7800 = vmatpush1.bf16.msra.mxu1 %v9478_v54  ;;  %v9566_v54 = vld [vmem:[%s11109_s6 + $0x424] ss:$8 sps:$4 sm:$0xff]  }
 0x1ef   : > { %8128 = vmatpush1.bf16.msra.mxu0 %v9481_v55  ;;  %7801 = vmatprep.subr.bf16.mxu1 %v9486_v56  ;;  %v9569_v55 = vld [vmem:[%s11109_s6 + $0xc24] ss:$8 sps:$4 sm:$0xff]   ;;  %v9572_v56 = vld [vmem:[%s11109_s6 + $0x434] ss:$8 sps:$4 sm:$0xff]  }
 0x1f0   : > { %8129 = vmatprep.subr.bf16.mxu0 %v9489_v57  ;;  %v9575_v57 = vld [vmem:[%s11109_s6 + $0xc34] ss:$8 sps:$4 sm:$0xff]  }
 0x1f2   : > { %7802 = vmatpush1.bf16.msra.mxu1 %v9484_v58  ;;  %v9570_v58 = vld [vmem:[%s11109_s6 + $0x430] ss:$8 sps:$4 sm:$0xff]  }
 0x1f3   : > { %8130 = vmatpush1.bf16.msra.mxu0 %v9487_v59  ;;  %7803 = vmatprep.subr.bf16.mxu1 %v9492_v60  ;;  %v9573_v59 = vld [vmem:[%s11109_s6 + $0xc30] ss:$8 sps:$4 sm:$0xff]   ;;  %v9578_v60 = vld [vmem:[%s11109_s6 + $0x444] ss:$8 sps:$4 sm:$0xff]  }
 0x1f4   : > { %8131 = vmatprep.subr.bf16.mxu0 %v9495_v61  ;;  %v9581_v61 = vld [vmem:[%s11109_s6 + $0xc44] ss:$8 sps:$4 sm:$0xff]  }
 0x1f6   : > { %7804 = vmatpush1.bf16.msra.mxu1 %v9490_v62  ;;  %v9576_v62 = vld [vmem:[%s11109_s6 + $0x440] ss:$8 sps:$4 sm:$0xff]  }
 0x1f7   : > { %8132 = vmatpush1.bf16.msra.mxu0 %v9493_v63  ;;  %7805 = vmatprep.subr.bf16.mxu1 %v9498_v0  ;;  %v9579_v63 = vld [vmem:[%s11109_s6 + $0xc40] ss:$8 sps:$4 sm:$0xff]   ;;  %v9584_v0 = vld [vmem:[%s11109_s6 + $0x454] ss:$8 sps:$4 sm:$0xff]  }
 0x1f8   : > { %8133 = vmatprep.subr.bf16.mxu0 %v9501_v1  ;;  %v9587_v1 = vld [vmem:[%s11109_s6 + $0xc54] ss:$8 sps:$4 sm:$0xff]  }
 0x1fa   : > { %7806 = vmatpush1.bf16.msra.mxu1 %v9496_v2  ;;  %v9582_v2 = vld [vmem:[%s11109_s6 + $0x450] ss:$8 sps:$4 sm:$0xff]  }
 0x1fb   : > { %8134 = vmatpush1.bf16.msra.mxu0 %v9499_v3  ;;  %7807 = vmatprep.subr.bf16.mxu1 %v9504_v4  ;;  %v9585_v3 = vld [vmem:[%s11109_s6 + $0xc50] ss:$8 sps:$4 sm:$0xff]   ;;  %v9590_v4 = vld [vmem:[%s11109_s6 + $0x464] ss:$8 sps:$4 sm:$0xff]  }
 0x1fc   : > { %8135 = vmatprep.subr.bf16.mxu0 %v9507_v5  ;;  %v9593_v5 = vld [vmem:[%s11109_s6 + $0xc64] ss:$8 sps:$4 sm:$0xff]  }
 0x1fe   : > { %7808 = vmatpush1.bf16.msra.mxu1 %v9502_v6  ;;  %v9588_v6 = vld [vmem:[%s11109_s6 + $0x460] ss:$8 sps:$4 sm:$0xff]  }
 0x1ff   : > { %8136 = vmatpush1.bf16.msra.mxu0 %v9505_v7  ;;  %7809 = vmatprep.subr.bf16.mxu1 %v9510_v8  ;;  %v9591_v7 = vld [vmem:[%s11109_s6 + $0xc60] ss:$8 sps:$4 sm:$0xff]   ;;  %v9596_v8 = vld [vmem:[%s11109_s6 + $0x474] ss:$8 sps:$4 sm:$0xff]  }
 0x200   : > { %8137 = vmatprep.subr.bf16.mxu0 %v9513_v9  ;;  %v9599_v9 = vld [vmem:[%s11109_s6 + $0xc74] ss:$8 sps:$4 sm:$0xff]  }
 0x202   : > { %7810 = vmatpush1.bf16.msra.mxu1 %v9508_v10  ;;  %v9594_v10 = vld [vmem:[%s11109_s6 + $0x470] ss:$8 sps:$4 sm:$0xff]  }
 0x203   : > { %8138 = vmatpush1.bf16.msra.mxu0 %v9511_v11  ;;  %7811 = vmatprep.subr.bf16.mxu1 %v9516_v12  ;;  %v9597_v11 = vld [vmem:[%s11109_s6 + $0xc70] ss:$8 sps:$4 sm:$0xff]   ;;  %v9602_v12 = vld [vmem:[%s11109_s6 + $0x484] ss:$8 sps:$4 sm:$0xff]  }
 0x204   : > { %8139 = vmatprep.subr.bf16.mxu0 %v9519_v13  ;;  %v9605_v13 = vld [vmem:[%s11109_s6 + $0xc84] ss:$8 sps:$4 sm:$0xff]  }
 0x206   : > { %7812 = vmatpush1.bf16.msra.mxu1 %v9514_v14  ;;  %v9600_v14 = vld [vmem:[%s11109_s6 + $0x480] ss:$8 sps:$4 sm:$0xff]  }
 0x207   : > { %8140 = vmatpush1.bf16.msra.mxu0 %v9517_v15  ;;  %7813 = vmatprep.subr.bf16.mxu1 %v9522_v18  ;;  %v9603_v15 = vld [vmem:[%s11109_s6 + $0xc80] ss:$8 sps:$4 sm:$0xff]   ;;  %v9608_v18 = vld [vmem:[%s11109_s6 + $0x494] ss:$8 sps:$4 sm:$0xff]  }
 0x208   : > { %8141 = vmatprep.subr.bf16.mxu0 %v9525_v19  ;;  %v9611_v19 = vld [vmem:[%s11109_s6 + $0xc94] ss:$8 sps:$4 sm:$0xff]  }
 0x20a   : > { %7814 = vmatpush1.bf16.msra.mxu1 %v9520_v20  ;;  %v9606_v20 = vld [vmem:[%s11109_s6 + $0x490] ss:$8 sps:$4 sm:$0xff]  }
 0x20b   : > { %8142 = vmatpush1.bf16.msra.mxu0 %v9523_v21  ;;  %7815 = vmatprep.subr.bf16.mxu1 %v9528_v22  ;;  %v9609_v21 = vld [vmem:[%s11109_s6 + $0xc90] ss:$8 sps:$4 sm:$0xff]   ;;  %v9614_v22 = vld [vmem:[%s11109_s6 + $0x4a4] ss:$8 sps:$4 sm:$0xff]  }
 0x20c   : > { %8143 = vmatprep.subr.bf16.mxu0 %v9531_v23  ;;  %v9617_v23 = vld [vmem:[%s11109_s6 + $0xca4] ss:$8 sps:$4 sm:$0xff]  }
 0x20e   : > { %7816 = vmatpush1.bf16.msra.mxu1 %v9526_v24  ;;  %v9612_v24 = vld [vmem:[%s11109_s6 + $0x4a0] ss:$8 sps:$4 sm:$0xff]  }
 0x20f   : > { %8144 = vmatpush1.bf16.msra.mxu0 %v9529_v25  ;;  %7817 = vmatprep.subr.bf16.mxu1 %v9534_v26  ;;  %v9615_v25 = vld [vmem:[%s11109_s6 + $0xca0] ss:$8 sps:$4 sm:$0xff]   ;;  %v9620_v26 = vld [vmem:[%s11109_s6 + $0x4b4] ss:$8 sps:$4 sm:$0xff]  }
 0x210   : > { %8145 = vmatprep.subr.bf16.mxu0 %v9537_v28  ;;  %v9623_v28 = vld [vmem:[%s11109_s6 + $0xcb4] ss:$8 sps:$4 sm:$0xff]  }
 0x212   : > { %7818 = vmatpush1.bf16.msra.mxu1 %v9532_v31  ;;  %v9618_v31 = vld [vmem:[%s11109_s6 + $0x4b0] ss:$8 sps:$4 sm:$0xff]  }
 0x213   : > { %8146 = vmatpush1.bf16.msra.mxu0 %v9535_v32  ;;  %7819 = vmatprep.subr.bf16.mxu1 %v9540_v33  ;;  %v9621_v32 = vld [vmem:[%s11109_s6 + $0xcb0] ss:$8 sps:$4 sm:$0xff]   ;;  %v9626_v33 = vld [vmem:[%s11109_s6 + $0x4c4] ss:$8 sps:$4 sm:$0xff]  }
 0x214   : > { %8147 = vmatprep.subr.bf16.mxu0 %v9543_v35  ;;  %v9629_v35 = vld [vmem:[%s11109_s6 + $0xcc4] ss:$8 sps:$4 sm:$0xff]  }
 0x216   : > { %7820 = vmatpush1.bf16.msra.mxu1 %v9538_v16  ;;  %v9624_v16 = vld [vmem:[%s11109_s6 + $0x4c0] ss:$8 sps:$4 sm:$0xff]  }
 0x217   : > { %8148 = vmatpush1.bf16.msra.mxu0 %v9541_v17  ;;  %7821 = vmatprep.subr.bf16.mxu1 %v9546_v37  ;;  %v9627_v17 = vld [vmem:[%s11109_s6 + $0xcc0] ss:$8 sps:$4 sm:$0xff]   ;;  %v9632_v37 = vld [vmem:[%s11109_s6 + $0x4d4] ss:$8 sps:$4 sm:$0xff]  }
 0x218   : > { %8149 = vmatprep.subr.bf16.mxu0 %v9549_v30  ;;  %v9635_v30 = vld [vmem:[%s11109_s6 + $0xcd4] ss:$8 sps:$4 sm:$0xff]  }
 0x21a   : > { %7822 = vmatpush1.bf16.msra.mxu1 %v9544_v40  ;;  %v9630_v40 = vld [vmem:[%s11109_s6 + $0x4d0] ss:$8 sps:$4 sm:$0xff]  }
 0x21b   : > { %8150 = vmatpush1.bf16.msra.mxu0 %v9547_v41  ;;  %7832 = vmatprep.subr.bf16.mxu1 %v9553_v43  ;;  %v9633_v41 = vld [vmem:[%s11109_s6 + $0xcd0] ss:$8 sps:$4 sm:$0xff]   ;;  %v9638_v43 = vld [vmem:[%s11109_s6 + $0x4e4] ss:$8 sps:$4 sm:$0xff]  }
 0x21c   : > { %8160 = vmatprep.subr.bf16.mxu0 %v9557_v44  ;;  %v9641_v44 = vld [vmem:[%s11109_s6 + $0xce4] ss:$8 sps:$4 sm:$0xff]  }
 0x21d   : > { %7824 = vmatmul.mubr.bf16.vlgmr.msra.gmra.mrb[0].mxu1 %v11359_v36  ;;  %v9564_v36 = vld [vmem:[%s11109_s6 + $0x420] ss:$8 sps:$4 sm:$0xff]  }
 0x21e   : > { %8152 = vmatmul.mubr.bf16.vlgmr.msra.gmra.mrb[0].mxu0 %v11362_v27  ;;  %7833 = vmatpush1.bf16.msra.mxu1 %v9551_v47  ;;  %v9567_v27 = vld [vmem:[%s11109_s6 + $0xc20] ss:$8 sps:$4 sm:$0xff]  }
 0x21f   : > { %8161 = vmatpush1.bf16.msra.mxu0 %v9555_v29  ;;  %7834 = vmatprep.subr.bf16.mxu1 %v9560_v34  ;;  %v9636_v47 = vld [vmem:[%s11109_s6 + $0x4e0] ss:$8 sps:$4 sm:$0xff]   ;;  %v9644_v34 = vld [vmem:[%s11109_s6 + $0x4f4] ss:$8 sps:$4 sm:$0xff]  }
 0x220   : > { %8162 = vmatprep.subr.bf16.mxu0 %v9563_v48  ;;  %7864 = vmatprep.mubr.bf16.mxu1 %v4989_v50  ;;  %v9639_v29 = vld [vmem:[%s11109_s6 + $0xce0] ss:$8 sps:$4 sm:$0xff]   ;;  %v9647_v48 = vld [vmem:[%s11109_s6 + $0xcf4] ss:$8 sps:$4 sm:$0xff]   ;;  %v4974_v50 = vcombine.high %v11431_v38, %v11431_v38 }
 0x221   : > { %8192 = vmatprep.mubr.bf16.mxu0 %v5057_v51  ;;  %v5042_v51 = vcombine.high %v11434_v39, %v11434_v39  ;;  %v9648_v38 = vld [vmem:[%s11109_s6 + $0x500] ss:$8 sps:$4 sm:$0xff]  }
 0x222   : > { %7835 = vmatpush1.bf16.msra.mxu1 %v9558_v52  ;;  %v9642_v52 = vld [vmem:[%s11109_s6 + $0x4f0] ss:$8 sps:$4 sm:$0xff]   ;;  %v9651_v39 = vld [vmem:[%s11109_s6 + $0xd00] ss:$8 sps:$4 sm:$0xff]  }
 0x223   : > { %8163 = vmatpush1.bf16.msra.mxu0 %v9561_v53  ;;  %7836 = vmatprep.subr.bf16.mxu1 %v9566_v54  ;;  %v9645_v53 = vld [vmem:[%s11109_s6 + $0xcf0] ss:$8 sps:$4 sm:$0xff]   ;;  %v9650_v54 = vld [vmem:[%s11109_s6 + $0x504] ss:$8 sps:$4 sm:$0xff]  }
 0x224   : > { %8164 = vmatprep.subr.bf16.mxu0 %v9569_v55  ;;  %v9653_v55 = vld [vmem:[%s11109_s6 + $0xd04] ss:$8 sps:$4 sm:$0xff]  }
 0x226   : > { %7837 = vmatpush1.bf16.msra.mxu1 %v9564_v36  ;;  %v11523_v36 = vrot.slane %v4974_v50, %v11168_v49  ;;  %v9726_v50 = vld [vmem:[%s11109_s6 + $0x5d0] ss:$8 sps:$4 sm:$0xff]  }
 0x227   : > { %8165 = vmatpush1.bf16.msra.mxu0 %v9567_v27  ;;  %7838 = vmatprep.subr.bf16.mxu1 %v9572_v56  ;;  %v11526_v27 = vrot.slane %v5042_v51, %v11168_v49  ;;  %v9656_v56 = vld [vmem:[%s11109_s6 + $0x514] ss:$8 sps:$4 sm:$0xff]   ;;  %v9729_v51 = vld [vmem:[%s11109_s6 + $0xdd0] ss:$8 sps:$4 sm:$0xff]  }
 0x228   : > { %8166 = vmatprep.subr.bf16.mxu0 %v9575_v57  ;;  %v9659_v57 = vld [vmem:[%s11109_s6 + $0xd14] ss:$8 sps:$4 sm:$0xff]  }
 0x22a   : > { %7839 = vmatpush1.bf16.msra.mxu1 %v9570_v58  ;;  %v4990_v58 = vcombine.high %v11523_v36, %v11523_v36 }
 0x22b   : > { %8167 = vmatpush1.bf16.msra.mxu0 %v9573_v59  ;;  %7840 = vmatprep.subr.bf16.mxu1 %v9578_v60  ;;  %v5058_v59 = vcombine.high %v11526_v27, %v11526_v27  ;;  %v9654_v60 = vld [vmem:[%s11109_s6 + $0x510] ss:$8 sps:$4 sm:$0xff]  }
 0x22c   : > { %8168 = vmatprep.subr.bf16.mxu0 %v9581_v61  ;;  %v9657_v61 = vld [vmem:[%s11109_s6 + $0xd10] ss:$8 sps:$4 sm:$0xff]  }
 0x22e   : > { %7841 = vmatpush1.bf16.msra.mxu1 %v9576_v62  ;;  %v9662_v62 = vld [vmem:[%s11109_s6 + $0x524] ss:$8 sps:$4 sm:$0xff]  }
 0x22f   : > { %8169 = vmatpush1.bf16.msra.mxu0 %v9579_v63  ;;  %7842 = vmatprep.subr.bf16.mxu1 %v9584_v0  ;;  %v9665_v63 = vld [vmem:[%s11109_s6 + $0xd24] ss:$8 sps:$4 sm:$0xff]   ;;  %v9668_v0 = vld [vmem:[%s11109_s6 + $0x534] ss:$8 sps:$4 sm:$0xff]  }
 0x230   : > { %8170 = vmatprep.subr.bf16.mxu0 %v9587_v1  ;;  %v9671_v1 = vld [vmem:[%s11109_s6 + $0xd34] ss:$8 sps:$4 sm:$0xff]  }
 0x232   : > { %7843 = vmatpush1.bf16.msra.mxu1 %v9582_v2  ;;  %v9666_v2 = vld [vmem:[%s11109_s6 + $0x530] ss:$8 sps:$4 sm:$0xff]  }
 0x233   : > { %8171 = vmatpush1.bf16.msra.mxu0 %v9585_v3  ;;  %7844 = vmatprep.subr.bf16.mxu1 %v9590_v4  ;;  %v9669_v3 = vld [vmem:[%s11109_s6 + $0xd30] ss:$8 sps:$4 sm:$0xff]   ;;  %v9674_v4 = vld [vmem:[%s11109_s6 + $0x544] ss:$8 sps:$4 sm:$0xff]  }
 0x234   : > { %8172 = vmatprep.subr.bf16.mxu0 %v9593_v5  ;;  %v9677_v5 = vld [vmem:[%s11109_s6 + $0xd44] ss:$8 sps:$4 sm:$0xff]  }
 0x236   : > { %7845 = vmatpush1.bf16.msra.mxu1 %v9588_v6  ;;  %v9672_v6 = vld [vmem:[%s11109_s6 + $0x540] ss:$8 sps:$4 sm:$0xff]  }
 0x237   : > { %8173 = vmatpush1.bf16.msra.mxu0 %v9591_v7  ;;  %7846 = vmatprep.subr.bf16.mxu1 %v9596_v8  ;;  %v9675_v7 = vld [vmem:[%s11109_s6 + $0xd40] ss:$8 sps:$4 sm:$0xff]   ;;  %v9680_v8 = vld [vmem:[%s11109_s6 + $0x554] ss:$8 sps:$4 sm:$0xff]  }
 0x238   : > { %8174 = vmatprep.subr.bf16.mxu0 %v9599_v9  ;;  %v9683_v9 = vld [vmem:[%s11109_s6 + $0xd54] ss:$8 sps:$4 sm:$0xff]  }
 0x23a   : > { %7847 = vmatpush1.bf16.msra.mxu1 %v9594_v10  ;;  %v9678_v10 = vld [vmem:[%s11109_s6 + $0x550] ss:$8 sps:$4 sm:$0xff]  }
 0x23b   : > { %8175 = vmatpush1.bf16.msra.mxu0 %v9597_v11  ;;  %7848 = vmatprep.subr.bf16.mxu1 %v9602_v12  ;;  %v9681_v11 = vld [vmem:[%s11109_s6 + $0xd50] ss:$8 sps:$4 sm:$0xff]   ;;  %v9686_v12 = vld [vmem:[%s11109_s6 + $0x564] ss:$8 sps:$4 sm:$0xff]  }
 0x23c   : > { %8176 = vmatprep.subr.bf16.mxu0 %v9605_v13  ;;  %v9689_v13 = vld [vmem:[%s11109_s6 + $0xd64] ss:$8 sps:$4 sm:$0xff]  }
 0x23e   : > { %7849 = vmatpush1.bf16.msra.mxu1 %v9600_v14  ;;  %v9684_v14 = vld [vmem:[%s11109_s6 + $0x560] ss:$8 sps:$4 sm:$0xff]  }
 0x23f   : > { %8177 = vmatpush1.bf16.msra.mxu0 %v9603_v15  ;;  %7850 = vmatprep.subr.bf16.mxu1 %v9608_v18  ;;  %v9687_v15 = vld [vmem:[%s11109_s6 + $0xd60] ss:$8 sps:$4 sm:$0xff]   ;;  %v9692_v18 = vld [vmem:[%s11109_s6 + $0x574] ss:$8 sps:$4 sm:$0xff]  }
 0x240   : > { %8178 = vmatprep.subr.bf16.mxu0 %v9611_v19  ;;  %v9695_v19 = vld [vmem:[%s11109_s6 + $0xd74] ss:$8 sps:$4 sm:$0xff]  }
 0x242   : > { %7851 = vmatpush1.bf16.msra.mxu1 %v9606_v20  ;;  %v9690_v20 = vld [vmem:[%s11109_s6 + $0x570] ss:$8 sps:$4 sm:$0xff]  }
 0x243   : > { %8179 = vmatpush1.bf16.msra.mxu0 %v9609_v21  ;;  %7852 = vmatprep.subr.bf16.mxu1 %v9614_v22  ;;  %v9693_v21 = vld [vmem:[%s11109_s6 + $0xd70] ss:$8 sps:$4 sm:$0xff]   ;;  %v9698_v22 = vld [vmem:[%s11109_s6 + $0x584] ss:$8 sps:$4 sm:$0xff]  }
 0x244   : > { %8180 = vmatprep.subr.bf16.mxu0 %v9617_v23  ;;  %v9701_v23 = vld [vmem:[%s11109_s6 + $0xd84] ss:$8 sps:$4 sm:$0xff]  }
 0x246   : > { %7853 = vmatpush1.bf16.msra.mxu1 %v9612_v24  ;;  %v9696_v24 = vld [vmem:[%s11109_s6 + $0x580] ss:$8 sps:$4 sm:$0xff]  }
 0x247   : > { %8181 = vmatpush1.bf16.msra.mxu0 %v9615_v25  ;;  %7854 = vmatprep.subr.bf16.mxu1 %v9620_v26  ;;  %v9699_v25 = vld [vmem:[%s11109_s6 + $0xd80] ss:$8 sps:$4 sm:$0xff]   ;;  %v9704_v26 = vld [vmem:[%s11109_s6 + $0x594] ss:$8 sps:$4 sm:$0xff]  }
 0x248   : > { %8182 = vmatprep.subr.bf16.mxu0 %v9623_v28  ;;  %v9707_v28 = vld [vmem:[%s11109_s6 + $0xd94] ss:$8 sps:$4 sm:$0xff]  }
 0x24a   : > { %7855 = vmatpush1.bf16.msra.mxu1 %v9618_v31  ;;  %v9702_v31 = vld [vmem:[%s11109_s6 + $0x590] ss:$8 sps:$4 sm:$0xff]  }
 0x24b   : > { %8183 = vmatpush1.bf16.msra.mxu0 %v9621_v32  ;;  %7856 = vmatprep.subr.bf16.mxu1 %v9626_v33  ;;  %v9705_v32 = vld [vmem:[%s11109_s6 + $0xd90] ss:$8 sps:$4 sm:$0xff]   ;;  %v9710_v33 = vld [vmem:[%s11109_s6 + $0x5a4] ss:$8 sps:$4 sm:$0xff]  }
 0x24c   : > { %8184 = vmatprep.subr.bf16.mxu0 %v9629_v35  ;;  %v9713_v35 = vld [vmem:[%s11109_s6 + $0xda4] ss:$8 sps:$4 sm:$0xff]  }
 0x24e   : > { %7857 = vmatpush1.bf16.msra.mxu1 %v9624_v16  ;;  %v9708_v16 = vld [vmem:[%s11109_s6 + $0x5a0] ss:$8 sps:$4 sm:$0xff]  }
 0x24f   : > { %8185 = vmatpush1.bf16.msra.mxu0 %v9627_v17  ;;  %7858 = vmatprep.subr.bf16.mxu1 %v9632_v37  ;;  %v9711_v17 = vld [vmem:[%s11109_s6 + $0xda0] ss:$8 sps:$4 sm:$0xff]   ;;  %v9716_v37 = vld [vmem:[%s11109_s6 + $0x5b4] ss:$8 sps:$4 sm:$0xff]  }
 0x250   : > { %8186 = vmatprep.subr.bf16.mxu0 %v9635_v30  ;;  %v9719_v30 = vld [vmem:[%s11109_s6 + $0xdb4] ss:$8 sps:$4 sm:$0xff]  }
 0x252   : > { %7859 = vmatpush1.bf16.msra.mxu1 %v9630_v40  ;;  %v9714_v40 = vld [vmem:[%s11109_s6 + $0x5b0] ss:$8 sps:$4 sm:$0xff]  }
 0x253   : > { %8187 = vmatpush1.bf16.msra.mxu0 %v9633_v41  ;;  %7860 = vmatprep.subr.bf16.mxu1 %v9638_v43  ;;  %v9717_v41 = vld [vmem:[%s11109_s6 + $0xdb0] ss:$8 sps:$4 sm:$0xff]   ;;  %v9722_v43 = vld [vmem:[%s11109_s6 + $0x5c4] ss:$8 sps:$4 sm:$0xff]  }
 0x254   : > { %8188 = vmatprep.subr.bf16.mxu0 %v9641_v44  ;;  %v9725_v44 = vld [vmem:[%s11109_s6 + $0xdc4] ss:$8 sps:$4 sm:$0xff]  }
 0x256   : > { %7861 = vmatpush1.bf16.msra.mxu1 %v9636_v47  ;;  %v9720_v47 = vld [vmem:[%s11109_s6 + $0x5c0] ss:$8 sps:$4 sm:$0xff]  }
 0x257   : > { %8189 = vmatpush1.bf16.msra.mxu0 %v9639_v29  ;;  %7862 = vmatprep.subr.bf16.mxu1 %v9644_v34  ;;  %v9723_v29 = vld [vmem:[%s11109_s6 + $0xdc0] ss:$8 sps:$4 sm:$0xff]   ;;  %v9728_v34 = vld [vmem:[%s11109_s6 + $0x5d4] ss:$8 sps:$4 sm:$0xff]  }
 0x258   : > { %8190 = vmatprep.subr.bf16.mxu0 %v9647_v48  ;;  %v9731_v48 = vld [vmem:[%s11109_s6 + $0xdd4] ss:$8 sps:$4 sm:$0xff]  }
 0x25a   : > { %7863 = vmatpush1.bf16.msra.mxu1 %v9642_v52  ;;  %v9734_v52 = vld [vmem:[%s11109_s6 + $0x5e4] ss:$8 sps:$4 sm:$0xff]  }
 0x25b   : > { %8191 = vmatpush1.bf16.msra.mxu0 %v9645_v53  ;;  %7873 = vmatprep.subr.bf16.mxu1 %v9650_v54  ;;  %v9737_v53 = vld [vmem:[%s11109_s6 + $0xde4] ss:$8 sps:$4 sm:$0xff]   ;;  %v9732_v54 = vld [vmem:[%s11109_s6 + $0x5e0] ss:$8 sps:$4 sm:$0xff]  }
 0x25c   : > { %8201 = vmatprep.subr.bf16.mxu0 %v9653_v55  ;;  %v9735_v55 = vld [vmem:[%s11109_s6 + $0xde0] ss:$8 sps:$4 sm:$0xff]  }
 0x25d   : > { %7865 = vmatmul.mubr.bf16.vlgmr.msra.gmra.mrb[0].mxu1 %v11442_v45  ;;  %v9660_v45 = vld [vmem:[%s11109_s6 + $0x520] ss:$8 sps:$4 sm:$0xff]  }
 0x25e   : > { %8193 = vmatmul.mubr.bf16.vlgmr.msra.gmra.mrb[0].mxu0 %v11446_v46  ;;  %7874 = vmatpush1.bf16.msra.mxu1 %v9648_v38  ;;  %v9663_v46 = vld [vmem:[%s11109_s6 + $0xd20] ss:$8 sps:$4 sm:$0xff]   ;;  %v9740_v38 = vld [vmem:[%s11109_s6 + $0x5f4] ss:$8 sps:$4 sm:$0xff]  }
 0x25f   : > { %8202 = vmatpush1.bf16.msra.mxu0 %v9651_v39  ;;  %7875 = vmatprep.subr.bf16.mxu1 %v9656_v56  ;;  %v9743_v39 = vld [vmem:[%s11109_s6 + $0xdf4] ss:$8 sps:$4 sm:$0xff]  }
 0x260   : > { %8203 = vmatprep.subr.bf16.mxu0 %v9659_v57  ;;  %7905 = vmatprep.mubr.bf16.mxu1 %v4990_v58  ;;  %v11595_v56 = vld [vmem:[%s11165_s10 + $0x18] sm:$0xff] }
 0x261   : > { %8233 = vmatprep.mubr.bf16.mxu0 %v5058_v59  ;;  %v11598_v57 = vld [vmem:[%s11165_s10 + $0x38] sm:$0xff] }
 0x262   : > { %7876 = vmatpush1.bf16.msra.mxu1 %v9654_v60  ;;  %v9738_v58 = vld [vmem:[%s11109_s6 + $0x5f0] ss:$8 sps:$4 sm:$0xff]   ;;  %v9747_v60 = vld [vmem:[%s11109_s6 + $0x604] ss:$8 sps:$4 sm:$0xff]  }
 0x263   : > { %8204 = vmatpush1.bf16.msra.mxu0 %v9657_v61  ;;  %7877 = vmatprep.subr.bf16.mxu1 %v9662_v62  ;;  %v9741_v59 = vld [vmem:[%s11109_s6 + $0xdf0] ss:$8 sps:$4 sm:$0xff]   ;;  %v9751_v61 = vld [vmem:[%s11109_s6 + $0xe04] ss:$8 sps:$4 sm:$0xff]   ;;  %v11606_v62 = vrot.slane %v11595_v56, %v11168_v49 }
 0x264   : > { %8205 = vmatprep.subr.bf16.mxu0 %v9665_v63  ;;  %v11610_v63 = vrot.slane %v11598_v57, %v11168_v49 }
 0x266   : > { %7878 = vmatpush1.bf16.msra.mxu1 %v9660_v45  ;;  %v9745_v45 = vld [vmem:[%s11109_s6 + $0x600] ss:$8 sps:$4 sm:$0xff]  }
 0x267   : > { %8206 = vmatpush1.bf16.msra.mxu0 %v9663_v46  ;;  %7879 = vmatprep.subr.bf16.mxu1 %v9668_v0  ;;  %v9749_v46 = vld [vmem:[%s11109_s6 + $0xe00] ss:$8 sps:$4 sm:$0xff]   ;;  %v9754_v0 = vld [vmem:[%s11109_s6 + $0x614] ss:$8 sps:$4 sm:$0xff]  }
 0x268   : > { %8207 = vmatprep.subr.bf16.mxu0 %v9671_v1  ;;  %v9757_v1 = vld [vmem:[%s11109_s6 + $0xe14] ss:$8 sps:$4 sm:$0xff]  }
 0x26a   : > { %7880 = vmatpush1.bf16.msra.mxu1 %v9666_v2  ;;  %v5006_v2 = vcombine.high %v11606_v62, %v11606_v62 }
 0x26b   : > { %8208 = vmatpush1.bf16.msra.mxu0 %v9669_v3  ;;  %7881 = vmatprep.subr.bf16.mxu1 %v9674_v4  ;;  %v5074_v3 = vcombine.high %v11610_v63, %v11610_v63  ;;  %v9752_v4 = vld [vmem:[%s11109_s6 + $0x610] ss:$8 sps:$4 sm:$0xff]  }
 0x26c   : > { %8209 = vmatprep.subr.bf16.mxu0 %v9677_v5  ;;  %v9755_v5 = vld [vmem:[%s11109_s6 + $0xe10] ss:$8 sps:$4 sm:$0xff]  }
 0x26e   : > { %7882 = vmatpush1.bf16.msra.mxu1 %v9672_v6  ;;  %v9760_v6 = vld [vmem:[%s11109_s6 + $0x624] ss:$8 sps:$4 sm:$0xff]  }
 0x26f   : > { %8210 = vmatpush1.bf16.msra.mxu0 %v9675_v7  ;;  %7883 = vmatprep.subr.bf16.mxu1 %v9680_v8  ;;  %v9763_v7 = vld [vmem:[%s11109_s6 + $0xe24] ss:$8 sps:$4 sm:$0xff]   ;;  %v9766_v8 = vld [vmem:[%s11109_s6 + $0x634] ss:$8 sps:$4 sm:$0xff]  }
 0x270   : > { %8211 = vmatprep.subr.bf16.mxu0 %v9683_v9  ;;  %v9769_v9 = vld [vmem:[%s11109_s6 + $0xe34] ss:$8 sps:$4 sm:$0xff]  }
 0x272   : > { %7884 = vmatpush1.bf16.msra.mxu1 %v9678_v10  ;;  %v9764_v10 = vld [vmem:[%s11109_s6 + $0x630] ss:$8 sps:$4 sm:$0xff]  }
 0x273   : > { %8212 = vmatpush1.bf16.msra.mxu0 %v9681_v11  ;;  %7885 = vmatprep.subr.bf16.mxu1 %v9686_v12  ;;  %v9767_v11 = vld [vmem:[%s11109_s6 + $0xe30] ss:$8 sps:$4 sm:$0xff]   ;;  %v9772_v12 = vld [vmem:[%s11109_s6 + $0x644] ss:$8 sps:$4 sm:$0xff]  }
 0x274   : > { %8213 = vmatprep.subr.bf16.mxu0 %v9689_v13  ;;  %v9775_v13 = vld [vmem:[%s11109_s6 + $0xe44] ss:$8 sps:$4 sm:$0xff]  }
 0x276   : > { %7886 = vmatpush1.bf16.msra.mxu1 %v9684_v14  ;;  %v9770_v14 = vld [vmem:[%s11109_s6 + $0x640] ss:$8 sps:$4 sm:$0xff]  }
 0x277   : > { %8214 = vmatpush1.bf16.msra.mxu0 %v9687_v15  ;;  %7887 = vmatprep.subr.bf16.mxu1 %v9692_v18  ;;  %v9773_v15 = vld [vmem:[%s11109_s6 + $0xe40] ss:$8 sps:$4 sm:$0xff]   ;;  %v9778_v18 = vld [vmem:[%s11109_s6 + $0x654] ss:$8 sps:$4 sm:$0xff]  }
 0x278   : > { %8215 = vmatprep.subr.bf16.mxu0 %v9695_v19  ;;  %v9781_v19 = vld [vmem:[%s11109_s6 + $0xe54] ss:$8 sps:$4 sm:$0xff]  }
 0x27a   : > { %7888 = vmatpush1.bf16.msra.mxu1 %v9690_v20  ;;  %v9776_v20 = vld [vmem:[%s11109_s6 + $0x650] ss:$8 sps:$4 sm:$0xff]  }
 0x27b   : > { %8216 = vmatpush1.bf16.msra.mxu0 %v9693_v21  ;;  %7889 = vmatprep.subr.bf16.mxu1 %v9698_v22  ;;  %v9779_v21 = vld [vmem:[%s11109_s6 + $0xe50] ss:$8 sps:$4 sm:$0xff]   ;;  %v9784_v22 = vld [vmem:[%s11109_s6 + $0x664] ss:$8 sps:$4 sm:$0xff]  }
 0x27c   : > { %8217 = vmatprep.subr.bf16.mxu0 %v9701_v23  ;;  %v9787_v23 = vld [vmem:[%s11109_s6 + $0xe64] ss:$8 sps:$4 sm:$0xff]  }
 0x27e   : > { %7890 = vmatpush1.bf16.msra.mxu1 %v9696_v24  ;;  %v9782_v24 = vld [vmem:[%s11109_s6 + $0x660] ss:$8 sps:$4 sm:$0xff]  }
 0x27f   : > { %8218 = vmatpush1.bf16.msra.mxu0 %v9699_v25  ;;  %7891 = vmatprep.subr.bf16.mxu1 %v9704_v26  ;;  %v9785_v25 = vld [vmem:[%s11109_s6 + $0xe60] ss:$8 sps:$4 sm:$0xff]   ;;  %v9790_v26 = vld [vmem:[%s11109_s6 + $0x674] ss:$8 sps:$4 sm:$0xff]  }
 0x280   : > { %8219 = vmatprep.subr.bf16.mxu0 %v9707_v28  ;;  %v9793_v28 = vld [vmem:[%s11109_s6 + $0xe74] ss:$8 sps:$4 sm:$0xff]  }
 0x282   : > { %7892 = vmatpush1.bf16.msra.mxu1 %v9702_v31  ;;  %v9788_v31 = vld [vmem:[%s11109_s6 + $0x670] ss:$8 sps:$4 sm:$0xff]  }
 0x283   : > { %8220 = vmatpush1.bf16.msra.mxu0 %v9705_v32  ;;  %7893 = vmatprep.subr.bf16.mxu1 %v9710_v33  ;;  %v9791_v32 = vld [vmem:[%s11109_s6 + $0xe70] ss:$8 sps:$4 sm:$0xff]   ;;  %v9796_v33 = vld [vmem:[%s11109_s6 + $0x684] ss:$8 sps:$4 sm:$0xff]  }
 0x284   : > { %8221 = vmatprep.subr.bf16.mxu0 %v9713_v35  ;;  %v9799_v35 = vld [vmem:[%s11109_s6 + $0xe84] ss:$8 sps:$4 sm:$0xff]  }
 0x286   : > { %7894 = vmatpush1.bf16.msra.mxu1 %v9708_v16  ;;  %v9794_v16 = vld [vmem:[%s11109_s6 + $0x680] ss:$8 sps:$4 sm:$0xff]  }
 0x287   : > { %8222 = vmatpush1.bf16.msra.mxu0 %v9711_v17  ;;  %7895 = vmatprep.subr.bf16.mxu1 %v9716_v37  ;;  %v9797_v17 = vld [vmem:[%s11109_s6 + $0xe80] ss:$8 sps:$4 sm:$0xff]   ;;  %v9802_v37 = vld [vmem:[%s11109_s6 + $0x694] ss:$8 sps:$4 sm:$0xff]  }
 0x288   : > { %8223 = vmatprep.subr.bf16.mxu0 %v9719_v30  ;;  %v9805_v30 = vld [vmem:[%s11109_s6 + $0xe94] ss:$8 sps:$4 sm:$0xff]  }
 0x28a   : > { %7896 = vmatpush1.bf16.msra.mxu1 %v9714_v40  ;;  %v9800_v40 = vld [vmem:[%s11109_s6 + $0x690] ss:$8 sps:$4 sm:$0xff]  }
 0x28b   : > { %8224 = vmatpush1.bf16.msra.mxu0 %v9717_v41  ;;  %7897 = vmatprep.subr.bf16.mxu1 %v9722_v43  ;;  %v9803_v41 = vld [vmem:[%s11109_s6 + $0xe90] ss:$8 sps:$4 sm:$0xff]   ;;  %v9808_v43 = vld [vmem:[%s11109_s6 + $0x6a4] ss:$8 sps:$4 sm:$0xff]  }
 0x28c   : > { %8225 = vmatprep.subr.bf16.mxu0 %v9725_v44  ;;  %v9811_v44 = vld [vmem:[%s11109_s6 + $0xea4] ss:$8 sps:$4 sm:$0xff]  }
 0x28e   : > { %7898 = vmatpush1.bf16.msra.mxu1 %v9720_v47  ;;  %v9806_v47 = vld [vmem:[%s11109_s6 + $0x6a0] ss:$8 sps:$4 sm:$0xff]  }
 0x28f   : > { %8226 = vmatpush1.bf16.msra.mxu0 %v9723_v29  ;;  %7899 = vmatprep.subr.bf16.mxu1 %v9728_v34  ;;  %v9809_v29 = vld [vmem:[%s11109_s6 + $0xea0] ss:$8 sps:$4 sm:$0xff]   ;;  %v9814_v34 = vld [vmem:[%s11109_s6 + $0x6b4] ss:$8 sps:$4 sm:$0xff]  }
 0x290   : > { %8227 = vmatprep.subr.bf16.mxu0 %v9731_v48  ;;  %v9817_v48 = vld [vmem:[%s11109_s6 + $0xeb4] ss:$8 sps:$4 sm:$0xff]  }
 0x292   : > { %7900 = vmatpush1.bf16.msra.mxu1 %v9726_v50  ;;  %v9812_v50 = vld [vmem:[%s11109_s6 + $0x6b0] ss:$8 sps:$4 sm:$0xff]  }
 0x293   : > { %8228 = vmatpush1.bf16.msra.mxu0 %v9729_v51  ;;  %7901 = vmatprep.subr.bf16.mxu1 %v9734_v52  ;;  %v9815_v51 = vld [vmem:[%s11109_s6 + $0xeb0] ss:$8 sps:$4 sm:$0xff]   ;;  %v9820_v52 = vld [vmem:[%s11109_s6 + $0x6c4] ss:$8 sps:$4 sm:$0xff]  }
 0x294   : > { %8229 = vmatprep.subr.bf16.mxu0 %v9737_v53  ;;  %v9823_v53 = vld [vmem:[%s11109_s6 + $0xec4] ss:$8 sps:$4 sm:$0xff]  }
 0x296   : > { %7902 = vmatpush1.bf16.msra.mxu1 %v9732_v54  ;;  %v9818_v54 = vld [vmem:[%s11109_s6 + $0x6c0] ss:$8 sps:$4 sm:$0xff]  }
 0x297   : > { %8230 = vmatpush1.bf16.msra.mxu0 %v9735_v55  ;;  %7903 = vmatprep.subr.bf16.mxu1 %v9740_v38  ;;  %v9821_v55 = vld [vmem:[%s11109_s6 + $0xec0] ss:$8 sps:$4 sm:$0xff]   ;;  %v9826_v38 = vld [vmem:[%s11109_s6 + $0x6d4] ss:$8 sps:$4 sm:$0xff]  }
 0x298   : > { %8231 = vmatprep.subr.bf16.mxu0 %v9743_v39  ;;  %v9829_v39 = vld [vmem:[%s11109_s6 + $0xed4] ss:$8 sps:$4 sm:$0xff]  }
 0x29a   : > { %7904 = vmatpush1.bf16.msra.mxu1 %v9738_v58  ;;  %v9824_v58 = vld [vmem:[%s11109_s6 + $0x6d0] ss:$8 sps:$4 sm:$0xff]  }
 0x29b   : > { %8232 = vmatpush1.bf16.msra.mxu0 %v9741_v59  ;;  %7914 = vmatprep.subr.bf16.mxu1 %v9747_v60  ;;  %v9827_v59 = vld [vmem:[%s11109_s6 + $0xed0] ss:$8 sps:$4 sm:$0xff]   ;;  %v9832_v60 = vld [vmem:[%s11109_s6 + $0x6e4] ss:$8 sps:$4 sm:$0xff]  }
 0x29c   : > { %8242 = vmatprep.subr.bf16.mxu0 %v9751_v61  ;;  %v9835_v61 = vld [vmem:[%s11109_s6 + $0xee4] ss:$8 sps:$4 sm:$0xff]  }
 0x29d   : > { %7906 = vmatmul.mubr.bf16.vlgmr.msra.gmra.mrb[0].mxu1 %v11523_v36  ;;  %v9758_v36 = vld [vmem:[%s11109_s6 + $0x620] ss:$8 sps:$4 sm:$0xff]  }
 0x29e   : > { %8234 = vmatmul.mubr.bf16.vlgmr.msra.gmra.mrb[0].mxu0 %v11526_v27  ;;  %7915 = vmatpush1.bf16.msra.mxu1 %v9745_v45  ;;  %v9761_v27 = vld [vmem:[%s11109_s6 + $0xe20] ss:$8 sps:$4 sm:$0xff]  }
 0x29f   : > { %8243 = vmatpush1.bf16.msra.mxu0 %v9749_v46  ;;  %7916 = vmatprep.subr.bf16.mxu1 %v9754_v0  ;;  %v9830_v45 = vld [vmem:[%s11109_s6 + $0x6e0] ss:$8 sps:$4 sm:$0xff]   ;;  %v9838_v0 = vld [vmem:[%s11109_s6 + $0x6f4] ss:$8 sps:$4 sm:$0xff]  }
 0x2a0   : > { %8244 = vmatprep.subr.bf16.mxu0 %v9757_v1  ;;  %7946 = vmatprep.mubr.bf16.mxu1 %v5006_v2  ;;  %v9833_v46 = vld [vmem:[%s11109_s6 + $0xee0] ss:$8 sps:$4 sm:$0xff]   ;;  %v9841_v1 = vld [vmem:[%s11109_s6 + $0xef4] ss:$8 sps:$4 sm:$0xff]   ;;  %v4991_v2 = vcombine.high %v11595_v56, %v11595_v56 }
 0x2a1   : > { %8274 = vmatprep.mubr.bf16.mxu0 %v5074_v3  ;;  %v5059_v3 = vcombine.high %v11598_v57, %v11598_v57  ;;  %v9842_v56 = vld [vmem:[%s11109_s6 + $0x700] ss:$8 sps:$4 sm:$0xff]  }
 0x2a2   : > { %7917 = vmatpush1.bf16.msra.mxu1 %v9752_v4  ;;  %v9836_v4 = vld [vmem:[%s11109_s6 + $0x6f0] ss:$8 sps:$4 sm:$0xff]   ;;  %v9845_v57 = vld [vmem:[%s11109_s6 + $0xf00] ss:$8 sps:$4 sm:$0xff]  }
 0x2a3   : > { %8245 = vmatpush1.bf16.msra.mxu0 %v9755_v5  ;;  %7918 = vmatprep.subr.bf16.mxu1 %v9760_v6  ;;  %v9839_v5 = vld [vmem:[%s11109_s6 + $0xef0] ss:$8 sps:$4 sm:$0xff]   ;;  %v9844_v6 = vld [vmem:[%s11109_s6 + $0x704] ss:$8 sps:$4 sm:$0xff]  }
 0x2a4   : > { %8246 = vmatprep.subr.bf16.mxu0 %v9763_v7  ;;  %v9847_v7 = vld [vmem:[%s11109_s6 + $0xf04] ss:$8 sps:$4 sm:$0xff]  }
 0x2a6   : > { %7919 = vmatpush1.bf16.msra.mxu1 %v9758_v36  ;;  %v11687_v36 = vrot.slane %v4991_v2, %v11168_v49  ;;  %v9923_v2 = vld [vmem:[%s11109_s6 + $0xfd0] ss:$8 sps:$4 sm:$0xff]  }
 0x2a7   : > { %8247 = vmatpush1.bf16.msra.mxu0 %v9761_v27  ;;  %7920 = vmatprep.subr.bf16.mxu1 %v9766_v8  ;;  %v11690_v27 = vrot.slane %v5059_v3, %v11168_v49  ;;  %v9850_v8 = vld [vmem:[%s11109_s6 + $0x714] ss:$8 sps:$4 sm:$0xff]   ;;  %v9848_v49 = vld [vmem:[%s11109_s6 + $0x710] ss:$8 sps:$4 sm:$0xff]   ;;  %v9928_v3 = vld [vmem:[%s11109_s6 + $0x7e4] ss:$8 sps:$4 sm:$0xff]  }
 0x2a8   : > { %8248 = vmatprep.subr.bf16.mxu0 %v9769_v9  ;;  %v9853_v9 = vld [vmem:[%s11109_s6 + $0xf14] ss:$8 sps:$4 sm:$0xff]  }
 0x2aa   : > { %7921 = vmatpush1.bf16.msra.mxu1 %v9764_v10  ;;  %v5007_v10 = vcombine.high %v11687_v36, %v11687_v36 }
 0x2ab   : > { %8249 = vmatpush1.bf16.msra.mxu0 %v9767_v11  ;;  %7922 = vmatprep.subr.bf16.mxu1 %v9772_v12  ;;  %v5075_v11 = vcombine.high %v11690_v27, %v11690_v27  ;;  %v9851_v12 = vld [vmem:[%s11109_s6 + $0xf10] ss:$8 sps:$4 sm:$0xff]  }
 0x2ac   : > { %8250 = vmatprep.subr.bf16.mxu0 %v9775_v13  ;;  %v9856_v13 = vld [vmem:[%s11109_s6 + $0x724] ss:$8 sps:$4 sm:$0xff]  }
 0x2ae   : > { %7923 = vmatpush1.bf16.msra.mxu1 %v9770_v14  ;;  %v9859_v14 = vld [vmem:[%s11109_s6 + $0xf24] ss:$8 sps:$4 sm:$0xff]  }
 0x2af   : > { %8251 = vmatpush1.bf16.msra.mxu0 %v9773_v15  ;;  %7924 = vmatprep.subr.bf16.mxu1 %v9778_v18  ;;  %v9862_v15 = vld [vmem:[%s11109_s6 + $0x734] ss:$8 sps:$4 sm:$0xff]  }
 0x2b0   : > { %8252 = vmatprep.subr.bf16.mxu0 %v9781_v19  ;;  %v9865_v18 = vld [vmem:[%s11109_s6 + $0xf34] ss:$8 sps:$4 sm:$0xff]   ;;  %v9860_v19 = vld [vmem:[%s11109_s6 + $0x730] ss:$8 sps:$4 sm:$0xff]  }
 0x2b2   : > { %7925 = vmatpush1.bf16.msra.mxu1 %v9776_v20  ;;  %v9863_v20 = vld [vmem:[%s11109_s6 + $0xf30] ss:$8 sps:$4 sm:$0xff]  }
 0x2b3   : > { %8253 = vmatpush1.bf16.msra.mxu0 %v9779_v21  ;;  %7926 = vmatprep.subr.bf16.mxu1 %v9784_v22  ;;  %v9868_v21 = vld [vmem:[%s11109_s6 + $0x744] ss:$8 sps:$4 sm:$0xff]  }
 0x2b4   : > { %8254 = vmatprep.subr.bf16.mxu0 %v9787_v23  ;;  %v9871_v22 = vld [vmem:[%s11109_s6 + $0xf44] ss:$8 sps:$4 sm:$0xff]   ;;  %v9866_v23 = vld [vmem:[%s11109_s6 + $0x740] ss:$8 sps:$4 sm:$0xff]  }
 0x2b6   : > { %7927 = vmatpush1.bf16.msra.mxu1 %v9782_v24  ;;  %v9869_v24 = vld [vmem:[%s11109_s6 + $0xf40] ss:$8 sps:$4 sm:$0xff]  }
 0x2b7   : > { %8255 = vmatpush1.bf16.msra.mxu0 %v9785_v25  ;;  %7928 = vmatprep.subr.bf16.mxu1 %v9790_v26  ;;  %v9874_v25 = vld [vmem:[%s11109_s6 + $0x754] ss:$8 sps:$4 sm:$0xff]  }
 0x2b8   : > { %8256 = vmatprep.subr.bf16.mxu0 %v9793_v28  ;;  %v9877_v26 = vld [vmem:[%s11109_s6 + $0xf54] ss:$8 sps:$4 sm:$0xff]   ;;  %v9872_v28 = vld [vmem:[%s11109_s6 + $0x750] ss:$8 sps:$4 sm:$0xff]  }
 0x2ba   : > { %7929 = vmatpush1.bf16.msra.mxu1 %v9788_v31  ;;  %v9875_v31 = vld [vmem:[%s11109_s6 + $0xf50] ss:$8 sps:$4 sm:$0xff]  }
 0x2bb   : > { %8257 = vmatpush1.bf16.msra.mxu0 %v9791_v32  ;;  %7930 = vmatprep.subr.bf16.mxu1 %v9796_v33  ;;  %v9880_v32 = vld [vmem:[%s11109_s6 + $0x764] ss:$8 sps:$4 sm:$0xff]  }
 0x2bc   : > { %8258 = vmatprep.subr.bf16.mxu0 %v9799_v35  ;;  %v9883_v33 = vld [vmem:[%s11109_s6 + $0xf64] ss:$8 sps:$4 sm:$0xff]   ;;  %v9878_v35 = vld [vmem:[%s11109_s6 + $0x760] ss:$8 sps:$4 sm:$0xff]  }
 0x2be   : > { %7931 = vmatpush1.bf16.msra.mxu1 %v9794_v16  ;;  %v9881_v16 = vld [vmem:[%s11109_s6 + $0xf60] ss:$8 sps:$4 sm:$0xff]  }
 0x2bf   : > { %8259 = vmatpush1.bf16.msra.mxu0 %v9797_v17  ;;  %7932 = vmatprep.subr.bf16.mxu1 %v9802_v37  ;;  %v9886_v17 = vld [vmem:[%s11109_s6 + $0x774] ss:$8 sps:$4 sm:$0xff]  }
 0x2c0   : > { %8260 = vmatprep.subr.bf16.mxu0 %v9805_v30  ;;  %v9889_v37 = vld [vmem:[%s11109_s6 + $0xf74] ss:$8 sps:$4 sm:$0xff]   ;;  %v9884_v30 = vld [vmem:[%s11109_s6 + $0x770] ss:$8 sps:$4 sm:$0xff]  }
 0x2c2   : > { %7933 = vmatpush1.bf16.msra.mxu1 %v9800_v40  ;;  %v9887_v40 = vld [vmem:[%s11109_s6 + $0xf70] ss:$8 sps:$4 sm:$0xff]  }
 0x2c3   : > { %8261 = vmatpush1.bf16.msra.mxu0 %v9803_v41  ;;  %7934 = vmatprep.subr.bf16.mxu1 %v9808_v43  ;;  %v9892_v41 = vld [vmem:[%s11109_s6 + $0x784] ss:$8 sps:$4 sm:$0xff]  }
 0x2c4   : > { %8262 = vmatprep.subr.bf16.mxu0 %v9811_v44  ;;  %v9895_v43 = vld [vmem:[%s11109_s6 + $0xf84] ss:$8 sps:$4 sm:$0xff]   ;;  %v9890_v44 = vld [vmem:[%s11109_s6 + $0x780] ss:$8 sps:$4 sm:$0xff]  }
 0x2c6   : > { %7935 = vmatpush1.bf16.msra.mxu1 %v9806_v47  ;;  %v9893_v47 = vld [vmem:[%s11109_s6 + $0xf80] ss:$8 sps:$4 sm:$0xff]  }
 0x2c7   : > { %8263 = vmatpush1.bf16.msra.mxu0 %v9809_v29  ;;  %7936 = vmatprep.subr.bf16.mxu1 %v9814_v34  ;;  %v9898_v29 = vld [vmem:[%s11109_s6 + $0x794] ss:$8 sps:$4 sm:$0xff]  }
 0x2c8   : > { %8264 = vmatprep.subr.bf16.mxu0 %v9817_v48  ;;  %v9901_v34 = vld [vmem:[%s11109_s6 + $0xf94] ss:$8 sps:$4 sm:$0xff]   ;;  %v9896_v48 = vld [vmem:[%s11109_s6 + $0x790] ss:$8 sps:$4 sm:$0xff]  }
 0x2ca   : > { %7937 = vmatpush1.bf16.msra.mxu1 %v9812_v50  ;;  %v9899_v50 = vld [vmem:[%s11109_s6 + $0xf90] ss:$8 sps:$4 sm:$0xff]  }
 0x2cb   : > { %8265 = vmatpush1.bf16.msra.mxu0 %v9815_v51  ;;  %7938 = vmatprep.subr.bf16.mxu1 %v9820_v52  ;;  %v9904_v51 = vld [vmem:[%s11109_s6 + $0x7a4] ss:$8 sps:$4 sm:$0xff]  }
 0x2cc   : > { %8266 = vmatprep.subr.bf16.mxu0 %v9823_v53  ;;  %v9907_v52 = vld [vmem:[%s11109_s6 + $0xfa4] ss:$8 sps:$4 sm:$0xff]   ;;  %v9902_v53 = vld [vmem:[%s11109_s6 + $0x7a0] ss:$8 sps:$4 sm:$0xff]  }
 0x2ce   : > { %7939 = vmatpush1.bf16.msra.mxu1 %v9818_v54  ;;  %v9905_v54 = vld [vmem:[%s11109_s6 + $0xfa0] ss:$8 sps:$4 sm:$0xff]  }
 0x2cf   : > { %8267 = vmatpush1.bf16.msra.mxu0 %v9821_v55  ;;  %7940 = vmatprep.subr.bf16.mxu1 %v9826_v38  ;;  %v9910_v55 = vld [vmem:[%s11109_s6 + $0x7b4] ss:$8 sps:$4 sm:$0xff]  }
 0x2d0   : > { %8268 = vmatprep.subr.bf16.mxu0 %v9829_v39  ;;  %v9913_v38 = vld [vmem:[%s11109_s6 + $0xfb4] ss:$8 sps:$4 sm:$0xff]   ;;  %v9908_v39 = vld [vmem:[%s11109_s6 + $0x7b0] ss:$8 sps:$4 sm:$0xff]  }
 0x2d2   : > { %7941 = vmatpush1.bf16.msra.mxu1 %v9824_v58  ;;  %v9911_v58 = vld [vmem:[%s11109_s6 + $0xfb0] ss:$8 sps:$4 sm:$0xff]  }
 0x2d3   : > { %8269 = vmatpush1.bf16.msra.mxu0 %v9827_v59  ;;  %7942 = vmatprep.subr.bf16.mxu1 %v9832_v60  ;;  %v9916_v59 = vld [vmem:[%s11109_s6 + $0x7c4] ss:$8 sps:$4 sm:$0xff]  }
 0x2d4   : > { %8270 = vmatprep.subr.bf16.mxu0 %v9835_v61  ;;  %v9919_v60 = vld [vmem:[%s11109_s6 + $0xfc4] ss:$8 sps:$4 sm:$0xff]   ;;  %v9914_v61 = vld [vmem:[%s11109_s6 + $0x7c0] ss:$8 sps:$4 sm:$0xff]  }
 0x2d6   : > { %7943 = vmatpush1.bf16.msra.mxu1 %v9830_v45  ;;  %v9917_v45 = vld [vmem:[%s11109_s6 + $0xfc0] ss:$8 sps:$4 sm:$0xff]  }
 0x2d7   : > { %8271 = vmatpush1.bf16.msra.mxu0 %v9833_v46  ;;  %7944 = vmatprep.subr.bf16.mxu1 %v9838_v0  ;;  %v9922_v46 = vld [vmem:[%s11109_s6 + $0x7d4] ss:$8 sps:$4 sm:$0xff]  }
 0x2d8   : > { %8272 = vmatprep.subr.bf16.mxu0 %v9841_v1  ;;  %v9925_v0 = vld [vmem:[%s11109_s6 + $0xfd4] ss:$8 sps:$4 sm:$0xff]   ;;  %v9920_v1 = vld [vmem:[%s11109_s6 + $0x7d0] ss:$8 sps:$4 sm:$0xff]  }
 0x2da   : > { %7945 = vmatpush1.bf16.msra.mxu1 %v9836_v4  ;;  %v9931_v4 = vld [vmem:[%s11109_s6 + $0xfe4] ss:$8 sps:$4 sm:$0xff]  }
 0x2db   : > { %8273 = vmatpush1.bf16.msra.mxu0 %v9839_v5  ;;  %7955 = vmatprep.subr.bf16.mxu1 %v9844_v6  ;;  %v9926_v5 = vld [vmem:[%s11109_s6 + $0x7e0] ss:$8 sps:$4 sm:$0xff]  }
 0x2dc   : > { %8283 = vmatprep.subr.bf16.mxu0 %v9847_v7  ;;  %v9929_v6 = vld [vmem:[%s11109_s6 + $0xfe0] ss:$8 sps:$4 sm:$0xff]   ;;  %v9934_v7 = vld [vmem:[%s11109_s6 + $0x7f4] ss:$8 sps:$4 sm:$0xff]  }
 0x2dd   : > { %7947 = vmatmul.mubr.bf16.vlgmr.msra.gmra.mrb[0].mxu1 %v11606_v62  ;;  %v9854_v62 = vld [vmem:[%s11109_s6 + $0x720] ss:$8 sps:$4 sm:$0xff]  }
 0x2de   : > { %8275 = vmatmul.mubr.bf16.vlgmr.msra.gmra.mrb[0].mxu0 %v11610_v63  ;;  %7956 = vmatpush1.bf16.msra.mxu1 %v9842_v56  ;;  %v9857_v63 = vld [vmem:[%s11109_s6 + $0xf20] ss:$8 sps:$4 sm:$0xff]   ;;  %v9937_v56 = vld [vmem:[%s11109_s6 + $0xff4] ss:$8 sps:$4 sm:$0xff]  }
 0x2df   : > { %8284 = vmatpush1.bf16.msra.mxu0 %v9845_v57  ;;  %7957 = vmatprep.subr.bf16.mxu1 %v9850_v8  ;;  %v9932_v57 = vld [vmem:[%s11109_s6 + $0x7f0] ss:$8 sps:$4 sm:$0xff]  }
 0x2e0   : > { %8285 = vmatprep.subr.bf16.mxu0 %v9853_v9  ;;  %7987 = vmatprep.mubr.bf16.mxu1 %v5007_v10  ;;  %v9935_v8 = vld [vmem:[%s11109_s6 + $0xff0] ss:$8 sps:$4 sm:$0xff]   ;;  %v4924_v9 = vsub.s32 0, %v11154_v42  ;;  %v4920_v10 = vld [vmem:[%s4388_s22] sm:$0x3] }
 0x2e1   : > { %8315 = vmatprep.mubr.bf16.mxu0 %v5075_v11  ;;  %v4928_v11 = vsub.s32 1, %v11154_v42 }
 0x2e2   : > { %7958 = vmatpush1.bf16.msra.mxu1 %v9848_v49  ;;  %v4925_v49 = vrot.slane %v4920_v10, %v4924_v9 }
 0x2e3   : > { %8286 = vmatpush1.bf16.msra.mxu0 %v9851_v12  ;;  %7959 = vmatprep.subr.bf16.mxu1 %v9856_v13  ;;  %v4929_v12 = vrot.slane %v4920_v10, %v4928_v11 }
 0x2e4   : > { %8287 = vmatprep.subr.bf16.mxu0 %v9859_v14 }
 0x2e6   : > { %7960 = vmatpush1.bf16.msra.mxu1 %v9854_v62 }
 0x2e7   : > { %8288 = vmatpush1.bf16.msra.mxu0 %v9857_v63  ;;  %7961 = vmatprep.subr.bf16.mxu1 %v9862_v15 }
 0x2e8   : > { %8289 = vmatprep.subr.bf16.mxu0 %v9865_v18 }
 0x2ea   : > { %7962 = vmatpush1.bf16.msra.mxu1 %v9860_v19 }
 0x2eb   : > { %8290 = vmatpush1.bf16.msra.mxu0 %v9863_v20  ;;  %7963 = vmatprep.subr.bf16.mxu1 %v9868_v21 }
 0x2ec   : > { %8291 = vmatprep.subr.bf16.mxu0 %v9871_v22 }
 0x2ee   : > { %7964 = vmatpush1.bf16.msra.mxu1 %v9866_v23 }
 0x2ef   : > { %8292 = vmatpush1.bf16.msra.mxu0 %v9869_v24  ;;  %7965 = vmatprep.subr.bf16.mxu1 %v9874_v25 }
 0x2f0   : > { %8293 = vmatprep.subr.bf16.mxu0 %v9877_v26 }
 0x2f2   : > { %7966 = vmatpush1.bf16.msra.mxu1 %v9872_v28 }
 0x2f3   : > { %8294 = vmatpush1.bf16.msra.mxu0 %v9875_v31  ;;  %7967 = vmatprep.subr.bf16.mxu1 %v9880_v32 }
 0x2f4   : > { %8295 = vmatprep.subr.bf16.mxu0 %v9883_v33 }
 0x2f6   : > { %7968 = vmatpush1.bf16.msra.mxu1 %v9878_v35 }
 0x2f7   : > { %8296 = vmatpush1.bf16.msra.mxu0 %v9881_v16  ;;  %7969 = vmatprep.subr.bf16.mxu1 %v9886_v17 }
 0x2f8   : > { %8297 = vmatprep.subr.bf16.mxu0 %v9889_v37 }
 0x2fa   : > { %7970 = vmatpush1.bf16.msra.mxu1 %v9884_v30 }
 0x2fb   : > { %8298 = vmatpush1.bf16.msra.mxu0 %v9887_v40  ;;  %7971 = vmatprep.subr.bf16.mxu1 %v9892_v41 }
 0x2fc   : > { %8299 = vmatprep.subr.bf16.mxu0 %v9895_v43 }
 0x2fe   : > { %7972 = vmatpush1.bf16.msra.mxu1 %v9890_v44 }
 0x2ff   : > { %8300 = vmatpush1.bf16.msra.mxu0 %v9893_v47  ;;  %7973 = vmatprep.subr.bf16.mxu1 %v9898_v29 }
 0x300   : > { %8301 = vmatprep.subr.bf16.mxu0 %v9901_v34 }
 0x302   : > { %7974 = vmatpush1.bf16.msra.mxu1 %v9896_v48 }
 0x303   : > { %8302 = vmatpush1.bf16.msra.mxu0 %v9899_v50  ;;  %7975 = vmatprep.subr.bf16.mxu1 %v9904_v51 }
 0x304   : > { %8303 = vmatprep.subr.bf16.mxu0 %v9907_v52 }
 0x306   : > { %7976 = vmatpush1.bf16.msra.mxu1 %v9902_v53 }
 0x307   : > { %8304 = vmatpush1.bf16.msra.mxu0 %v9905_v54  ;;  %7977 = vmatprep.subr.bf16.mxu1 %v9910_v55 }
 0x308   : > { %8305 = vmatprep.subr.bf16.mxu0 %v9913_v38 }
 0x30a   : > { %7978 = vmatpush1.bf16.msra.mxu1 %v9908_v39 }
 0x30b   : > { %8306 = vmatpush1.bf16.msra.mxu0 %v9911_v58  ;;  %7979 = vmatprep.subr.bf16.mxu1 %v9916_v59 }
 0x30c   : > { %8307 = vmatprep.subr.bf16.mxu0 %v9919_v60 }
 0x30e   : > { %7980 = vmatpush1.bf16.msra.mxu1 %v9914_v61 }
 0x30f   : > { %8308 = vmatpush1.bf16.msra.mxu0 %v9917_v45  ;;  %7981 = vmatprep.subr.bf16.mxu1 %v9922_v46 }
 0x310   : > { %8309 = vmatprep.subr.bf16.mxu0 %v9925_v0 }
 0x312   : > { %7982 = vmatpush1.bf16.msra.mxu1 %v9920_v1 }
 0x313   : > { %8310 = vmatpush1.bf16.msra.mxu0 %v9923_v2  ;;  %7983 = vmatprep.subr.bf16.mxu1 %v9928_v3 }
 0x314   : > { %8311 = vmatprep.subr.bf16.mxu0 %v9931_v4 }
 0x316   : > { %7984 = vmatpush1.bf16.msra.mxu1 %v9926_v5 }
 0x317   : > { %8312 = vmatpush1.bf16.msra.mxu0 %v9929_v6  ;;  %7985 = vmatprep.subr.bf16.mxu1 %v9934_v7 }
 0x318   : > { %8313 = vmatprep.subr.bf16.mxu0 %v9937_v56 }
 0x31a   : > { %7986 = vmatpush1.bf16.msra.mxu1 %v9932_v57 }
 0x31b   : > { %8314 = vmatpush1.bf16.msra.mxu0 %v9935_v8 }
 0x31d   : > { %7988 = vmatmul.mubr.bf16.vlgmr.msra.gmra.mrb[0].mxu1 %v11687_v36 }
 0x31e   : > { %8316 = vmatmul.mubr.bf16.vlgmr.msra.gmra.mrb[0].mxu0 %v11690_v27 }
 0x3f0   : > { %v7989_v13 = vpop.f32.mrb[0].mxu1 }
 0x3f1   : > { %v8317_v36 = vpop.f32.mrb[0].mxu0  ;;  %v9047_v14 = vadd.f32 %v7989_v13, %v4925_v49  ;;  %v7991_v27 = vpop.f32.mrb[1].mxu1 }
 0x3f2   : > { %v8319_v62 = vpop.f32.mrb[1].mxu0  ;;  %v9049_v63 = vadd.f32 %v7991_v27, %v4929_v12  ;;  %v7993_v15 = vpop.f32.mrb[2].mxu1 }
 0x3f3   : > { %v8321_v18 = vpop.f32.mrb[2].mxu0  ;;  %v9048_v19 = vadd.f32 %v9047_v14, %v8317_v36  ;;  %v7994_v20 = vpop.f32.mrb[3].mxu1 }
 0x3f4   : > { %v8322_v21 = vpop.f32.mrb[3].mxu0  ;;  %v9050_v22 = vadd.f32 %v9049_v63, %v8319_v62 }
 0x3f5   : > { %v8325_v23 = vsel %vm8324_vm0, %v9048_v19, 0.0  ;;  %v8342_v24 = vmul.f32 %v9048_v19, %v9048_v19 }
 0x3f6   : > { %v8326_v25 = vrot.slane %v8325_v23, 4  ;;  %v8332_v42 = vsel %vm8324_vm0, %v9050_v22, 0.0  ;;  %v8343_v26 = vmul.f32 %v9050_v22, %v9050_v22 }
 0x3f7   : > { %v8344_v28 = vsel %vm8324_vm0, %v8342_v24, 0.0  ;;  %v8333_v31 = vrot.slane %v8332_v42, 4 }
 0x3f8   : > { %v8327_v32 = vadd.f32 %v8326_v25, %v8325_v23  ;;  %v8345_v33 = vrot.slane %v8344_v28, 4  ;;  %v8351_v35 = vsel %vm8324_vm0, %v8343_v26, 0.0 }
 0x3f9   : > { %v8334_v16 = vadd.f32 %v8333_v31, %v8332_v42  ;;  %v8352_v17 = vrot.slane %v8351_v35, 4 }
 0x3fa   : > { %v8328_v37 = vrot.slane %v8327_v32, 2  ;;  %v8346_v30 = vadd.f32 %v8345_v33, %v8344_v28 }
 0x3fb   : > { %v8335_v40 = vrot.slane %v8334_v16, 2  ;;  %v8353_v41 = vadd.f32 %v8352_v17, %v8351_v35 }
 0x3fc   : > { %v8329_v43 = vadd.f32 %v8328_v37, %v8327_v32  ;;  %v8347_v44 = vrot.slane %v8346_v30, 2 }
 0x3fd   : > { %v8336_v47 = vadd.f32 %v8335_v40, %v8334_v16  ;;  %v8354_v29 = vrot.slane %v8353_v41, 2 }
 0x3fe   : > { %v8330_v34 = vrot.slane %v8329_v43, 1  ;;  %v8348_v48 = vadd.f32 %v8347_v44, %v8346_v30 }
 0x3ff   : > { %v8337_v50 = vrot.slane %v8336_v47, 1  ;;  %v8355_v51 = vadd.f32 %v8354_v29, %v8353_v41 }
 0x400   : > { %v8331_v52 = vadd.f32 %v8330_v34, %v8329_v43  ;;  %v8349_v53 = vrot.slane %v8348_v48, 1 }
 0x401   : > { %v8338_v54 = vadd.f32 %v8337_v50, %v8336_v47  ;;  %v8356_v55 = vrot.slane %v8355_v51, 1 }
 0x402   : > { %v8340_v38 = vmul.f32 0.25, %v8331_v52  ;;  %v8350_v39 = vadd.f32 %v8349_v53, %v8348_v48 }
 0x403   : > { %v8341_v58 = vmul.f32 0.25, %v8338_v54  ;;  %v8357_v59 = vadd.f32 %v8356_v55, %v8355_v51 }
 0x404   : > { %v8358_v60 = vmul.f32 0.25, %v8350_v39  ;;  %v8360_v61 = vmul.f32 %v8340_v38, %v8340_v38  ;;  %v8366_v6 = vsub.f32 %v9048_v19, %v8340_v38 }
 0x405   : > { %v8359_v45 = vmul.f32 0.25, %v8357_v59  ;;  %v8361_v46 = vmul.f32 %v8341_v58, %v8341_v58  ;;  %v8367_v56 = vsub.f32 %v9050_v22, %v8341_v58 }
 0x406   : > { %v8362_v0 = vsub.f32 %v8358_v60, %v8360_v61 }
 0x407   : > { %v8363_v1 = vsub.f32 %v8359_v45, %v8361_v46 }
 0x408   : > { %v8364_v2 = vmax.f32 %v8362_v0, 0.0 }
 0x409   : > { %v8365_v3 = vmax.f32 %v8363_v1, 0.0 }
 0x40a   : > { %v8368_v4 = vadd.f32 1e-05, %v8364_v2 }
 0x40b   : > { %v8369_v5 = vadd.f32 1e-05, %v8365_v3 }
 0x40c   : > { %9940 = vrsqrt.f32 %v8368_v4 }
 0x40d   : > { %9942 = vrsqrt.f32 %v8369_v5 }
 0x416   : > { %v9941_v7 = vpop.eup %9940 }
 0x417   : > { %v9943_v57 = vpop.eup %9942  ;;  %v8372_v8 = vmul.f32 %v9941_v7, %v8366_v6 }
 0x418   : > { %v8373_v9 = vmul.f32 %v9943_v57, %v8367_v56 }
 0x419   : > { %vm8374_vm1 = vcmp.ge.f32.partialorder %v8372_v8, 0.0  ;;  %v8376_v10 = vmul.f32 0.2, %v8372_v8 }
 0x41a   : > { %vm8375_vm2 = vcmp.ge.f32.partialorder %v8373_v9, 0.0  ;;  %v8377_v11 = vmul.f32 0.2, %v8373_v9 }
 0x41b   : > { %v8378_v49 = vsel %vm8374_vm1, %v8372_v8, %v8376_v10 }
 0x41c   : > { %v8379_v12 = vsel %vm8375_vm2, %v8373_v9, %v8377_v11 }
 0x41d   : > { %v9041_v13 = vpack.c.bf16 %v8379_v12, %v8378_v49 }
 0x41f   : > { %9042 = vst.sshfl [vmem:[%s4398_s28] sm:$0x33 pattern:$0x76325410] %v9041_v13 }
 0x420 PF: > { %s13_s18 = sadd.s32 1, %s9998_s18   ;;  %s11805_s12 = smov %s9978_s13 }
 0x421   : > { %p10_p12 = scmp.ge.s32.totalorder %s13_s18, 6   ;;  %s11806_s13 = smov %s10070_s23 }
 0x422   : > { %s11807_s14 = smov %s9990_s16  ;;  %s11808_s15 = smov %s9994_s17 }
 0x423   : > { %s11809_s16 = smov %s11812_s19  ;;  %s11810_s17 = smov %s11816_s20 }
 0x424   :  { %12 = sbr.rel (!%p10_p12) target bundleno = 4 (0x4), region = 131 }

// kernel: image_discriminator.9
= control target key start
LH: loop header
LB: loop body
LE: loop exit
PB: predicated region body
PF: predicated region fallthrough
CT: control target
= control target key end

     0   :  { %vm5656_vm0 = vcmask 7168   ;;  %s9201_s1 = inlined_call_operand.vmem [shape: bf16[8192,1], index: 1, kind: input, shape index: {}]   ;;  %s9202_s0 = inlined_call_operand.vmem [shape: bf16[8,8192], index: 0, kind: input, shape index: {}]   ;;  %s9203_s2 = inlined_call_operand.<no memory space> [shape: f32[1,1], index: 2, kind: input, shape index: {}]   ;;  %s9204_s3 = inlined_call_operand.vmem [shape: f32[8,1], index: 3, kind: output, shape index: {}]  }
   0x1   :  { %v6943_v0 = vld [vmem:[%s9201_s1 + $0x40] sm:$0xff]   ;;  %v6947_v4 = vld [vmem:[%s9201_s1 + $0x48] sm:$0xff]   ;;  %v6951_v8 = vld [vmem:[%s9201_s1 + $0x50] sm:$0xff]  }
   0x2   :  { %v6944_v1 = vld [vmem:[%s9201_s1 + $0xc0] sm:$0xff]   ;;  %6239 = vmatprep.subr.bf16.mxu0 %v6943_v0  ;;  %v6948_v5 = vld [vmem:[%s9201_s1 + $0xc8] sm:$0xff]   ;;  %v6952_v9 = vld [vmem:[%s9201_s1 + $0xd0] sm:$0xff]  }
   0x3   :  { %v6945_v2 = vld [vmem:[%s9201_s1] sm:$0xff]   ;;  %6261 = vmatprep.subr.bf16.mxu1 %v6944_v1  ;;  %v6949_v6 = vld [vmem:[%s9201_s1 + $0x8] sm:$0xff]   ;;  %v6953_v10 = vld [vmem:[%s9201_s1 + $0x10] sm:$0xff]  }
   0x4   :  { %v6946_v3 = vld [vmem:[%s9201_s1 + $0x80] sm:$0xff]   ;;  %6240 = vmatpush3.bf16.msra.mxu0 %v6945_v2  ;;  %v6950_v7 = vld [vmem:[%s9201_s1 + $0x88] sm:$0xff]   ;;  %v6954_v11 = vld [vmem:[%s9201_s1 + $0x90] sm:$0xff]  }
   0x5   :  { %6262 = vmatpush3.bf16.msra.mxu1 %v6946_v3  ;;  %6241 = vmatprep.subr.bf16.mxu0 %v6947_v4  ;;  %v6955_v12 = vld [vmem:[%s9201_s1 + $0x58] sm:$0xff]   ;;  %v6959_v16 = vld [vmem:[%s9201_s1 + $0x60] sm:$0xff]   ;;  %v6963_v20 = vld [vmem:[%s9201_s1 + $0x68] sm:$0xff]  }
   0x6   :  { %6263 = vmatprep.subr.bf16.mxu1 %v6948_v5  ;;  %v6956_v13 = vld [vmem:[%s9201_s1 + $0xd8] sm:$0xff]   ;;  %v6960_v17 = vld [vmem:[%s9201_s1 + $0xe0] sm:$0xff]   ;;  %v6964_v21 = vld [vmem:[%s9201_s1 + $0xe8] sm:$0xff]  }
   0x7   :  { %v6957_v14 = vld [vmem:[%s9201_s1 + $0x18] sm:$0xff]   ;;  %v6961_v18 = vld [vmem:[%s9201_s1 + $0x20] sm:$0xff]   ;;  %v6965_v22 = vld [vmem:[%s9201_s1 + $0x28] sm:$0xff]  }
   0x8   :  { %6242 = vmatpush3.bf16.msra.mxu0 %v6949_v6  ;;  %v6958_v15 = vld [vmem:[%s9201_s1 + $0x98] sm:$0xff]   ;;  %v6962_v19 = vld [vmem:[%s9201_s1 + $0xa0] sm:$0xff]   ;;  %v6966_v23 = vld [vmem:[%s9201_s1 + $0xa8] sm:$0xff]  }
   0x9   :  { %6264 = vmatpush3.bf16.msra.mxu1 %v6950_v7  ;;  %6243 = vmatprep.subr.bf16.mxu0 %v6951_v8  ;;  %v6967_v24 = vld [vmem:[%s9201_s1 + $0x70] sm:$0xff]   ;;  %v6971_v28 = vld [vmem:[%s9201_s1 + $0x78] sm:$0xff]   ;;  %v17_v32 = vld [vmem:[%s9202_s0] sm:$0xff] }
   0xa   :  { %6265 = vmatprep.subr.bf16.mxu1 %v6952_v9  ;;  %v6968_v25 = vld [vmem:[%s9201_s1 + $0xf0] sm:$0xff]   ;;  %v6972_v29 = vld [vmem:[%s9201_s1 + $0xf8] sm:$0xff]   ;;  %v18_v33 = vld [vmem:[%s9202_s0 + $0x8] sm:$0xff]  ;;  %v5663_v34 = vcombine.low %v17_v32, %v17_v32  ;;  %v5664_v35 = vcombine.high %v17_v32, %v17_v32 }
   0xb   :  { %v6969_v26 = vld [vmem:[%s9201_s1 + $0x30] sm:$0xff]   ;;  %v6973_v30 = vld [vmem:[%s9201_s1 + $0x38] sm:$0xff]   ;;  %v5665_v36 = vcombine.low %v18_v33, %v18_v33  ;;  %v5666_v37 = vcombine.high %v18_v33, %v18_v33  ;;  %v6979_v38 = vld [vmem:[%s9201_s1 + $0x140] sm:$0xff]  }
   0xc   :  { %6244 = vmatpush3.bf16.msra.mxu0 %v6953_v10  ;;  %v6970_v27 = vld [vmem:[%s9201_s1 + $0xb0] sm:$0xff]   ;;  %v6974_v31 = vld [vmem:[%s9201_s1 + $0xb8] sm:$0xff]   ;;  %v6980_v39 = vld [vmem:[%s9201_s1 + $0x1c0] sm:$0xff]   ;;  %4408 = vmatprep.mubr.bf16.mxu0 %v5664_v35 }
   0xd   :  { %6266 = vmatpush3.bf16.msra.mxu1 %v6954_v11  ;;  %6245 = vmatprep.subr.bf16.mxu0 %v6955_v12  ;;  %v6981_v40 = vld [vmem:[%s9201_s1 + $0x100] sm:$0xff]   ;;  %v6983_v42 = vld [vmem:[%s9201_s1 + $0x148] sm:$0xff]   ;;  %v6987_v46 = vld [vmem:[%s9201_s1 + $0x150] sm:$0xff]  }
   0xe   :  { %6267 = vmatprep.subr.bf16.mxu1 %v6956_v13  ;;  %4448 = vmatprep.mubr.bf16.mxu1 %v5666_v37  ;;  %v6982_v41 = vld [vmem:[%s9201_s1 + $0x180] sm:$0xff]   ;;  %v6984_v43 = vld [vmem:[%s9201_s1 + $0x1c8] sm:$0xff]   ;;  %v6988_v47 = vld [vmem:[%s9201_s1 + $0x1d0] sm:$0xff]  }
   0xf   :  { %v6985_v44 = vld [vmem:[%s9201_s1 + $0x108] sm:$0xff]   ;;  %v6989_v48 = vld [vmem:[%s9201_s1 + $0x110] sm:$0xff]   ;;  %v6991_v50 = vld [vmem:[%s9201_s1 + $0x158] sm:$0xff]  }
  0x10   :  { %6246 = vmatpush3.bf16.msra.mxu0 %v6957_v14  ;;  %v6986_v45 = vld [vmem:[%s9201_s1 + $0x188] sm:$0xff]   ;;  %v6990_v49 = vld [vmem:[%s9201_s1 + $0x190] sm:$0xff]   ;;  %v6992_v51 = vld [vmem:[%s9201_s1 + $0x1d8] sm:$0xff]  }
  0x11   :  { %6268 = vmatpush3.bf16.msra.mxu1 %v6958_v15  ;;  %6247 = vmatprep.subr.bf16.mxu0 %v6959_v16  ;;  %v6993_v52 = vld [vmem:[%s9201_s1 + $0x118] sm:$0xff]   ;;  %v6995_v54 = vld [vmem:[%s9201_s1 + $0x160] sm:$0xff]   ;;  %v6999_v58 = vld [vmem:[%s9201_s1 + $0x168] sm:$0xff]  }
  0x12   :  { %6269 = vmatprep.subr.bf16.mxu1 %v6960_v17  ;;  %v6994_v53 = vld [vmem:[%s9201_s1 + $0x198] sm:$0xff]   ;;  %v6996_v55 = vld [vmem:[%s9201_s1 + $0x1e0] sm:$0xff]   ;;  %v7000_v59 = vld [vmem:[%s9201_s1 + $0x1e8] sm:$0xff]  }
  0x13   :  { %v6997_v56 = vld [vmem:[%s9201_s1 + $0x120] sm:$0xff]   ;;  %v7001_v60 = vld [vmem:[%s9201_s1 + $0x128] sm:$0xff]   ;;  %v7003_v62 = vld [vmem:[%s9201_s1 + $0x170] sm:$0xff]  }
  0x14   :  { %6248 = vmatpush3.bf16.msra.mxu0 %v6961_v18  ;;  %v6998_v57 = vld [vmem:[%s9201_s1 + $0x1a0] sm:$0xff]   ;;  %v7002_v61 = vld [vmem:[%s9201_s1 + $0x1a8] sm:$0xff]   ;;  %v7004_v63 = vld [vmem:[%s9201_s1 + $0x1f0] sm:$0xff]  }
  0x15   :  { %6270 = vmatpush3.bf16.msra.mxu1 %v6962_v19  ;;  %6249 = vmatprep.subr.bf16.mxu0 %v6963_v20  ;;  %v7005_v0 = vld [vmem:[%s9201_s1 + $0x130] sm:$0xff]   ;;  %v7007_v2 = vld [vmem:[%s9201_s1 + $0x178] sm:$0xff]   ;;  %v7015_v12 = vld [vmem:[%s9201_s1 + $0x240] sm:$0xff]  }
  0x16   :  { %6271 = vmatprep.subr.bf16.mxu1 %v6964_v21  ;;  %v7006_v1 = vld [vmem:[%s9201_s1 + $0x1b0] sm:$0xff]   ;;  %v7008_v3 = vld [vmem:[%s9201_s1 + $0x1f8] sm:$0xff]   ;;  %v7016_v13 = vld [vmem:[%s9201_s1 + $0x2c0] sm:$0xff]  }
  0x17   :  { %v7009_v4 = vld [vmem:[%s9201_s1 + $0x138] sm:$0xff]   ;;  %v19_v6 = vld [vmem:[%s9202_s0 + $0x10] sm:$0xff]  ;;  %v7017_v14 = vld [vmem:[%s9201_s1 + $0x200] sm:$0xff]  }
  0x18   :  { %6250 = vmatpush3.bf16.msra.mxu0 %v6965_v22  ;;  %v7010_v5 = vld [vmem:[%s9201_s1 + $0x1b8] sm:$0xff]   ;;  %v5667_v7 = vcombine.low %v19_v6, %v19_v6  ;;  %v5668_v8 = vcombine.high %v19_v6, %v19_v6  ;;  %v7018_v15 = vld [vmem:[%s9201_s1 + $0x280] sm:$0xff]   ;;  %v7019_v16 = vld [vmem:[%s9201_s1 + $0x248] sm:$0xff]  }
  0x19   :  { %6272 = vmatpush3.bf16.msra.mxu1 %v6966_v23  ;;  %6251 = vmatprep.subr.bf16.mxu0 %v6967_v24  ;;  %v20_v9 = vld [vmem:[%s9202_s0 + $0x18] sm:$0xff]  ;;  %v7020_v17 = vld [vmem:[%s9201_s1 + $0x2c8] sm:$0xff]   ;;  %v7023_v20 = vld [vmem:[%s9201_s1 + $0x250] sm:$0xff]  }
  0x1a   :  { %6273 = vmatprep.subr.bf16.mxu1 %v6968_v25  ;;  %v5669_v10 = vcombine.low %v20_v9, %v20_v9  ;;  %v5670_v11 = vcombine.high %v20_v9, %v20_v9  ;;  %v7021_v18 = vld [vmem:[%s9201_s1 + $0x208] sm:$0xff]   ;;  %v7024_v21 = vld [vmem:[%s9201_s1 + $0x2d0] sm:$0xff]   ;;  %v7027_v24 = vld [vmem:[%s9201_s1 + $0x258] sm:$0xff]  }
  0x1b   :  { %v7022_v19 = vld [vmem:[%s9201_s1 + $0x288] sm:$0xff]   ;;  %v7025_v22 = vld [vmem:[%s9201_s1 + $0x210] sm:$0xff]   ;;  %v7028_v25 = vld [vmem:[%s9201_s1 + $0x2d8] sm:$0xff]  }
  0x1c   :  { %6252 = vmatpush3.bf16.msra.mxu0 %v6969_v26  ;;  %v7026_v23 = vld [vmem:[%s9201_s1 + $0x290] sm:$0xff]   ;;  %v7029_v26 = vld [vmem:[%s9201_s1 + $0x218] sm:$0xff]   ;;  %v7035_v32 = vld [vmem:[%s9201_s1 + $0x268] sm:$0xff]  }
  0x1d   :  { %6274 = vmatpush3.bf16.msra.mxu1 %v6970_v27  ;;  %6253 = vmatprep.subr.bf16.mxu0 %v6971_v28  ;;  %v7030_v27 = vld [vmem:[%s9201_s1 + $0x298] sm:$0xff]   ;;  %v7031_v28 = vld [vmem:[%s9201_s1 + $0x260] sm:$0xff]   ;;  %v7036_v33 = vld [vmem:[%s9201_s1 + $0x2e8] sm:$0xff]  }
  0x1e   :  { %6275 = vmatprep.subr.bf16.mxu1 %v6972_v29  ;;  %v7032_v29 = vld [vmem:[%s9201_s1 + $0x2e0] sm:$0xff]   ;;  %v7038_v35 = vld [vmem:[%s9201_s1 + $0x2a8] sm:$0xff]   ;;  %v7040_v37 = vld [vmem:[%s9201_s1 + $0x2f0] sm:$0xff]  }
  0x1f   :  { %v7071_v6 = vld [vmem:[%s9201_s1 + $0x368] sm:$0xff]  }
  0x20   :  { %6254 = vmatpush3.bf16.msra.mxu0 %v6973_v30  ;;  %v7033_v30 = vld [vmem:[%s9201_s1 + $0x220] sm:$0xff]   ;;  %v7073_v9 = vld [vmem:[%s9201_s1 + $0x328] sm:$0xff]  }
  0x21   :  { %6276 = vmatpush3.bf16.msra.mxu1 %v6974_v31  ;;  %6283 = vmatprep.subr.bf16.mxu0 %v6979_v38  ;;  %v7034_v31 = vld [vmem:[%s9201_s1 + $0x2a0] sm:$0xff]   ;;  %v7041_v38 = vld [vmem:[%s9201_s1 + $0x230] sm:$0xff]  }
  0x22   :  { %6305 = vmatprep.subr.bf16.mxu1 %v6980_v39  ;;  %v7042_v39 = vld [vmem:[%s9201_s1 + $0x2b0] sm:$0xff]  }
  0x23   :  { %4409 = vmatmul.mubr.bf16.vlgmr.msra.gmra.mrb[0].mxu0 %v5663_v34  ;;  %v7037_v34 = vld [vmem:[%s9201_s1 + $0x228] sm:$0xff]  }
  0x24   :  { %4449 = vmatmul.mubr.bf16.vlgmr.msra.gmra.mrb[0].mxu1 %v5665_v36  ;;  %6284 = vmatpush3.bf16.msra.mxu0 %v6981_v40  ;;  %v7039_v36 = vld [vmem:[%s9201_s1 + $0x270] sm:$0xff]   ;;  %v7043_v40 = vld [vmem:[%s9201_s1 + $0x278] sm:$0xff]  }
  0x25   :  { %6306 = vmatpush3.bf16.msra.mxu1 %v6982_v41  ;;  %6285 = vmatprep.subr.bf16.mxu0 %v6983_v42  ;;  %v7044_v41 = vld [vmem:[%s9201_s1 + $0x2f8] sm:$0xff]  }
  0x26   :  { %6307 = vmatprep.subr.bf16.mxu1 %v6984_v43  ;;  %4488 = vmatprep.mubr.bf16.mxu0 %v5668_v8  ;;  %v7045_v42 = vld [vmem:[%s9201_s1 + $0x238] sm:$0xff]   ;;  %v8_v8 = vstv %s9203_s2 }
  0x27   :  { %4528 = vmatprep.mubr.bf16.mxu1 %v5670_v11  ;;  %v7046_v43 = vld [vmem:[%s9201_s1 + $0x2b8] sm:$0xff]   ;;  %9 = vst [vmem:[#allocation2] sm:$0x1] %v8_v8  ;;  %v7075_v11 = vld [vmem:[%s9201_s1 + $0x370] sm:$0xff]  }
  0x28   :  { %6286 = vmatpush3.bf16.msra.mxu0 %v6985_v44  ;;  %v21_v44 = vld [vmem:[%s9202_s0 + $0x20] sm:$0xff]  ;;  %v7132_v8 = vld [vmem:[%s9201_s1 + $0x5d0] sm:$0xff]  }
  0x29   :  { %6308 = vmatpush3.bf16.msra.mxu1 %v6986_v45  ;;  %6287 = vmatprep.subr.bf16.mxu0 %v6987_v46  ;;  %v22_v45 = vld [vmem:[%s9202_s0 + $0x28] sm:$0xff]  ;;  %v5671_v46 = vcombine.low %v21_v44, %v21_v44 }
  0x2a   :  { %6309 = vmatprep.subr.bf16.mxu1 %v6988_v47  ;;  %v5672_v47 = vcombine.high %v21_v44, %v21_v44  ;;  %v7106_v44 = vld [vmem:[%s9201_s1 + $0x4a0] sm:$0xff]  }
  0x2c   :  { %6288 = vmatpush3.bf16.msra.mxu0 %v6989_v48  ;;  %v5673_v48 = vcombine.low %v22_v45, %v22_v45 }
  0x2d   :  { %6310 = vmatpush3.bf16.msra.mxu1 %v6990_v49  ;;  %6289 = vmatprep.subr.bf16.mxu0 %v6991_v50  ;;  %v5674_v49 = vcombine.high %v22_v45, %v22_v45  ;;  %v7051_v50 = vld [vmem:[%s9201_s1 + $0x340] sm:$0xff]   ;;  %v7107_v45 = vld [vmem:[%s9201_s1 + $0x468] sm:$0xff]  }
  0x2e   :  { %6311 = vmatprep.subr.bf16.mxu1 %v6992_v51  ;;  %v7052_v51 = vld [vmem:[%s9201_s1 + $0x3c0] sm:$0xff]  }
  0x30   :  { %6290 = vmatpush3.bf16.msra.mxu0 %v6993_v52  ;;  %v7053_v52 = vld [vmem:[%s9201_s1 + $0x300] sm:$0xff]  }
  0x31   :  { %6312 = vmatpush3.bf16.msra.mxu1 %v6994_v53  ;;  %6291 = vmatprep.subr.bf16.mxu0 %v6995_v54  ;;  %v7054_v53 = vld [vmem:[%s9201_s1 + $0x380] sm:$0xff]   ;;  %v7055_v54 = vld [vmem:[%s9201_s1 + $0x348] sm:$0xff]  }
  0x32   :  { %6313 = vmatprep.subr.bf16.mxu1 %v6996_v55  ;;  %v7056_v55 = vld [vmem:[%s9201_s1 + $0x3c8] sm:$0xff]  }
  0x34   :  { %6292 = vmatpush3.bf16.msra.mxu0 %v6997_v56  ;;  %v7057_v56 = vld [vmem:[%s9201_s1 + $0x308] sm:$0xff]  }
  0x35   :  { %6314 = vmatpush3.bf16.msra.mxu1 %v6998_v57  ;;  %6293 = vmatprep.subr.bf16.mxu0 %v6999_v58  ;;  %v7058_v57 = vld [vmem:[%s9201_s1 + $0x388] sm:$0xff]   ;;  %v7059_v58 = vld [vmem:[%s9201_s1 + $0x350] sm:$0xff]  }
  0x36   :  { %6315 = vmatprep.subr.bf16.mxu1 %v7000_v59  ;;  %v7060_v59 = vld [vmem:[%s9201_s1 + $0x3d0] sm:$0xff]  }
  0x38   :  { %6294 = vmatpush3.bf16.msra.mxu0 %v7001_v60  ;;  %v7061_v60 = vld [vmem:[%s9201_s1 + $0x310] sm:$0xff]  }
  0x39   :  { %6316 = vmatpush3.bf16.msra.mxu1 %v7002_v61  ;;  %6295 = vmatprep.subr.bf16.mxu0 %v7003_v62  ;;  %v7062_v61 = vld [vmem:[%s9201_s1 + $0x390] sm:$0xff]   ;;  %v7063_v62 = vld [vmem:[%s9201_s1 + $0x358] sm:$0xff]  }
  0x3a   :  { %6317 = vmatprep.subr.bf16.mxu1 %v7004_v63  ;;  %v7064_v63 = vld [vmem:[%s9201_s1 + $0x3d8] sm:$0xff]  }
  0x3c   :  { %6296 = vmatpush3.bf16.msra.mxu0 %v7005_v0  ;;  %v7065_v0 = vld [vmem:[%s9201_s1 + $0x318] sm:$0xff]  }
  0x3d   :  { %6318 = vmatpush3.bf16.msra.mxu1 %v7006_v1  ;;  %6297 = vmatprep.subr.bf16.mxu0 %v7007_v2  ;;  %v7066_v1 = vld [vmem:[%s9201_s1 + $0x398] sm:$0xff]   ;;  %v7067_v2 = vld [vmem:[%s9201_s1 + $0x360] sm:$0xff]  }
  0x3e   :  { %6319 = vmatprep.subr.bf16.mxu1 %v7008_v3  ;;  %v7068_v3 = vld [vmem:[%s9201_s1 + $0x3e0] sm:$0xff]  }
  0x40   :  { %6298 = vmatpush3.bf16.msra.mxu0 %v7009_v4  ;;  %v7069_v4 = vld [vmem:[%s9201_s1 + $0x320] sm:$0xff]  }
  0x41   :  { %6320 = vmatpush3.bf16.msra.mxu1 %v7010_v5  ;;  %6327 = vmatprep.subr.bf16.mxu0 %v7015_v12  ;;  %v7070_v5 = vld [vmem:[%s9201_s1 + $0x3a0] sm:$0xff]   ;;  %v7076_v12 = vld [vmem:[%s9201_s1 + $0x3f0] sm:$0xff]  }
  0x42   :  { %6349 = vmatprep.subr.bf16.mxu1 %v7016_v13  ;;  %v7077_v13 = vld [vmem:[%s9201_s1 + $0x330] sm:$0xff]  }
  0x43   :  { %4489 = vmatmul.mubr.bf16.vlgmr.msra.gmra.mrb[4].mxu0 %v5667_v7  ;;  %v7072_v7 = vld [vmem:[%s9201_s1 + $0x3e8] sm:$0xff]  }
  0x44   :  { %4529 = vmatmul.mubr.bf16.vlgmr.msra.gmra.mrb[4].mxu1 %v5669_v10  ;;  %6328 = vmatpush3.bf16.msra.mxu0 %v7017_v14  ;;  %v7074_v10 = vld [vmem:[%s9201_s1 + $0x3a8] sm:$0xff]   ;;  %v7078_v14 = vld [vmem:[%s9201_s1 + $0x3b0] sm:$0xff]  }
  0x45   :  { %6350 = vmatpush3.bf16.msra.mxu1 %v7018_v15  ;;  %6329 = vmatprep.subr.bf16.mxu0 %v7019_v16  ;;  %v7079_v15 = vld [vmem:[%s9201_s1 + $0x378] sm:$0xff]  }
  0x46   :  { %6351 = vmatprep.subr.bf16.mxu1 %v7020_v17  ;;  %4568 = vmatprep.mubr.bf16.mxu0 %v5672_v47  ;;  %v7080_v16 = vld [vmem:[%s9201_s1 + $0x3f8] sm:$0xff]   ;;  %v7109_v47 = vld [vmem:[%s9201_s1 + $0x428] sm:$0xff]  }
  0x47   :  { %4608 = vmatprep.mubr.bf16.mxu1 %v5674_v49  ;;  %v7081_v17 = vld [vmem:[%s9201_s1 + $0x338] sm:$0xff]   ;;  %v7111_v49 = vld [vmem:[%s9201_s1 + $0x470] sm:$0xff]  }
  0x48   :  { %6330 = vmatpush3.bf16.msra.mxu0 %v7021_v18  ;;  %v7082_v18 = vld [vmem:[%s9201_s1 + $0x3b8] sm:$0xff]  }
  0x49   :  { %6352 = vmatpush3.bf16.msra.mxu1 %v7022_v19  ;;  %6331 = vmatprep.subr.bf16.mxu0 %v7023_v20  ;;  %v23_v19 = vld [vmem:[%s9202_s0 + $0x30] sm:$0xff]  ;;  %v24_v20 = vld [vmem:[%s9202_s0 + $0x38] sm:$0xff] }
  0x4a   :  { %6353 = vmatprep.subr.bf16.mxu1 %v7024_v21  ;;  %v5675_v21 = vcombine.low %v23_v19, %v23_v19 }
  0x4c   :  { %6332 = vmatpush3.bf16.msra.mxu0 %v7025_v22  ;;  %v5676_v22 = vcombine.high %v23_v19, %v23_v19  ;;  %v7143_v19 = vld [vmem:[%s9201_s1 + $0x568] sm:$0xff]  }
  0x4d   :  { %6354 = vmatpush3.bf16.msra.mxu1 %v7026_v23  ;;  %6333 = vmatprep.subr.bf16.mxu0 %v7027_v24  ;;  %v5677_v23 = vcombine.low %v24_v20, %v24_v20  ;;  %v7087_v24 = vld [vmem:[%s9201_s1 + $0x440] sm:$0xff]  }
  0x4e   :  { %6355 = vmatprep.subr.bf16.mxu1 %v7028_v25  ;;  %v5678_v25 = vcombine.high %v24_v20, %v24_v20  ;;  %v7144_v20 = vld [vmem:[%s9201_s1 + $0x5e8] sm:$0xff]  }
  0x50   :  { %6334 = vmatpush3.bf16.msra.mxu0 %v7029_v26  ;;  %v7088_v26 = vld [vmem:[%s9201_s1 + $0x4c0] sm:$0xff]  }
  0x51   :  { %6356 = vmatpush3.bf16.msra.mxu1 %v7030_v27  ;;  %6335 = vmatprep.subr.bf16.mxu0 %v7031_v28  ;;  %v7089_v27 = vld [vmem:[%s9201_s1 + $0x400] sm:$0xff]  }
  0x52   :  { %6357 = vmatprep.subr.bf16.mxu1 %v7032_v29  ;;  %v7090_v28 = vld [vmem:[%s9201_s1 + $0x480] sm:$0xff]   ;;  %v7091_v29 = vld [vmem:[%s9201_s1 + $0x448] sm:$0xff]  }
  0x54   :  { %6336 = vmatpush3.bf16.msra.mxu0 %v7033_v30  ;;  %v7092_v30 = vld [vmem:[%s9201_s1 + $0x4c8] sm:$0xff]  }
  0x55   :  { %6358 = vmatpush3.bf16.msra.mxu1 %v7034_v31  ;;  %6337 = vmatprep.subr.bf16.mxu0 %v7035_v32  ;;  %v7093_v31 = vld [vmem:[%s9201_s1 + $0x408] sm:$0xff]  }
  0x56   :  { %6359 = vmatprep.subr.bf16.mxu1 %v7036_v33  ;;  %v7094_v32 = vld [vmem:[%s9201_s1 + $0x488] sm:$0xff]   ;;  %v7095_v33 = vld [vmem:[%s9201_s1 + $0x450] sm:$0xff]  }
  0x58   :  { %6338 = vmatpush3.bf16.msra.mxu0 %v7037_v34  ;;  %v7096_v34 = vld [vmem:[%s9201_s1 + $0x4d0] sm:$0xff]  }
  0x59   :  { %6360 = vmatpush3.bf16.msra.mxu1 %v7038_v35  ;;  %6339 = vmatprep.subr.bf16.mxu0 %v7039_v36  ;;  %v7097_v35 = vld [vmem:[%s9201_s1 + $0x410] sm:$0xff]  }
  0x5a   :  { %6361 = vmatprep.subr.bf16.mxu1 %v7040_v37  ;;  %v7098_v36 = vld [vmem:[%s9201_s1 + $0x490] sm:$0xff]   ;;  %v7099_v37 = vld [vmem:[%s9201_s1 + $0x458] sm:$0xff]  }
  0x5c   :  { %6340 = vmatpush3.bf16.msra.mxu0 %v7041_v38  ;;  %v7100_v38 = vld [vmem:[%s9201_s1 + $0x4d8] sm:$0xff]  }
  0x5d   :  { %6362 = vmatpush3.bf16.msra.mxu1 %v7042_v39  ;;  %6341 = vmatprep.subr.bf16.mxu0 %v7043_v40  ;;  %v7101_v39 = vld [vmem:[%s9201_s1 + $0x418] sm:$0xff]  }
  0x5e   :  { %6363 = vmatprep.subr.bf16.mxu1 %v7044_v41  ;;  %v7102_v40 = vld [vmem:[%s9201_s1 + $0x498] sm:$0xff]   ;;  %v7103_v41 = vld [vmem:[%s9201_s1 + $0x460] sm:$0xff]  }
  0x60   :  { %6342 = vmatpush3.bf16.msra.mxu0 %v7045_v42  ;;  %v7104_v42 = vld [vmem:[%s9201_s1 + $0x4e0] sm:$0xff]  }
  0x61   :  { %6364 = vmatpush3.bf16.msra.mxu1 %v7046_v43  ;;  %6371 = vmatprep.subr.bf16.mxu0 %v7051_v50  ;;  %v7105_v43 = vld [vmem:[%s9201_s1 + $0x420] sm:$0xff]   ;;  %v7112_v50 = vld [vmem:[%s9201_s1 + $0x4f0] sm:$0xff]  }
  0x62   :  { %6393 = vmatprep.subr.bf16.mxu1 %v7052_v51  ;;  %v7113_v51 = vld [vmem:[%s9201_s1 + $0x430] sm:$0xff]  }
  0x63   :  { %4569 = vmatmul.mubr.bf16.vlgmr.msra.gmra.mrb[8].mxu0 %v5671_v46  ;;  %v7108_v46 = vld [vmem:[%s9201_s1 + $0x4e8] sm:$0xff]  }
  0x64   :  { %4609 = vmatmul.mubr.bf16.vlgmr.msra.gmra.mrb[8].mxu1 %v5673_v48  ;;  %6372 = vmatpush3.bf16.msra.mxu0 %v7053_v52  ;;  %v7110_v48 = vld [vmem:[%s9201_s1 + $0x4a8] sm:$0xff]   ;;  %v7114_v52 = vld [vmem:[%s9201_s1 + $0x4b0] sm:$0xff]  }
  0x65   :  { %6394 = vmatpush3.bf16.msra.mxu1 %v7054_v53  ;;  %6373 = vmatprep.subr.bf16.mxu0 %v7055_v54  ;;  %v7115_v53 = vld [vmem:[%s9201_s1 + $0x478] sm:$0xff]  }
  0x66   :  { %6395 = vmatprep.subr.bf16.mxu1 %v7056_v55  ;;  %4648 = vmatprep.mubr.bf16.mxu0 %v5676_v22  ;;  %v7116_v54 = vld [vmem:[%s9201_s1 + $0x4f8] sm:$0xff]   ;;  %v7146_v22 = vld [vmem:[%s9201_s1 + $0x5a8] sm:$0xff]  }
  0x67   :  { %4688 = vmatprep.mubr.bf16.mxu1 %v5678_v25  ;;  %v7117_v55 = vld [vmem:[%s9201_s1 + $0x438] sm:$0xff]   ;;  %v7149_v25 = vld [vmem:[%s9201_s1 + $0x530] sm:$0xff]  }
  0x68   :  { %6374 = vmatpush3.bf16.msra.mxu0 %v7057_v56  ;;  %v7118_v56 = vld [vmem:[%s9201_s1 + $0x4b8] sm:$0xff]  }
  0x69   :  { %6396 = vmatpush3.bf16.msra.mxu1 %v7058_v57  ;;  %6375 = vmatprep.subr.bf16.mxu0 %v7059_v58  ;;  %v25_v57 = vld [vmem:[%s9202_s0 + $0x40] sm:$0xff] }
  0x6a   :  { %6397 = vmatprep.subr.bf16.mxu1 %v7060_v59  ;;  %v5679_v58 = vcombine.low %v25_v57, %v25_v57  ;;  %v5680_v59 = vcombine.high %v25_v57, %v25_v57  ;;  %v7179_v57 = vld [vmem:[%s9201_s1 + $0x668] sm:$0xff]  }
  0x6c   :  { %6376 = vmatpush3.bf16.msra.mxu0 %v7061_v60  ;;  %v26_v60 = vld [vmem:[%s9202_s0 + $0x48] sm:$0xff] }
  0x6d   :  { %6398 = vmatpush3.bf16.msra.mxu1 %v7062_v61  ;;  %6377 = vmatprep.subr.bf16.mxu0 %v7063_v62  ;;  %v5681_v61 = vcombine.low %v26_v60, %v26_v60  ;;  %v5682_v62 = vcombine.high %v26_v60, %v26_v60  ;;  %v7182_v60 = vld [vmem:[%s9201_s1 + $0x6a8] sm:$0xff]  }
  0x6e   :  { %6399 = vmatprep.subr.bf16.mxu1 %v7064_v63  ;;  %v7123_v63 = vld [vmem:[%s9201_s1 + $0x540] sm:$0xff]  }
  0x70   :  { %6378 = vmatpush3.bf16.msra.mxu0 %v7065_v0  ;;  %v7124_v0 = vld [vmem:[%s9201_s1 + $0x5c0] sm:$0xff]  }
  0x71   :  { %6400 = vmatpush3.bf16.msra.mxu1 %v7066_v1  ;;  %6379 = vmatprep.subr.bf16.mxu0 %v7067_v2  ;;  %v7125_v1 = vld [vmem:[%s9201_s1 + $0x500] sm:$0xff]  }
  0x72   :  { %6401 = vmatprep.subr.bf16.mxu1 %v7068_v3  ;;  %v7126_v2 = vld [vmem:[%s9201_s1 + $0x580] sm:$0xff]   ;;  %v7127_v3 = vld [vmem:[%s9201_s1 + $0x548] sm:$0xff]  }
  0x74   :  { %6380 = vmatpush3.bf16.msra.mxu0 %v7069_v4  ;;  %v7128_v4 = vld [vmem:[%s9201_s1 + $0x5c8] sm:$0xff]  }
  0x75   :  { %6402 = vmatpush3.bf16.msra.mxu1 %v7070_v5  ;;  %6381 = vmatprep.subr.bf16.mxu0 %v7071_v6  ;;  %v7129_v5 = vld [vmem:[%s9201_s1 + $0x508] sm:$0xff]  }
  0x76   :  { %6403 = vmatprep.subr.bf16.mxu1 %v7072_v7  ;;  %v7130_v6 = vld [vmem:[%s9201_s1 + $0x588] sm:$0xff]   ;;  %v7131_v7 = vld [vmem:[%s9201_s1 + $0x550] sm:$0xff]  }
  0x78   :  { %6382 = vmatpush3.bf16.msra.mxu0 %v7073_v9  ;;  %v7133_v9 = vld [vmem:[%s9201_s1 + $0x510] sm:$0xff]  }
  0x79   :  { %6404 = vmatpush3.bf16.msra.mxu1 %v7074_v10  ;;  %6383 = vmatprep.subr.bf16.mxu0 %v7075_v11  ;;  %v7134_v10 = vld [vmem:[%s9201_s1 + $0x590] sm:$0xff]   ;;  %v7135_v11 = vld [vmem:[%s9201_s1 + $0x558] sm:$0xff]  }
  0x7a   :  { %6405 = vmatprep.subr.bf16.mxu1 %v7076_v12  ;;  %v7136_v12 = vld [vmem:[%s9201_s1 + $0x5d8] sm:$0xff]  }
  0x7c   :  { %6384 = vmatpush3.bf16.msra.mxu0 %v7077_v13  ;;  %v7137_v13 = vld [vmem:[%s9201_s1 + $0x518] sm:$0xff]  }
  0x7d   :  { %6406 = vmatpush3.bf16.msra.mxu1 %v7078_v14  ;;  %6385 = vmatprep.subr.bf16.mxu0 %v7079_v15  ;;  %v7138_v14 = vld [vmem:[%s9201_s1 + $0x598] sm:$0xff]   ;;  %v7139_v15 = vld [vmem:[%s9201_s1 + $0x560] sm:$0xff]  }
  0x7e   :  { %6407 = vmatprep.subr.bf16.mxu1 %v7080_v16  ;;  %v7140_v16 = vld [vmem:[%s9201_s1 + $0x5e0] sm:$0xff]  }
  0x80   :  { %6386 = vmatpush3.bf16.msra.mxu0 %v7081_v17  ;;  %v7141_v17 = vld [vmem:[%s9201_s1 + $0x520] sm:$0xff]  }
  0x81   :  { %6408 = vmatpush3.bf16.msra.mxu1 %v7082_v18  ;;  %6415 = vmatprep.subr.bf16.mxu0 %v7087_v24  ;;  %v7142_v18 = vld [vmem:[%s9201_s1 + $0x5a0] sm:$0xff]   ;;  %v7148_v24 = vld [vmem:[%s9201_s1 + $0x5f0] sm:$0xff]  }
  0x82   :  { %6437 = vmatprep.subr.bf16.mxu1 %v7088_v26  ;;  %v7150_v26 = vld [vmem:[%s9201_s1 + $0x5b0] sm:$0xff]  }
  0x83   :  { %4649 = vmatmul.mubr.bf16.vlgmr.msra.gmra.mrb[12].mxu0 %v5675_v21  ;;  %v7145_v21 = vld [vmem:[%s9201_s1 + $0x528] sm:$0xff]  }
  0x84   :  { %4689 = vmatmul.mubr.bf16.vlgmr.msra.gmra.mrb[12].mxu1 %v5677_v23  ;;  %6416 = vmatpush3.bf16.msra.mxu0 %v7089_v27  ;;  %v7147_v23 = vld [vmem:[%s9201_s1 + $0x570] sm:$0xff]   ;;  %v7151_v27 = vld [vmem:[%s9201_s1 + $0x578] sm:$0xff]  }
  0x85   :  { %6438 = vmatpush3.bf16.msra.mxu1 %v7090_v28  ;;  %6417 = vmatprep.subr.bf16.mxu0 %v7091_v29  ;;  %v7152_v28 = vld [vmem:[%s9201_s1 + $0x5f8] sm:$0xff]  }
  0x86   :  { %6439 = vmatprep.subr.bf16.mxu1 %v7092_v30  ;;  %4728 = vmatprep.mubr.bf16.mxu0 %v5680_v59  ;;  %v7153_v29 = vld [vmem:[%s9201_s1 + $0x538] sm:$0xff]   ;;  %v7181_v59 = vld [vmem:[%s9201_s1 + $0x628] sm:$0xff]  }
  0x87   :  { %4768 = vmatprep.mubr.bf16.mxu1 %v5682_v62  ;;  %v7154_v30 = vld [vmem:[%s9201_s1 + $0x5b8] sm:$0xff]   ;;  %v7184_v62 = vld [vmem:[%s9201_s1 + $0x6f0] sm:$0xff]  }
  0x88   :  { %6418 = vmatpush3.bf16.msra.mxu0 %v7093_v31  ;;  %v27_v31 = vld [vmem:[%s9202_s0 + $0x50] sm:$0xff] }
  0x89   :  { %6440 = vmatpush3.bf16.msra.mxu1 %v7094_v32  ;;  %6419 = vmatprep.subr.bf16.mxu0 %v7095_v33  ;;  %v28_v32 = vld [vmem:[%s9202_s0 + $0x58] sm:$0xff]  ;;  %v5683_v33 = vcombine.low %v27_v31, %v27_v31 }
  0x8a   :  { %6441 = vmatprep.subr.bf16.mxu1 %v7096_v34  ;;  %v5684_v34 = vcombine.high %v27_v31, %v27_v31  ;;  %v7214_v31 = vld [vmem:[%s9201_s1 + $0x7a0] sm:$0xff]  }
  0x8c   :  { %6420 = vmatpush3.bf16.msra.mxu0 %v7097_v35  ;;  %v5685_v35 = vcombine.low %v28_v32, %v28_v32 }
  0x8d   :  { %6442 = vmatpush3.bf16.msra.mxu1 %v7098_v36  ;;  %6421 = vmatprep.subr.bf16.mxu0 %v7099_v37  ;;  %v5686_v36 = vcombine.high %v28_v32, %v28_v32  ;;  %v7159_v37 = vld [vmem:[%s9201_s1 + $0x640] sm:$0xff]  }
  0x8e   :  { %6443 = vmatprep.subr.bf16.mxu1 %v7100_v38  ;;  %v7160_v38 = vld [vmem:[%s9201_s1 + $0x6c0] sm:$0xff]  }
  0x90   :  { %6422 = vmatpush3.bf16.msra.mxu0 %v7101_v39  ;;  %v7161_v39 = vld [vmem:[%s9201_s1 + $0x600] sm:$0xff]  }
  0x91   :  { %6444 = vmatpush3.bf16.msra.mxu1 %v7102_v40  ;;  %6423 = vmatprep.subr.bf16.mxu0 %v7103_v41  ;;  %v7162_v40 = vld [vmem:[%s9201_s1 + $0x680] sm:$0xff]   ;;  %v7163_v41 = vld [vmem:[%s9201_s1 + $0x648] sm:$0xff]  }
  0x92   :  { %6445 = vmatprep.subr.bf16.mxu1 %v7104_v42  ;;  %v7164_v42 = vld [vmem:[%s9201_s1 + $0x6c8] sm:$0xff]  }
  0x94   :  { %6424 = vmatpush3.bf16.msra.mxu0 %v7105_v43  ;;  %v7165_v43 = vld [vmem:[%s9201_s1 + $0x608] sm:$0xff]  }
  0x95   :  { %6446 = vmatpush3.bf16.msra.mxu1 %v7106_v44  ;;  %6425 = vmatprep.subr.bf16.mxu0 %v7107_v45  ;;  %v7166_v44 = vld [vmem:[%s9201_s1 + $0x688] sm:$0xff]   ;;  %v7167_v45 = vld [vmem:[%s9201_s1 + $0x650] sm:$0xff]  }
  0x96   :  { %6447 = vmatprep.subr.bf16.mxu1 %v7108_v46  ;;  %v7168_v46 = vld [vmem:[%s9201_s1 + $0x6d0] sm:$0xff]  }
  0x98   :  { %6426 = vmatpush3.bf16.msra.mxu0 %v7109_v47  ;;  %v7169_v47 = vld [vmem:[%s9201_s1 + $0x610] sm:$0xff]  }
  0x99   :  { %6448 = vmatpush3.bf16.msra.mxu1 %v7110_v48  ;;  %6427 = vmatprep.subr.bf16.mxu0 %v7111_v49  ;;  %v7170_v48 = vld [vmem:[%s9201_s1 + $0x690] sm:$0xff]   ;;  %v7171_v49 = vld [vmem:[%s9201_s1 + $0x658] sm:$0xff]  }
  0x9a   :  { %6449 = vmatprep.subr.bf16.mxu1 %v7112_v50  ;;  %v7172_v50 = vld [vmem:[%s9201_s1 + $0x6d8] sm:$0xff]  }
  0x9c   :  { %6428 = vmatpush3.bf16.msra.mxu0 %v7113_v51  ;;  %v7173_v51 = vld [vmem:[%s9201_s1 + $0x618] sm:$0xff]  }
  0x9d   :  { %6450 = vmatpush3.bf16.msra.mxu1 %v7114_v52  ;;  %6429 = vmatprep.subr.bf16.mxu0 %v7115_v53  ;;  %v7174_v52 = vld [vmem:[%s9201_s1 + $0x698] sm:$0xff]   ;;  %v7175_v53 = vld [vmem:[%s9201_s1 + $0x660] sm:$0xff]  }
  0x9e   :  { %6451 = vmatprep.subr.bf16.mxu1 %v7116_v54  ;;  %v7176_v54 = vld [vmem:[%s9201_s1 + $0x6e0] sm:$0xff]  }
  0xa0   :  { %6430 = vmatpush3.bf16.msra.mxu0 %v7117_v55  ;;  %v7177_v55 = vld [vmem:[%s9201_s1 + $0x620] sm:$0xff]  }
  0xa1   :  { %6452 = vmatpush3.bf16.msra.mxu1 %v7118_v56  ;;  %6459 = vmatprep.subr.bf16.mxu0 %v7123_v63  ;;  %v7178_v56 = vld [vmem:[%s9201_s1 + $0x6a0] sm:$0xff]   ;;  %v7185_v63 = vld [vmem:[%s9201_s1 + $0x630] sm:$0xff]  }
  0xa2   :  { %6481 = vmatprep.subr.bf16.mxu1 %v7124_v0  ;;  %v7186_v0 = vld [vmem:[%s9201_s1 + $0x6b0] sm:$0xff]  }
  0xa3   :  { %4729 = vmatmul.mubr.bf16.vlgmr.msra.gmra.mrb[16].mxu0 %v5679_v58  ;;  %v7180_v58 = vld [vmem:[%s9201_s1 + $0x6e8] sm:$0xff]  }
  0xa4   :  { %4769 = vmatmul.mubr.bf16.vlgmr.msra.gmra.mrb[16].mxu1 %v5681_v61  ;;  %6460 = vmatpush3.bf16.msra.mxu0 %v7125_v1  ;;  %v7183_v61 = vld [vmem:[%s9201_s1 + $0x670] sm:$0xff]   ;;  %v7187_v1 = vld [vmem:[%s9201_s1 + $0x678] sm:$0xff]  }
  0xa5   :  { %6482 = vmatpush3.bf16.msra.mxu1 %v7126_v2  ;;  %6461 = vmatprep.subr.bf16.mxu0 %v7127_v3  ;;  %v7188_v2 = vld [vmem:[%s9201_s1 + $0x6f8] sm:$0xff]  }
  0xa6   :  { %6483 = vmatprep.subr.bf16.mxu1 %v7128_v4  ;;  %4808 = vmatprep.mubr.bf16.mxu0 %v5684_v34  ;;  %v7189_v3 = vld [vmem:[%s9201_s1 + $0x638] sm:$0xff]  }
  0xa7   :  { %4848 = vmatprep.mubr.bf16.mxu1 %v5686_v36  ;;  %v7190_v4 = vld [vmem:[%s9201_s1 + $0x6b8] sm:$0xff]  }
  0xa8   :  { %6462 = vmatpush3.bf16.msra.mxu0 %v7129_v5  ;;  %v29_v5 = vld [vmem:[%s9202_s0 + $0x60] sm:$0xff] }
  0xa9   :  { %6484 = vmatpush3.bf16.msra.mxu1 %v7130_v6  ;;  %6463 = vmatprep.subr.bf16.mxu0 %v7131_v7  ;;  %v30_v6 = vld [vmem:[%s9202_s0 + $0x68] sm:$0xff]  ;;  %v5687_v7 = vcombine.low %v29_v5, %v29_v5 }
  0xaa   :  { %6485 = vmatprep.subr.bf16.mxu1 %v7132_v8  ;;  %v5688_v8 = vcombine.high %v29_v5, %v29_v5  ;;  %v7238_v5 = vld [vmem:[%s9201_s1 + $0x888] sm:$0xff]  }
  0xac   :  { %6464 = vmatpush3.bf16.msra.mxu0 %v7133_v9  ;;  %v5689_v9 = vcombine.low %v30_v6, %v30_v6 }
  0xad   :  { %6486 = vmatpush3.bf16.msra.mxu1 %v7134_v10  ;;  %6465 = vmatprep.subr.bf16.mxu0 %v7135_v11  ;;  %v7195_v10 = vld [vmem:[%s9201_s1 + $0x740] sm:$0xff]   ;;  %v5690_v11 = vcombine.high %v30_v6, %v30_v6  ;;  %v7239_v6 = vld [vmem:[%s9201_s1 + $0x850] sm:$0xff]  }
  0xae   :  { %6487 = vmatprep.subr.bf16.mxu1 %v7136_v12  ;;  %v7196_v12 = vld [vmem:[%s9201_s1 + $0x7c0] sm:$0xff]  }
  0xb0   :  { %6466 = vmatpush3.bf16.msra.mxu0 %v7137_v13  ;;  %v7197_v13 = vld [vmem:[%s9201_s1 + $0x700] sm:$0xff]  }
  0xb1   :  { %6488 = vmatpush3.bf16.msra.mxu1 %v7138_v14  ;;  %6467 = vmatprep.subr.bf16.mxu0 %v7139_v15  ;;  %v7198_v14 = vld [vmem:[%s9201_s1 + $0x780] sm:$0xff]   ;;  %v7199_v15 = vld [vmem:[%s9201_s1 + $0x748] sm:$0xff]  }
  0xb2   :  { %6489 = vmatprep.subr.bf16.mxu1 %v7140_v16  ;;  %v7200_v16 = vld [vmem:[%s9201_s1 + $0x7c8] sm:$0xff]  }
  0xb4   :  { %6468 = vmatpush3.bf16.msra.mxu0 %v7141_v17  ;;  %v7201_v17 = vld [vmem:[%s9201_s1 + $0x708] sm:$0xff]  }
  0xb5   :  { %6490 = vmatpush3.bf16.msra.mxu1 %v7142_v18  ;;  %6469 = vmatprep.subr.bf16.mxu0 %v7143_v19  ;;  %v7202_v18 = vld [vmem:[%s9201_s1 + $0x788] sm:$0xff]   ;;  %v7203_v19 = vld [vmem:[%s9201_s1 + $0x750] sm:$0xff]  }
  0xb6   :  { %6491 = vmatprep.subr.bf16.mxu1 %v7144_v20  ;;  %v7204_v20 = vld [vmem:[%s9201_s1 + $0x7d0] sm:$0xff]  }
  0xb8   :  { %6470 = vmatpush3.bf16.msra.mxu0 %v7145_v21  ;;  %v7205_v21 = vld [vmem:[%s9201_s1 + $0x710] sm:$0xff]  }
  0xb9   :  { %6492 = vmatpush3.bf16.msra.mxu1 %v7146_v22  ;;  %6471 = vmatprep.subr.bf16.mxu0 %v7147_v23  ;;  %v7206_v22 = vld [vmem:[%s9201_s1 + $0x790] sm:$0xff]   ;;  %v7207_v23 = vld [vmem:[%s9201_s1 + $0x758] sm:$0xff]  }
  0xba   :  { %6493 = vmatprep.subr.bf16.mxu1 %v7148_v24  ;;  %v7208_v24 = vld [vmem:[%s9201_s1 + $0x7d8] sm:$0xff]  }
  0xbc   :  { %6472 = vmatpush3.bf16.msra.mxu0 %v7149_v25  ;;  %v7209_v25 = vld [vmem:[%s9201_s1 + $0x718] sm:$0xff]  }
  0xbd   :  { %6494 = vmatpush3.bf16.msra.mxu1 %v7150_v26  ;;  %6473 = vmatprep.subr.bf16.mxu0 %v7151_v27  ;;  %v7210_v26 = vld [vmem:[%s9201_s1 + $0x798] sm:$0xff]   ;;  %v7211_v27 = vld [vmem:[%s9201_s1 + $0x760] sm:$0xff]  }
  0xbe   :  { %6495 = vmatprep.subr.bf16.mxu1 %v7152_v28  ;;  %v7212_v28 = vld [vmem:[%s9201_s1 + $0x7e0] sm:$0xff]  }
  0xc0   :  { %6474 = vmatpush3.bf16.msra.mxu0 %v7153_v29  ;;  %v7213_v29 = vld [vmem:[%s9201_s1 + $0x720] sm:$0xff]  }
  0xc1   :  { %6496 = vmatpush3.bf16.msra.mxu1 %v7154_v30  ;;  %6503 = vmatprep.subr.bf16.mxu0 %v7159_v37 }
  0xc2   :  { %6525 = vmatprep.subr.bf16.mxu1 %v7160_v38  ;;  %v7215_v38 = vld [vmem:[%s9201_s1 + $0x768] sm:$0xff]  }
  0xc3   :  { %4809 = vmatmul.mubr.bf16.vlgmr.msra.gmra.mrb[20].mxu0 %v5683_v33  ;;  %v5662_v33 = vld [vmem:[#allocation2] ss:$0 sm:$0xff] }
  0xc4   :  { %4849 = vmatmul.mubr.bf16.vlgmr.msra.gmra.mrb[20].mxu1 %v5685_v35  ;;  %6504 = vmatpush3.bf16.msra.mxu0 %v7161_v39 }
  0xc5   :  { %6526 = vmatpush3.bf16.msra.mxu1 %v7162_v40  ;;  %6505 = vmatprep.subr.bf16.mxu0 %v7163_v41  ;;  %v7216_v40 = vld [vmem:[%s9201_s1 + $0x7e8] sm:$0xff]  }
  0xc6   :  { %6527 = vmatprep.subr.bf16.mxu1 %v7164_v42  ;;  %4888 = vmatprep.mubr.bf16.mxu0 %v5688_v8  ;;  %v7241_v8 = vld [vmem:[%s9201_s1 + $0x810] sm:$0xff]  }
  0xc7   :  { %4928 = vmatprep.mubr.bf16.mxu1 %v5690_v11  ;;  %v7244_v11 = vld [vmem:[%s9201_s1 + $0x8d8] sm:$0xff]  }
  0xc8   :  { %6506 = vmatpush3.bf16.msra.mxu0 %v7165_v43  ;;  %v7217_v43 = vld [vmem:[%s9201_s1 + $0x728] sm:$0xff]  }
  0xc9   :  { %6528 = vmatpush3.bf16.msra.mxu1 %v7166_v44  ;;  %6507 = vmatprep.subr.bf16.mxu0 %v7167_v45  ;;  %v7218_v45 = vld [vmem:[%s9201_s1 + $0x7a8] sm:$0xff]  }
  0xca   :  { %6529 = vmatprep.subr.bf16.mxu1 %v7168_v46 }
  0xcc   :  { %6508 = vmatpush3.bf16.msra.mxu0 %v7169_v47 }
  0xcd   :  { %6530 = vmatpush3.bf16.msra.mxu1 %v7170_v48  ;;  %6509 = vmatprep.subr.bf16.mxu0 %v7171_v49  ;;  %v7219_v48 = vld [vmem:[%s9201_s1 + $0x770] sm:$0xff]  }
  0xce   :  { %6531 = vmatprep.subr.bf16.mxu1 %v7172_v50  ;;  %v7220_v49 = vld [vmem:[%s9201_s1 + $0x7f0] sm:$0xff]  }
  0xcf   :  { %v7221_v50 = vld [vmem:[%s9201_s1 + $0x730] sm:$0xff]  }
  0xd0   :  { %6510 = vmatpush3.bf16.msra.mxu0 %v7173_v51  ;;  %v7222_v51 = vld [vmem:[%s9201_s1 + $0x7b0] sm:$0xff]  }
  0xd1   :  { %6532 = vmatpush3.bf16.msra.mxu1 %v7174_v52  ;;  %6511 = vmatprep.subr.bf16.mxu0 %v7175_v53  ;;  %v7223_v52 = vld [vmem:[%s9201_s1 + $0x778] sm:$0xff]  }
  0xd2   :  { %6533 = vmatprep.subr.bf16.mxu1 %v7176_v54  ;;  %v7224_v53 = vld [vmem:[%s9201_s1 + $0x7f8] sm:$0xff]  }
  0xd3   :  { %v7225_v54 = vld [vmem:[%s9201_s1 + $0x738] sm:$0xff]  }
  0xd4   :  { %6512 = vmatpush3.bf16.msra.mxu0 %v7177_v55  ;;  %v7226_v55 = vld [vmem:[%s9201_s1 + $0x7b8] sm:$0xff]  }
  0xd5   :  { %6534 = vmatpush3.bf16.msra.mxu1 %v7178_v56  ;;  %6513 = vmatprep.subr.bf16.mxu0 %v7179_v57  ;;  %v31_v56 = vld [vmem:[%s9202_s0 + $0x70] sm:$0xff]  ;;  %v32_v57 = vld [vmem:[%s9202_s0 + $0x78] sm:$0xff] }
  0xd6   :  { %6535 = vmatprep.subr.bf16.mxu1 %v7180_v58  ;;  %v5691_v58 = vcombine.low %v31_v56, %v31_v56 }
  0xd8   :  { %6514 = vmatpush3.bf16.msra.mxu0 %v7181_v59  ;;  %v5692_v59 = vcombine.high %v31_v56, %v31_v56  ;;  %v7275_v56 = vld [vmem:[%s9201_s1 + $0x950] sm:$0xff]  }
  0xd9   :  { %6536 = vmatpush3.bf16.msra.mxu1 %v7182_v60  ;;  %6515 = vmatprep.subr.bf16.mxu0 %v7183_v61  ;;  %v5693_v60 = vcombine.low %v32_v57, %v32_v57  ;;  %v5694_v61 = vcombine.high %v32_v57, %v32_v57  ;;  %v7276_v57 = vld [vmem:[%s9201_s1 + $0x9d0] sm:$0xff]  }
  0xda   :  { %6537 = vmatprep.subr.bf16.mxu1 %v7184_v62  ;;  %v7231_v62 = vld [vmem:[%s9201_s1 + $0x840] sm:$0xff]  }
  0xdc   :  { %6516 = vmatpush3.bf16.msra.mxu0 %v7185_v63  ;;  %v7232_v63 = vld [vmem:[%s9201_s1 + $0x8c0] sm:$0xff]  }
  0xdd   :  { %6538 = vmatpush3.bf16.msra.mxu1 %v7186_v0  ;;  %6517 = vmatprep.subr.bf16.mxu0 %v7187_v1  ;;  %v7233_v0 = vld [vmem:[%s9201_s1 + $0x800] sm:$0xff]  }
  0xde   :  { %6539 = vmatprep.subr.bf16.mxu1 %v7188_v2  ;;  %v7234_v1 = vld [vmem:[%s9201_s1 + $0x880] sm:$0xff]   ;;  %v7235_v2 = vld [vmem:[%s9201_s1 + $0x848] sm:$0xff]  }
  0xe0   :  { %6518 = vmatpush3.bf16.msra.mxu0 %v7189_v3  ;;  %v7236_v3 = vld [vmem:[%s9201_s1 + $0x8c8] sm:$0xff]  }
  0xe1   :  { %6540 = vmatpush3.bf16.msra.mxu1 %v7190_v4  ;;  %6547 = vmatprep.subr.bf16.mxu0 %v7195_v10  ;;  %v7237_v4 = vld [vmem:[%s9201_s1 + $0x808] sm:$0xff]   ;;  %v7243_v10 = vld [vmem:[%s9201_s1 + $0x858] sm:$0xff]  }
  0xe2   :  { %6569 = vmatprep.subr.bf16.mxu1 %v7196_v12  ;;  %v7245_v12 = vld [vmem:[%s9201_s1 + $0x818] sm:$0xff]  }
  0xe3   :  { %4889 = vmatmul.mubr.bf16.vlgmr.msra.gmra.mrb[24].mxu0 %v5687_v7  ;;  %v7240_v7 = vld [vmem:[%s9201_s1 + $0x8d0] sm:$0xff]  }
  0xe4   :  { %4929 = vmatmul.mubr.bf16.vlgmr.msra.gmra.mrb[24].mxu1 %v5689_v9  ;;  %6548 = vmatpush3.bf16.msra.mxu0 %v7197_v13  ;;  %v7242_v9 = vld [vmem:[%s9201_s1 + $0x890] sm:$0xff]   ;;  %v7246_v13 = vld [vmem:[%s9201_s1 + $0x898] sm:$0xff]  }
  0xe5   :  { %6570 = vmatpush3.bf16.msra.mxu1 %v7198_v14  ;;  %6549 = vmatprep.subr.bf16.mxu0 %v7199_v15  ;;  %v7247_v14 = vld [vmem:[%s9201_s1 + $0x860] sm:$0xff]  }
  0xe6   :  { %6571 = vmatprep.subr.bf16.mxu1 %v7200_v16  ;;  %4968 = vmatprep.mubr.bf16.mxu0 %v5692_v59  ;;  %v7248_v15 = vld [vmem:[%s9201_s1 + $0x8e0] sm:$0xff]   ;;  %v7278_v59 = vld [vmem:[%s9201_s1 + $0x990] sm:$0xff]  }
  0xe7   :  { %5008 = vmatprep.mubr.bf16.mxu1 %v5694_v61  ;;  %v7249_v16 = vld [vmem:[%s9201_s1 + $0x820] sm:$0xff]   ;;  %v7280_v61 = vld [vmem:[%s9201_s1 + $0x9d8] sm:$0xff]  }
  0xe8   :  { %6550 = vmatpush3.bf16.msra.mxu0 %v7201_v17 }
  0xe9   :  { %6572 = vmatpush3.bf16.msra.mxu1 %v7202_v18  ;;  %6551 = vmatprep.subr.bf16.mxu0 %v7203_v19  ;;  %v7250_v18 = vld [vmem:[%s9201_s1 + $0x8a0] sm:$0xff]  }
  0xea   :  { %6573 = vmatprep.subr.bf16.mxu1 %v7204_v20 }
  0xec   :  { %6552 = vmatpush3.bf16.msra.mxu0 %v7205_v21 }
  0xed   :  { %6574 = vmatpush3.bf16.msra.mxu1 %v7206_v22  ;;  %6553 = vmatprep.subr.bf16.mxu0 %v7207_v23 }
  0xee   :  { %6575 = vmatprep.subr.bf16.mxu1 %v7208_v24  ;;  %v7251_v24 = vld [vmem:[%s9201_s1 + $0x868] sm:$0xff]  }
  0xf0   :  { %6554 = vmatpush3.bf16.msra.mxu0 %v7209_v25 }
  0xf1   :  { %6576 = vmatpush3.bf16.msra.mxu1 %v7210_v26  ;;  %6555 = vmatprep.subr.bf16.mxu0 %v7211_v27  ;;  %v7252_v26 = vld [vmem:[%s9201_s1 + $0x8e8] sm:$0xff]  }
  0xf2   :  { %6577 = vmatprep.subr.bf16.mxu1 %v7212_v28 }
  0xf4   :  { %6556 = vmatpush3.bf16.msra.mxu0 %v7213_v29  ;;  %v7253_v29 = vld [vmem:[%s9201_s1 + $0x828] sm:$0xff]  }
  0xf5   :  { %6578 = vmatpush3.bf16.msra.mxu1 %v7214_v31  ;;  %6557 = vmatprep.subr.bf16.mxu0 %v7215_v38  ;;  %v7254_v31 = vld [vmem:[%s9201_s1 + $0x8a8] sm:$0xff]   ;;  %v7259_v38 = vld [vmem:[%s9201_s1 + $0x878] sm:$0xff]  }
  0xf6   :  { %v6255_v30 = vpop.f32.mrb[0].mxu0  ;;  %6579 = vmatprep.subr.bf16.mxu1 %v7216_v40  ;;  %v7261_v40 = vld [vmem:[%s9201_s1 + $0x838] sm:$0xff]  }
  0xf7   :  { %v6277_v32 = vpop.f32.mrb[0].mxu1  ;;  %v6256_v34 = vpop.f32.mrb[1].mxu0 }
  0xf8   :  { %v6278_v35 = vpop.f32.mrb[1].mxu1  ;;  %v6257_v36 = vadd.f32 %v6256_v34, %v6255_v30  ;;  %v6258_v39 = vpop.f32.mrb[2].mxu0  ;;  %6558 = vmatpush3.bf16.msra.mxu0 %v7217_v43  ;;  %v7255_v34 = vld [vmem:[%s9201_s1 + $0x870] sm:$0xff]   ;;  %v34_v43 = vld [vmem:[%s9202_s0 + $0x88] sm:$0xff] }
  0xf9   :  { %v6279_v37 = vadd.f32 %v6278_v35, %v6277_v32  ;;  %v6280_v41 = vpop.f32.mrb[2].mxu1  ;;  %v6259_v44 = vpop.f32.mrb[3].mxu0  ;;  %6580 = vmatpush3.bf16.msra.mxu1 %v7218_v45  ;;  %6559 = vmatprep.subr.bf16.mxu0 %v7219_v48  ;;  %v7256_v35 = vld [vmem:[%s9201_s1 + $0x8f0] sm:$0xff]   ;;  %v7260_v39 = vld [vmem:[%s9201_s1 + $0x8f8] sm:$0xff]   ;;  %v7267_v48 = vld [vmem:[%s9201_s1 + $0x940] sm:$0xff]  }
  0xfa   :  { %v4411_v42 = vadd.f32 %v6257_v36, %v5662_v33  ;;  %v6281_v46 = vpop.f32.mrb[3].mxu1  ;;  %6581 = vmatprep.subr.bf16.mxu1 %v7220_v49  ;;  %v7257_v36 = vld [vmem:[%s9201_s1 + $0x830] sm:$0xff]   ;;  %v7262_v41 = vld [vmem:[%s9201_s1 + $0x8b8] sm:$0xff]   ;;  %v7268_v49 = vld [vmem:[%s9201_s1 + $0x9c0] sm:$0xff]  }
  0xfb   :  { %v5697_v46 = vcombine.low %v34_v43, %v34_v43 }
  0xfc   :  { %v8328_v47 = vadd.f32 %v6279_v37, %v4411_v42  ;;  %6560 = vmatpush3.bf16.msra.mxu0 %v7221_v50  ;;  %v7258_v37 = vld [vmem:[%s9201_s1 + $0x8b0] sm:$0xff]   ;;  %v33_v42 = vld [vmem:[%s9202_s0 + $0x80] sm:$0xff] }
  0xfd   :  { %6582 = vmatpush3.bf16.msra.mxu1 %v7222_v51  ;;  %6561 = vmatprep.subr.bf16.mxu0 %v7223_v52  ;;  %v5695_v44 = vcombine.low %v33_v42, %v33_v42  ;;  %v5696_v45 = vcombine.high %v33_v42, %v33_v42  ;;  %v7269_v50 = vld [vmem:[%s9201_s1 + $0x900] sm:$0xff]   ;;  %v7271_v52 = vld [vmem:[%s9201_s1 + $0x948] sm:$0xff]   ;;  %v7311_v42 = vld [vmem:[%s9201_s1 + $0xa50] sm:$0xff]  }
  0xfe   :  { %6583 = vmatprep.subr.bf16.mxu1 %v7224_v53  ;;  %v7270_v51 = vld [vmem:[%s9201_s1 + $0x980] sm:$0xff]   ;;  %v7272_v53 = vld [vmem:[%s9201_s1 + $0x9c8] sm:$0xff]  }
 0x100   :  { %6562 = vmatpush3.bf16.msra.mxu0 %v7225_v54  ;;  %v7273_v54 = vld [vmem:[%s9201_s1 + $0x908] sm:$0xff]  }
 0x101   :  { %6584 = vmatpush3.bf16.msra.mxu1 %v7226_v55  ;;  %6591 = vmatprep.subr.bf16.mxu0 %v7231_v62  ;;  %v7274_v55 = vld [vmem:[%s9201_s1 + $0x988] sm:$0xff]   ;;  %v7281_v62 = vld [vmem:[%s9201_s1 + $0x918] sm:$0xff]  }
 0x102   :  { %6613 = vmatprep.subr.bf16.mxu1 %v7232_v63  ;;  %v7282_v63 = vld [vmem:[%s9201_s1 + $0x998] sm:$0xff]  }
 0x103   :  { %4969 = vmatmul.mubr.bf16.vlgmr.msra.gmra.mrb[28].mxu0 %v5691_v58  ;;  %v7277_v58 = vld [vmem:[%s9201_s1 + $0x910] sm:$0xff]  }
 0x104   :  { %5009 = vmatmul.mubr.bf16.vlgmr.msra.gmra.mrb[28].mxu1 %v5693_v60  ;;  %6592 = vmatpush3.bf16.msra.mxu0 %v7233_v0  ;;  %v7279_v60 = vld [vmem:[%s9201_s1 + $0x958] sm:$0xff]   ;;  %v7283_v0 = vld [vmem:[%s9201_s1 + $0x960] sm:$0xff]  }
 0x105   :  { %6614 = vmatpush3.bf16.msra.mxu1 %v7234_v1  ;;  %6593 = vmatprep.subr.bf16.mxu0 %v7235_v2  ;;  %v7284_v1 = vld [vmem:[%s9201_s1 + $0x9e0] sm:$0xff]  }
 0x106   :  { %6615 = vmatprep.subr.bf16.mxu1 %v7236_v3  ;;  %5048 = vmatprep.mubr.bf16.mxu0 %v5696_v45  ;;  %v7285_v3 = vld [vmem:[%s9201_s1 + $0x920] sm:$0xff]   ;;  %v7314_v45 = vld [vmem:[%s9201_s1 + $0xa90] sm:$0xff]  }
 0x108   :  { %6594 = vmatpush3.bf16.msra.mxu0 %v7237_v4 }
 0x109   :  { %6616 = vmatpush3.bf16.msra.mxu1 %v7238_v5  ;;  %6595 = vmatprep.subr.bf16.mxu0 %v7239_v6  ;;  %v7286_v5 = vld [vmem:[%s9201_s1 + $0x9a0] sm:$0xff]  }
 0x10a   :  { %6617 = vmatprep.subr.bf16.mxu1 %v7240_v7 }
 0x10c   :  { %6596 = vmatpush3.bf16.msra.mxu0 %v7241_v8 }
 0x10d   :  { %6618 = vmatpush3.bf16.msra.mxu1 %v7242_v9  ;;  %6597 = vmatprep.subr.bf16.mxu0 %v7243_v10  ;;  %v7287_v9 = vld [vmem:[%s9201_s1 + $0x968] sm:$0xff]  }
 0x10e   :  { %6619 = vmatprep.subr.bf16.mxu1 %v7244_v11  ;;  %v7288_v11 = vld [vmem:[%s9201_s1 + $0x9e8] sm:$0xff]  }
 0x110   :  { %6598 = vmatpush3.bf16.msra.mxu0 %v7245_v12 }
 0x111   :  { %6620 = vmatpush3.bf16.msra.mxu1 %v7246_v13  ;;  %6599 = vmatprep.subr.bf16.mxu0 %v7247_v14 }
 0x112   :  { %6621 = vmatprep.subr.bf16.mxu1 %v7248_v15  ;;  %v7289_v15 = vld [vmem:[%s9201_s1 + $0x928] sm:$0xff]  }
 0x114   :  { %6600 = vmatpush3.bf16.msra.mxu0 %v7249_v16  ;;  %v7290_v16 = vld [vmem:[%s9201_s1 + $0x9a8] sm:$0xff]  }
 0x115   :  { %6622 = vmatpush3.bf16.msra.mxu1 %v7250_v18  ;;  %6601 = vmatprep.subr.bf16.mxu0 %v7251_v24  ;;  %v7295_v24 = vld [vmem:[%s9201_s1 + $0x978] sm:$0xff]  }
 0x116   :  { %v6299_v17 = vpop.f32.mrb[4].mxu0  ;;  %6623 = vmatprep.subr.bf16.mxu1 %v7252_v26  ;;  %v7297_v26 = vld [vmem:[%s9201_s1 + $0x938] sm:$0xff]  }
 0x117   :  { %v6321_v19 = vpop.f32.mrb[4].mxu1  ;;  %v6300_v20 = vpop.f32.mrb[5].mxu0 }
 0x118   :  { %v6322_v21 = vpop.f32.mrb[5].mxu1  ;;  %v6301_v22 = vadd.f32 %v6300_v20, %v6299_v17  ;;  %v6302_v25 = vpop.f32.mrb[6].mxu0  ;;  %6602 = vmatpush3.bf16.msra.mxu0 %v7253_v29  ;;  %v7291_v20 = vld [vmem:[%s9201_s1 + $0x970] sm:$0xff]   ;;  %v36_v29 = vld [vmem:[%s9202_s0 + $0x98] sm:$0xff] }
 0x119   :  { %v6323_v23 = vadd.f32 %v6322_v21, %v6321_v19  ;;  %v6324_v27 = vpop.f32.mrb[6].mxu1  ;;  %v6303_v30 = vpop.f32.mrb[7].mxu0  ;;  %6624 = vmatpush3.bf16.msra.mxu1 %v7254_v31  ;;  %6603 = vmatprep.subr.bf16.mxu0 %v7255_v34  ;;  %v7292_v21 = vld [vmem:[%s9201_s1 + $0x9f0] sm:$0xff]   ;;  %v7296_v25 = vld [vmem:[%s9201_s1 + $0x9f8] sm:$0xff]   ;;  %v5702_v34 = vcombine.high %v36_v29, %v36_v29 }
 0x11a   :  { %v4491_v28 = vadd.f32 %v6301_v22, %v8328_v47  ;;  %v6325_v32 = vpop.f32.mrb[7].mxu1  ;;  %6625 = vmatprep.subr.bf16.mxu1 %v7256_v35  ;;  %v5698_v47 = vcombine.high %v34_v43, %v34_v43  ;;  %v7293_v22 = vld [vmem:[%s9201_s1 + $0x930] sm:$0xff]   ;;  %v7298_v27 = vld [vmem:[%s9201_s1 + $0x9b8] sm:$0xff]   ;;  %v7304_v35 = vld [vmem:[%s9201_s1 + $0xac0] sm:$0xff]  }
 0x11b   :  { %v5701_v32 = vcombine.low %v36_v29, %v36_v29  ;;  %v7312_v43 = vld [vmem:[%s9201_s1 + $0xad0] sm:$0xff]  }
 0x11c   :  { %v8433_v33 = vadd.f32 %v6323_v23, %v4491_v28  ;;  %6604 = vmatpush3.bf16.msra.mxu0 %v7257_v36  ;;  %5088 = vmatprep.mubr.bf16.mxu1 %v5698_v47  ;;  %v7294_v23 = vld [vmem:[%s9201_s1 + $0x9b0] sm:$0xff]   ;;  %v7305_v36 = vld [vmem:[%s9201_s1 + $0xa00] sm:$0xff]   ;;  %v7316_v47 = vld [vmem:[%s9201_s1 + $0xad8] sm:$0xff]  }
 0x11d   :  { %6626 = vmatpush3.bf16.msra.mxu1 %v7258_v37  ;;  %6605 = vmatprep.subr.bf16.mxu0 %v7259_v38  ;;  %v35_v28 = vld [vmem:[%s9202_s0 + $0x90] sm:$0xff]  ;;  %v7306_v37 = vld [vmem:[%s9201_s1 + $0xa80] sm:$0xff]   ;;  %v7307_v38 = vld [vmem:[%s9201_s1 + $0xa48] sm:$0xff]  }
 0x11e   :  { %6627 = vmatprep.subr.bf16.mxu1 %v7260_v39  ;;  %v5699_v30 = vcombine.low %v35_v28, %v35_v28  ;;  %v5700_v31 = vcombine.high %v35_v28, %v35_v28  ;;  %v7308_v39 = vld [vmem:[%s9201_s1 + $0xac8] sm:$0xff]   ;;  %v7347_v28 = vld [vmem:[%s9201_s1 + $0xb50] sm:$0xff]  }
 0x11f   :  { %v7348_v29 = vld [vmem:[%s9201_s1 + $0xbd0] sm:$0xff]  }
 0x120   :  { %6606 = vmatpush3.bf16.msra.mxu0 %v7261_v40  ;;  %v7309_v40 = vld [vmem:[%s9201_s1 + $0xa08] sm:$0xff]  }
 0x121   :  { %6628 = vmatpush3.bf16.msra.mxu1 %v7262_v41  ;;  %6635 = vmatprep.subr.bf16.mxu0 %v7267_v48  ;;  %v7310_v41 = vld [vmem:[%s9201_s1 + $0xa88] sm:$0xff]   ;;  %v7317_v48 = vld [vmem:[%s9201_s1 + $0xa18] sm:$0xff]  }
 0x122   :  { %6657 = vmatprep.subr.bf16.mxu1 %v7268_v49  ;;  %v7318_v49 = vld [vmem:[%s9201_s1 + $0xa98] sm:$0xff]  }
 0x123   :  { %5049 = vmatmul.mubr.bf16.vlgmr.msra.gmra.mrb[32].mxu0 %v5695_v44  ;;  %v7313_v44 = vld [vmem:[%s9201_s1 + $0xa10] sm:$0xff]  }
 0x124   :  { %5089 = vmatmul.mubr.bf16.vlgmr.msra.gmra.mrb[32].mxu1 %v5697_v46  ;;  %6636 = vmatpush3.bf16.msra.mxu0 %v7269_v50  ;;  %v7315_v46 = vld [vmem:[%s9201_s1 + $0xa58] sm:$0xff]   ;;  %v7319_v50 = vld [vmem:[%s9201_s1 + $0xa60] sm:$0xff]  }
 0x125   :  { %6658 = vmatpush3.bf16.msra.mxu1 %v7270_v51  ;;  %6637 = vmatprep.subr.bf16.mxu0 %v7271_v52  ;;  %v7320_v51 = vld [vmem:[%s9201_s1 + $0xae0] sm:$0xff]  }
 0x126   :  { %6659 = vmatprep.subr.bf16.mxu1 %v7272_v53  ;;  %5128 = vmatprep.mubr.bf16.mxu0 %v5700_v31  ;;  %v7321_v53 = vld [vmem:[%s9201_s1 + $0xa20] sm:$0xff]   ;;  %v7350_v31 = vld [vmem:[%s9201_s1 + $0xb90] sm:$0xff]  }
 0x127   :  { %5168 = vmatprep.mubr.bf16.mxu1 %v5702_v34  ;;  %v7353_v34 = vld [vmem:[%s9201_s1 + $0xb18] sm:$0xff]  }
 0x128   :  { %6638 = vmatpush3.bf16.msra.mxu0 %v7273_v54 }
 0x129   :  { %6660 = vmatpush3.bf16.msra.mxu1 %v7274_v55  ;;  %6639 = vmatprep.subr.bf16.mxu0 %v7275_v56  ;;  %v7322_v55 = vld [vmem:[%s9201_s1 + $0xaa0] sm:$0xff]  }
 0x12a   :  { %6661 = vmatprep.subr.bf16.mxu1 %v7276_v57 }
 0x12c   :  { %6640 = vmatpush3.bf16.msra.mxu0 %v7277_v58  ;;  %v7323_v58 = vld [vmem:[%s9201_s1 + $0xa68] sm:$0xff]  }
 0x12d   :  { %6662 = vmatpush3.bf16.msra.mxu1 %v7278_v59  ;;  %6641 = vmatprep.subr.bf16.mxu0 %v7279_v60 }
 0x12e   :  { %6663 = vmatprep.subr.bf16.mxu1 %v7280_v61  ;;  %v7324_v61 = vld [vmem:[%s9201_s1 + $0xae8] sm:$0xff]  }
 0x130   :  { %6642 = vmatpush3.bf16.msra.mxu0 %v7281_v62 }
 0x131   :  { %6664 = vmatpush3.bf16.msra.mxu1 %v7282_v63  ;;  %6643 = vmatprep.subr.bf16.mxu0 %v7283_v0  ;;  %v7325_v0 = vld [vmem:[%s9201_s1 + $0xa28] sm:$0xff]  }
 0x132   :  { %6665 = vmatprep.subr.bf16.mxu1 %v7284_v1 }
 0x134   :  { %6644 = vmatpush3.bf16.msra.mxu0 %v7285_v3 }
 0x135   :  { %6666 = vmatpush3.bf16.msra.mxu1 %v7286_v5  ;;  %6645 = vmatprep.subr.bf16.mxu0 %v7287_v9  ;;  %v7327_v5 = vld [vmem:[%s9201_s1 + $0xa70] sm:$0xff]  }
 0x136   :  { %v6343_v2 = vpop.f32.mrb[8].mxu0  ;;  %6667 = vmatprep.subr.bf16.mxu1 %v7288_v11  ;;  %v7330_v9 = vld [vmem:[%s9201_s1 + $0xab0] sm:$0xff]   ;;  %v7332_v11 = vld [vmem:[%s9201_s1 + $0xaf8] sm:$0xff]  }
 0x137   :  { %v6365_v4 = vpop.f32.mrb[8].mxu1  ;;  %v6344_v6 = vpop.f32.mrb[9].mxu0 }
 0x138   :  { %v6345_v7 = vadd.f32 %v6344_v6, %v6343_v2  ;;  %v6366_v8 = vpop.f32.mrb[9].mxu1  ;;  %v6346_v12 = vpop.f32.mrb[10].mxu0  ;;  %6646 = vmatpush3.bf16.msra.mxu0 %v7289_v15  ;;  %v7326_v2 = vld [vmem:[%s9201_s1 + $0xaa8] sm:$0xff]  }
 0x139   :  { %v6367_v10 = vadd.f32 %v6366_v8, %v6365_v4  ;;  %v6368_v14 = vpop.f32.mrb[10].mxu1  ;;  %v6347_v17 = vpop.f32.mrb[11].mxu0  ;;  %6668 = vmatpush3.bf16.msra.mxu1 %v7290_v16  ;;  %6647 = vmatprep.subr.bf16.mxu0 %v7291_v20  ;;  %v7329_v8 = vld [vmem:[%s9201_s1 + $0xa30] sm:$0xff]   ;;  %v7333_v12 = vld [vmem:[%s9201_s1 + $0xa38] sm:$0xff]   ;;  %v7339_v20 = vld [vmem:[%s9201_s1 + $0xb40] sm:$0xff]  }
 0x13a   :  { %v4571_v13 = vadd.f32 %v6345_v7, %v8433_v33  ;;  %v6369_v19 = vpop.f32.mrb[11].mxu1  ;;  %6669 = vmatprep.subr.bf16.mxu1 %v7292_v21  ;;  %v7303_v33 = vld [vmem:[%s9201_s1 + $0xa40] sm:$0xff]   ;;  %v7328_v7 = vld [vmem:[%s9201_s1 + $0xaf0] sm:$0xff]   ;;  %v38_v17 = vld [vmem:[%s9202_s0 + $0xa8] sm:$0xff] }
 0x13b   :  { %v37_v14 = vld [vmem:[%s9202_s0 + $0xa0] sm:$0xff]  ;;  %v5706_v19 = vcombine.high %v38_v17, %v38_v17 }
 0x13c   :  { %v8538_v18 = vadd.f32 %v6367_v10, %v4571_v13  ;;  %6648 = vmatpush3.bf16.msra.mxu0 %v7293_v22  ;;  %v7331_v10 = vld [vmem:[%s9201_s1 + $0xa78] sm:$0xff]   ;;  %v5703_v15 = vcombine.low %v37_v14, %v37_v14  ;;  %v5704_v16 = vcombine.high %v37_v14, %v37_v14  ;;  %v7340_v21 = vld [vmem:[%s9201_s1 + $0xbc0] sm:$0xff]   ;;  %v7383_v14 = vld [vmem:[%s9201_s1 + $0xc50] sm:$0xff]  }
 0x13d   :  { %6670 = vmatpush3.bf16.msra.mxu1 %v7294_v23  ;;  %6649 = vmatprep.subr.bf16.mxu0 %v7295_v24  ;;  %v7334_v13 = vld [vmem:[%s9201_s1 + $0xab8] sm:$0xff]   ;;  %v7341_v22 = vld [vmem:[%s9201_s1 + $0xb00] sm:$0xff]   ;;  %v7343_v24 = vld [vmem:[%s9201_s1 + $0xb48] sm:$0xff]  }
 0x13e   :  { %6671 = vmatprep.subr.bf16.mxu1 %v7296_v25  ;;  %v7342_v23 = vld [vmem:[%s9201_s1 + $0xb80] sm:$0xff]   ;;  %v7344_v25 = vld [vmem:[%s9201_s1 + $0xbc8] sm:$0xff]  }
 0x140   :  { %6650 = vmatpush3.bf16.msra.mxu0 %v7297_v26  ;;  %v7345_v26 = vld [vmem:[%s9201_s1 + $0xb08] sm:$0xff]  }
 0x141   :  { %6672 = vmatpush3.bf16.msra.mxu1 %v7298_v27  ;;  %6679 = vmatprep.subr.bf16.mxu0 %v7303_v33  ;;  %v7346_v27 = vld [vmem:[%s9201_s1 + $0xb88] sm:$0xff]   ;;  %v7352_v33 = vld [vmem:[%s9201_s1 + $0xbd8] sm:$0xff]  }
 0x142   :  { %6701 = vmatprep.subr.bf16.mxu1 %v7304_v35  ;;  %v7354_v35 = vld [vmem:[%s9201_s1 + $0xb98] sm:$0xff]  }
 0x143   :  { %5129 = vmatmul.mubr.bf16.vlgmr.msra.gmra.mrb[36].mxu0 %v5699_v30  ;;  %v7349_v30 = vld [vmem:[%s9201_s1 + $0xb10] sm:$0xff]  }
 0x144   :  { %5169 = vmatmul.mubr.bf16.vlgmr.msra.gmra.mrb[36].mxu1 %v5701_v32  ;;  %6680 = vmatpush3.bf16.msra.mxu0 %v7305_v36  ;;  %v7351_v32 = vld [vmem:[%s9201_s1 + $0xb58] sm:$0xff]   ;;  %v7355_v36 = vld [vmem:[%s9201_s1 + $0xb60] sm:$0xff]  }
 0x145   :  { %6702 = vmatpush3.bf16.msra.mxu1 %v7306_v37  ;;  %6681 = vmatprep.subr.bf16.mxu0 %v7307_v38  ;;  %v7356_v37 = vld [vmem:[%s9201_s1 + $0xbe0] sm:$0xff]  }
 0x146   :  { %6703 = vmatprep.subr.bf16.mxu1 %v7308_v39  ;;  %5208 = vmatprep.mubr.bf16.mxu0 %v5704_v16  ;;  %v7357_v39 = vld [vmem:[%s9201_s1 + $0xb20] sm:$0xff]   ;;  %v7385_v16 = vld [vmem:[%s9201_s1 + $0xc10] sm:$0xff]  }
 0x147   :  { %5248 = vmatprep.mubr.bf16.mxu1 %v5706_v19  ;;  %v7388_v19 = vld [vmem:[%s9201_s1 + $0xcd8] sm:$0xff]  }
 0x148   :  { %6682 = vmatpush3.bf16.msra.mxu0 %v7309_v40 }
 0x149   :  { %6704 = vmatpush3.bf16.msra.mxu1 %v7310_v41  ;;  %6683 = vmatprep.subr.bf16.mxu0 %v7311_v42  ;;  %v7358_v41 = vld [vmem:[%s9201_s1 + $0xba0] sm:$0xff]  }
 0x14a   :  { %6705 = vmatprep.subr.bf16.mxu1 %v7312_v43 }
 0x14c   :  { %6684 = vmatpush3.bf16.msra.mxu0 %v7313_v44  ;;  %v7359_v44 = vld [vmem:[%s9201_s1 + $0xb68] sm:$0xff]  }
 0x14d   :  { %6706 = vmatpush3.bf16.msra.mxu1 %v7314_v45  ;;  %6685 = vmatprep.subr.bf16.mxu0 %v7315_v46 }
 0x14e   :  { %6707 = vmatprep.subr.bf16.mxu1 %v7316_v47  ;;  %v7360_v47 = vld [vmem:[%s9201_s1 + $0xbe8] sm:$0xff]  }
 0x150   :  { %6686 = vmatpush3.bf16.msra.mxu0 %v7317_v48 }
 0x151   :  { %6708 = vmatpush3.bf16.msra.mxu1 %v7318_v49  ;;  %6687 = vmatprep.subr.bf16.mxu0 %v7319_v50  ;;  %v7361_v50 = vld [vmem:[%s9201_s1 + $0xb28] sm:$0xff]  }
 0x152   :  { %6709 = vmatprep.subr.bf16.mxu1 %v7320_v51 }
 0x154   :  { %6688 = vmatpush3.bf16.msra.mxu0 %v7321_v53 }
 0x155   :  { %6710 = vmatpush3.bf16.msra.mxu1 %v7322_v55  ;;  %6689 = vmatprep.subr.bf16.mxu0 %v7323_v58  ;;  %v7363_v55 = vld [vmem:[%s9201_s1 + $0xb70] sm:$0xff]  }
 0x156   :  { %v6387_v52 = vpop.f32.mrb[12].mxu0  ;;  %6711 = vmatprep.subr.bf16.mxu1 %v7324_v61  ;;  %v7365_v58 = vld [vmem:[%s9201_s1 + $0xb30] sm:$0xff]   ;;  %v7368_v61 = vld [vmem:[%s9201_s1 + $0xbf8] sm:$0xff]  }
 0x157   :  { %v6409_v54 = vpop.f32.mrb[12].mxu1  ;;  %v6388_v56 = vpop.f32.mrb[13].mxu0 }
 0x158   :  { %v6410_v57 = vpop.f32.mrb[13].mxu1  ;;  %v6389_v59 = vadd.f32 %v6388_v56, %v6387_v52  ;;  %v6390_v62 = vpop.f32.mrb[14].mxu0  ;;  %6690 = vmatpush3.bf16.msra.mxu0 %v7325_v0  ;;  %v7362_v52 = vld [vmem:[%s9201_s1 + $0xba8] sm:$0xff]   ;;  %v39_v0 = vld [vmem:[%s9202_s0 + $0xb0] sm:$0xff] }
 0x159   :  { %v6411_v60 = vadd.f32 %v6410_v57, %v6409_v54  ;;  %v6412_v63 = vpop.f32.mrb[14].mxu1  ;;  %v6391_v3 = vpop.f32.mrb[15].mxu0  ;;  %6712 = vmatpush3.bf16.msra.mxu1 %v7326_v2  ;;  %6691 = vmatprep.subr.bf16.mxu0 %v7327_v5  ;;  %v7364_v57 = vld [vmem:[%s9201_s1 + $0xbf0] sm:$0xff]   ;;  %v7369_v62 = vld [vmem:[%s9201_s1 + $0xb38] sm:$0xff]   ;;  %v5707_v2 = vcombine.low %v39_v0, %v39_v0 }
 0x15a   :  { %v4651_v1 = vadd.f32 %v6389_v59, %v8538_v18  ;;  %v6413_v4 = vpop.f32.mrb[15].mxu1  ;;  %6713 = vmatprep.subr.bf16.mxu1 %v7328_v7  ;;  %v5705_v18 = vcombine.low %v38_v17, %v38_v17  ;;  %v7366_v59 = vld [vmem:[%s9201_s1 + $0xbb0] sm:$0xff]   ;;  %v7370_v63 = vld [vmem:[%s9201_s1 + $0xbb8] sm:$0xff]   ;;  %v5708_v3 = vcombine.high %v39_v0, %v39_v0  ;;  %v7376_v7 = vld [vmem:[%s9201_s1 + $0xcc0] sm:$0xff]  }
 0x15b   :  { %v7386_v17 = vld [vmem:[%s9201_s1 + $0xc90] sm:$0xff]  }
 0x15c   :  { %v8646_v6 = vadd.f32 %v6411_v60, %v4651_v1  ;;  %6692 = vmatpush3.bf16.msra.mxu0 %v7329_v8  ;;  %v7367_v60 = vld [vmem:[%s9201_s1 + $0xb78] sm:$0xff]   ;;  %v7377_v8 = vld [vmem:[%s9201_s1 + $0xc00] sm:$0xff]   ;;  %v7419_v0 = vld [vmem:[%s9201_s1 + $0xd50] sm:$0xff]  }
 0x15d   :  { %6714 = vmatpush3.bf16.msra.mxu1 %v7330_v9  ;;  %6693 = vmatprep.subr.bf16.mxu0 %v7331_v10  ;;  %v40_v1 = vld [vmem:[%s9202_s0 + $0xb8] sm:$0xff]  ;;  %v7378_v9 = vld [vmem:[%s9201_s1 + $0xc80] sm:$0xff]   ;;  %v7379_v10 = vld [vmem:[%s9201_s1 + $0xc48] sm:$0xff]  }
 0x15e   :  { %6715 = vmatprep.subr.bf16.mxu1 %v7332_v11  ;;  %v5709_v4 = vcombine.low %v40_v1, %v40_v1  ;;  %v5710_v5 = vcombine.high %v40_v1, %v40_v1  ;;  %v7380_v11 = vld [vmem:[%s9201_s1 + $0xcc8] sm:$0xff]   ;;  %v7420_v1 = vld [vmem:[%s9201_s1 + $0xdd0] sm:$0xff]  }
 0x160   :  { %6694 = vmatpush3.bf16.msra.mxu0 %v7333_v12  ;;  %v7381_v12 = vld [vmem:[%s9201_s1 + $0xc08] sm:$0xff]  }
 0x161   :  { %6716 = vmatpush3.bf16.msra.mxu1 %v7334_v13  ;;  %6723 = vmatprep.subr.bf16.mxu0 %v7339_v20  ;;  %v7382_v13 = vld [vmem:[%s9201_s1 + $0xc88] sm:$0xff]   ;;  %v7389_v20 = vld [vmem:[%s9201_s1 + $0xc18] sm:$0xff]  }
 0x162   :  { %6745 = vmatprep.subr.bf16.mxu1 %v7340_v21  ;;  %v7390_v21 = vld [vmem:[%s9201_s1 + $0xc98] sm:$0xff]  }
 0x163   :  { %5209 = vmatmul.mubr.bf16.vlgmr.msra.gmra.mrb[40].mxu0 %v5703_v15  ;;  %v7384_v15 = vld [vmem:[%s9201_s1 + $0xcd0] sm:$0xff]  }
 0x164   :  { %5249 = vmatmul.mubr.bf16.vlgmr.msra.gmra.mrb[40].mxu1 %v5705_v18  ;;  %6724 = vmatpush3.bf16.msra.mxu0 %v7341_v22  ;;  %v7387_v18 = vld [vmem:[%s9201_s1 + $0xc58] sm:$0xff]   ;;  %v7391_v22 = vld [vmem:[%s9201_s1 + $0xc60] sm:$0xff]  }
 0x165   :  { %6746 = vmatpush3.bf16.msra.mxu1 %v7342_v23  ;;  %6725 = vmatprep.subr.bf16.mxu0 %v7343_v24  ;;  %v7392_v23 = vld [vmem:[%s9201_s1 + $0xce0] sm:$0xff]  }
 0x166   :  { %6747 = vmatprep.subr.bf16.mxu1 %v7344_v25  ;;  %5288 = vmatprep.mubr.bf16.mxu0 %v5708_v3  ;;  %v7393_v25 = vld [vmem:[%s9201_s1 + $0xc20] sm:$0xff]   ;;  %v7422_v3 = vld [vmem:[%s9201_s1 + $0xd90] sm:$0xff]  }
 0x167   :  { %5328 = vmatprep.mubr.bf16.mxu1 %v5710_v5  ;;  %v7424_v5 = vld [vmem:[%s9201_s1 + $0xdd8] sm:$0xff]  }
 0x168   :  { %6726 = vmatpush3.bf16.msra.mxu0 %v7345_v26 }
 0x169   :  { %6748 = vmatpush3.bf16.msra.mxu1 %v7346_v27  ;;  %6727 = vmatprep.subr.bf16.mxu0 %v7347_v28  ;;  %v7394_v27 = vld [vmem:[%s9201_s1 + $0xca0] sm:$0xff]  }
 0x16a   :  { %6749 = vmatprep.subr.bf16.mxu1 %v7348_v29 }
 0x16c   :  { %6728 = vmatpush3.bf16.msra.mxu0 %v7349_v30 }
 0x16d   :  { %6750 = vmatpush3.bf16.msra.mxu1 %v7350_v31  ;;  %6729 = vmatprep.subr.bf16.mxu0 %v7351_v32  ;;  %v7395_v31 = vld [vmem:[%s9201_s1 + $0xc68] sm:$0xff]  }
 0x16e   :  { %6751 = vmatprep.subr.bf16.mxu1 %v7352_v33  ;;  %v7396_v33 = vld [vmem:[%s9201_s1 + $0xce8] sm:$0xff]  }
 0x170   :  { %6730 = vmatpush3.bf16.msra.mxu0 %v7353_v34 }
 0x171   :  { %6752 = vmatpush3.bf16.msra.mxu1 %v7354_v35  ;;  %6731 = vmatprep.subr.bf16.mxu0 %v7355_v36 }
 0x172   :  { %6753 = vmatprep.subr.bf16.mxu1 %v7356_v37  ;;  %v7397_v37 = vld [vmem:[%s9201_s1 + $0xc28] sm:$0xff]  }
 0x174   :  { %6732 = vmatpush3.bf16.msra.mxu0 %v7357_v39 }
 0x175   :  { %6754 = vmatpush3.bf16.msra.mxu1 %v7358_v41  ;;  %6733 = vmatprep.subr.bf16.mxu0 %v7359_v44  ;;  %v7401_v44 = vld [vmem:[%s9201_s1 + $0xc30] sm:$0xff]  }
 0x176   :  { %v6431_v38 = vpop.f32.mrb[16].mxu0  ;;  %6755 = vmatprep.subr.bf16.mxu1 %v7360_v47  ;;  %v7404_v47 = vld [vmem:[%s9201_s1 + $0xcf8] sm:$0xff]  }
 0x177   :  { %v6453_v40 = vpop.f32.mrb[16].mxu1  ;;  %v6432_v42 = vpop.f32.mrb[17].mxu0 }
 0x178   :  { %v6454_v43 = vpop.f32.mrb[17].mxu1  ;;  %v6433_v45 = vadd.f32 %v6432_v42, %v6431_v38  ;;  %v6434_v48 = vpop.f32.mrb[18].mxu0  ;;  %6734 = vmatpush3.bf16.msra.mxu0 %v7361_v50  ;;  %v7398_v38 = vld [vmem:[%s9201_s1 + $0xca8] sm:$0xff]   ;;  %v7399_v42 = vld [vmem:[%s9201_s1 + $0xc70] sm:$0xff]   ;;  %v41_v50 = vld [vmem:[%s9202_s0 + $0xc0] sm:$0xff] }
 0x179   :  { %v6455_v46 = vadd.f32 %v6454_v43, %v6453_v40  ;;  %v6456_v49 = vpop.f32.mrb[18].mxu1  ;;  %v6435_v53 = vpop.f32.mrb[19].mxu0  ;;  %6756 = vmatpush3.bf16.msra.mxu1 %v7362_v52  ;;  %6735 = vmatprep.subr.bf16.mxu0 %v7363_v55  ;;  %v7400_v43 = vld [vmem:[%s9201_s1 + $0xcf0] sm:$0xff]   ;;  %v7405_v48 = vld [vmem:[%s9201_s1 + $0xc38] sm:$0xff]   ;;  %v5711_v52 = vcombine.low %v41_v50, %v41_v50  ;;  %v7411_v55 = vld [vmem:[%s9201_s1 + $0xd40] sm:$0xff]  }
 0x17a   :  { %v4731_v51 = vadd.f32 %v6433_v45, %v8646_v6  ;;  %v6457_v54 = vpop.f32.mrb[19].mxu1  ;;  %6757 = vmatprep.subr.bf16.mxu1 %v7364_v57  ;;  %v7375_v6 = vld [vmem:[%s9201_s1 + $0xc40] sm:$0xff]   ;;  %v7402_v45 = vld [vmem:[%s9201_s1 + $0xcb0] sm:$0xff]   ;;  %v7406_v49 = vld [vmem:[%s9201_s1 + $0xcb8] sm:$0xff]   ;;  %v5712_v53 = vcombine.high %v41_v50, %v41_v50 }
 0x17b   :  { %v7412_v57 = vld [vmem:[%s9201_s1 + $0xdc0] sm:$0xff]   ;;  %v7455_v50 = vld [vmem:[%s9201_s1 + $0xe50] sm:$0xff]  }
 0x17c   :  { %v8751_v56 = vadd.f32 %v6455_v46, %v4731_v51  ;;  %6736 = vmatpush3.bf16.msra.mxu0 %v7365_v58  ;;  %v7403_v46 = vld [vmem:[%s9201_s1 + $0xc78] sm:$0xff]   ;;  %v42_v51 = vld [vmem:[%s9202_s0 + $0xc8] sm:$0xff]  ;;  %v7413_v58 = vld [vmem:[%s9201_s1 + $0xd00] sm:$0xff]  }
 0x17d   :  { %6758 = vmatpush3.bf16.msra.mxu1 %v7366_v59  ;;  %6737 = vmatprep.subr.bf16.mxu0 %v7367_v60  ;;  %v5713_v54 = vcombine.low %v42_v51, %v42_v51  ;;  %v7414_v59 = vld [vmem:[%s9201_s1 + $0xd80] sm:$0xff]   ;;  %v7415_v60 = vld [vmem:[%s9201_s1 + $0xd48] sm:$0xff]  }
 0x17e   :  { %6759 = vmatprep.subr.bf16.mxu1 %v7368_v61  ;;  %v7416_v61 = vld [vmem:[%s9201_s1 + $0xdc8] sm:$0xff]  }
 0x180   :  { %6738 = vmatpush3.bf16.msra.mxu0 %v7369_v62  ;;  %v7417_v62 = vld [vmem:[%s9201_s1 + $0xd08] sm:$0xff]  }
 0x181   :  { %6760 = vmatpush3.bf16.msra.mxu1 %v7370_v63  ;;  %6767 = vmatprep.subr.bf16.mxu0 %v7375_v6  ;;  %v7418_v63 = vld [vmem:[%s9201_s1 + $0xd88] sm:$0xff]   ;;  %v7425_v6 = vld [vmem:[%s9201_s1 + $0xd18] sm:$0xff]  }
 0x182   :  { %6789 = vmatprep.subr.bf16.mxu1 %v7376_v7  ;;  %v7426_v7 = vld [vmem:[%s9201_s1 + $0xd98] sm:$0xff]  }
 0x183   :  { %5289 = vmatmul.mubr.bf16.vlgmr.msra.gmra.mrb[44].mxu0 %v5707_v2  ;;  %v7421_v2 = vld [vmem:[%s9201_s1 + $0xd10] sm:$0xff]  }
 0x184   :  { %5329 = vmatmul.mubr.bf16.vlgmr.msra.gmra.mrb[44].mxu1 %v5709_v4  ;;  %6768 = vmatpush3.bf16.msra.mxu0 %v7377_v8  ;;  %v7423_v4 = vld [vmem:[%s9201_s1 + $0xd58] sm:$0xff]   ;;  %v7427_v8 = vld [vmem:[%s9201_s1 + $0xd60] sm:$0xff]  }
 0x185   :  { %6790 = vmatpush3.bf16.msra.mxu1 %v7378_v9  ;;  %6769 = vmatprep.subr.bf16.mxu0 %v7379_v10  ;;  %v7428_v9 = vld [vmem:[%s9201_s1 + $0xde0] sm:$0xff]  }
 0x186   :  { %6791 = vmatprep.subr.bf16.mxu1 %v7380_v11  ;;  %5368 = vmatprep.mubr.bf16.mxu0 %v5712_v53  ;;  %v7429_v11 = vld [vmem:[%s9201_s1 + $0xd20] sm:$0xff]   ;;  %v7458_v53 = vld [vmem:[%s9201_s1 + $0xe90] sm:$0xff]  }
 0x188   :  { %6770 = vmatpush3.bf16.msra.mxu0 %v7381_v12 }
 0x189   :  { %6792 = vmatpush3.bf16.msra.mxu1 %v7382_v13  ;;  %6771 = vmatprep.subr.bf16.mxu0 %v7383_v14  ;;  %v7430_v13 = vld [vmem:[%s9201_s1 + $0xda0] sm:$0xff]  }
 0x18a   :  { %6793 = vmatprep.subr.bf16.mxu1 %v7384_v15 }
 0x18c   :  { %6772 = vmatpush3.bf16.msra.mxu0 %v7385_v16  ;;  %v7431_v16 = vld [vmem:[%s9201_s1 + $0xd68] sm:$0xff]  }
 0x18d   :  { %6794 = vmatpush3.bf16.msra.mxu1 %v7386_v17  ;;  %6773 = vmatprep.subr.bf16.mxu0 %v7387_v18 }
 0x18e   :  { %6795 = vmatprep.subr.bf16.mxu1 %v7388_v19  ;;  %v7432_v19 = vld [vmem:[%s9201_s1 + $0xde8] sm:$0xff]  }
 0x190   :  { %6774 = vmatpush3.bf16.msra.mxu0 %v7389_v20 }
 0x191   :  { %6796 = vmatpush3.bf16.msra.mxu1 %v7390_v21  ;;  %6775 = vmatprep.subr.bf16.mxu0 %v7391_v22  ;;  %v7433_v22 = vld [vmem:[%s9201_s1 + $0xd28] sm:$0xff]  }
 0x192   :  { %6797 = vmatprep.subr.bf16.mxu1 %v7392_v23 }
 0x194   :  { %6776 = vmatpush3.bf16.msra.mxu0 %v7393_v25 }
 0x195   :  { %6798 = vmatpush3.bf16.msra.mxu1 %v7394_v27  ;;  %6777 = vmatprep.subr.bf16.mxu0 %v7395_v31  ;;  %v7435_v27 = vld [vmem:[%s9201_s1 + $0xd70] sm:$0xff]  }
 0x196   :  { %v6475_v24 = vpop.f32.mrb[20].mxu0  ;;  %6799 = vmatprep.subr.bf16.mxu1 %v7396_v33  ;;  %v7438_v31 = vld [vmem:[%s9201_s1 + $0xdb0] sm:$0xff]   ;;  %v7440_v33 = vld [vmem:[%s9201_s1 + $0xdf8] sm:$0xff]  }
 0x197   :  { %v6497_v26 = vpop.f32.mrb[20].mxu1  ;;  %v6476_v28 = vpop.f32.mrb[21].mxu0 }
 0x198   :  { %v6477_v29 = vadd.f32 %v6476_v28, %v6475_v24  ;;  %v6498_v30 = vpop.f32.mrb[21].mxu1  ;;  %v6478_v34 = vpop.f32.mrb[22].mxu0  ;;  %6778 = vmatpush3.bf16.msra.mxu0 %v7397_v37  ;;  %v7434_v24 = vld [vmem:[%s9201_s1 + $0xda8] sm:$0xff]  }
 0x199   :  { %v6499_v32 = vadd.f32 %v6498_v30, %v6497_v26  ;;  %v6500_v36 = vpop.f32.mrb[22].mxu1  ;;  %v6479_v39 = vpop.f32.mrb[23].mxu0  ;;  %6800 = vmatpush3.bf16.msra.mxu1 %v7398_v38  ;;  %6779 = vmatprep.subr.bf16.mxu0 %v7399_v42  ;;  %v7437_v30 = vld [vmem:[%s9201_s1 + $0xd30] sm:$0xff]   ;;  %v7441_v34 = vld [vmem:[%s9201_s1 + $0xd38] sm:$0xff]   ;;  %v7447_v42 = vld [vmem:[%s9201_s1 + $0xe40] sm:$0xff]  }
 0x19a   :  { %v4811_v35 = vadd.f32 %v6477_v29, %v8751_v56  ;;  %v6501_v41 = vpop.f32.mrb[23].mxu1  ;;  %6801 = vmatprep.subr.bf16.mxu1 %v7400_v43  ;;  %v5714_v56 = vcombine.high %v42_v51, %v42_v51  ;;  %v7436_v29 = vld [vmem:[%s9201_s1 + $0xdf0] sm:$0xff]   ;;  %v44_v39 = vld [vmem:[%s9202_s0 + $0xd8] sm:$0xff]  ;;  %v7448_v43 = vld [vmem:[%s9201_s1 + $0xec0] sm:$0xff]  }
 0x19b   :  { %v43_v36 = vld [vmem:[%s9202_s0 + $0xd0] sm:$0xff]  ;;  %v5718_v41 = vcombine.high %v44_v39, %v44_v39 }
 0x19c   :  { %v8853_v40 = vadd.f32 %v6499_v32, %v4811_v35  ;;  %6780 = vmatpush3.bf16.msra.mxu0 %v7401_v44  ;;  %5408 = vmatprep.mubr.bf16.mxu1 %v5714_v56  ;;  %v7439_v32 = vld [vmem:[%s9201_s1 + $0xd78] sm:$0xff]   ;;  %v5715_v37 = vcombine.low %v43_v36, %v43_v36  ;;  %v5716_v38 = vcombine.high %v43_v36, %v43_v36  ;;  %v7449_v44 = vld [vmem:[%s9201_s1 + $0xe00] sm:$0xff]   ;;  %v7456_v51 = vld [vmem:[%s9201_s1 + $0xed0] sm:$0xff]  }
 0x19d   :  { %6802 = vmatpush3.bf16.msra.mxu1 %v7402_v45  ;;  %6781 = vmatprep.subr.bf16.mxu0 %v7403_v46  ;;  %v7442_v35 = vld [vmem:[%s9201_s1 + $0xdb8] sm:$0xff]   ;;  %v7450_v45 = vld [vmem:[%s9201_s1 + $0xe80] sm:$0xff]   ;;  %v7451_v46 = vld [vmem:[%s9201_s1 + $0xe48] sm:$0xff]  }
 0x19e   :  { %6803 = vmatprep.subr.bf16.mxu1 %v7404_v47  ;;  %v7452_v47 = vld [vmem:[%s9201_s1 + $0xec8] sm:$0xff]   ;;  %v7461_v56 = vld [vmem:[%s9201_s1 + $0xe18] sm:$0xff]   ;;  %v7491_v36 = vld [vmem:[%s9201_s1 + $0xf50] sm:$0xff]  }
 0x1a0   :  { %6782 = vmatpush3.bf16.msra.mxu0 %v7405_v48  ;;  %v7453_v48 = vld [vmem:[%s9201_s1 + $0xe08] sm:$0xff]  }
 0x1a1   :  { %6804 = vmatpush3.bf16.msra.mxu1 %v7406_v49  ;;  %6811 = vmatprep.subr.bf16.mxu0 %v7411_v55  ;;  %v7454_v49 = vld [vmem:[%s9201_s1 + $0xe88] sm:$0xff]   ;;  %v7460_v55 = vld [vmem:[%s9201_s1 + $0xed8] sm:$0xff]  }
 0x1a2   :  { %6833 = vmatprep.subr.bf16.mxu1 %v7412_v57  ;;  %v7462_v57 = vld [vmem:[%s9201_s1 + $0xe98] sm:$0xff]  }
 0x1a3   :  { %5369 = vmatmul.mubr.bf16.vlgmr.msra.gmra.mrb[48].mxu0 %v5711_v52  ;;  %v7457_v52 = vld [vmem:[%s9201_s1 + $0xe10] sm:$0xff]  }
 0x1a4   :  { %5409 = vmatmul.mubr.bf16.vlgmr.msra.gmra.mrb[48].mxu1 %v5713_v54  ;;  %6812 = vmatpush3.bf16.msra.mxu0 %v7413_v58  ;;  %v7459_v54 = vld [vmem:[%s9201_s1 + $0xe58] sm:$0xff]   ;;  %v7463_v58 = vld [vmem:[%s9201_s1 + $0xe60] sm:$0xff]  }
 0x1a5   :  { %6834 = vmatpush3.bf16.msra.mxu1 %v7414_v59  ;;  %6813 = vmatprep.subr.bf16.mxu0 %v7415_v60  ;;  %v7464_v59 = vld [vmem:[%s9201_s1 + $0xee0] sm:$0xff]  }
 0x1a6   :  { %6835 = vmatprep.subr.bf16.mxu1 %v7416_v61  ;;  %5448 = vmatprep.mubr.bf16.mxu0 %v5716_v38  ;;  %v7465_v61 = vld [vmem:[%s9201_s1 + $0xe20] sm:$0xff]   ;;  %v7493_v38 = vld [vmem:[%s9201_s1 + $0xf10] sm:$0xff]  }
 0x1a7   :  { %5488 = vmatprep.mubr.bf16.mxu1 %v5718_v41  ;;  %v7496_v41 = vld [vmem:[%s9201_s1 + $0xfd8] sm:$0xff]  }
 0x1a8   :  { %6814 = vmatpush3.bf16.msra.mxu0 %v7417_v62 }
 0x1a9   :  { %6836 = vmatpush3.bf16.msra.mxu1 %v7418_v63  ;;  %6815 = vmatprep.subr.bf16.mxu0 %v7419_v0  ;;  %v7466_v63 = vld [vmem:[%s9201_s1 + $0xea0] sm:$0xff]  }
 0x1aa   :  { %6837 = vmatprep.subr.bf16.mxu1 %v7420_v1 }
 0x1ac   :  { %6816 = vmatpush3.bf16.msra.mxu0 %v7421_v2  ;;  %v7467_v2 = vld [vmem:[%s9201_s1 + $0xe68] sm:$0xff]  }
 0x1ad   :  { %6838 = vmatpush3.bf16.msra.mxu1 %v7422_v3  ;;  %6817 = vmatprep.subr.bf16.mxu0 %v7423_v4 }
 0x1ae   :  { %6839 = vmatprep.subr.bf16.mxu1 %v7424_v5  ;;  %v7468_v5 = vld [vmem:[%s9201_s1 + $0xee8] sm:$0xff]  }
 0x1b0   :  { %6818 = vmatpush3.bf16.msra.mxu0 %v7425_v6 }
 0x1b1   :  { %6840 = vmatpush3.bf16.msra.mxu1 %v7426_v7  ;;  %6819 = vmatprep.subr.bf16.mxu0 %v7427_v8  ;;  %v7469_v8 = vld [vmem:[%s9201_s1 + $0xe28] sm:$0xff]  }
 0x1b2   :  { %6841 = vmatprep.subr.bf16.mxu1 %v7428_v9 }
 0x1b4   :  { %6820 = vmatpush3.bf16.msra.mxu0 %v7429_v11 }
 0x1b5   :  { %6842 = vmatpush3.bf16.msra.mxu1 %v7430_v13  ;;  %6821 = vmatprep.subr.bf16.mxu0 %v7431_v16  ;;  %v7471_v13 = vld [vmem:[%s9201_s1 + $0xe70] sm:$0xff]  }
 0x1b6   :  { %v6519_v10 = vpop.f32.mrb[24].mxu0  ;;  %6843 = vmatprep.subr.bf16.mxu1 %v7432_v19  ;;  %v7473_v16 = vld [vmem:[%s9201_s1 + $0xe30] sm:$0xff]   ;;  %v7476_v19 = vld [vmem:[%s9201_s1 + $0xef8] sm:$0xff]  }
 0x1b7   :  { %v6541_v12 = vpop.f32.mrb[24].mxu1  ;;  %v6520_v14 = vpop.f32.mrb[25].mxu0 }
 0x1b8   :  { %v6542_v15 = vpop.f32.mrb[25].mxu1  ;;  %v6521_v17 = vadd.f32 %v6520_v14, %v6519_v10  ;;  %v6522_v20 = vpop.f32.mrb[26].mxu0  ;;  %6822 = vmatpush3.bf16.msra.mxu0 %v7433_v22  ;;  %v7470_v10 = vld [vmem:[%s9201_s1 + $0xea8] sm:$0xff]   ;;  %v45_v22 = vld [vmem:[%s9202_s0 + $0xe0] sm:$0xff] }
 0x1b9   :  { %v6543_v18 = vadd.f32 %v6542_v15, %v6541_v12  ;;  %v6544_v21 = vpop.f32.mrb[26].mxu1  ;;  %v6523_v25 = vpop.f32.mrb[27].mxu0  ;;  %6844 = vmatpush3.bf16.msra.mxu1 %v7434_v24  ;;  %6823 = vmatprep.subr.bf16.mxu0 %v7435_v27  ;;  %v7472_v15 = vld [vmem:[%s9201_s1 + $0xef0] sm:$0xff]   ;;  %v7477_v20 = vld [vmem:[%s9201_s1 + $0xe38] sm:$0xff]   ;;  %v5719_v24 = vcombine.low %v45_v22, %v45_v22 }
 0x1ba   :  { %v4891_v23 = vadd.f32 %v6521_v17, %v8853_v40  ;;  %v6545_v26 = vpop.f32.mrb[27].mxu1  ;;  %6845 = vmatprep.subr.bf16.mxu1 %v7436_v29  ;;  %v5717_v40 = vcombine.low %v44_v39, %v44_v39  ;;  %v7474_v17 = vld [vmem:[%s9201_s1 + $0xeb0] sm:$0xff]   ;;  %v7478_v21 = vld [vmem:[%s9201_s1 + $0xeb8] sm:$0xff]   ;;  %v5720_v25 = vcombine.high %v45_v22, %v45_v22  ;;  %v7484_v29 = vld [vmem:[%s9201_s1 + $0xfc0] sm:$0xff]  }
 0x1bb   :  { %v7494_v39 = vld [vmem:[%s9201_s1 + $0xf90] sm:$0xff]  }
 0x1bc   :  { %v8961_v28 = vadd.f32 %v6543_v18, %v4891_v23  ;;  %6824 = vmatpush3.bf16.msra.mxu0 %v7437_v30  ;;  %v7475_v18 = vld [vmem:[%s9201_s1 + $0xe78] sm:$0xff]   ;;  %v46_v23 = vld [vmem:[%s9202_s0 + $0xe8] sm:$0xff]  ;;  %v7485_v30 = vld [vmem:[%s9201_s1 + $0xf00] sm:$0xff]  }
 0x1bd   :  { %6846 = vmatpush3.bf16.msra.mxu1 %v7438_v31  ;;  %6825 = vmatprep.subr.bf16.mxu0 %v7439_v32  ;;  %v5721_v26 = vcombine.low %v46_v23, %v46_v23  ;;  %v5722_v27 = vcombine.high %v46_v23, %v46_v23  ;;  %v7486_v31 = vld [vmem:[%s9201_s1 + $0xf80] sm:$0xff]   ;;  %v7487_v32 = vld [vmem:[%s9201_s1 + $0xf48] sm:$0xff]  }
 0x1be   :  { %6847 = vmatprep.subr.bf16.mxu1 %v7440_v33  ;;  %v7488_v33 = vld [vmem:[%s9201_s1 + $0xfc8] sm:$0xff]  }
 0x1c0   :  { %6826 = vmatpush3.bf16.msra.mxu0 %v7441_v34  ;;  %v7489_v34 = vld [vmem:[%s9201_s1 + $0xf08] sm:$0xff]  }
 0x1c1   :  { %6848 = vmatpush3.bf16.msra.mxu1 %v7442_v35  ;;  %6855 = vmatprep.subr.bf16.mxu0 %v7447_v42  ;;  %v7490_v35 = vld [vmem:[%s9201_s1 + $0xf88] sm:$0xff]   ;;  %v7497_v42 = vld [vmem:[%s9201_s1 + $0xf18] sm:$0xff]  }
 0x1c2   :  { %6877 = vmatprep.subr.bf16.mxu1 %v7448_v43  ;;  %v7498_v43 = vld [vmem:[%s9201_s1 + $0xf98] sm:$0xff]  }
 0x1c3   :  { %5449 = vmatmul.mubr.bf16.vlgmr.msra.gmra.mrb[52].mxu0 %v5715_v37  ;;  %v7492_v37 = vld [vmem:[%s9201_s1 + $0xfd0] sm:$0xff]  }
 0x1c4   :  { %5489 = vmatmul.mubr.bf16.vlgmr.msra.gmra.mrb[52].mxu1 %v5717_v40  ;;  %6856 = vmatpush3.bf16.msra.mxu0 %v7449_v44  ;;  %v7495_v40 = vld [vmem:[%s9201_s1 + $0xf58] sm:$0xff]   ;;  %v7499_v44 = vld [vmem:[%s9201_s1 + $0xf60] sm:$0xff]  }
 0x1c5   :  { %6878 = vmatpush3.bf16.msra.mxu1 %v7450_v45  ;;  %6857 = vmatprep.subr.bf16.mxu0 %v7451_v46  ;;  %v7500_v45 = vld [vmem:[%s9201_s1 + $0xfe0] sm:$0xff]  }
 0x1c6   :  { %6879 = vmatprep.subr.bf16.mxu1 %v7452_v47  ;;  %5528 = vmatprep.mubr.bf16.mxu0 %v5720_v25  ;;  %v7501_v46 = vld [vmem:[%s9201_s1 + $0xf20] sm:$0xff]  }
 0x1c7   :  { %5568 = vmatprep.mubr.bf16.mxu1 %v5722_v27 }
 0x1c8   :  { %6858 = vmatpush3.bf16.msra.mxu0 %v7453_v48  ;;  %v7502_v48 = vld [vmem:[%s9201_s1 + $0xfa0] sm:$0xff]  }
 0x1c9   :  { %6880 = vmatpush3.bf16.msra.mxu1 %v7454_v49  ;;  %6859 = vmatprep.subr.bf16.mxu0 %v7455_v50 }
 0x1ca   :  { %6881 = vmatprep.subr.bf16.mxu1 %v7456_v51 }
 0x1cc   :  { %6860 = vmatpush3.bf16.msra.mxu0 %v7457_v52 }
 0x1cd   :  { %6882 = vmatpush3.bf16.msra.mxu1 %v7458_v53  ;;  %6861 = vmatprep.subr.bf16.mxu0 %v7459_v54  ;;  %v7503_v54 = vld [vmem:[%s9201_s1 + $0xf68] sm:$0xff]  }
 0x1ce   :  { %6883 = vmatprep.subr.bf16.mxu1 %v7460_v55 }
 0x1d0   :  { %6862 = vmatpush3.bf16.msra.mxu0 %v7461_v56  ;;  %v7504_v56 = vld [vmem:[%s9201_s1 + $0xfe8] sm:$0xff]  }
 0x1d1   :  { %6884 = vmatpush3.bf16.msra.mxu1 %v7462_v57  ;;  %6863 = vmatprep.subr.bf16.mxu0 %v7463_v58 }
 0x1d2   :  { %6885 = vmatprep.subr.bf16.mxu1 %v7464_v59  ;;  %v7505_v59 = vld [vmem:[%s9201_s1 + $0xf28] sm:$0xff]  }
 0x1d4   :  { %6864 = vmatpush3.bf16.msra.mxu0 %v7465_v61  ;;  %v7506_v61 = vld [vmem:[%s9201_s1 + $0xfa8] sm:$0xff]  }
 0x1d5   :  { %6886 = vmatpush3.bf16.msra.mxu1 %v7466_v63  ;;  %6865 = vmatprep.subr.bf16.mxu0 %v7467_v2  ;;  %v7509_v2 = vld [vmem:[%s9201_s1 + $0xf30] sm:$0xff]  }
 0x1d6   :  { %v6563_v60 = vpop.f32.mrb[28].mxu0  ;;  %6887 = vmatprep.subr.bf16.mxu1 %v7468_v5  ;;  %v7512_v5 = vld [vmem:[%s9201_s1 + $0xff8] sm:$0xff]  }
 0x1d7   :  { %v6585_v62 = vpop.f32.mrb[28].mxu1  ;;  %v6564_v0 = vpop.f32.mrb[29].mxu0 }
 0x1d8   :  { %v6586_v1 = vpop.f32.mrb[29].mxu1  ;;  %v6565_v3 = vadd.f32 %v6564_v0, %v6563_v60  ;;  %v6566_v6 = vpop.f32.mrb[30].mxu0  ;;  %6866 = vmatpush3.bf16.msra.mxu0 %v7469_v8  ;;  %v7507_v0 = vld [vmem:[%s9201_s1 + $0xf70] sm:$0xff]  }
 0x1d9   :  { %v6587_v4 = vadd.f32 %v6586_v1, %v6585_v62  ;;  %v6588_v7 = vpop.f32.mrb[30].mxu1  ;;  %v6567_v11 = vpop.f32.mrb[31].mxu0  ;;  %6888 = vmatpush3.bf16.msra.mxu1 %v7470_v10  ;;  %6867 = vmatprep.subr.bf16.mxu0 %v7471_v13  ;;  %v7508_v1 = vld [vmem:[%s9201_s1 + $0xff0] sm:$0xff]   ;;  %v7513_v6 = vld [vmem:[%s9201_s1 + $0xf38] sm:$0xff]  }
 0x1da   :  { %v4971_v9 = vadd.f32 %v6565_v3, %v8961_v28  ;;  %v6589_v12 = vpop.f32.mrb[31].mxu1  ;;  %6889 = vmatprep.subr.bf16.mxu1 %v7472_v15  ;;  %v7483_v28 = vld [vmem:[%s9201_s1 + $0xf40] sm:$0xff]   ;;  %v7510_v3 = vld [vmem:[%s9201_s1 + $0xfb0] sm:$0xff]   ;;  %v7514_v7 = vld [vmem:[%s9201_s1 + $0xfb8] sm:$0xff]  }
 0x1db   :  { %v47_v8 = vld [vmem:[%s9202_s0 + $0xf0] sm:$0xff] }
 0x1dc   :  { %v9066_v14 = vadd.f32 %v6587_v4, %v4971_v9  ;;  %6868 = vmatpush3.bf16.msra.mxu0 %v7473_v16  ;;  %v7511_v4 = vld [vmem:[%s9201_s1 + $0xf78] sm:$0xff]   ;;  %v5723_v10 = vcombine.low %v47_v8, %v47_v8  ;;  %v5724_v11 = vcombine.high %v47_v8, %v47_v8 }
 0x1dd   :  { %6890 = vmatpush3.bf16.msra.mxu1 %v7474_v17  ;;  %6869 = vmatprep.subr.bf16.mxu0 %v7475_v18  ;;  %v48_v9 = vld [vmem:[%s9202_s0 + $0xf8] sm:$0xff] }
 0x1de   :  { %6891 = vmatprep.subr.bf16.mxu1 %v7476_v19  ;;  %v5725_v12 = vcombine.low %v48_v9, %v48_v9  ;;  %v5726_v13 = vcombine.high %v48_v9, %v48_v9 }
 0x1e0   :  { %6870 = vmatpush3.bf16.msra.mxu0 %v7477_v20 }
 0x1e1   :  { %6892 = vmatpush3.bf16.msra.mxu1 %v7478_v21  ;;  %6899 = vmatprep.subr.bf16.mxu0 %v7483_v28 }
 0x1e2   :  { %6921 = vmatprep.subr.bf16.mxu1 %v7484_v29 }
 0x1e3   :  { %5529 = vmatmul.mubr.bf16.vlgmr.msra.gmra.mrb[56].mxu0 %v5719_v24 }
 0x1e4   :  { %5569 = vmatmul.mubr.bf16.vlgmr.msra.gmra.mrb[56].mxu1 %v5721_v26  ;;  %6900 = vmatpush3.bf16.msra.mxu0 %v7485_v30 }
 0x1e5   :  { %6922 = vmatpush3.bf16.msra.mxu1 %v7486_v31  ;;  %6901 = vmatprep.subr.bf16.mxu0 %v7487_v32 }
 0x1e6   :  { %6923 = vmatprep.subr.bf16.mxu1 %v7488_v33  ;;  %5608 = vmatprep.mubr.bf16.mxu0 %v5724_v11 }
 0x1e7   :  { %5648 = vmatprep.mubr.bf16.mxu1 %v5726_v13 }
 0x1e8   :  { %6902 = vmatpush3.bf16.msra.mxu0 %v7489_v34 }
 0x1e9   :  { %6924 = vmatpush3.bf16.msra.mxu1 %v7490_v35  ;;  %6903 = vmatprep.subr.bf16.mxu0 %v7491_v36 }
 0x1ea   :  { %6925 = vmatprep.subr.bf16.mxu1 %v7492_v37 }
 0x1ec   :  { %6904 = vmatpush3.bf16.msra.mxu0 %v7493_v38 }
 0x1ed   :  { %6926 = vmatpush3.bf16.msra.mxu1 %v7494_v39  ;;  %6905 = vmatprep.subr.bf16.mxu0 %v7495_v40 }
 0x1ee   :  { %6927 = vmatprep.subr.bf16.mxu1 %v7496_v41 }
 0x1f0   :  { %6906 = vmatpush3.bf16.msra.mxu0 %v7497_v42 }
 0x1f1   :  { %6928 = vmatpush3.bf16.msra.mxu1 %v7498_v43  ;;  %6907 = vmatprep.subr.bf16.mxu0 %v7499_v44 }
 0x1f2   :  { %6929 = vmatprep.subr.bf16.mxu1 %v7500_v45 }
 0x1f4   :  { %6908 = vmatpush3.bf16.msra.mxu0 %v7501_v46 }
 0x1f5   :  { %6930 = vmatpush3.bf16.msra.mxu1 %v7502_v48  ;;  %6909 = vmatprep.subr.bf16.mxu0 %v7503_v54 }
 0x1f6   :  { %v6607_v47 = vpop.f32.mrb[32].mxu0  ;;  %6931 = vmatprep.subr.bf16.mxu1 %v7504_v56 }
 0x1f7   :  { %v6629_v49 = vpop.f32.mrb[32].mxu1  ;;  %v6608_v50 = vpop.f32.mrb[33].mxu0 }
 0x1f8   :  { %v6630_v51 = vpop.f32.mrb[33].mxu1  ;;  %v6609_v52 = vadd.f32 %v6608_v50, %v6607_v47  ;;  %v6610_v55 = vpop.f32.mrb[34].mxu0  ;;  %6910 = vmatpush3.bf16.msra.mxu0 %v7505_v59 }
 0x1f9   :  { %v6631_v53 = vadd.f32 %v6630_v51, %v6629_v49  ;;  %v6632_v57 = vpop.f32.mrb[34].mxu1  ;;  %v6611_v60 = vpop.f32.mrb[35].mxu0  ;;  %6932 = vmatpush3.bf16.msra.mxu1 %v7506_v61  ;;  %6911 = vmatprep.subr.bf16.mxu0 %v7507_v0 }
 0x1fa   :  { %v5051_v58 = vadd.f32 %v6609_v52, %v9066_v14  ;;  %v6633_v62 = vpop.f32.mrb[35].mxu1  ;;  %6933 = vmatprep.subr.bf16.mxu1 %v7508_v1 }
 0x1fc   :  { %v5091_v63 = vadd.f32 %v6631_v53, %v5051_v58  ;;  %6912 = vmatpush3.bf16.msra.mxu0 %v7509_v2 }
 0x1fd   :  { %6934 = vmatpush3.bf16.msra.mxu1 %v7510_v3  ;;  %6913 = vmatprep.subr.bf16.mxu0 %v7511_v4 }
 0x1fe   :  { %6935 = vmatprep.subr.bf16.mxu1 %v7512_v5 }
 0x200   :  { %6914 = vmatpush3.bf16.msra.mxu0 %v7513_v6 }
 0x201   :  { %6936 = vmatpush3.bf16.msra.mxu1 %v7514_v7 }
 0x203   :  { %5609 = vmatmul.mubr.bf16.vlgmr.msra.gmra.mrb[60].mxu0 %v5723_v10 }
 0x204   :  { %5649 = vmatmul.mubr.bf16.vlgmr.msra.gmra.mrb[60].mxu1 %v5725_v12 }
 0x216   :  { %v6651_v14 = vpop.f32.mrb[36].mxu0 }
 0x217   :  { %v6673_v15 = vpop.f32.mrb[36].mxu1  ;;  %v6652_v16 = vpop.f32.mrb[37].mxu0 }
 0x218   :  { %v6653_v17 = vadd.f32 %v6652_v16, %v6651_v14  ;;  %v6674_v18 = vpop.f32.mrb[37].mxu1  ;;  %v6654_v19 = vpop.f32.mrb[38].mxu0 }
 0x219   :  { %v6675_v20 = vadd.f32 %v6674_v18, %v6673_v15  ;;  %v6676_v21 = vpop.f32.mrb[38].mxu1  ;;  %v6655_v22 = vpop.f32.mrb[39].mxu0 }
 0x21a   :  { %v5131_v23 = vadd.f32 %v6653_v17, %v5091_v63  ;;  %v6677_v24 = vpop.f32.mrb[39].mxu1 }
 0x21c   :  { %v5171_v25 = vadd.f32 %v6675_v20, %v5131_v23 }
 0x236   :  { %v6695_v26 = vpop.f32.mrb[40].mxu0 }
 0x237   :  { %v6717_v27 = vpop.f32.mrb[40].mxu1  ;;  %v6696_v28 = vpop.f32.mrb[41].mxu0 }
 0x238   :  { %v6718_v29 = vpop.f32.mrb[41].mxu1  ;;  %v6697_v30 = vadd.f32 %v6696_v28, %v6695_v26  ;;  %v6698_v32 = vpop.f32.mrb[42].mxu0 }
 0x239   :  { %v6719_v31 = vadd.f32 %v6718_v29, %v6717_v27  ;;  %v6720_v33 = vpop.f32.mrb[42].mxu1  ;;  %v6699_v34 = vpop.f32.mrb[43].mxu0 }
 0x23a   :  { %v6721_v35 = vpop.f32.mrb[43].mxu1  ;;  %v5211_v36 = vadd.f32 %v6697_v30, %v5171_v25 }
 0x23c   :  { %v5251_v37 = vadd.f32 %v6719_v31, %v5211_v36 }
 0x256   :  { %v6739_v38 = vpop.f32.mrb[44].mxu0 }
 0x257   :  { %v6761_v39 = vpop.f32.mrb[44].mxu1  ;;  %v6740_v40 = vpop.f32.mrb[45].mxu0 }
 0x258   :  { %v6741_v41 = vadd.f32 %v6740_v40, %v6739_v38  ;;  %v6762_v42 = vpop.f32.mrb[45].mxu1  ;;  %v6742_v43 = vpop.f32.mrb[46].mxu0 }
 0x259   :  { %v6763_v44 = vadd.f32 %v6762_v42, %v6761_v39  ;;  %v6764_v45 = vpop.f32.mrb[46].mxu1  ;;  %v6743_v46 = vpop.f32.mrb[47].mxu0 }
 0x25a   :  { %v5291_v47 = vadd.f32 %v6741_v41, %v5251_v37  ;;  %v6765_v48 = vpop.f32.mrb[47].mxu1 }
 0x25c   :  { %v5331_v49 = vadd.f32 %v6763_v44, %v5291_v47 }
 0x276   :  { %v6783_v50 = vpop.f32.mrb[48].mxu0 }
 0x277   :  { %v6805_v51 = vpop.f32.mrb[48].mxu1  ;;  %v6784_v52 = vpop.f32.mrb[49].mxu0 }
 0x278   :  { %v6785_v53 = vadd.f32 %v6784_v52, %v6783_v50  ;;  %v6806_v54 = vpop.f32.mrb[49].mxu1  ;;  %v6786_v55 = vpop.f32.mrb[50].mxu0 }
 0x279   :  { %v6807_v56 = vadd.f32 %v6806_v54, %v6805_v51  ;;  %v6808_v57 = vpop.f32.mrb[50].mxu1  ;;  %v6787_v58 = vpop.f32.mrb[51].mxu0 }
 0x27a   :  { %v5371_v59 = vadd.f32 %v6785_v53, %v5331_v49  ;;  %v6809_v60 = vpop.f32.mrb[51].mxu1 }
 0x27c   :  { %v5411_v61 = vadd.f32 %v6807_v56, %v5371_v59 }
 0x296   :  { %v6827_v62 = vpop.f32.mrb[52].mxu0 }
 0x297   :  { %v6849_v63 = vpop.f32.mrb[52].mxu1  ;;  %v6828_v0 = vpop.f32.mrb[53].mxu0 }
 0x298   :  { %v6850_v1 = vpop.f32.mrb[53].mxu1  ;;  %v6829_v2 = vadd.f32 %v6828_v0, %v6827_v62  ;;  %v6830_v4 = vpop.f32.mrb[54].mxu0 }
 0x299   :  { %v6851_v3 = vadd.f32 %v6850_v1, %v6849_v63  ;;  %v6852_v5 = vpop.f32.mrb[54].mxu1  ;;  %v6831_v6 = vpop.f32.mrb[55].mxu0 }
 0x29a   :  { %v6853_v7 = vpop.f32.mrb[55].mxu1  ;;  %v5451_v8 = vadd.f32 %v6829_v2, %v5411_v61 }
 0x29c   :  { %v5491_v9 = vadd.f32 %v6851_v3, %v5451_v8 }
 0x2b6   :  { %v6871_v10 = vpop.f32.mrb[56].mxu0 }
 0x2b7   :  { %v6893_v11 = vpop.f32.mrb[56].mxu1  ;;  %v6872_v12 = vpop.f32.mrb[57].mxu0 }
 0x2b8   :  { %v6873_v13 = vadd.f32 %v6872_v12, %v6871_v10  ;;  %v6894_v14 = vpop.f32.mrb[57].mxu1  ;;  %v6874_v15 = vpop.f32.mrb[58].mxu0 }
 0x2b9   :  { %v6895_v16 = vadd.f32 %v6894_v14, %v6893_v11  ;;  %v6896_v17 = vpop.f32.mrb[58].mxu1  ;;  %v6875_v18 = vpop.f32.mrb[59].mxu0 }
 0x2ba   :  { %v5531_v19 = vadd.f32 %v6873_v13, %v5491_v9  ;;  %v6897_v20 = vpop.f32.mrb[59].mxu1 }
 0x2bc   :  { %v5571_v21 = vadd.f32 %v6895_v16, %v5531_v19 }
 0x2d6   :  { %v6915_v22 = vpop.f32.mrb[60].mxu0 }
 0x2d7   :  { %v6937_v23 = vpop.f32.mrb[60].mxu1  ;;  %v6916_v24 = vpop.f32.mrb[61].mxu0 }
 0x2d8   :  { %v6917_v25 = vadd.f32 %v6916_v24, %v6915_v22  ;;  %v6938_v26 = vpop.f32.mrb[61].mxu1  ;;  %v6918_v27 = vpop.f32.mrb[62].mxu0 }
 0x2d9   :  { %v6939_v28 = vadd.f32 %v6938_v26, %v6937_v23  ;;  %v6940_v29 = vpop.f32.mrb[62].mxu1  ;;  %v6919_v30 = vpop.f32.mrb[63].mxu0 }
 0x2da   :  { %v5611_v31 = vadd.f32 %v6917_v25, %v5571_v21  ;;  %v6941_v32 = vpop.f32.mrb[63].mxu1 }
 0x2dc   :  { %v5651_v33 = vadd.f32 %v6939_v28, %v5611_v31 }
 0x2de   :  { %5657 = vst.msk [vmem:[%s9204_s3] sm:$0xff] %vm5656_vm0, %v5651_v33 }

</bundles_post_ra>
